<compile_context>
chip_gen: v7x
topology: tpu7x:2x2x1
jax: 0.10.0
libtpu: 0.0.40
codegen_flags: <defaults>
</compile_context>

<pallas_src>
import jax
import jax.numpy as jnp
from jax import lax
from jax.experimental import pallas as pl
from jax.experimental.pallas import tpu as pltpu


# ------------------------------ Pallas kernel ------------------------------ #

def fused_forward_kernel(x_ref, w1_ref, t1_ref, w2_ref, t2_ref,
                         wh_ref, bh_ref, out_ref, xpad_ref, feat_ref):
    """conv1(1->3,3x3,pad=1)+BN1+ReLU -> conv2(3->3,3x3)+BN2+ReLU -> flatten -> head.

    x_ref    : (B, H, W)      f32 VMEM   input (C_in == 1, channel squeezed)
    w1_ref   : (27,)          f32 SMEM   conv1 weights * BN1 scale, flat [co, ki, kj]
    t1_ref   : (3,)           f32 SMEM   folded conv1-bias/BN1 shift per channel
    w2_ref   : (81,)          f32 SMEM   conv2 weights * BN2 scale, flat [co, ci, ki, kj]
    t2_ref   : (3,)           f32 SMEM   folded conv2-bias/BN2 shift per channel
    wh_ref   : (O, F)         bf16 VMEM  head weight, untransposed (O=480, F=1176)
    bh_ref   : (1, O)         f32 VMEM   head bias
    out_ref  : (B, O)         f32 VMEM   output
    xpad_ref : (B, H+2, W+2)  f32 VMEM   scratch: zero-padded input
    feat_ref : (B, F)         f32 VMEM   scratch: lane-dense flattened features
    """
    B, H, W = x_ref.shape
    H2, W2 = H - 2, W - 2
    FC = H2 * W2                       # features per channel (row-major H2*W2)

    # --- pad=1 for conv1, done in-kernel via a VMEM scratch -----------------
    xpad_ref[...] = jnp.zeros(xpad_ref.shape, jnp.float32)
    xpad_ref[:, 1:H + 1, 1:W + 1] = x_ref[...]
    xp = xpad_ref[...]

    # --- conv1 (1->3, 3x3) + folded BN1 + ReLU ------------------------------
    # Hoist the 9 shifted windows of the padded input; reuse across channels.
    xwin = [[xp[:, ki:ki + H, kj:kj + W] for kj in range(3)] for ki in range(3)]
    h1 = []
    for co in range(3):
        acc = jnp.zeros((B, H, W), jnp.float32)
        for ki in range(3):
            for kj in range(3):
                acc = acc + w1_ref[co * 9 + ki * 3 + kj] * xwin[ki][kj]
        h1.append(jnp.maximum(acc + t1_ref[co], 0.0))

    # --- conv2 (3->3, 3x3, valid) + folded BN2 + ReLU -----------------------
    # Hoist the 27 shifted windows of h1; reuse across the 3 output channels.
    h1win = [[[h1[ci][:, ki:ki + H2, kj:kj + W2] for kj in range(3)]
              for ki in range(3)] for ci in range(3)]
    for co in range(3):
        acc = jnp.zeros((B, H2, W2), jnp.float32)
        for ci in range(3):
            for ki in range(3):
                for kj in range(3):
                    acc = acc + (w2_ref[co * 27 + ci * 9 + ki * 3 + kj]
                                 * h1win[ci][ki][kj])
        h2 = jnp.maximum(acc + t2_ref[co], 0.0)
        # PyTorch NCHW view(B,-1) order: flat index = co*H2*W2 + i*W2 + j.
        # Row-wise static stores into the lane-dense slab (avoids relying on
        # an unaligned lane-merging reshape inside the kernel).
        for i in range(H2):
            base = co * FC + i * W2
            feat_ref[:, base:base + W2] = h2[:, i, :]

    # --- head: (B, F) x (O, F)^T on the MXU (bf16 operands, f32 accumulate) -
    feat = feat_ref[...].astype(jnp.bfloat16)
    out = lax.dot_general(feat, wh_ref[...],
                          dimension_numbers=(((1,), (1,)), ((), ())),
                          preferred_element_type=jnp.float32)
    out_ref[...] = out + bh_ref[...]


# ------------------------------- JAX wrapper ------------------------------- #

def fold_params(params, eps=1e-5):
    """Fold conv biases + inference BatchNorm into the conv weights / shifts
    and prepare the head weight (bf16, untransposed).  Call ONCE per param set."""
    (w1, b1, g1, be1, m1, v1,
     w2, b2, g2, be2, m2, v2,
     wh, bh) = params
    s1 = g1 / jnp.sqrt(v1 + eps)
    s2 = g2 / jnp.sqrt(v2 + eps)
    w1f = (w1 * s1[:, None, None, None]).reshape(-1).astype(jnp.float32)   # (27,)
    w2f = (w2 * s2[:, None, None, None]).reshape(-1).astype(jnp.float32)   # (81,)
    t1 = (s1 * (b1 - m1) + be1).astype(jnp.float32)                        # (3,)
    t2 = (s2 * (b2 - m2) + be2).astype(jnp.float32)                        # (3,)
    wh_bf16 = wh.astype(jnp.bfloat16)          # (O, F) untransposed; halves HBM DMA
    bh2 = bh.reshape(1, -1).astype(jnp.float32)
    return w1f, t1, w2f, t2, wh_bf16, bh2


def bot_demineur_v2_forward(x, folded_params):
    """x: (B, 1, rows, cols) f32 NCHW. Returns (B, outputs) f32."""
    w1f, t1, w2f, t2, wh_bf16, bh2 = folded_params
    B, _, H, W = x.shape
    O = wh_bf16.shape[0]
    F = 3 * (H - 2) * (W - 2)

    smem = pl.BlockSpec(memory_space=pltpu.MemorySpace.SMEM)
    vmem = pl.BlockSpec(memory_space=pltpu.MemorySpace.VMEM)

    return pl.pallas_call(
        fused_forward_kernel,
        out_shape=jax.ShapeDtypeStruct((B, O), jnp.float32),
        in_specs=[vmem, smem, smem, smem, smem, vmem, vmem],
        out_specs=vmem,
        scratch_shapes=[
            pltpu.VMEM((B, H + 2, W + 2), jnp.float32),   # zero-padded input
            pltpu.VMEM((B, F), jnp.float32),              # flattened feature slab
        ],
    )(x[:, 0], w1f, t1, w2f, t2, wh_bf16, bh2)


# --------------------------- pure-JAX reference ---------------------------- #

def ref_forward(x, params):
    (w1, b1, g1, be1, m1, v1,
     w2, b2, g2, be2, m2, v2,
     wh, bh) = params
    eps = 1e-5
    dn = ('NCHW', 'OIHW', 'NCHW')

    def bn(y, g, be, m, v):
        return (g[None, :, None, None] * (y - m[None, :, None, None])
                / jnp.sqrt(v + eps)[None, :, None, None]
                + be[None, :, None, None])

    y = lax.conv_general_dilated(x, w1, (1, 1), ((1, 1), (1, 1)),
                                 dimension_numbers=dn) + b1[None, :, None, None]
    y = jnp.maximum(bn(y, g1, be1, m1, v1), 0.0)
    y = lax.conv_general_dilated(y, w2, (1, 1), ((0, 0), (0, 0)),
                                 dimension_numbers=dn) + b2[None, :, None, None]
    y = jnp.maximum(bn(y, g2, be2, m2, v2), 0.0)
    y = y.reshape(y.shape[0], -1)
    return y @ wh.T + bh


# ----------------------------------- main ----------------------------------- #

if __name__ == "__main__":
    rows, cols, outputs = 16, 30, 480
    B = 2
    lin_in = (rows - 2) * (cols - 2) * 3   # 1176

    keys = jax.random.split(jax.random.PRNGKey(0), 16)

    w1 = 0.2 * jax.random.normal(keys[0], (3, 1, 3, 3), jnp.float32)
    b1 = 0.1 * jax.random.normal(keys[1], (3,), jnp.float32)
    g1 = 1.0 + 0.1 * jax.random.normal(keys[2], (3,), jnp.float32)
    be1 = 0.1 * jax.random.normal(keys[3], (3,), jnp.float32)
    m1 = 0.1 * jax.random.normal(keys[4], (3,), jnp.float32)
    v1 = jax.random.uniform(keys[5], (3,), jnp.float32, 0.5, 1.5)

    w2 = 0.2 * jax.random.normal(keys[6], (3, 3, 3, 3), jnp.float32)
    b2 = 0.1 * jax.random.normal(keys[7], (3,), jnp.float32)
    g2 = 1.0 + 0.1 * jax.random.normal(keys[8], (3,), jnp.float32)
    be2 = 0.1 * jax.random.normal(keys[9], (3,), jnp.float32)
    m2 = 0.1 * jax.random.normal(keys[10], (3,), jnp.float32)
    v2 = jax.random.uniform(keys[11], (3,), jnp.float32, 0.5, 1.5)

    wh = 0.05 * jax.random.normal(keys[12], (outputs, lin_in), jnp.float32)
    bh = 0.1 * jax.random.normal(keys[13], (outputs,), jnp.float32)

    params = (w1, b1, g1, be1, m1, v1,
              w2, b2, g2, be2, m2, v2,
              wh, bh)

    x = jax.random.normal(keys[14], (B, 1, rows, cols), jnp.float32)

    folded = fold_params(params)           # one-time parameter preprocessing
    out = bot_demineur_v2_forward(x, folded)
    out = jax.block_until_ready(out)

    ref = ref_forward(x, params)
    assert out.shape == (B, outputs), out.shape
    assert jnp.allclose(out, ref, atol=2e-2, rtol=2e-2), \
        float(jnp.max(jnp.abs(out - ref)))

    print("KERNEL_OK")
</pallas_src>

<mosaic_0001>
module attributes {stable_mosaic.version = 11 : i64} {
  func.func @fused_forward_kernel(%arg0: memref<2x16x30xf32, #tpu.memory_space<vmem>>, %arg1: memref<27xf32, #tpu.memory_space<smem>>, %arg2: memref<3xf32, #tpu.memory_space<smem>>, %arg3: memref<81xf32, #tpu.memory_space<smem>>, %arg4: memref<3xf32, #tpu.memory_space<smem>>, %arg5: memref<480x1176xbf16, #tpu.memory_space<vmem>>, %arg6: memref<1x480xf32, #tpu.memory_space<vmem>>, %arg7: memref<2x480xf32, #tpu.memory_space<vmem>>, %arg8: memref<2x18x32xf32, #tpu.memory_space<vmem>>, %arg9: memref<2x1176xf32, #tpu.memory_space<vmem>>) attributes {dimension_semantics = [], scalar_prefetch = 0 : i64, scratch_operands = 2 : i64, tpu.core_type = #tpu.core_type<tc>} {
    %cst = arith.constant 0.000000e+00 : f32
    %0 = vector.broadcast %cst : f32 to vector<2x18x32xf32>
    %c0 = arith.constant 0 : index
    %c0_0 = arith.constant 0 : index
    %c0_1 = arith.constant 0 : index
    %1 = vector.load %arg8[%c0, %c0_0, %c0_1] : memref<2x18x32xf32, #tpu.memory_space<vmem>>, vector<2x18x32xf32>
    tpu.vector_store %arg8[%c0, %c0_0, %c0_1], %0 {strides = array<i32>} : memref<2x18x32xf32, #tpu.memory_space<vmem>>, vector<2x18x32xf32>,
    %c0_2 = arith.constant 0 : index
    %c0_3 = arith.constant 0 : index
    %c0_4 = arith.constant 0 : index
    %2 = vector.load %arg0[%c0_2, %c0_3, %c0_4] : memref<2x16x30xf32, #tpu.memory_space<vmem>>, vector<2x16x30xf32>
    %c0_5 = arith.constant 0 : index
    %c1 = arith.constant 1 : index
    %c1_6 = arith.constant 1 : index
    %3 = vector.load %arg8[%c0_5, %c1, %c1_6] : memref<2x18x32xf32, #tpu.memory_space<vmem>>, vector<2x16x30xf32>
    tpu.vector_store %arg8[%c0_5, %c1, %c1_6], %2 {strides = array<i32>} : memref<2x18x32xf32, #tpu.memory_space<vmem>>, vector<2x16x30xf32>,
    %c0_7 = arith.constant 0 : index
    %c0_8 = arith.constant 0 : index
    %c0_9 = arith.constant 0 : index
    %4 = vector.load %arg8[%c0_7, %c0_8, %c0_9] : memref<2x18x32xf32, #tpu.memory_space<vmem>>, vector<2x18x32xf32>
    %5 = vector.extract_strided_slice %4 {offsets = [0, 0, 0], sizes = [2, 16, 30], strides = [1, 1, 1]} : vector<2x18x32xf32> to vector<2x16x30xf32>
    %6 = vector.extract_strided_slice %4 {offsets = [0, 0, 1], sizes = [2, 16, 30], strides = [1, 1, 1]} : vector<2x18x32xf32> to vector<2x16x30xf32>
    %7 = vector.extract_strided_slice %4 {offsets = [0, 0, 2], sizes = [2, 16, 30], strides = [1, 1, 1]} : vector<2x18x32xf32> to vector<2x16x30xf32>
    %8 = vector.extract_strided_slice %4 {offsets = [0, 1, 0], sizes = [2, 16, 30], strides = [1, 1, 1]} : vector<2x18x32xf32> to vector<2x16x30xf32>
    %9 = vector.extract_strided_slice %4 {offsets = [0, 1, 1], sizes = [2, 16, 30], strides = [1, 1, 1]} : vector<2x18x32xf32> to vector<2x16x30xf32>
    %10 = vector.extract_strided_slice %4 {offsets = [0, 1, 2], sizes = [2, 16, 30], strides = [1, 1, 1]} : vector<2x18x32xf32> to vector<2x16x30xf32>
    %11 = vector.extract_strided_slice %4 {offsets = [0, 2, 0], sizes = [2, 16, 30], strides = [1, 1, 1]} : vector<2x18x32xf32> to vector<2x16x30xf32>
    %12 = vector.extract_strided_slice %4 {offsets = [0, 2, 1], sizes = [2, 16, 30], strides = [1, 1, 1]} : vector<2x18x32xf32> to vector<2x16x30xf32>
    %13 = vector.extract_strided_slice %4 {offsets = [0, 2, 2], sizes = [2, 16, 30], strides = [1, 1, 1]} : vector<2x18x32xf32> to vector<2x16x30xf32>
    %cst_10 = arith.constant 0.000000e+00 : f32
    %14 = vector.broadcast %cst_10 : f32 to vector<2x16x30xf32>
    %c0_11 = arith.constant 0 : index
    %15 = memref.load %arg1[%c0_11] : memref<27xf32, #tpu.memory_space<smem>>
    %16 = vector.broadcast %15 : f32 to vector<2x16x30xf32>
    %17 = arith.mulf %16, %5 : vector<2x16x30xf32>
    %18 = arith.addf %14, %17 : vector<2x16x30xf32>
    %c1_12 = arith.constant 1 : index
    %19 = memref.load %arg1[%c1_12] : memref<27xf32, #tpu.memory_space<smem>>
    %20 = vector.broadcast %19 : f32 to vector<2x16x30xf32>
    %21 = arith.mulf %20, %6 : vector<2x16x30xf32>
    %22 = arith.addf %18, %21 : vector<2x16x30xf32>
    %c2 = arith.constant 2 : index
    %23 = memref.load %arg1[%c2] : memref<27xf32, #tpu.memory_space<smem>>
    %24 = vector.broadcast %23 : f32 to vector<2x16x30xf32>
    %25 = arith.mulf %24, %7 : vector<2x16x30xf32>
    %26 = arith.addf %22, %25 : vector<2x16x30xf32>
    %c3 = arith.constant 3 : index
    %27 = memref.load %arg1[%c3] : memref<27xf32, #tpu.memory_space<smem>>
    %28 = vector.broadcast %27 : f32 to vector<2x16x30xf32>
    %29 = arith.mulf %28, %8 : vector<2x16x30xf32>
    %30 = arith.addf %26, %29 : vector<2x16x30xf32>
    %c4 = arith.constant 4 : index
    %31 = memref.load %arg1[%c4] : memref<27xf32, #tpu.memory_space<smem>>
    %32 = vector.broadcast %31 : f32 to vector<2x16x30xf32>
    %33 = arith.mulf %32, %9 : vector<2x16x30xf32>
    %34 = arith.addf %30, %33 : vector<2x16x30xf32>
    %c5 = arith.constant 5 : index
    %35 = memref.load %arg1[%c5] : memref<27xf32, #tpu.memory_space<smem>>
    %36 = vector.broadcast %35 : f32 to vector<2x16x30xf32>
    %37 = arith.mulf %36, %10 : vector<2x16x30xf32>
    %38 = arith.addf %34, %37 : vector<2x16x30xf32>
    %c6 = arith.constant 6 : index
    %39 = memref.load %arg1[%c6] : memref<27xf32, #tpu.memory_space<smem>>
    %40 = vector.broadcast %39 : f32 to vector<2x16x30xf32>
    %41 = arith.mulf %40, %11 : vector<2x16x30xf32>
    %42 = arith.addf %38, %41 : vector<2x16x30xf32>
    %c7 = arith.constant 7 : index
    %43 = memref.load %arg1[%c7] : memref<27xf32, #tpu.memory_space<smem>>
    %44 = vector.broadcast %43 : f32 to vector<2x16x30xf32>
    %45 = arith.mulf %44, %12 : vector<2x16x30xf32>
    %46 = arith.addf %42, %45 : vector<2x16x30xf32>
    %c8 = arith.constant 8 : index
    %47 = memref.load %arg1[%c8] : memref<27xf32, #tpu.memory_space<smem>>
    %48 = vector.broadcast %47 : f32 to vector<2x16x30xf32>
    %49 = arith.mulf %48, %13 : vector<2x16x30xf32>
    %50 = arith.addf %46, %49 : vector<2x16x30xf32>
    %c0_13 = arith.constant 0 : index
    %51 = memref.load %arg2[%c0_13] : memref<3xf32, #tpu.memory_space<smem>>
    %52 = vector.broadcast %51 : f32 to vector<2x16x30xf32>
    %53 = arith.addf %50, %52 : vector<2x16x30xf32>
    %cst_14 = arith.constant 0.000000e+00 : f32
    %54 = vector.broadcast %cst_14 : f32 to vector<2x16x30xf32>
    %55 = arith.maximumf %53, %54 : vector<2x16x30xf32>
    %cst_15 = arith.constant 0.000000e+00 : f32
    %56 = vector.broadcast %cst_15 : f32 to vector<2x16x30xf32>
    %c9 = arith.constant 9 : index
    %57 = memref.load %arg1[%c9] : memref<27xf32, #tpu.memory_space<smem>>
    %58 = vector.broadcast %57 : f32 to vector<2x16x30xf32>
    %59 = arith.mulf %58, %5 : vector<2x16x30xf32>
    %60 = arith.addf %56, %59 : vector<2x16x30xf32>
    %c10 = arith.constant 10 : index
    %61 = memref.load %arg1[%c10] : memref<27xf32, #tpu.memory_space<smem>>
    %62 = vector.broadcast %61 : f32 to vector<2x16x30xf32>
    %63 = arith.mulf %62, %6 : vector<2x16x30xf32>
    %64 = arith.addf %60, %63 : vector<2x16x30xf32>
    %c11 = arith.constant 11 : index
    %65 = memref.load %arg1[%c11] : memref<27xf32, #tpu.memory_space<smem>>
    %66 = vector.broadcast %65 : f32 to vector<2x16x30xf32>
    %67 = arith.mulf %66, %7 : vector<2x16x30xf32>
    %68 = arith.addf %64, %67 : vector<2x16x30xf32>
    %c12 = arith.constant 12 : index
    %69 = memref.load %arg1[%c12] : memref<27xf32, #tpu.memory_space<smem>>
    %70 = vector.broadcast %69 : f32 to vector<2x16x30xf32>
    %71 = arith.mulf %70, %8 : vector<2x16x30xf32>
    %72 = arith.addf %68, %71 : vector<2x16x30xf32>
    %c13 = arith.constant 13 : index
    %73 = memref.load %arg1[%c13] : memref<27xf32, #tpu.memory_space<smem>>
    %74 = vector.broadcast %73 : f32 to vector<2x16x30xf32>
    %75 = arith.mulf %74, %9 : vector<2x16x30xf32>
    %76 = arith.addf %72, %75 : vector<2x16x30xf32>
    %c14 = arith.constant 14 : index
    %77 = memref.load %arg1[%c14] : memref<27xf32, #tpu.memory_space<smem>>
    %78 = vector.broadcast %77 : f32 to vector<2x16x30xf32>
    %79 = arith.mulf %78, %10 : vector<2x16x30xf32>
    %80 = arith.addf %76, %79 : vector<2x16x30xf32>
    %c15 = arith.constant 15 : index
    %81 = memref.load %arg1[%c15] : memref<27xf32, #tpu.memory_space<smem>>
    %82 = vector.broadcast %81 : f32 to vector<2x16x30xf32>
    %83 = arith.mulf %82, %11 : vector<2x16x30xf32>
    %84 = arith.addf %80, %83 : vector<2x16x30xf32>
    %c16 = arith.constant 16 : index
    %85 = memref.load %arg1[%c16] : memref<27xf32, #tpu.memory_space<smem>>
    %86 = vector.broadcast %85 : f32 to vector<2x16x30xf32>
    %87 = arith.mulf %86, %12 : vector<2x16x30xf32>
    %88 = arith.addf %84, %87 : vector<2x16x30xf32>
    %c17 = arith.constant 17 : index
    %89 = memref.load %arg1[%c17] : memref<27xf32, #tpu.memory_space<smem>>
    %90 = vector.broadcast %89 : f32 to vector<2x16x30xf32>
    %91 = arith.mulf %90, %13 : vector<2x16x30xf32>
    %92 = arith.addf %88, %91 : vector<2x16x30xf32>
    %c1_16 = arith.constant 1 : index
    %93 = memref.load %arg2[%c1_16] : memref<3xf32, #tpu.memory_space<smem>>
    %94 = vector.broadcast %93 : f32 to vector<2x16x30xf32>
    %95 = arith.addf %92, %94 : vector<2x16x30xf32>
    %cst_17 = arith.constant 0.000000e+00 : f32
    %96 = vector.broadcast %cst_17 : f32 to vector<2x16x30xf32>
    %97 = arith.maximumf %95, %96 : vector<2x16x30xf32>
    %cst_18 = arith.constant 0.000000e+00 : f32
    %98 = vector.broadcast %cst_18 : f32 to vector<2x16x30xf32>
    %c18 = arith.constant 18 : index
    %99 = memref.load %arg1[%c18] : memref<27xf32, #tpu.memory_space<smem>>
    %100 = vector.broadcast %99 : f32 to vector<2x16x30xf32>
    %101 = arith.mulf %100, %5 : vector<2x16x30xf32>
    %102 = arith.addf %98, %101 : vector<2x16x30xf32>
    %c19 = arith.constant 19 : index
    %103 = memref.load %arg1[%c19] : memref<27xf32, #tpu.memory_space<smem>>
    %104 = vector.broadcast %103 : f32 to vector<2x16x30xf32>
    %105 = arith.mulf %104, %6 : vector<2x16x30xf32>
    %106 = arith.addf %102, %105 : vector<2x16x30xf32>
    %c20 = arith.constant 20 : index
    %107 = memref.load %arg1[%c20] : memref<27xf32, #tpu.memory_space<smem>>
    %108 = vector.broadcast %107 : f32 to vector<2x16x30xf32>
    %109 = arith.mulf %108, %7 : vector<2x16x30xf32>
    %110 = arith.addf %106, %109 : vector<2x16x30xf32>
    %c21 = arith.constant 21 : index
    %111 = memref.load %arg1[%c21] : memref<27xf32, #tpu.memory_space<smem>>
    %112 = vector.broadcast %111 : f32 to vector<2x16x30xf32>
    %113 = arith.mulf %112, %8 : vector<2x16x30xf32>
    %114 = arith.addf %110, %113 : vector<2x16x30xf32>
    %c22 = arith.constant 22 : index
    %115 = memref.load %arg1[%c22] : memref<27xf32, #tpu.memory_space<smem>>
    %116 = vector.broadcast %115 : f32 to vector<2x16x30xf32>
    %117 = arith.mulf %116, %9 : vector<2x16x30xf32>
    %118 = arith.addf %114, %117 : vector<2x16x30xf32>
    %c23 = arith.constant 23 : index
    %119 = memref.load %arg1[%c23] : memref<27xf32, #tpu.memory_space<smem>>
    %120 = vector.broadcast %119 : f32 to vector<2x16x30xf32>
    %121 = arith.mulf %120, %10 : vector<2x16x30xf32>
    %122 = arith.addf %118, %121 : vector<2x16x30xf32>
    %c24 = arith.constant 24 : index
    %123 = memref.load %arg1[%c24] : memref<27xf32, #tpu.memory_space<smem>>
    %124 = vector.broadcast %123 : f32 to vector<2x16x30xf32>
    %125 = arith.mulf %124, %11 : vector<2x16x30xf32>
    %126 = arith.addf %122, %125 : vector<2x16x30xf32>
    %c25 = arith.constant 25 : index
    %127 = memref.load %arg1[%c25] : memref<27xf32, #tpu.memory_space<smem>>
    %128 = vector.broadcast %127 : f32 to vector<2x16x30xf32>
    %129 = arith.mulf %128, %12 : vector<2x16x30xf32>
    %130 = arith.addf %126, %129 : vector<2x16x30xf32>
    %c26 = arith.constant 26 : index
    %131 = memref.load %arg1[%c26] : memref<27xf32, #tpu.memory_space<smem>>
    %132 = vector.broadcast %131 : f32 to vector<2x16x30xf32>
    %133 = arith.mulf %132, %13 : vector<2x16x30xf32>
    %134 = arith.addf %130, %133 : vector<2x16x30xf32>
    %c2_19 = arith.constant 2 : index
    %135 = memref.load %arg2[%c2_19] : memref<3xf32, #tpu.memory_space<smem>>
    %136 = vector.broadcast %135 : f32 to vector<2x16x30xf32>
    %137 = arith.addf %134, %136 : vector<2x16x30xf32>
    %cst_20 = arith.constant 0.000000e+00 : f32
    %138 = vector.broadcast %cst_20 : f32 to vector<2x16x30xf32>
    %139 = arith.maximumf %137, %138 : vector<2x16x30xf32>
    %140 = vector.extract_strided_slice %55 {offsets = [0, 0, 0], sizes = [2, 14, 28], strides = [1, 1, 1]} : vector<2x16x30xf32> to vector<2x14x28xf32>
    %141 = vector.extract_strided_slice %55 {offsets = [0, 0, 1], sizes = [2, 14, 28], strides = [1, 1, 1]} : vector<2x16x30xf32> to vector<2x14x28xf32>
    %142 = vector.extract_strided_slice %55 {offsets = [0, 0, 2], sizes = [2, 14, 28], strides = [1, 1, 1]} : vector<2x16x30xf32> to vector<2x14x28xf32>
    %143 = vector.extract_strided_slice %55 {offsets = [0, 1, 0], sizes = [2, 14, 28], strides = [1, 1, 1]} : vector<2x16x30xf32> to vector<2x14x28xf32>
    %144 = vector.extract_strided_slice %55 {offsets = [0, 1, 1], sizes = [2, 14, 28], strides = [1, 1, 1]} : vector<2x16x30xf32> to vector<2x14x28xf32>
    %145 = vector.extract_strided_slice %55 {offsets = [0, 1, 2], sizes = [2, 14, 28], strides = [1, 1, 1]} : vector<2x16x30xf32> to vector<2x14x28xf32>
    %146 = vector.extract_strided_slice %55 {offsets = [0, 2, 0], sizes = [2, 14, 28], strides = [1, 1, 1]} : vector<2x16x30xf32> to vector<2x14x28xf32>
    %147 = vector.extract_strided_slice %55 {offsets = [0, 2, 1], sizes = [2, 14, 28], strides = [1, 1, 1]} : vector<2x16x30xf32> to vector<2x14x28xf32>
    %148 = vector.extract_strided_slice %55 {offsets = [0, 2, 2], sizes = [2, 14, 28], strides = [1, 1, 1]} : vector<2x16x30xf32> to vector<2x14x28xf32>
    %149 = vector.extract_strided_slice %97 {offsets = [0, 0, 0], sizes = [2, 14, 28], strides = [1, 1, 1]} : vector<2x16x30xf32> to vector<2x14x28xf32>
    %150 = vector.extract_strided_slice %97 {offsets = [0, 0, 1], sizes = [2, 14, 28], strides = [1, 1, 1]} : vector<2x16x30xf32> to vector<2x14x28xf32>
    %151 = vector.extract_strided_slice %97 {offsets = [0, 0, 2], sizes = [2, 14, 28], strides = [1, 1, 1]} : vector<2x16x30xf32> to vector<2x14x28xf32>
    %152 = vector.extract_strided_slice %97 {offsets = [0, 1, 0], sizes = [2, 14, 28], strides = [1, 1, 1]} : vector<2x16x30xf32> to vector<2x14x28xf32>
    %153 = vector.extract_strided_slice %97 {offsets = [0, 1, 1], sizes = [2, 14, 28], strides = [1, 1, 1]} : vector<2x16x30xf32> to vector<2x14x28xf32>
    %154 = vector.extract_strided_slice %97 {offsets = [0, 1, 2], sizes = [2, 14, 28], strides = [1, 1, 1]} : vector<2x16x30xf32> to vector<2x14x28xf32>
    %155 = vector.extract_strided_slice %97 {offsets = [0, 2, 0], sizes = [2, 14, 28], strides = [1, 1, 1]} : vector<2x16x30xf32> to vector<2x14x28xf32>
    %156 = vector.extract_strided_slice %97 {offsets = [0, 2, 1], sizes = [2, 14, 28], strides = [1, 1, 1]} : vector<2x16x30xf32> to vector<2x14x28xf32>
    %157 = vector.extract_strided_slice %97 {offsets = [0, 2, 2], sizes = [2, 14, 28], strides = [1, 1, 1]} : vector<2x16x30xf32> to vector<2x14x28xf32>
    %158 = vector.extract_strided_slice %139 {offsets = [0, 0, 0], sizes = [2, 14, 28], strides = [1, 1, 1]} : vector<2x16x30xf32> to vector<2x14x28xf32>
    %159 = vector.extract_strided_slice %139 {offsets = [0, 0, 1], sizes = [2, 14, 28], strides = [1, 1, 1]} : vector<2x16x30xf32> to vector<2x14x28xf32>
    %160 = vector.extract_strided_slice %139 {offsets = [0, 0, 2], sizes = [2, 14, 28], strides = [1, 1, 1]} : vector<2x16x30xf32> to vector<2x14x28xf32>
    %161 = vector.extract_strided_slice %139 {offsets = [0, 1, 0], sizes = [2, 14, 28], strides = [1, 1, 1]} : vector<2x16x30xf32> to vector<2x14x28xf32>
    %162 = vector.extract_strided_slice %139 {offsets = [0, 1, 1], sizes = [2, 14, 28], strides = [1, 1, 1]} : vector<2x16x30xf32> to vector<2x14x28xf32>
    %163 = vector.extract_strided_slice %139 {offsets = [0, 1, 2], sizes = [2, 14, 28], strides = [1, 1, 1]} : vector<2x16x30xf32> to vector<2x14x28xf32>
    %164 = vector.extract_strided_slice %139 {offsets = [0, 2, 0], sizes = [2, 14, 28], strides = [1, 1, 1]} : vector<2x16x30xf32> to vector<2x14x28xf32>
    %165 = vector.extract_strided_slice %139 {offsets = [0, 2, 1], sizes = [2, 14, 28], strides = [1, 1, 1]} : vector<2x16x30xf32> to vector<2x14x28xf32>
    %166 = vector.extract_strided_slice %139 {offsets = [0, 2, 2], sizes = [2, 14, 28], strides = [1, 1, 1]} : vector<2x16x30xf32> to vector<2x14x28xf32>
    %cst_21 = arith.constant 0.000000e+00 : f32
    %167 = vector.broadcast %cst_21 : f32 to vector<2x14x28xf32>
    %c0_22 = arith.constant 0 : index
    %168 = memref.load %arg3[%c0_22] : memref<81xf32, #tpu.memory_space<smem>>
    %169 = vector.broadcast %168 : f32 to vector<2x14x28xf32>
    %170 = arith.mulf %169, %140 : vector<2x14x28xf32>
    %171 = arith.addf %167, %170 : vector<2x14x28xf32>
    %c1_23 = arith.constant 1 : index
    %172 = memref.load %arg3[%c1_23] : memref<81xf32, #tpu.memory_space<smem>>
    %173 = vector.broadcast %172 : f32 to vector<2x14x28xf32>
    %174 = arith.mulf %173, %141 : vector<2x14x28xf32>
    %175 = arith.addf %171, %174 : vector<2x14x28xf32>
    %c2_24 = arith.constant 2 : index
    %176 = memref.load %arg3[%c2_24] : memref<81xf32, #tpu.memory_space<smem>>
    %177 = vector.broadcast %176 : f32 to vector<2x14x28xf32>
    %178 = arith.mulf %177, %142 : vector<2x14x28xf32>
    %179 = arith.addf %175, %178 : vector<2x14x28xf32>
    %c3_25 = arith.constant 3 : index
    %180 = memref.load %arg3[%c3_25] : memref<81xf32, #tpu.memory_space<smem>>
    %181 = vector.broadcast %180 : f32 to vector<2x14x28xf32>
    %182 = arith.mulf %181, %143 : vector<2x14x28xf32>
    %183 = arith.addf %179, %182 : vector<2x14x28xf32>
    %c4_26 = arith.constant 4 : index
    %184 = memref.load %arg3[%c4_26] : memref<81xf32, #tpu.memory_space<smem>>
    %185 = vector.broadcast %184 : f32 to vector<2x14x28xf32>
    %186 = arith.mulf %185, %144 : vector<2x14x28xf32>
    %187 = arith.addf %183, %186 : vector<2x14x28xf32>
    %c5_27 = arith.constant 5 : index
    %188 = memref.load %arg3[%c5_27] : memref<81xf32, #tpu.memory_space<smem>>
    %189 = vector.broadcast %188 : f32 to vector<2x14x28xf32>
    %190 = arith.mulf %189, %145 : vector<2x14x28xf32>
    %191 = arith.addf %187, %190 : vector<2x14x28xf32>
    %c6_28 = arith.constant 6 : index
    %192 = memref.load %arg3[%c6_28] : memref<81xf32, #tpu.memory_space<smem>>
    %193 = vector.broadcast %192 : f32 to vector<2x14x28xf32>
    %194 = arith.mulf %193, %146 : vector<2x14x28xf32>
    %195 = arith.addf %191, %194 : vector<2x14x28xf32>
    %c7_29 = arith.constant 7 : index
    %196 = memref.load %arg3[%c7_29] : memref<81xf32, #tpu.memory_space<smem>>
    %197 = vector.broadcast %196 : f32 to vector<2x14x28xf32>
    %198 = arith.mulf %197, %147 : vector<2x14x28xf32>
    %199 = arith.addf %195, %198 : vector<2x14x28xf32>
    %c8_30 = arith.constant 8 : index
    %200 = memref.load %arg3[%c8_30] : memref<81xf32, #tpu.memory_space<smem>>
    %201 = vector.broadcast %200 : f32 to vector<2x14x28xf32>
    %202 = arith.mulf %201, %148 : vector<2x14x28xf32>
    %203 = arith.addf %199, %202 : vector<2x14x28xf32>
    %c9_31 = arith.constant 9 : index
    %204 = memref.load %arg3[%c9_31] : memref<81xf32, #tpu.memory_space<smem>>
    %205 = vector.broadcast %204 : f32 to vector<2x14x28xf32>
    %206 = arith.mulf %205, %149 : vector<2x14x28xf32>
    %207 = arith.addf %203, %206 : vector<2x14x28xf32>
    %c10_32 = arith.constant 10 : index
    %208 = memref.load %arg3[%c10_32] : memref<81xf32, #tpu.memory_space<smem>>
    %209 = vector.broadcast %208 : f32 to vector<2x14x28xf32>
    %210 = arith.mulf %209, %150 : vector<2x14x28xf32>
    %211 = arith.addf %207, %210 : vector<2x14x28xf32>
    %c11_33 = arith.constant 11 : index
    %212 = memref.load %arg3[%c11_33] : memref<81xf32, #tpu.memory_space<smem>>
    %213 = vector.broadcast %212 : f32 to vector<2x14x28xf32>
    %214 = arith.mulf %213, %151 : vector<2x14x28xf32>
    %215 = arith.addf %211, %214 : vector<2x14x28xf32>
    %c12_34 = arith.constant 12 : index
    %216 = memref.load %arg3[%c12_34] : memref<81xf32, #tpu.memory_space<smem>>
    %217 = vector.broadcast %216 : f32 to vector<2x14x28xf32>
    %218 = arith.mulf %217, %152 : vector<2x14x28xf32>
    %219 = arith.addf %215, %218 : vector<2x14x28xf32>
    %c13_35 = arith.constant 13 : index
    %220 = memref.load %arg3[%c13_35] : memref<81xf32, #tpu.memory_space<smem>>
    %221 = vector.broadcast %220 : f32 to vector<2x14x28xf32>
    %222 = arith.mulf %221, %153 : vector<2x14x28xf32>
    %223 = arith.addf %219, %222 : vector<2x14x28xf32>
    %c14_36 = arith.constant 14 : index
    %224 = memref.load %arg3[%c14_36] : memref<81xf32, #tpu.memory_space<smem>>
    %225 = vector.broadcast %224 : f32 to vector<2x14x28xf32>
    %226 = arith.mulf %225, %154 : vector<2x14x28xf32>
    %227 = arith.addf %223, %226 : vector<2x14x28xf32>
    %c15_37 = arith.constant 15 : index
    %228 = memref.load %arg3[%c15_37] : memref<81xf32, #tpu.memory_space<smem>>
    %229 = vector.broadcast %228 : f32 to vector<2x14x28xf32>
    %230 = arith.mulf %229, %155 : vector<2x14x28xf32>
    %231 = arith.addf %227, %230 : vector<2x14x28xf32>
    %c16_38 = arith.constant 16 : index
    %232 = memref.load %arg3[%c16_38] : memref<81xf32, #tpu.memory_space<smem>>
    %233 = vector.broadcast %232 : f32 to vector<2x14x28xf32>
    %234 = arith.mulf %233, %156 : vector<2x14x28xf32>
    %235 = arith.addf %231, %234 : vector<2x14x28xf32>
    %c17_39 = arith.constant 17 : index
    %236 = memref.load %arg3[%c17_39] : memref<81xf32, #tpu.memory_space<smem>>
    %237 = vector.broadcast %236 : f32 to vector<2x14x28xf32>
    %238 = arith.mulf %237, %157 : vector<2x14x28xf32>
    %239 = arith.addf %235, %238 : vector<2x14x28xf32>
    %c18_40 = arith.constant 18 : index
    %240 = memref.load %arg3[%c18_40] : memref<81xf32, #tpu.memory_space<smem>>
    %241 = vector.broadcast %240 : f32 to vector<2x14x28xf32>
    %242 = arith.mulf %241, %158 : vector<2x14x28xf32>
    %243 = arith.addf %239, %242 : vector<2x14x28xf32>
    %c19_41 = arith.constant 19 : index
    %244 = memref.load %arg3[%c19_41] : memref<81xf32, #tpu.memory_space<smem>>
    %245 = vector.broadcast %244 : f32 to vector<2x14x28xf32>
    %246 = arith.mulf %245, %159 : vector<2x14x28xf32>
    %247 = arith.addf %243, %246 : vector<2x14x28xf32>
    %c20_42 = arith.constant 20 : index
    %248 = memref.load %arg3[%c20_42] : memref<81xf32, #tpu.memory_space<smem>>
    %249 = vector.broadcast %248 : f32 to vector<2x14x28xf32>
    %250 = arith.mulf %249, %160 : vector<2x14x28xf32>
    %251 = arith.addf %247, %250 : vector<2x14x28xf32>
    %c21_43 = arith.constant 21 : index
    %252 = memref.load %arg3[%c21_43] : memref<81xf32, #tpu.memory_space<smem>>
    %253 = vector.broadcast %252 : f32 to vector<2x14x28xf32>
    %254 = arith.mulf %253, %161 : vector<2x14x28xf32>
    %255 = arith.addf %251, %254 : vector<2x14x28xf32>
    %c22_44 = arith.constant 22 : index
    %256 = memref.load %arg3[%c22_44] : memref<81xf32, #tpu.memory_space<smem>>
    %257 = vector.broadcast %256 : f32 to vector<2x14x28xf32>
    %258 = arith.mulf %257, %162 : vector<2x14x28xf32>
    %259 = arith.addf %255, %258 : vector<2x14x28xf32>
    %c23_45 = arith.constant 23 : index
    %260 = memref.load %arg3[%c23_45] : memref<81xf32, #tpu.memory_space<smem>>
    %261 = vector.broadcast %260 : f32 to vector<2x14x28xf32>
    %262 = arith.mulf %261, %163 : vector<2x14x28xf32>
    %263 = arith.addf %259, %262 : vector<2x14x28xf32>
    %c24_46 = arith.constant 24 : index
    %264 = memref.load %arg3[%c24_46] : memref<81xf32, #tpu.memory_space<smem>>
    %265 = vector.broadcast %264 : f32 to vector<2x14x28xf32>
    %266 = arith.mulf %265, %164 : vector<2x14x28xf32>
    %267 = arith.addf %263, %266 : vector<2x14x28xf32>
    %c25_47 = arith.constant 25 : index
    %268 = memref.load %arg3[%c25_47] : memref<81xf32, #tpu.memory_space<smem>>
    %269 = vector.broadcast %268 : f32 to vector<2x14x28xf32>
    %270 = arith.mulf %269, %165 : vector<2x14x28xf32>
    %271 = arith.addf %267, %270 : vector<2x14x28xf32>
    %c26_48 = arith.constant 26 : index
    %272 = memref.load %arg3[%c26_48] : memref<81xf32, #tpu.memory_space<smem>>
    %273 = vector.broadcast %272 : f32 to vector<2x14x28xf32>
    %274 = arith.mulf %273, %166 : vector<2x14x28xf32>
    %275 = arith.addf %271, %274 : vector<2x14x28xf32>
    %c0_49 = arith.constant 0 : index
    %276 = memref.load %arg4[%c0_49] : memref<3xf32, #tpu.memory_space<smem>>
    %277 = vector.broadcast %276 : f32 to vector<2x14x28xf32>
    %278 = arith.addf %275, %277 : vector<2x14x28xf32>
    %cst_50 = arith.constant 0.000000e+00 : f32
    %279 = vector.broadcast %cst_50 : f32 to vector<2x14x28xf32>
    %280 = arith.maximumf %278, %279 : vector<2x14x28xf32>
    %281 = vector.extract_strided_slice %280 {offsets = [0, 0, 0], sizes = [2, 1, 28], strides = [1, 1, 1]} : vector<2x14x28xf32> to vector<2x1x28xf32>
    %282 = vector.shape_cast %281 : vector<2x1x28xf32> to vector<2x28xf32>
    %c0_51 = arith.constant 0 : index
    %c0_52 = arith.constant 0 : index
    %283 = vector.load %arg9[%c0_51, %c0_52] : memref<2x1176xf32, #tpu.memory_space<vmem>>, vector<2x28xf32>
    tpu.vector_store %arg9[%c0_51, %c0_52], %282 {strides = array<i32>} : memref<2x1176xf32, #tpu.memory_space<vmem>>, vector<2x28xf32>,
    %284 = vector.extract_strided_slice %280 {offsets = [0, 1, 0], sizes = [2, 1, 28], strides = [1, 1, 1]} : vector<2x14x28xf32> to vector<2x1x28xf32>
    %285 = vector.shape_cast %284 : vector<2x1x28xf32> to vector<2x28xf32>
    %c0_53 = arith.constant 0 : index
    %c28 = arith.constant 28 : index
    %286 = vector.load %arg9[%c0_53, %c28] : memref<2x1176xf32, #tpu.memory_space<vmem>>, vector<2x28xf32>
    tpu.vector_store %arg9[%c0_53, %c28], %285 {strides = array<i32>} : memref<2x1176xf32, #tpu.memory_space<vmem>>, vector<2x28xf32>,
    %287 = vector.extract_strided_slice %280 {offsets = [0, 2, 0], sizes = [2, 1, 28], strides = [1, 1, 1]} : vector<2x14x28xf32> to vector<2x1x28xf32>
    %288 = vector.shape_cast %287 : vector<2x1x28xf32> to vector<2x28xf32>
    %c0_54 = arith.constant 0 : index
    %c56 = arith.constant 56 : index
    %289 = vector.load %arg9[%c0_54, %c56] : memref<2x1176xf32, #tpu.memory_space<vmem>>, vector<2x28xf32>
    tpu.vector_store %arg9[%c0_54, %c56], %288 {strides = array<i32>} : memref<2x1176xf32, #tpu.memory_space<vmem>>, vector<2x28xf32>,
    %290 = vector.extract_strided_slice %280 {offsets = [0, 3, 0], sizes = [2, 1, 28], strides = [1, 1, 1]} : vector<2x14x28xf32> to vector<2x1x28xf32>
    %291 = vector.shape_cast %290 : vector<2x1x28xf32> to vector<2x28xf32>
    %c0_55 = arith.constant 0 : index
    %c84 = arith.constant 84 : index
    %292 = vector.load %arg9[%c0_55, %c84] : memref<2x1176xf32, #tpu.memory_space<vmem>>, vector<2x28xf32>
    tpu.vector_store %arg9[%c0_55, %c84], %291 {strides = array<i32>} : memref<2x1176xf32, #tpu.memory_space<vmem>>, vector<2x28xf32>,
    %293 = vector.extract_strided_slice %280 {offsets = [0, 4, 0], sizes = [2, 1, 28], strides = [1, 1, 1]} : vector<2x14x28xf32> to vector<2x1x28xf32>
    %294 = vector.shape_cast %293 : vector<2x1x28xf32> to vector<2x28xf32>
    %c0_56 = arith.constant 0 : index
    %c112 = arith.constant 112 : index
    %295 = vector.load %arg9[%c0_56, %c112] : memref<2x1176xf32, #tpu.memory_space<vmem>>, vector<2x28xf32>
    tpu.vector_store %arg9[%c0_56, %c112], %294 {strides = array<i32>} : memref<2x1176xf32, #tpu.memory_space<vmem>>, vector<2x28xf32>,
    %296 = vector.extract_strided_slice %280 {offsets = [0, 5, 0], sizes = [2, 1, 28], strides = [1, 1, 1]} : vector<2x14x28xf32> to vector<2x1x28xf32>
    %297 = vector.shape_cast %296 : vector<2x1x28xf32> to vector<2x28xf32>
    %c0_57 = arith.constant 0 : index
    %c140 = arith.constant 140 : index
    %298 = vector.load %arg9[%c0_57, %c140] : memref<2x1176xf32, #tpu.memory_space<vmem>>, vector<2x28xf32>
    tpu.vector_store %arg9[%c0_57, %c140], %297 {strides = array<i32>} : memref<2x1176xf32, #tpu.memory_space<vmem>>, vector<2x28xf32>,
    %299 = vector.extract_strided_slice %280 {offsets = [0, 6, 0], sizes = [2, 1, 28], strides = [1, 1, 1]} : vector<2x14x28xf32> to vector<2x1x28xf32>
    %300 = vector.shape_cast %299 : vector<2x1x28xf32> to vector<2x28xf32>
    %c0_58 = arith.constant 0 : index
    %c168 = arith.constant 168 : index
    %301 = vector.load %arg9[%c0_58, %c168] : memref<2x1176xf32, #tpu.memory_space<vmem>>, vector<2x28xf32>
    tpu.vector_store %arg9[%c0_58, %c168], %300 {strides = array<i32>} : memref<2x1176xf32, #tpu.memory_space<vmem>>, vector<2x28xf32>,
    %302 = vector.extract_strided_slice %280 {offsets = [0, 7, 0], sizes = [2, 1, 28], strides = [1, 1, 1]} : vector<2x14x28xf32> to vector<2x1x28xf32>
    %303 = vector.shape_cast %302 : vector<2x1x28xf32> to vector<2x28xf32>
    %c0_59 = arith.constant 0 : index
    %c196 = arith.constant 196 : index
    %304 = vector.load %arg9[%c0_59, %c196] : memref<2x1176xf32, #tpu.memory_space<vmem>>, vector<2x28xf32>
    tpu.vector_store %arg9[%c0_59, %c196], %303 {strides = array<i32>} : memref<2x1176xf32, #tpu.memory_space<vmem>>, vector<2x28xf32>,
    %305 = vector.extract_strided_slice %280 {offsets = [0, 8, 0], sizes = [2, 1, 28], strides = [1, 1, 1]} : vector<2x14x28xf32> to vector<2x1x28xf32>
    %306 = vector.shape_cast %305 : vector<2x1x28xf32> to vector<2x28xf32>
    %c0_60 = arith.constant 0 : index
    %c224 = arith.constant 224 : index
    %307 = vector.load %arg9[%c0_60, %c224] : memref<2x1176xf32, #tpu.memory_space<vmem>>, vector<2x28xf32>
    tpu.vector_store %arg9[%c0_60, %c224], %306 {strides = array<i32>} : memref<2x1176xf32, #tpu.memory_space<vmem>>, vector<2x28xf32>,
    %308 = vector.extract_strided_slice %280 {offsets = [0, 9, 0], sizes = [2, 1, 28], strides = [1, 1, 1]} : vector<2x14x28xf32> to vector<2x1x28xf32>
    %309 = vector.shape_cast %308 : vector<2x1x28xf32> to vector<2x28xf32>
    %c0_61 = arith.constant 0 : index
    %c252 = arith.constant 252 : index
    %310 = vector.load %arg9[%c0_61, %c252] : memref<2x1176xf32, #tpu.memory_space<vmem>>, vector<2x28xf32>
    tpu.vector_store %arg9[%c0_61, %c252], %309 {strides = array<i32>} : memref<2x1176xf32, #tpu.memory_space<vmem>>, vector<2x28xf32>,
    %311 = vector.extract_strided_slice %280 {offsets = [0, 10, 0], sizes = [2, 1, 28], strides = [1, 1, 1]} : vector<2x14x28xf32> to vector<2x1x28xf32>
    %312 = vector.shape_cast %311 : vector<2x1x28xf32> to vector<2x28xf32>
    %c0_62 = arith.constant 0 : index
    %c280 = arith.constant 280 : index
    %313 = vector.load %arg9[%c0_62, %c280] : memref<2x1176xf32, #tpu.memory_space<vmem>>, vector<2x28xf32>
    tpu.vector_store %arg9[%c0_62, %c280], %312 {strides = array<i32>} : memref<2x1176xf32, #tpu.memory_space<vmem>>, vector<2x28xf32>,
    %314 = vector.extract_strided_slice %280 {offsets = [0, 11, 0], sizes = [2, 1, 28], strides = [1, 1, 1]} : vector<2x14x28xf32> to vector<2x1x28xf32>
    %315 = vector.shape_cast %314 : vector<2x1x28xf32> to vector<2x28xf32>
    %c0_63 = arith.constant 0 : index
    %c308 = arith.constant 308 : index
    %316 = vector.load %arg9[%c0_63, %c308] : memref<2x1176xf32, #tpu.memory_space<vmem>>, vector<2x28xf32>
    tpu.vector_store %arg9[%c0_63, %c308], %315 {strides = array<i32>} : memref<2x1176xf32, #tpu.memory_space<vmem>>, vector<2x28xf32>,
    %317 = vector.extract_strided_slice %280 {offsets = [0, 12, 0], sizes = [2, 1, 28], strides = [1, 1, 1]} : vector<2x14x28xf32> to vector<2x1x28xf32>
    %318 = vector.shape_cast %317 : vector<2x1x28xf32> to vector<2x28xf32>
    %c0_64 = arith.constant 0 : index
    %c336 = arith.constant 336 : index
    %319 = vector.load %arg9[%c0_64, %c336] : memref<2x1176xf32, #tpu.memory_space<vmem>>, vector<2x28xf32>
    tpu.vector_store %arg9[%c0_64, %c336], %318 {strides = array<i32>} : memref<2x1176xf32, #tpu.memory_space<vmem>>, vector<2x28xf32>,
    %320 = vector.extract_strided_slice %280 {offsets = [0, 13, 0], sizes = [2, 1, 28], strides = [1, 1, 1]} : vector<2x14x28xf32> to vector<2x1x28xf32>
    %321 = vector.shape_cast %320 : vector<2x1x28xf32> to vector<2x28xf32>
    %c0_65 = arith.constant 0 : index
    %c364 = arith.constant 364 : index
    %322 = vector.load %arg9[%c0_65, %c364] : memref<2x1176xf32, #tpu.memory_space<vmem>>, vector<2x28xf32>
    tpu.vector_store %arg9[%c0_65, %c364], %321 {strides = array<i32>} : memref<2x1176xf32, #tpu.memory_space<vmem>>, vector<2x28xf32>,
    %cst_66 = arith.constant 0.000000e+00 : f32
    %323 = vector.broadcast %cst_66 : f32 to vector<2x14x28xf32>
    %c27 = arith.constant 27 : index
    %324 = memref.load %arg3[%c27] : memref<81xf32, #tpu.memory_space<smem>>
    %325 = vector.broadcast %324 : f32 to vector<2x14x28xf32>
    %326 = arith.mulf %325, %140 : vector<2x14x28xf32>
    %327 = arith.addf %323, %326 : vector<2x14x28xf32>
    %c28_67 = arith.constant 28 : index
    %328 = memref.load %arg3[%c28_67] : memref<81xf32, #tpu.memory_space<smem>>
    %329 = vector.broadcast %328 : f32 to vector<2x14x28xf32>
    %330 = arith.mulf %329, %141 : vector<2x14x28xf32>
    %331 = arith.addf %327, %330 : vector<2x14x28xf32>
    %c29 = arith.constant 29 : index
    %332 = memref.load %arg3[%c29] : memref<81xf32, #tpu.memory_space<smem>>
    %333 = vector.broadcast %332 : f32 to vector<2x14x28xf32>
    %334 = arith.mulf %333, %142 : vector<2x14x28xf32>
    %335 = arith.addf %331, %334 : vector<2x14x28xf32>
    %c30 = arith.constant 30 : index
    %336 = memref.load %arg3[%c30] : memref<81xf32, #tpu.memory_space<smem>>
    %337 = vector.broadcast %336 : f32 to vector<2x14x28xf32>
    %338 = arith.mulf %337, %143 : vector<2x14x28xf32>
    %339 = arith.addf %335, %338 : vector<2x14x28xf32>
    %c31 = arith.constant 31 : index
    %340 = memref.load %arg3[%c31] : memref<81xf32, #tpu.memory_space<smem>>
    %341 = vector.broadcast %340 : f32 to vector<2x14x28xf32>
    %342 = arith.mulf %341, %144 : vector<2x14x28xf32>
    %343 = arith.addf %339, %342 : vector<2x14x28xf32>
    %c32 = arith.constant 32 : index
    %344 = memref.load %arg3[%c32] : memref<81xf32, #tpu.memory_space<smem>>
    %345 = vector.broadcast %344 : f32 to vector<2x14x28xf32>
    %346 = arith.mulf %345, %145 : vector<2x14x28xf32>
    %347 = arith.addf %343, %346 : vector<2x14x28xf32>
    %c33 = arith.constant 33 : index
    %348 = memref.load %arg3[%c33] : memref<81xf32, #tpu.memory_space<smem>>
    %349 = vector.broadcast %348 : f32 to vector<2x14x28xf32>
    %350 = arith.mulf %349, %146 : vector<2x14x28xf32>
    %351 = arith.addf %347, %350 : vector<2x14x28xf32>
    %c34 = arith.constant 34 : index
    %352 = memref.load %arg3[%c34] : memref<81xf32, #tpu.memory_space<smem>>
    %353 = vector.broadcast %352 : f32 to vector<2x14x28xf32>
    %354 = arith.mulf %353, %147 : vector<2x14x28xf32>
    %355 = arith.addf %351, %354 : vector<2x14x28xf32>
    %c35 = arith.constant 35 : index
    %356 = memref.load %arg3[%c35] : memref<81xf32, #tpu.memory_space<smem>>
    %357 = vector.broadcast %356 : f32 to vector<2x14x28xf32>
    %358 = arith.mulf %357, %148 : vector<2x14x28xf32>
    %359 = arith.addf %355, %358 : vector<2x14x28xf32>
    %c36 = arith.constant 36 : index
    %360 = memref.load %arg3[%c36] : memref<81xf32, #tpu.memory_space<smem>>
    %361 = vector.broadcast %360 : f32 to vector<2x14x28xf32>
    %362 = arith.mulf %361, %149 : vector<2x14x28xf32>
    %363 = arith.addf %359, %362 : vector<2x14x28xf32>
    %c37 = arith.constant 37 : index
    %364 = memref.load %arg3[%c37] : memref<81xf32, #tpu.memory_space<smem>>
    %365 = vector.broadcast %364 : f32 to vector<2x14x28xf32>
    %366 = arith.mulf %365, %150 : vector<2x14x28xf32>
    %367 = arith.addf %363, %366 : vector<2x14x28xf32>
    %c38 = arith.constant 38 : index
    %368 = memref.load %arg3[%c38] : memref<81xf32, #tpu.memory_space<smem>>
    %369 = vector.broadcast %368 : f32 to vector<2x14x28xf32>
    %370 = arith.mulf %369, %151 : vector<2x14x28xf32>
    %371 = arith.addf %367, %370 : vector<2x14x28xf32>
    %c39 = arith.constant 39 : index
    %372 = memref.load %arg3[%c39] : memref<81xf32, #tpu.memory_space<smem>>
    %373 = vector.broadcast %372 : f32 to vector<2x14x28xf32>
    %374 = arith.mulf %373, %152 : vector<2x14x28xf32>
    %375 = arith.addf %371, %374 : vector<2x14x28xf32>
    %c40 = arith.constant 40 : index
    %376 = memref.load %arg3[%c40] : memref<81xf32, #tpu.memory_space<smem>>
    %377 = vector.broadcast %376 : f32 to vector<2x14x28xf32>
    %378 = arith.mulf %377, %153 : vector<2x14x28xf32>
    %379 = arith.addf %375, %378 : vector<2x14x28xf32>
    %c41 = arith.constant 41 : index
    %380 = memref.load %arg3[%c41] : memref<81xf32, #tpu.memory_space<smem>>
    %381 = vector.broadcast %380 : f32 to vector<2x14x28xf32>
    %382 = arith.mulf %381, %154 : vector<2x14x28xf32>
    %383 = arith.addf %379, %382 : vector<2x14x28xf32>
    %c42 = arith.constant 42 : index
    %384 = memref.load %arg3[%c42] : memref<81xf32, #tpu.memory_space<smem>>
    %385 = vector.broadcast %384 : f32 to vector<2x14x28xf32>
    %386 = arith.mulf %385, %155 : vector<2x14x28xf32>
    %387 = arith.addf %383, %386 : vector<2x14x28xf32>
    %c43 = arith.constant 43 : index
    %388 = memref.load %arg3[%c43] : memref<81xf32, #tpu.memory_space<smem>>
    %389 = vector.broadcast %388 : f32 to vector<2x14x28xf32>
    %390 = arith.mulf %389, %156 : vector<2x14x28xf32>
    %391 = arith.addf %387, %390 : vector<2x14x28xf32>
    %c44 = arith.constant 44 : index
    %392 = memref.load %arg3[%c44] : memref<81xf32, #tpu.memory_space<smem>>
    %393 = vector.broadcast %392 : f32 to vector<2x14x28xf32>
    %394 = arith.mulf %393, %157 : vector<2x14x28xf32>
    %395 = arith.addf %391, %394 : vector<2x14x28xf32>
    %c45 = arith.constant 45 : index
    %396 = memref.load %arg3[%c45] : memref<81xf32, #tpu.memory_space<smem>>
    %397 = vector.broadcast %396 : f32 to vector<2x14x28xf32>
    %398 = arith.mulf %397, %158 : vector<2x14x28xf32>
    %399 = arith.addf %395, %398 : vector<2x14x28xf32>
    %c46 = arith.constant 46 : index
    %400 = memref.load %arg3[%c46] : memref<81xf32, #tpu.memory_space<smem>>
    %401 = vector.broadcast %400 : f32 to vector<2x14x28xf32>
    %402 = arith.mulf %401, %159 : vector<2x14x28xf32>
    %403 = arith.addf %399, %402 : vector<2x14x28xf32>
    %c47 = arith.constant 47 : index
    %404 = memref.load %arg3[%c47] : memref<81xf32, #tpu.memory_space<smem>>
    %405 = vector.broadcast %404 : f32 to vector<2x14x28xf32>
    %406 = arith.mulf %405, %160 : vector<2x14x28xf32>
    %407 = arith.addf %403, %406 : vector<2x14x28xf32>
    %c48 = arith.constant 48 : index
    %408 = memref.load %arg3[%c48] : memref<81xf32, #tpu.memory_space<smem>>
    %409 = vector.broadcast %408 : f32 to vector<2x14x28xf32>
    %410 = arith.mulf %409, %161 : vector<2x14x28xf32>
    %411 = arith.addf %407, %410 : vector<2x14x28xf32>
    %c49 = arith.constant 49 : index
    %412 = memref.load %arg3[%c49] : memref<81xf32, #tpu.memory_space<smem>>
    %413 = vector.broadcast %412 : f32 to vector<2x14x28xf32>
    %414 = arith.mulf %413, %162 : vector<2x14x28xf32>
    %415 = arith.addf %411, %414 : vector<2x14x28xf32>
    %c50 = arith.constant 50 : index
    %416 = memref.load %arg3[%c50] : memref<81xf32, #tpu.memory_space<smem>>
    %417 = vector.broadcast %416 : f32 to vector<2x14x28xf32>
    %418 = arith.mulf %417, %163 : vector<2x14x28xf32>
    %419 = arith.addf %415, %418 : vector<2x14x28xf32>
    %c51 = arith.constant 51 : index
    %420 = memref.load %arg3[%c51] : memref<81xf32, #tpu.memory_space<smem>>
    %421 = vector.broadcast %420 : f32 to vector<2x14x28xf32>
    %422 = arith.mulf %421, %164 : vector<2x14x28xf32>
    %423 = arith.addf %419, %422 : vector<2x14x28xf32>
    %c52 = arith.constant 52 : index
    %424 = memref.load %arg3[%c52] : memref<81xf32, #tpu.memory_space<smem>>
    %425 = vector.broadcast %424 : f32 to vector<2x14x28xf32>
    %426 = arith.mulf %425, %165 : vector<2x14x28xf32>
    %427 = arith.addf %423, %426 : vector<2x14x28xf32>
    %c53 = arith.constant 53 : index
    %428 = memref.load %arg3[%c53] : memref<81xf32, #tpu.memory_space<smem>>
    %429 = vector.broadcast %428 : f32 to vector<2x14x28xf32>
    %430 = arith.mulf %429, %166 : vector<2x14x28xf32>
    %431 = arith.addf %427, %430 : vector<2x14x28xf32>
    %c1_68 = arith.constant 1 : index
    %432 = memref.load %arg4[%c1_68] : memref<3xf32, #tpu.memory_space<smem>>
    %433 = vector.broadcast %432 : f32 to vector<2x14x28xf32>
    %434 = arith.addf %431, %433 : vector<2x14x28xf32>
    %cst_69 = arith.constant 0.000000e+00 : f32
    %435 = vector.broadcast %cst_69 : f32 to vector<2x14x28xf32>
    %436 = arith.maximumf %434, %435 : vector<2x14x28xf32>
    %437 = vector.extract_strided_slice %436 {offsets = [0, 0, 0], sizes = [2, 1, 28], strides = [1, 1, 1]} : vector<2x14x28xf32> to vector<2x1x28xf32>
    %438 = vector.shape_cast %437 : vector<2x1x28xf32> to vector<2x28xf32>
    %c0_70 = arith.constant 0 : index
    %c392 = arith.constant 392 : index
    %439 = vector.load %arg9[%c0_70, %c392] : memref<2x1176xf32, #tpu.memory_space<vmem>>, vector<2x28xf32>
    tpu.vector_store %arg9[%c0_70, %c392], %438 {strides = array<i32>} : memref<2x1176xf32, #tpu.memory_space<vmem>>, vector<2x28xf32>,
    %440 = vector.extract_strided_slice %436 {offsets = [0, 1, 0], sizes = [2, 1, 28], strides = [1, 1, 1]} : vector<2x14x28xf32> to vector<2x1x28xf32>
    %441 = vector.shape_cast %440 : vector<2x1x28xf32> to vector<2x28xf32>
    %c0_71 = arith.constant 0 : index
    %c420 = arith.constant 420 : index
    %442 = vector.load %arg9[%c0_71, %c420] : memref<2x1176xf32, #tpu.memory_space<vmem>>, vector<2x28xf32>
    tpu.vector_store %arg9[%c0_71, %c420], %441 {strides = array<i32>} : memref<2x1176xf32, #tpu.memory_space<vmem>>, vector<2x28xf32>,
    %443 = vector.extract_strided_slice %436 {offsets = [0, 2, 0], sizes = [2, 1, 28], strides = [1, 1, 1]} : vector<2x14x28xf32> to vector<2x1x28xf32>
    %444 = vector.shape_cast %443 : vector<2x1x28xf32> to vector<2x28xf32>
    %c0_72 = arith.constant 0 : index
    %c448 = arith.constant 448 : index
    %445 = vector.load %arg9[%c0_72, %c448] : memref<2x1176xf32, #tpu.memory_space<vmem>>, vector<2x28xf32>
    tpu.vector_store %arg9[%c0_72, %c448], %444 {strides = array<i32>} : memref<2x1176xf32, #tpu.memory_space<vmem>>, vector<2x28xf32>,
    %446 = vector.extract_strided_slice %436 {offsets = [0, 3, 0], sizes = [2, 1, 28], strides = [1, 1, 1]} : vector<2x14x28xf32> to vector<2x1x28xf32>
    %447 = vector.shape_cast %446 : vector<2x1x28xf32> to vector<2x28xf32>
    %c0_73 = arith.constant 0 : index
    %c476 = arith.constant 476 : index
    %448 = vector.load %arg9[%c0_73, %c476] : memref<2x1176xf32, #tpu.memory_space<vmem>>, vector<2x28xf32>
    tpu.vector_store %arg9[%c0_73, %c476], %447 {strides = array<i32>} : memref<2x1176xf32, #tpu.memory_space<vmem>>, vector<2x28xf32>,
    %449 = vector.extract_strided_slice %436 {offsets = [0, 4, 0], sizes = [2, 1, 28], strides = [1, 1, 1]} : vector<2x14x28xf32> to vector<2x1x28xf32>
    %450 = vector.shape_cast %449 : vector<2x1x28xf32> to vector<2x28xf32>
    %c0_74 = arith.constant 0 : index
    %c504 = arith.constant 504 : index
    %451 = vector.load %arg9[%c0_74, %c504] : memref<2x1176xf32, #tpu.memory_space<vmem>>, vector<2x28xf32>
    tpu.vector_store %arg9[%c0_74, %c504], %450 {strides = array<i32>} : memref<2x1176xf32, #tpu.memory_space<vmem>>, vector<2x28xf32>,
    %452 = vector.extract_strided_slice %436 {offsets = [0, 5, 0], sizes = [2, 1, 28], strides = [1, 1, 1]} : vector<2x14x28xf32> to vector<2x1x28xf32>
    %453 = vector.shape_cast %452 : vector<2x1x28xf32> to vector<2x28xf32>
    %c0_75 = arith.constant 0 : index
    %c532 = arith.constant 532 : index
    %454 = vector.load %arg9[%c0_75, %c532] : memref<2x1176xf32, #tpu.memory_space<vmem>>, vector<2x28xf32>
    tpu.vector_store %arg9[%c0_75, %c532], %453 {strides = array<i32>} : memref<2x1176xf32, #tpu.memory_space<vmem>>, vector<2x28xf32>,
    %455 = vector.extract_strided_slice %436 {offsets = [0, 6, 0], sizes = [2, 1, 28], strides = [1, 1, 1]} : vector<2x14x28xf32> to vector<2x1x28xf32>
    %456 = vector.shape_cast %455 : vector<2x1x28xf32> to vector<2x28xf32>
    %c0_76 = arith.constant 0 : index
    %c560 = arith.constant 560 : index
    %457 = vector.load %arg9[%c0_76, %c560] : memref<2x1176xf32, #tpu.memory_space<vmem>>, vector<2x28xf32>
    tpu.vector_store %arg9[%c0_76, %c560], %456 {strides = array<i32>} : memref<2x1176xf32, #tpu.memory_space<vmem>>, vector<2x28xf32>,
    %458 = vector.extract_strided_slice %436 {offsets = [0, 7, 0], sizes = [2, 1, 28], strides = [1, 1, 1]} : vector<2x14x28xf32> to vector<2x1x28xf32>
    %459 = vector.shape_cast %458 : vector<2x1x28xf32> to vector<2x28xf32>
    %c0_77 = arith.constant 0 : index
    %c588 = arith.constant 588 : index
    %460 = vector.load %arg9[%c0_77, %c588] : memref<2x1176xf32, #tpu.memory_space<vmem>>, vector<2x28xf32>
    tpu.vector_store %arg9[%c0_77, %c588], %459 {strides = array<i32>} : memref<2x1176xf32, #tpu.memory_space<vmem>>, vector<2x28xf32>,
    %461 = vector.extract_strided_slice %436 {offsets = [0, 8, 0], sizes = [2, 1, 28], strides = [1, 1, 1]} : vector<2x14x28xf32> to vector<2x1x28xf32>
    %462 = vector.shape_cast %461 : vector<2x1x28xf32> to vector<2x28xf32>
    %c0_78 = arith.constant 0 : index
    %c616 = arith.constant 616 : index
    %463 = vector.load %arg9[%c0_78, %c616] : memref<2x1176xf32, #tpu.memory_space<vmem>>, vector<2x28xf32>
    tpu.vector_store %arg9[%c0_78, %c616], %462 {strides = array<i32>} : memref<2x1176xf32, #tpu.memory_space<vmem>>, vector<2x28xf32>,
    %464 = vector.extract_strided_slice %436 {offsets = [0, 9, 0], sizes = [2, 1, 28], strides = [1, 1, 1]} : vector<2x14x28xf32> to vector<2x1x28xf32>
    %465 = vector.shape_cast %464 : vector<2x1x28xf32> to vector<2x28xf32>
    %c0_79 = arith.constant 0 : index
    %c644 = arith.constant 644 : index
    %466 = vector.load %arg9[%c0_79, %c644] : memref<2x1176xf32, #tpu.memory_space<vmem>>, vector<2x28xf32>
    tpu.vector_store %arg9[%c0_79, %c644], %465 {strides = array<i32>} : memref<2x1176xf32, #tpu.memory_space<vmem>>, vector<2x28xf32>,
    %467 = vector.extract_strided_slice %436 {offsets = [0, 10, 0], sizes = [2, 1, 28], strides = [1, 1, 1]} : vector<2x14x28xf32> to vector<2x1x28xf32>
    %468 = vector.shape_cast %467 : vector<2x1x28xf32> to vector<2x28xf32>
    %c0_80 = arith.constant 0 : index
    %c672 = arith.constant 672 : index
    %469 = vector.load %arg9[%c0_80, %c672] : memref<2x1176xf32, #tpu.memory_space<vmem>>, vector<2x28xf32>
    tpu.vector_store %arg9[%c0_80, %c672], %468 {strides = array<i32>} : memref<2x1176xf32, #tpu.memory_space<vmem>>, vector<2x28xf32>,
    %470 = vector.extract_strided_slice %436 {offsets = [0, 11, 0], sizes = [2, 1, 28], strides = [1, 1, 1]} : vector<2x14x28xf32> to vector<2x1x28xf32>
    %471 = vector.shape_cast %470 : vector<2x1x28xf32> to vector<2x28xf32>
    %c0_81 = arith.constant 0 : index
    %c700 = arith.constant 700 : index
    %472 = vector.load %arg9[%c0_81, %c700] : memref<2x1176xf32, #tpu.memory_space<vmem>>, vector<2x28xf32>
    tpu.vector_store %arg9[%c0_81, %c700], %471 {strides = array<i32>} : memref<2x1176xf32, #tpu.memory_space<vmem>>, vector<2x28xf32>,
    %473 = vector.extract_strided_slice %436 {offsets = [0, 12, 0], sizes = [2, 1, 28], strides = [1, 1, 1]} : vector<2x14x28xf32> to vector<2x1x28xf32>
    %474 = vector.shape_cast %473 : vector<2x1x28xf32> to vector<2x28xf32>
    %c0_82 = arith.constant 0 : index
    %c728 = arith.constant 728 : index
    %475 = vector.load %arg9[%c0_82, %c728] : memref<2x1176xf32, #tpu.memory_space<vmem>>, vector<2x28xf32>
    tpu.vector_store %arg9[%c0_82, %c728], %474 {strides = array<i32>} : memref<2x1176xf32, #tpu.memory_space<vmem>>, vector<2x28xf32>,
    %476 = vector.extract_strided_slice %436 {offsets = [0, 13, 0], sizes = [2, 1, 28], strides = [1, 1, 1]} : vector<2x14x28xf32> to vector<2x1x28xf32>
    %477 = vector.shape_cast %476 : vector<2x1x28xf32> to vector<2x28xf32>
    %c0_83 = arith.constant 0 : index
    %c756 = arith.constant 756 : index
    %478 = vector.load %arg9[%c0_83, %c756] : memref<2x1176xf32, #tpu.memory_space<vmem>>, vector<2x28xf32>
    tpu.vector_store %arg9[%c0_83, %c756], %477 {strides = array<i32>} : memref<2x1176xf32, #tpu.memory_space<vmem>>, vector<2x28xf32>,
    %cst_84 = arith.constant 0.000000e+00 : f32
    %479 = vector.broadcast %cst_84 : f32 to vector<2x14x28xf32>
    %c54 = arith.constant 54 : index
    %480 = memref.load %arg3[%c54] : memref<81xf32, #tpu.memory_space<smem>>
    %481 = vector.broadcast %480 : f32 to vector<2x14x28xf32>
    %482 = arith.mulf %481, %140 : vector<2x14x28xf32>
    %483 = arith.addf %479, %482 : vector<2x14x28xf32>
    %c55 = arith.constant 55 : index
    %484 = memref.load %arg3[%c55] : memref<81xf32, #tpu.memory_space<smem>>
    %485 = vector.broadcast %484 : f32 to vector<2x14x28xf32>
    %486 = arith.mulf %485, %141 : vector<2x14x28xf32>
    %487 = arith.addf %483, %486 : vector<2x14x28xf32>
    %c56_85 = arith.constant 56 : index
    %488 = memref.load %arg3[%c56_85] : memref<81xf32, #tpu.memory_space<smem>>
    %489 = vector.broadcast %488 : f32 to vector<2x14x28xf32>
    %490 = arith.mulf %489, %142 : vector<2x14x28xf32>
    %491 = arith.addf %487, %490 : vector<2x14x28xf32>
    %c57 = arith.constant 57 : index
    %492 = memref.load %arg3[%c57] : memref<81xf32, #tpu.memory_space<smem>>
    %493 = vector.broadcast %492 : f32 to vector<2x14x28xf32>
    %494 = arith.mulf %493, %143 : vector<2x14x28xf32>
    %495 = arith.addf %491, %494 : vector<2x14x28xf32>
    %c58 = arith.constant 58 : index
    %496 = memref.load %arg3[%c58] : memref<81xf32, #tpu.memory_space<smem>>
    %497 = vector.broadcast %496 : f32 to vector<2x14x28xf32>
    %498 = arith.mulf %497, %144 : vector<2x14x28xf32>
    %499 = arith.addf %495, %498 : vector<2x14x28xf32>
    %c59 = arith.constant 59 : index
    %500 = memref.load %arg3[%c59] : memref<81xf32, #tpu.memory_space<smem>>
    %501 = vector.broadcast %500 : f32 to vector<2x14x28xf32>
    %502 = arith.mulf %501, %145 : vector<2x14x28xf32>
    %503 = arith.addf %499, %502 : vector<2x14x28xf32>
    %c60 = arith.constant 60 : index
    %504 = memref.load %arg3[%c60] : memref<81xf32, #tpu.memory_space<smem>>
    %505 = vector.broadcast %504 : f32 to vector<2x14x28xf32>
    %506 = arith.mulf %505, %146 : vector<2x14x28xf32>
    %507 = arith.addf %503, %506 : vector<2x14x28xf32>
    %c61 = arith.constant 61 : index
    %508 = memref.load %arg3[%c61] : memref<81xf32, #tpu.memory_space<smem>>
    %509 = vector.broadcast %508 : f32 to vector<2x14x28xf32>
    %510 = arith.mulf %509, %147 : vector<2x14x28xf32>
    %511 = arith.addf %507, %510 : vector<2x14x28xf32>
    %c62 = arith.constant 62 : index
    %512 = memref.load %arg3[%c62] : memref<81xf32, #tpu.memory_space<smem>>
    %513 = vector.broadcast %512 : f32 to vector<2x14x28xf32>
    %514 = arith.mulf %513, %148 : vector<2x14x28xf32>
    %515 = arith.addf %511, %514 : vector<2x14x28xf32>
    %c63 = arith.constant 63 : index
    %516 = memref.load %arg3[%c63] : memref<81xf32, #tpu.memory_space<smem>>
    %517 = vector.broadcast %516 : f32 to vector<2x14x28xf32>
    %518 = arith.mulf %517, %149 : vector<2x14x28xf32>
    %519 = arith.addf %515, %518 : vector<2x14x28xf32>
    %c64 = arith.constant 64 : index
    %520 = memref.load %arg3[%c64] : memref<81xf32, #tpu.memory_space<smem>>
    %521 = vector.broadcast %520 : f32 to vector<2x14x28xf32>
    %522 = arith.mulf %521, %150 : vector<2x14x28xf32>
    %523 = arith.addf %519, %522 : vector<2x14x28xf32>
    %c65 = arith.constant 65 : index
    %524 = memref.load %arg3[%c65] : memref<81xf32, #tpu.memory_space<smem>>
    %525 = vector.broadcast %524 : f32 to vector<2x14x28xf32>
    %526 = arith.mulf %525, %151 : vector<2x14x28xf32>
    %527 = arith.addf %523, %526 : vector<2x14x28xf32>
    %c66 = arith.constant 66 : index
    %528 = memref.load %arg3[%c66] : memref<81xf32, #tpu.memory_space<smem>>
    %529 = vector.broadcast %528 : f32 to vector<2x14x28xf32>
    %530 = arith.mulf %529, %152 : vector<2x14x28xf32>
    %531 = arith.addf %527, %530 : vector<2x14x28xf32>
    %c67 = arith.constant 67 : index
    %532 = memref.load %arg3[%c67] : memref<81xf32, #tpu.memory_space<smem>>
    %533 = vector.broadcast %532 : f32 to vector<2x14x28xf32>
    %534 = arith.mulf %533, %153 : vector<2x14x28xf32>
    %535 = arith.addf %531, %534 : vector<2x14x28xf32>
    %c68 = arith.constant 68 : index
    %536 = memref.load %arg3[%c68] : memref<81xf32, #tpu.memory_space<smem>>
    %537 = vector.broadcast %536 : f32 to vector<2x14x28xf32>
    %538 = arith.mulf %537, %154 : vector<2x14x28xf32>
    %539 = arith.addf %535, %538 : vector<2x14x28xf32>
    %c69 = arith.constant 69 : index
    %540 = memref.load %arg3[%c69] : memref<81xf32, #tpu.memory_space<smem>>
    %541 = vector.broadcast %540 : f32 to vector<2x14x28xf32>
    %542 = arith.mulf %541, %155 : vector<2x14x28xf32>
    %543 = arith.addf %539, %542 : vector<2x14x28xf32>
    %c70 = arith.constant 70 : index
    %544 = memref.load %arg3[%c70] : memref<81xf32, #tpu.memory_space<smem>>
    %545 = vector.broadcast %544 : f32 to vector<2x14x28xf32>
    %546 = arith.mulf %545, %156 : vector<2x14x28xf32>
    %547 = arith.addf %543, %546 : vector<2x14x28xf32>
    %c71 = arith.constant 71 : index
    %548 = memref.load %arg3[%c71] : memref<81xf32, #tpu.memory_space<smem>>
    %549 = vector.broadcast %548 : f32 to vector<2x14x28xf32>
    %550 = arith.mulf %549, %157 : vector<2x14x28xf32>
    %551 = arith.addf %547, %550 : vector<2x14x28xf32>
    %c72 = arith.constant 72 : index
    %552 = memref.load %arg3[%c72] : memref<81xf32, #tpu.memory_space<smem>>
    %553 = vector.broadcast %552 : f32 to vector<2x14x28xf32>
    %554 = arith.mulf %553, %158 : vector<2x14x28xf32>
    %555 = arith.addf %551, %554 : vector<2x14x28xf32>
    %c73 = arith.constant 73 : index
    %556 = memref.load %arg3[%c73] : memref<81xf32, #tpu.memory_space<smem>>
    %557 = vector.broadcast %556 : f32 to vector<2x14x28xf32>
    %558 = arith.mulf %557, %159 : vector<2x14x28xf32>
    %559 = arith.addf %555, %558 : vector<2x14x28xf32>
    %c74 = arith.constant 74 : index
    %560 = memref.load %arg3[%c74] : memref<81xf32, #tpu.memory_space<smem>>
    %561 = vector.broadcast %560 : f32 to vector<2x14x28xf32>
    %562 = arith.mulf %561, %160 : vector<2x14x28xf32>
    %563 = arith.addf %559, %562 : vector<2x14x28xf32>
    %c75 = arith.constant 75 : index
    %564 = memref.load %arg3[%c75] : memref<81xf32, #tpu.memory_space<smem>>
    %565 = vector.broadcast %564 : f32 to vector<2x14x28xf32>
    %566 = arith.mulf %565, %161 : vector<2x14x28xf32>
    %567 = arith.addf %563, %566 : vector<2x14x28xf32>
    %c76 = arith.constant 76 : index
    %568 = memref.load %arg3[%c76] : memref<81xf32, #tpu.memory_space<smem>>
    %569 = vector.broadcast %568 : f32 to vector<2x14x28xf32>
    %570 = arith.mulf %569, %162 : vector<2x14x28xf32>
    %571 = arith.addf %567, %570 : vector<2x14x28xf32>
    %c77 = arith.constant 77 : index
    %572 = memref.load %arg3[%c77] : memref<81xf32, #tpu.memory_space<smem>>
    %573 = vector.broadcast %572 : f32 to vector<2x14x28xf32>
    %574 = arith.mulf %573, %163 : vector<2x14x28xf32>
    %575 = arith.addf %571, %574 : vector<2x14x28xf32>
    %c78 = arith.constant 78 : index
    %576 = memref.load %arg3[%c78] : memref<81xf32, #tpu.memory_space<smem>>
    %577 = vector.broadcast %576 : f32 to vector<2x14x28xf32>
    %578 = arith.mulf %577, %164 : vector<2x14x28xf32>
    %579 = arith.addf %575, %578 : vector<2x14x28xf32>
    %c79 = arith.constant 79 : index
    %580 = memref.load %arg3[%c79] : memref<81xf32, #tpu.memory_space<smem>>
    %581 = vector.broadcast %580 : f32 to vector<2x14x28xf32>
    %582 = arith.mulf %581, %165 : vector<2x14x28xf32>
    %583 = arith.addf %579, %582 : vector<2x14x28xf32>
    %c80 = arith.constant 80 : index
    %584 = memref.load %arg3[%c80] : memref<81xf32, #tpu.memory_space<smem>>
    %585 = vector.broadcast %584 : f32 to vector<2x14x28xf32>
    %586 = arith.mulf %585, %166 : vector<2x14x28xf32>
    %587 = arith.addf %583, %586 : vector<2x14x28xf32>
    %c2_86 = arith.constant 2 : index
    %588 = memref.load %arg4[%c2_86] : memref<3xf32, #tpu.memory_space<smem>>
    %589 = vector.broadcast %588 : f32 to vector<2x14x28xf32>
    %590 = arith.addf %587, %589 : vector<2x14x28xf32>
    %cst_87 = arith.constant 0.000000e+00 : f32
    %591 = vector.broadcast %cst_87 : f32 to vector<2x14x28xf32>
    %592 = arith.maximumf %590, %591 : vector<2x14x28xf32>
    %593 = vector.extract_strided_slice %592 {offsets = [0, 0, 0], sizes = [2, 1, 28], strides = [1, 1, 1]} : vector<2x14x28xf32> to vector<2x1x28xf32>
    %594 = vector.shape_cast %593 : vector<2x1x28xf32> to vector<2x28xf32>
    %c0_88 = arith.constant 0 : index
    %c784 = arith.constant 784 : index
    %595 = vector.load %arg9[%c0_88, %c784] : memref<2x1176xf32, #tpu.memory_space<vmem>>, vector<2x28xf32>
    tpu.vector_store %arg9[%c0_88, %c784], %594 {strides = array<i32>} : memref<2x1176xf32, #tpu.memory_space<vmem>>, vector<2x28xf32>,
    %596 = vector.extract_strided_slice %592 {offsets = [0, 1, 0], sizes = [2, 1, 28], strides = [1, 1, 1]} : vector<2x14x28xf32> to vector<2x1x28xf32>
    %597 = vector.shape_cast %596 : vector<2x1x28xf32> to vector<2x28xf32>
    %c0_89 = arith.constant 0 : index
    %c812 = arith.constant 812 : index
    %598 = vector.load %arg9[%c0_89, %c812] : memref<2x1176xf32, #tpu.memory_space<vmem>>, vector<2x28xf32>
    tpu.vector_store %arg9[%c0_89, %c812], %597 {strides = array<i32>} : memref<2x1176xf32, #tpu.memory_space<vmem>>, vector<2x28xf32>,
    %599 = vector.extract_strided_slice %592 {offsets = [0, 2, 0], sizes = [2, 1, 28], strides = [1, 1, 1]} : vector<2x14x28xf32> to vector<2x1x28xf32>
    %600 = vector.shape_cast %599 : vector<2x1x28xf32> to vector<2x28xf32>
    %c0_90 = arith.constant 0 : index
    %c840 = arith.constant 840 : index
    %601 = vector.load %arg9[%c0_90, %c840] : memref<2x1176xf32, #tpu.memory_space<vmem>>, vector<2x28xf32>
    tpu.vector_store %arg9[%c0_90, %c840], %600 {strides = array<i32>} : memref<2x1176xf32, #tpu.memory_space<vmem>>, vector<2x28xf32>,
    %602 = vector.extract_strided_slice %592 {offsets = [0, 3, 0], sizes = [2, 1, 28], strides = [1, 1, 1]} : vector<2x14x28xf32> to vector<2x1x28xf32>
    %603 = vector.shape_cast %602 : vector<2x1x28xf32> to vector<2x28xf32>
    %c0_91 = arith.constant 0 : index
    %c868 = arith.constant 868 : index
    %604 = vector.load %arg9[%c0_91, %c868] : memref<2x1176xf32, #tpu.memory_space<vmem>>, vector<2x28xf32>
    tpu.vector_store %arg9[%c0_91, %c868], %603 {strides = array<i32>} : memref<2x1176xf32, #tpu.memory_space<vmem>>, vector<2x28xf32>,
    %605 = vector.extract_strided_slice %592 {offsets = [0, 4, 0], sizes = [2, 1, 28], strides = [1, 1, 1]} : vector<2x14x28xf32> to vector<2x1x28xf32>
    %606 = vector.shape_cast %605 : vector<2x1x28xf32> to vector<2x28xf32>
    %c0_92 = arith.constant 0 : index
    %c896 = arith.constant 896 : index
    %607 = vector.load %arg9[%c0_92, %c896] : memref<2x1176xf32, #tpu.memory_space<vmem>>, vector<2x28xf32>
    tpu.vector_store %arg9[%c0_92, %c896], %606 {strides = array<i32>} : memref<2x1176xf32, #tpu.memory_space<vmem>>, vector<2x28xf32>,
    %608 = vector.extract_strided_slice %592 {offsets = [0, 5, 0], sizes = [2, 1, 28], strides = [1, 1, 1]} : vector<2x14x28xf32> to vector<2x1x28xf32>
    %609 = vector.shape_cast %608 : vector<2x1x28xf32> to vector<2x28xf32>
    %c0_93 = arith.constant 0 : index
    %c924 = arith.constant 924 : index
    %610 = vector.load %arg9[%c0_93, %c924] : memref<2x1176xf32, #tpu.memory_space<vmem>>, vector<2x28xf32>
    tpu.vector_store %arg9[%c0_93, %c924], %609 {strides = array<i32>} : memref<2x1176xf32, #tpu.memory_space<vmem>>, vector<2x28xf32>,
    %611 = vector.extract_strided_slice %592 {offsets = [0, 6, 0], sizes = [2, 1, 28], strides = [1, 1, 1]} : vector<2x14x28xf32> to vector<2x1x28xf32>
    %612 = vector.shape_cast %611 : vector<2x1x28xf32> to vector<2x28xf32>
    %c0_94 = arith.constant 0 : index
    %c952 = arith.constant 952 : index
    %613 = vector.load %arg9[%c0_94, %c952] : memref<2x1176xf32, #tpu.memory_space<vmem>>, vector<2x28xf32>
    tpu.vector_store %arg9[%c0_94, %c952], %612 {strides = array<i32>} : memref<2x1176xf32, #tpu.memory_space<vmem>>, vector<2x28xf32>,
    %614 = vector.extract_strided_slice %592 {offsets = [0, 7, 0], sizes = [2, 1, 28], strides = [1, 1, 1]} : vector<2x14x28xf32> to vector<2x1x28xf32>
    %615 = vector.shape_cast %614 : vector<2x1x28xf32> to vector<2x28xf32>
    %c0_95 = arith.constant 0 : index
    %c980 = arith.constant 980 : index
    %616 = vector.load %arg9[%c0_95, %c980] : memref<2x1176xf32, #tpu.memory_space<vmem>>, vector<2x28xf32>
    tpu.vector_store %arg9[%c0_95, %c980], %615 {strides = array<i32>} : memref<2x1176xf32, #tpu.memory_space<vmem>>, vector<2x28xf32>,
    %617 = vector.extract_strided_slice %592 {offsets = [0, 8, 0], sizes = [2, 1, 28], strides = [1, 1, 1]} : vector<2x14x28xf32> to vector<2x1x28xf32>
    %618 = vector.shape_cast %617 : vector<2x1x28xf32> to vector<2x28xf32>
    %c0_96 = arith.constant 0 : index
    %c1008 = arith.constant 1008 : index
    %619 = vector.load %arg9[%c0_96, %c1008] : memref<2x1176xf32, #tpu.memory_space<vmem>>, vector<2x28xf32>
    tpu.vector_store %arg9[%c0_96, %c1008], %618 {strides = array<i32>} : memref<2x1176xf32, #tpu.memory_space<vmem>>, vector<2x28xf32>,
    %620 = vector.extract_strided_slice %592 {offsets = [0, 9, 0], sizes = [2, 1, 28], strides = [1, 1, 1]} : vector<2x14x28xf32> to vector<2x1x28xf32>
    %621 = vector.shape_cast %620 : vector<2x1x28xf32> to vector<2x28xf32>
    %c0_97 = arith.constant 0 : index
    %c1036 = arith.constant 1036 : index
    %622 = vector.load %arg9[%c0_97, %c1036] : memref<2x1176xf32, #tpu.memory_space<vmem>>, vector<2x28xf32>
    tpu.vector_store %arg9[%c0_97, %c1036], %621 {strides = array<i32>} : memref<2x1176xf32, #tpu.memory_space<vmem>>, vector<2x28xf32>,
    %623 = vector.extract_strided_slice %592 {offsets = [0, 10, 0], sizes = [2, 1, 28], strides = [1, 1, 1]} : vector<2x14x28xf32> to vector<2x1x28xf32>
    %624 = vector.shape_cast %623 : vector<2x1x28xf32> to vector<2x28xf32>
    %c0_98 = arith.constant 0 : index
    %c1064 = arith.constant 1064 : index
    %625 = vector.load %arg9[%c0_98, %c1064] : memref<2x1176xf32, #tpu.memory_space<vmem>>, vector<2x28xf32>
    tpu.vector_store %arg9[%c0_98, %c1064], %624 {strides = array<i32>} : memref<2x1176xf32, #tpu.memory_space<vmem>>, vector<2x28xf32>,
    %626 = vector.extract_strided_slice %592 {offsets = [0, 11, 0], sizes = [2, 1, 28], strides = [1, 1, 1]} : vector<2x14x28xf32> to vector<2x1x28xf32>
    %627 = vector.shape_cast %626 : vector<2x1x28xf32> to vector<2x28xf32>
    %c0_99 = arith.constant 0 : index
    %c1092 = arith.constant 1092 : index
    %628 = vector.load %arg9[%c0_99, %c1092] : memref<2x1176xf32, #tpu.memory_space<vmem>>, vector<2x28xf32>
    tpu.vector_store %arg9[%c0_99, %c1092], %627 {strides = array<i32>} : memref<2x1176xf32, #tpu.memory_space<vmem>>, vector<2x28xf32>,
    %629 = vector.extract_strided_slice %592 {offsets = [0, 12, 0], sizes = [2, 1, 28], strides = [1, 1, 1]} : vector<2x14x28xf32> to vector<2x1x28xf32>
    %630 = vector.shape_cast %629 : vector<2x1x28xf32> to vector<2x28xf32>
    %c0_100 = arith.constant 0 : index
    %c1120 = arith.constant 1120 : index
    %631 = vector.load %arg9[%c0_100, %c1120] : memref<2x1176xf32, #tpu.memory_space<vmem>>, vector<2x28xf32>
    tpu.vector_store %arg9[%c0_100, %c1120], %630 {strides = array<i32>} : memref<2x1176xf32, #tpu.memory_space<vmem>>, vector<2x28xf32>,
    %632 = vector.extract_strided_slice %592 {offsets = [0, 13, 0], sizes = [2, 1, 28], strides = [1, 1, 1]} : vector<2x14x28xf32> to vector<2x1x28xf32>
    %633 = vector.shape_cast %632 : vector<2x1x28xf32> to vector<2x28xf32>
    %c0_101 = arith.constant 0 : index
    %c1148 = arith.constant 1148 : index
    %634 = vector.load %arg9[%c0_101, %c1148] : memref<2x1176xf32, #tpu.memory_space<vmem>>, vector<2x28xf32>
    tpu.vector_store %arg9[%c0_101, %c1148], %633 {strides = array<i32>} : memref<2x1176xf32, #tpu.memory_space<vmem>>, vector<2x28xf32>,
    %c0_102 = arith.constant 0 : index
    %c0_103 = arith.constant 0 : index
    %635 = vector.load %arg9[%c0_102, %c0_103] : memref<2x1176xf32, #tpu.memory_space<vmem>>, vector<2x1176xf32>
    %636 = arith.truncf %635 : vector<2x1176xf32> to vector<2x1176xbf16>
    %c0_104 = arith.constant 0 : index
    %c0_105 = arith.constant 0 : index
    %637 = vector.load %arg5[%c0_104, %c0_105] : memref<480x1176xbf16, #tpu.memory_space<vmem>>, vector<480x1176xbf16>
    %cst_106 = arith.constant dense<0.000000e+00> : vector<2x480xf32>
    %638 = tpu.matmul %636, %637, %cst_106 {dimension_numbers = #tpu.dot_dimension_numbers<[1], [1], [0], [0], [0, 0, 1, 0], [], []>} : vector<2x1176xbf16>, vector<480x1176xbf16>, vector<2x480xf32> -> vector<2x480xf32>
    %c0_107 = arith.constant 0 : index
    %c0_108 = arith.constant 0 : index
    %639 = vector.load %arg6[%c0_107, %c0_108] : memref<1x480xf32, #tpu.memory_space<vmem>>, vector<1x480xf32>
    %640 = vector.broadcast %639 : vector<1x480xf32> to vector<2x480xf32>
    %641 = arith.addf %638, %640 : vector<2x480xf32>
    %c0_109 = arith.constant 0 : index
    %c0_110 = arith.constant 0 : index
    %642 = vector.load %arg7[%c0_109, %c0_110] : memref<2x480xf32, #tpu.memory_space<vmem>>, vector<2x480xf32>
    tpu.vector_store %arg7[%c0_109, %c0_110], %641 {strides = array<i32>} : memref<2x480xf32, #tpu.memory_space<vmem>>, vector<2x480xf32>,
    return
  }
}

</mosaic_0001>

<bundles_post_ra>
// kernel: tpu_custom_call.1
= control target key start
LH: loop header
LB: loop body
LE: loop exit
PB: predicated region body
PF: predicated region fallthrough
CT: control target
= control target key end

     0   :  { %12 = vsyncpa [#allocation6], 0  ;;  %s11496_s0 = inlined_call_operand.vmem [shape: f32[2,16,30], index: 0, kind: input, shape index: {}]   ;;  %s11497_s1 = inlined_call_operand.vmem [shape: f32[27], index: 1, kind: input, shape index: {}]   ;;  %s11498_s2 = inlined_call_operand.vmem [shape: f32[3], index: 2, kind: input, shape index: {}]   ;;  %s11499_s3 = inlined_call_operand.vmem [shape: f32[81], index: 3, kind: input, shape index: {}]   ;;  %s11500_s4 = inlined_call_operand.vmem [shape: f32[3], index: 4, kind: input, shape index: {}]   ;;  %s11501_s5 = inlined_call_operand.vmem [shape: bf16[480,1176], index: 5, kind: input, shape index: {}]   ;;  %s11502_s6 = inlined_call_operand.vmem [shape: f32[1,480], index: 6, kind: input, shape index: {}]   ;;  %s11503_s7 = inlined_call_operand.hbm [shape: f32[2,480], index: 7, kind: output, shape index: {}]  }
   0x1   :  { %13 = vsyncpa [#allocation8], 0 }
   0x2   :  { %14 = vsyncpa [#allocation11], 0  ;;  %s34_s26 = sshll.u32 %s11498_s2, 4  ;;  %s35_s26 = int_to_ptr.vmem [resolvable:$true] %s34_s26 }
   0x3   :  { %15 = vsyncpa [#allocation5], 0  ;;  %s24_s29 = sshll.u32 %s11497_s1, 4  ;;  %s7302_s30 = scalar_lea.vmem %s35_s26, 16  ;;  %s25_s29 = int_to_ptr.vmem [resolvable:$true] %s24_s29 }
   0x4   :  { %p7303_p0 = scmp.ne.s32.totalorder %s35_s26, %s7302_s30  ;;  %p7307_p1 = scmp.lt.s32.totalorder %s35_s26, %s35_s26 }
   0x5   :  { %p7308_p2 = scmp.lt.s32.totalorder %s7302_s30, %s7302_s30 }
   0x7   :  { %p7309_p3 = por %p7308_p2, %p7307_p1 }
   0x9   :  { %p7310_p4 = pnand %p7309_p3, %p7303_p0 }
   0xb   :  { %7313 = shalt.err (!%p7310_p4)
}
   0xc   :  { %s7380_s8 = smov [#allocation7]   ;;  %s7314_s9 = scalar_lea.vmem %s25_s29, 16 }
   0xd   :  { %37 = dma.vmem_to_smem %s35_s26, 16, %s7380_s8, [#allocation8]  }
   0xe   :  { %p7315_p5 = scmp.ne.s32.totalorder %s25_s29, %s7314_s9  ;;  %p7319_p6 = scmp.lt.s32.totalorder %s25_s29, %s25_s29 }
   0xf   :  { %p7320_p7 = scmp.lt.s32.totalorder %s7314_s9, %s7314_s9 }
  0x11   :  { %p7321_p8 = por %p7320_p7, %p7319_p6 }
  0x13   :  { %p7322_p9 = pnand %p7321_p8, %p7315_p5 }
  0x15   :  { %7325 = shalt.err (!%p7322_p9)
}
  0x16   :  { %s7381_s2 = smov [#allocation4]   ;;  %s44_s11 = sshll.u32 %s11499_s3, 4  ;;  %s45_s11 = int_to_ptr.vmem [resolvable:$true] %s44_s11 }
  0x17   :  { %27 = dma.vmem_to_smem %s25_s29, 16, %s7381_s2, [#allocation6]  }
  0x18   :  { %s54_s14 = sshll.u32 %s11500_s4, 4  ;;  %s7326_s15 = scalar_lea.vmem %s45_s11, 16  ;;  %s55_s14 = int_to_ptr.vmem [resolvable:$true] %s54_s14 }
  0x19   :  { %p7327_p10 = scmp.ne.s32.totalorder %s45_s11, %s7326_s15  ;;  %p7331_p11 = scmp.lt.s32.totalorder %s45_s11, %s45_s11 }
  0x1a   :  { %p7332_p12 = scmp.lt.s32.totalorder %s7326_s15, %s7326_s15 }
  0x1c   :  { %p7333_p13 = por %p7332_p12, %p7331_p11 }
  0x1e   :  { %p7334_p0 = pnand %p7333_p13, %p7327_p10 }
  0x20   :  { %7337 = shalt.err (!%p7334_p0)
}
  0x21   :  { %s7382_s16 = smov [#allocation9]   ;;  %s7338_s17 = scalar_lea.vmem %s55_s14, 16 }
  0x22   :  { %47 = dma.vmem_to_smem %s45_s11, 16, %s7382_s16, [#allocation8]  }
  0x23   :  { %p7339_p1 = scmp.ne.s32.totalorder %s55_s14, %s7338_s17  ;;  %p7343_p2 = scmp.lt.s32.totalorder %s55_s14, %s55_s14 }
  0x24   :  { %p7344_p3 = scmp.lt.s32.totalorder %s7338_s17, %s7338_s17 }
  0x26   :  { %p7345_p4 = por %p7344_p3, %p7343_p2 }
  0x28   :  { %p7346_p5 = pnand %p7345_p4, %p7339_p1 }
  0x2a   :  { %7349 = shalt.err (!%p7346_p5)
}
  0x2b   :  { %s7383_s3 = smov [#allocation10]  }
  0x2c   :  { %57 = dma.vmem_to_smem %s55_s14, 16, %s7383_s3, [#allocation11]  }
  0x2d   :  { %7372 = dma.done.wait [#allocation6], 16  }
  0x2e   :  { %7373 = vsyncadd [#allocation6], 4294967280 }
  0x2f   :  { %7374 = dma.done.wait [#allocation8], 32  }
  0x30   :  { %7375 = vsyncadd [#allocation8], 4294967264 }
  0x31   :  { %7376 = dma.done.wait [#allocation11], 16  }
  0x32   :  { %7377 = vsyncadd [#allocation11], 4294967280 }
  0x33   :  { %74 = sfence }
  0x34   :  { %v87_v0 = vld [vmem:[%s11496_s0 + $0x18] sm:$0xff]  ;;  %v86_v1 = vld [vmem:[%s11496_s0 + $0x10] sm:$0xff]  ;;  %vm76_vm0 = vcmask 261120   ;;  %s7384_s21 = smov 1   ;;  %v84_v2 = vld [vmem:[%s11496_s0] sm:$0xff]  ;;  %vm79_vm1 = vcmask 254976  }
  0x35   :  { %98 = vrot.lane.b32.xlu1 %v87_v0, %s7384_s21  ;;  %96 = vrot.lane.b32.xlu0 %v86_v1, %s7384_s21  ;;  %v85_v3 = vld [vmem:[%s11496_s0 + $0x8] sm:$0xff]  ;;  %v7385_v4 = vmov 0.0   ;;  %vm104_vm2 = vcmask 252936   ;;  %s6328_s26 = sld [smem:[#allocation4 + $0x1]]  ;;  %s6329_s27 = sld [smem:[#allocation4 + $0x2]]  ;;  %vm191_vm3 = vcmask 1046528  }
  0x36   :  { %82 = vst.msk [vmem:[#allocation2 + $0x20] sm:$0xff] %vm76_vm0, %v7385_v4  ;;  %77 = vst.msk [vmem:[#allocation2] sm:$0xff] %vm76_vm0, %v7385_v4  ;;  %s7386_s0 = smov 127   ;;  %s6337_s28 = sld [smem:[#allocation4 + $0xa]]  ;;  %vm304_vm4 = vcmask 1045504   ;;  %vm1750_vm5 = vcmask 1041409  }
  0x37   :  { %83 = vst.msk [vmem:[#allocation2 + $0x28] sm:$0x3] %vm79_vm1, %v7385_v4  ;;  %80 = vst.msk [vmem:[#allocation2 + $0x10] sm:$0x3] %vm79_vm1, %v7385_v4  ;;  %s7387_s29 = smov 126   ;;  %s6338_s30 = sld [smem:[#allocation4 + $0xb]] }
  0x38   :  { %78 = vst.msk [vmem:[#allocation2 + $0x8] sm:$0xff] %vm76_vm0, %v7385_v4  ;;  %81 = vst.msk [vmem:[#allocation2 + $0x18] sm:$0xff] %vm76_vm0, %v7385_v4  ;;  %s6347_s8 = sld [smem:[#allocation4 + $0x13]]  ;;  %s6348_s9 = sld [smem:[#allocation4 + $0x14]]  ;;  %vm1752_vm6 = vcmask 1043459   ;;  %vm1754_vm7 = vcmask 1045509  }
  0x39   :  { %92 = vrot.lane.b32.xlu0 %v84_v2, %s7384_s21  ;;  %94 = vrot.lane.b32.xlu1 %v85_v3, %s7384_s21  ;;  %s6331_s2 = sld [smem:[#allocation4 + $0x4]]  ;;  %s6332_s1 = sld [smem:[#allocation4 + $0x5]]  ;;  %vm11622_vm8 = vcmask 1047559   ;;  %vm11617_vm9 = vcmask 222208   ;;  %vm11616_vm10 = vcmask 451808   ;;  %vm11612_vm11 = vcmask 681408  }
  0x3a   :  { %s6334_s10 = sld [smem:[#allocation4 + $0x7]]  ;;  %s6335_s11 = sld [smem:[#allocation4 + $0x8]]  ;;  %vm1828_vm12 = vcmask 1042304   ;;  %vm1829_vm13 = vcmask 93186   ;;  %vm11610_vm14 = vcmask 916480   ;;  %vm11609_vm15 = vcmask 911008  }
  0x3b   :  { %v126_v9 = vstv %s6328_s26  ;;  %v152_v12 = vstv %s6329_s27  ;;  %s6340_s12 = sld [smem:[#allocation4 + $0xd]]  ;;  %s6341_s13 = sld [smem:[#allocation4 + $0xe]]  ;;  %vm9911_vm0 = vmor %vm1829_vm13, %vm1828_vm12  ;;  %vm11608_vm1 = vcmask 320608   ;;  %vm1911_vm12 = vcmask 1042400  }
  0x3c   :  { %v424_v22 = vstv %s6337_s28  ;;  %s6343_s14 = sld [smem:[#allocation4 + $0x10]]  ;;  %s6344_s15 = sld [smem:[#allocation4 + $0x11]]  ;;  %vm1912_vm13 = vcmask 191490  }
  0x3d   :  { %v450_v25 = vstv %s6338_s30  ;;  %s6350_s16 = sld [smem:[#allocation4 + $0x16]]  ;;  %s6351_s17 = sld [smem:[#allocation4 + $0x17]] }
  0x3e   :  { %v720_v32 = vstv %s6347_s8  ;;  %v746_v35 = vstv %s6348_s9  ;;  %s6353_s3 = sld [smem:[#allocation4 + $0x19]]  ;;  %s6354_s4 = sld [smem:[#allocation4 + $0x1a]] }
  0x3f   :  { %v211_v38 = vstv %s6331_s2  ;;  %v251_v43 = vstv %s6332_s1  ;;  %s6330_s18 = sld [smem:[#allocation4 + $0x3]]  ;;  %s115_s19 = sld [smem:[#allocation4]] }
  0x40   :  { %v324_v2 = vstv %s6334_s10  ;;  %s6333_s20 = sld [smem:[#allocation4 + $0x6]]  ;;  %s403_s21 = sld [smem:[#allocation7]] }
  0x41   :  { %s6356_s22 = sld [smem:[#allocation9 + $0x1]]  ;;  %s6357_s23 = sld [smem:[#allocation9 + $0x2]] }
  0x42   :  { %s6339_s24 = sld [smem:[#allocation4 + $0xc]]  ;;  %s6336_s25 = sld [smem:[#allocation4 + $0x9]] }
  0x43   :  { %s7798_s26 = sld [smem:[#allocation9 + $0x1c]]  ;;  %s7803_s27 = sld [smem:[#allocation4 + $0xf]] }
  0x44   :  { %s7839_s28 = sld [smem:[#allocation9 + $0x1d]]  ;;  %s7869_s30 = sld [smem:[#allocation7 + $0x1]] }
  0x45   :  { %s7886_s8 = sld [smem:[#allocation9 + $0xa]]  ;;  %s6366_s9 = sld [smem:[#allocation9 + $0xb]] }
  0x46   :  { %s6392_s2 = sld [smem:[#allocation9 + $0x25]]  ;;  %s6393_s1 = sld [smem:[#allocation9 + $0x26]] }
  0x47   :  { %s6359_s10 = sld [smem:[#allocation9 + $0x4]] }
  0xa7   :  { %v99_v5 = vpop.permute.xlu1 %98  ;;  %v97_v6 = vpop.permute.xlu0 %96 }
  0xa8   :  { %108 = vst.msk [vmem:[#allocation2 + $0x21] sm:$0xff] %vm104_vm2, %v99_v5  ;;  %107 = vst.msk [vmem:[#allocation2 + $0x19] sm:$0xff] %vm104_vm2, %v97_v6 }
  0xab   :  { %v93_v7 = vpop.permute.xlu0 %92  ;;  %v95_v8 = vpop.permute.xlu1 %94 }
  0xac   :  { %105 = vst.msk [vmem:[#allocation2 + $0x1] sm:$0xff] %vm104_vm2, %v93_v7  ;;  %106 = vst.msk [vmem:[#allocation2 + $0x9] sm:$0xff] %vm104_vm2, %v95_v8  ;;  %vm11615_vm2 = vcmask 550208  }
  0xaf   :  { %v7485_v10 = vld [vmem:[#allocation2 + $0x18] sm:$0xff]  ;;  %v7493_v16 = vld [vmem:[#allocation2 + $0x20] sm:$0xff]  ;;  %v7543_v52 = vld [vmem:[#allocation2 + $0x28] sm:$0x3] }
  0xb0   :  { %v129_v11 = vmul.f32 %v126_v9, %v7485_v10  ;;  %v155_v14 = vmul.f32 %v152_v12, %v7485_v10  ;;  %v130_v18 = vmul.f32 %v126_v9, %v7493_v16  ;;  %v156_v20 = vmul.f32 %v152_v12, %v7493_v16 }
  0xb1   :  { %v427_v24 = vmul.f32 %v424_v22, %v7485_v10  ;;  %v453_v26 = vmul.f32 %v450_v25, %v7485_v10  ;;  %v428_v29 = vmul.f32 %v424_v22, %v7493_v16  ;;  %v454_v30 = vmul.f32 %v450_v25, %v7493_v16 }
  0xb2   :  { %139 = vrot.lane.b32.xlu0 %v129_v11, %s7386_s0  ;;  %v723_v34 = vmul.f32 %v720_v32, %v7485_v10  ;;  %v749_v36 = vmul.f32 %v746_v35, %v7485_v10  ;;  %v724_v40 = vmul.f32 %v720_v32, %v7493_v16  ;;  %v215_v41 = vmul.f32 %v211_v38, %v7485_v10 }
  0xb3   :  { %v7489_v13 = vld [vmem:[#allocation2] sm:$0xff]  ;;  %v7499_v19 = vld [vmem:[#allocation2 + $0x8] sm:$0xff]  ;;  %v216_v42 = vmul.f32 %v211_v38, %v7493_v16  ;;  %v750_v44 = vmul.f32 %v746_v35, %v7493_v16  ;;  %v255_v46 = vmul.f32 %v251_v43, %v7485_v10  ;;  %v256_v47 = vmul.f32 %v251_v43, %v7493_v16  ;;  %v7552_v62 = vld [vmem:[#allocation2 + $0x10] sm:$0x3] }
  0xb4   :  { %v127_v15 = vmul.f32 %v126_v9, %v7489_v13  ;;  %v153_v17 = vmul.f32 %v152_v12, %v7489_v13  ;;  %v128_v21 = vmul.f32 %v126_v9, %v7499_v19  ;;  %v154_v23 = vmul.f32 %v152_v12, %v7499_v19 }
  0xb5   :  { %v425_v27 = vmul.f32 %v424_v22, %v7489_v13  ;;  %v451_v28 = vmul.f32 %v450_v25, %v7489_v13  ;;  %v426_v31 = vmul.f32 %v424_v22, %v7499_v19  ;;  %v452_v33 = vmul.f32 %v450_v25, %v7499_v19 }
  0xb6   :  { %165 = vrot.lane.b32.xlu0 %v155_v14, %s7387_s29  ;;  %135 = vrot.lane.b32.xlu1 %v127_v15, %s7386_s0  ;;  %v721_v37 = vmul.f32 %v720_v32, %v7489_v13  ;;  %v747_v39 = vmul.f32 %v746_v35, %v7489_v13  ;;  %v722_v45 = vmul.f32 %v720_v32, %v7499_v19  ;;  %v229_v48 = vrot.slane %v215_v41, 1 }
  0xb7   :  { %v230_v49 = vrot.slane %v216_v42, 1  ;;  %v212_v50 = vmul.f32 %v211_v38, %v7489_v13  ;;  %v213_v51 = vmul.f32 %v211_v38, %v7499_v19  ;;  %v748_v53 = vmul.f32 %v746_v35, %v7499_v19 }
  0xb8   :  { %v269_v54 = vrot.slane %v255_v46, 1  ;;  %v270_v55 = vrot.slane %v256_v47, 1  ;;  %v252_v56 = vmul.f32 %v251_v43, %v7489_v13  ;;  %v253_v57 = vmul.f32 %v251_v43, %v7499_v19 }
  0xb9   :  { %v231_v58 = vsel %vm191_vm3, %v229_v48, %v230_v49  ;;  %v224_v59 = vrot.slane %v212_v50, 1  ;;  %v225_v60 = vrot.slane %v213_v51, 1  ;;  %v217_v61 = vmul.f32 %v211_v38, %v7543_v52 }
  0xba   :  { %161 = vrot.lane.b32.xlu0 %v153_v17, %s7387_s29  ;;  %141 = vrot.lane.b32.xlu1 %v130_v18, %s7386_s0  ;;  %v271_v63 = vsel %vm191_vm3, %v269_v54, %v270_v55  ;;  %v264_v0 = vrot.slane %v252_v56, 1  ;;  %v257_v1 = vmul.f32 %v251_v43, %v7543_v52  ;;  %v265_v4 = vrot.slane %v253_v57, 1 }
  0xbb   :  { %v226_v3 = vsel %vm191_vm3, %v224_v59, %v225_v60  ;;  %v232_v5 = vrot.slane %v217_v61, 1  ;;  %v214_v6 = vmul.f32 %v211_v38, %v7552_v62  ;;  %v254_v7 = vmul.f32 %v251_v43, %v7552_v62 }
  0xbc   :  { %v328_v8 = vmul.f32 %v324_v2, %v7485_v10  ;;  %v329_v9 = vmul.f32 %v324_v2, %v7493_v16  ;;  %v364_v11 = vstv %s6335_s11  ;;  %v266_v12 = vsel %vm191_vm3, %v264_v0, %v265_v4  ;;  %s6360_s11 = sld [smem:[#allocation9 + $0x5]] }
  0xbd   :  { %v233_v14 = vsel %vm191_vm3, %v230_v49, %v232_v5  ;;  %v272_v15 = vrot.slane %v257_v1, 1  ;;  %v227_v17 = vrot.slane %v214_v6, 1  ;;  %v267_v18 = vrot.slane %v254_v7, 1 }
  0xbe   :  { %167 = vrot.lane.b32.xlu0 %v156_v20, %s7387_s29  ;;  %137 = vrot.lane.b32.xlu1 %v128_v21, %s7386_s0  ;;  %v342_v20 = vrot.slane %v328_v8, 2  ;;  %v343_v21 = vrot.slane %v329_v9, 2  ;;  %v368_v22 = vmul.f32 %v364_v11, %v7485_v10  ;;  %v365_v32 = vmul.f32 %v364_v11, %v7489_v13 }
  0xbf   :  { %v228_v25 = vsel %vm191_vm3, %v225_v60, %v227_v17  ;;  %v366_v35 = vmul.f32 %v364_v11, %v7499_v19 }
  0xc0   :  { %v377_v38 = vrot.slane %v365_v32, 2 }
  0xc1   :  { %v378_v42 = vrot.slane %v366_v35, 2 }
  0xc2   :  { %163 = vrot.lane.b32.xlu0 %v154_v23, %s7387_s29  ;;  %437 = vrot.lane.b32.xlu1 %v427_v24, %s7386_s0  ;;  %v369_v23 = vmul.f32 %v364_v11, %v7493_v16  ;;  %v273_v24 = vsel %vm191_vm3, %v270_v55, %v272_v15 }
  0xc3   :  { %v379_v49 = vsel %vm304_vm4, %v377_v38, %v378_v42 }
  0xc6   :  { %463 = vrot.lane.b32.xlu0 %v453_v26, %s7387_s29  ;;  %433 = vrot.lane.b32.xlu1 %v425_v27, %s7386_s0  ;;  %v325_v26 = vmul.f32 %v324_v2, %v7489_v13  ;;  %v326_v27 = vmul.f32 %v324_v2, %v7499_v19 }
  0xca   :  { %459 = vrot.lane.b32.xlu0 %v451_v28, %s7387_s29  ;;  %439 = vrot.lane.b32.xlu1 %v428_v29, %s7386_s0  ;;  %v268_v28 = vsel %vm191_vm3, %v265_v4, %v267_v18  ;;  %v344_v29 = vsel %vm304_vm4, %v342_v20, %v343_v21  ;;  %v620_v20 = vstv %s6343_s14  ;;  %s6368_s14 = sld [smem:[#allocation9 + $0xd]] }
  0xce   :  { %465 = vrot.lane.b32.xlu0 %v454_v30, %s7387_s29  ;;  %435 = vrot.lane.b32.xlu1 %v426_v31, %s7386_s0  ;;  %v382_v30 = vrot.slane %v368_v22, 2  ;;  %v383_v31 = vrot.slane %v369_v23, 2 }
  0xd2   :  { %461 = vrot.lane.b32.xlu0 %v452_v33, %s7387_s29  ;;  %733 = vrot.lane.b32.xlu1 %v723_v34, %s7386_s0  ;;  %v337_v33 = vrot.slane %v325_v26, 2  ;;  %v338_v34 = vrot.slane %v326_v27, 2  ;;  %v624_v27 = vmul.f32 %v620_v20, %v7485_v10 }
  0xd4   :  { %v339_v41 = vsel %vm304_vm4, %v337_v33, %v338_v34 }
  0xd6   :  { %759 = vrot.lane.b32.xlu0 %v749_v36, %s7387_s29  ;;  %729 = vrot.lane.b32.xlu1 %v721_v37, %s7386_s0  ;;  %v330_v36 = vmul.f32 %v324_v2, %v7543_v52  ;;  %v384_v37 = vsel %vm304_vm4, %v382_v30, %v383_v31 }
  0xd8   :  { %v345_v43 = vrot.slane %v330_v36, 2  ;;  %v621_v36 = vmul.f32 %v620_v20, %v7489_v13 }
  0xda   :  { %755 = vrot.lane.b32.xlu0 %v747_v39, %s7387_s29  ;;  %735 = vrot.lane.b32.xlu1 %v724_v40, %s7386_s0  ;;  %v370_v39 = vmul.f32 %v364_v11, %v7543_v52  ;;  %v508_v40 = vstv %s6340_s12  ;;  %v346_v50 = vsel %vm304_vm4, %v343_v21, %v345_v43  ;;  %s6362_s12 = sld [smem:[#allocation9 + $0x7]] }
  0xdb   :  { %v512_v47 = vmul.f32 %v508_v40, %v7485_v10  ;;  %v513_v48 = vmul.f32 %v508_v40, %v7493_v16  ;;  %v509_v61 = vmul.f32 %v508_v40, %v7489_v13  ;;  %v514_v8 = vmul.f32 %v508_v40, %v7543_v52 }
  0xdc   :  { %v385_v46 = vrot.slane %v370_v39, 2 }
  0xdd   :  { %v526_v56 = vrot.slane %v512_v47, 1  ;;  %v527_v57 = vrot.slane %v513_v48, 1  ;;  %v521_v6 = vrot.slane %v509_v61, 1  ;;  %v529_v18 = vrot.slane %v514_v8, 1 }
  0xde   :  { %761 = vrot.lane.b32.xlu0 %v750_v44, %s7387_s29  ;;  %731 = vrot.lane.b32.xlu1 %v722_v45, %s7386_s0  ;;  %v327_v44 = vmul.f32 %v324_v2, %v7552_v62  ;;  %v367_v45 = vmul.f32 %v364_v11, %v7552_v62  ;;  %v386_v55 = vsel %vm304_vm4, %v383_v31, %v385_v46 }
  0xdf   :  { %v528_v1 = vsel %vm191_vm3, %v526_v56, %v527_v57  ;;  %v530_v26 = vsel %vm191_vm3, %v527_v57, %v529_v18  ;;  %v626_v46 = vmul.f32 %v620_v20, %v7543_v52 }
  0xe0   :  { %v340_v51 = vrot.slane %v327_v44, 2  ;;  %v380_v54 = vrot.slane %v367_v45, 2  ;;  %v633_v44 = vrot.slane %v621_v36, 2 }
  0xe2   :  { %757 = vrot.lane.b32.xlu0 %v748_v53, %s7387_s29  ;;  %238 = vrot.lane.b32.xlu1 %v231_v58, %s7386_s0  ;;  %v548_v53 = vstv %s6341_s13  ;;  %v341_v59 = vsel %vm304_vm4, %v338_v34, %v340_v51  ;;  %v381_v0 = vsel %vm304_vm4, %v378_v42, %v380_v54  ;;  %v638_v34 = vrot.slane %v624_v27, 2  ;;  %s6363_s13 = sld [smem:[#allocation9 + $0x8]] }
  0xe3   :  { %v552_v58 = vmul.f32 %v548_v53, %v7485_v10  ;;  %v553_v60 = vmul.f32 %v548_v53, %v7493_v16  ;;  %v550_v4 = vmul.f32 %v548_v53, %v7499_v19  ;;  %v554_v11 = vmul.f32 %v548_v53, %v7543_v52 }
  0xe4   :  { %v551_v21 = vmul.f32 %v548_v53, %v7552_v62  ;;  %v916_v27 = vstv %s6353_s3  ;;  %s6349_s3 = sld [smem:[#allocation4 + $0x15]] }
  0xe5   :  { %v566_v2 = vrot.slane %v552_v58, 1  ;;  %v567_v5 = vrot.slane %v553_v60, 1  ;;  %v562_v17 = vrot.slane %v550_v4, 1  ;;  %v569_v22 = vrot.slane %v554_v11, 1 }
  0xe6   :  { %278 = vrot.lane.b32.xlu0 %v271_v63, %s7387_s29  ;;  %234 = vrot.lane.b32.xlu1 %v226_v3, %s7386_s0  ;;  %v510_v63 = vmul.f32 %v508_v40, %v7499_v19  ;;  %v549_v3 = vmul.f32 %v548_v53, %v7489_v13  ;;  %v641_v53 = vrot.slane %v626_v46, 2  ;;  %v921_v36 = vmul.f32 %v916_v27, %v7493_v16 }
  0xe7   :  { %v570_v30 = vsel %vm191_vm3, %v567_v5, %v569_v22 }
  0xe8   :  { %v522_v7 = vrot.slane %v510_v63, 1  ;;  %v561_v9 = vrot.slane %v549_v3, 1  ;;  %v935_v46 = vrot.slane %v921_v36, 2 }
  0xea   :  { %274 = vrot.lane.b32.xlu0 %v266_v12, %s7387_s29  ;;  %240 = vrot.lane.b32.xlu1 %v233_v14, %s7386_s0  ;;  %v511_v12 = vmul.f32 %v508_v40, %v7552_v62  ;;  %v568_v14 = vsel %vm191_vm3, %v566_v2, %v567_v5  ;;  %v523_v15 = vsel %vm191_vm3, %v521_v6, %v522_v7 }
  0xec   :  { %v524_v23 = vrot.slane %v511_v12, 1 }
  0xee   :  { %280 = vrot.lane.b32.xlu0 %v273_v24, %s7387_s29  ;;  %236 = vrot.lane.b32.xlu1 %v228_v25, %s7386_s0  ;;  %v660_v24 = vstv %s6344_s15  ;;  %v563_v25 = vsel %vm191_vm3, %v561_v9, %v562_v17  ;;  %v525_v31 = vsel %vm191_vm3, %v522_v7, %v524_v23  ;;  %s6369_s15 = sld [smem:[#allocation9 + $0xe]] }
  0xef   :  { %v664_v32 = vmul.f32 %v660_v24, %v7485_v10  ;;  %v665_v33 = vmul.f32 %v660_v24, %v7493_v16  ;;  %v662_v42 = vmul.f32 %v660_v24, %v7499_v19  ;;  %v666_v54 = vmul.f32 %v660_v24, %v7543_v52 }
  0xf0   :  { %v663_v56 = vmul.f32 %v660_v24, %v7552_v62 }
  0xf1   :  { %v678_v39 = vrot.slane %v664_v32, 2  ;;  %v679_v40 = vrot.slane %v665_v33, 2  ;;  %v681_v63 = vrot.slane %v666_v54, 2 }
  0xf2   :  { %276 = vrot.lane.b32.xlu0 %v268_v28, %s7387_s29  ;;  %351 = vrot.lane.b32.xlu1 %v344_v29, %s7386_s0  ;;  %v625_v28 = vmul.f32 %v620_v20, %v7493_v16  ;;  %v564_v29 = vrot.slane %v551_v21, 1 }
  0xf3   :  { %v680_v47 = vsel %vm304_vm4, %v678_v39, %v679_v40  ;;  %v682_v6 = vsel %vm304_vm4, %v679_v40, %v681_v63 }
  0xf4   :  { %v639_v35 = vrot.slane %v625_v28, 2  ;;  %v565_v38 = vsel %vm191_vm3, %v562_v17, %v564_v29 }
  0xf6   :  { %391 = vrot.lane.b32.xlu0 %v384_v37, %s7387_s29  ;;  %347 = vrot.lane.b32.xlu1 %v339_v41, %s7386_s0  ;;  %v622_v37 = vmul.f32 %v620_v20, %v7499_v19  ;;  %v661_v41 = vmul.f32 %v660_v24, %v7489_v13  ;;  %v640_v43 = vsel %vm304_vm4, %v638_v34, %v639_v35 }
  0xf7   :  { %v642_v61 = vsel %vm304_vm4, %v639_v35, %v641_v53  ;;  %v920_v35 = vmul.f32 %v916_v27, %v7485_v10  ;;  %v918_v53 = vmul.f32 %v916_v27, %v7499_v19 }
  0xf8   :  { %v634_v45 = vrot.slane %v622_v37, 2  ;;  %v673_v48 = vrot.slane %v661_v41, 2  ;;  %v956_v37 = vstv %s6354_s4  ;;  %s6352_s4 = sld [smem:[#allocation4 + $0x18]] }
  0xf9   :  { %v930_v63 = vrot.slane %v918_v53, 2 }
  0xfa   :  { %387 = vrot.lane.b32.xlu0 %v379_v49, %s7387_s29  ;;  %353 = vrot.lane.b32.xlu1 %v346_v50, %s7386_s0  ;;  %v674_v49 = vrot.slane %v662_v42, 2  ;;  %v804_v50 = vstv %s6350_s16  ;;  %v635_v51 = vsel %vm304_vm4, %v633_v44, %v634_v45  ;;  %s6387_s16 = sld [smem:[#allocation9 + $0x20]] }
  0xfb   :  { %v808_v57 = vmul.f32 %v804_v50, %v7485_v10  ;;  %v809_v58 = vmul.f32 %v804_v50, %v7493_v16  ;;  %v805_v8 = vmul.f32 %v804_v50, %v7489_v13  ;;  %v806_v9 = vmul.f32 %v804_v50, %v7499_v19 }
  0xfc   :  { %v675_v60 = vsel %vm304_vm4, %v673_v48, %v674_v49  ;;  %v810_v22 = vmul.f32 %v804_v50, %v7543_v52  ;;  %v961_v48 = vmul.f32 %v956_v37, %v7493_v16 }
  0xfd   :  { %v822_v2 = vrot.slane %v808_v57, 1  ;;  %v823_v3 = vrot.slane %v809_v58, 1  ;;  %v817_v18 = vrot.slane %v805_v8, 1 }
  0xfe   :  { %393 = vrot.lane.b32.xlu0 %v386_v55, %s7387_s29  ;;  %349 = vrot.lane.b32.xlu1 %v341_v59, %s7386_s0  ;;  %v623_v55 = vmul.f32 %v620_v20, %v7552_v62  ;;  %v844_v59 = vstv %s6351_s17  ;;  %v818_v20 = vrot.slane %v806_v9, 1  ;;  %s6346_s17 = sld [smem:[#allocation4 + $0x12]] }
  0xff   :  { %v848_v4 = vmul.f32 %v844_v59, %v7485_v10  ;;  %v849_v5 = vmul.f32 %v844_v59, %v7493_v16  ;;  %v824_v12 = vsel %vm191_vm3, %v822_v2, %v823_v3  ;;  %v845_v17 = vmul.f32 %v844_v59, %v7489_v13 }
 0x100   :  { %v846_v21 = vmul.f32 %v844_v59, %v7499_v19  ;;  %v819_v28 = vsel %vm191_vm3, %v817_v18, %v818_v20  ;;  %v847_v32 = vmul.f32 %v844_v59, %v7552_v62 }
 0x102   :  { %389 = vrot.lane.b32.xlu0 %v381_v0, %s7387_s29  ;;  %535 = vrot.lane.b32.xlu1 %v528_v1, %s7386_s0  ;;  %v636_v0 = vrot.slane %v623_v55, 2  ;;  %v676_v1 = vrot.slane %v663_v56, 2  ;;  %v858_v29 = vrot.slane %v846_v21, 1  ;;  %v860_v42 = vrot.slane %v847_v32, 1 }
 0x103   :  { %v959_v21 = vmul.f32 %v956_v37, %v7552_v62 }
 0x104   :  { %v637_v7 = vsel %vm304_vm4, %v634_v45, %v636_v0  ;;  %v677_v11 = vsel %vm304_vm4, %v674_v49, %v676_v1  ;;  %v934_v45 = vrot.slane %v920_v35, 2  ;;  %v861_v54 = vsel %vm191_vm3, %v858_v29, %v860_v42 }
 0x105   :  { %v958_v0 = vmul.f32 %v956_v37, %v7499_v19  ;;  %v922_v1 = vmul.f32 %v916_v27, %v7543_v52  ;;  %v116_v42 = vstv %s115_s19  ;;  %s8086_s19 = sld [smem:[#allocation9 + $0x23]] }
 0x106   :  { %575 = vrot.lane.b32.xlu0 %v568_v14, %s7387_s29  ;;  %531 = vrot.lane.b32.xlu1 %v523_v15, %s7386_s0  ;;  %v862_v14 = vrot.slane %v848_v4, 1  ;;  %v863_v15 = vrot.slane %v849_v5, 1  ;;  %v936_v57 = vsel %vm304_vm4, %v934_v45, %v935_v46 }
 0x107   :  { %v970_v8 = vrot.slane %v958_v0, 2  ;;  %v937_v9 = vrot.slane %v922_v1, 2 }
 0x108   :  { %v864_v24 = vsel %vm191_vm3, %v862_v14, %v863_v15 }
 0x109   :  { %v938_v18 = vsel %vm304_vm4, %v935_v46, %v937_v9 }
 0x10a   :  { %571 = vrot.lane.b32.xlu0 %v563_v25, %s7387_s29  ;;  %537 = vrot.lane.b32.xlu1 %v530_v26, %s7386_s0  ;;  %v857_v25 = vrot.slane %v845_v17, 1  ;;  %v850_v26 = vmul.f32 %v844_v59, %v7543_v52  ;;  %v975_v59 = vrot.slane %v961_v48, 2 }
 0x10c   :  { %v865_v40 = vrot.slane %v850_v26, 1 }
 0x10e   :  { %577 = vrot.lane.b32.xlu0 %v570_v30, %s7387_s29  ;;  %533 = vrot.lane.b32.xlu1 %v525_v31, %s7386_s0  ;;  %v825_v30 = vrot.slane %v810_v22, 1  ;;  %v807_v31 = vmul.f32 %v804_v50, %v7552_v62  ;;  %v866_v49 = vsel %vm191_vm3, %v863_v15, %v865_v40 }
 0x110   :  { %v826_v39 = vsel %vm191_vm3, %v823_v3, %v825_v30  ;;  %v820_v41 = vrot.slane %v807_v31, 1 }
 0x112   :  { %573 = vrot.lane.b32.xlu0 %v565_v38, %s7387_s29  ;;  %647 = vrot.lane.b32.xlu1 %v640_v43, %s7386_s0  ;;  %v859_v38 = vsel %vm191_vm3, %v857_v25, %v858_v29  ;;  %v821_v50 = vsel %vm191_vm3, %v818_v20, %v820_v41  ;;  %v178_v41 = vstv %s6330_s18  ;;  %s8032_s18 = sld [smem:[#allocation9 + $0x1f]] }
 0x113   :  { %v182_v46 = vmul.f32 %v178_v41, %v7485_v10  ;;  %v180_v53 = vmul.f32 %v178_v41, %v7499_v19 }
 0x116   :  { %687 = vrot.lane.b32.xlu0 %v680_v47, %s7387_s29  ;;  %643 = vrot.lane.b32.xlu1 %v635_v51, %s7386_s0  ;;  %v960_v47 = vmul.f32 %v956_v37, %v7485_v10  ;;  %v917_v51 = vmul.f32 %v916_v27, %v7489_v13 }
 0x118   :  { %v974_v58 = vrot.slane %v960_v47, 2  ;;  %v183_v47 = vmul.f32 %v178_v41, %v7493_v16 }
 0x11a   :  { %683 = vrot.lane.b32.xlu0 %v675_v60, %s7387_s29  ;;  %649 = vrot.lane.b32.xlu1 %v642_v61, %s7386_s0  ;;  %v957_v60 = vmul.f32 %v956_v37, %v7489_v13  ;;  %v929_v61 = vrot.slane %v917_v51, 2  ;;  %v976_v4 = vsel %vm304_vm4, %v974_v58, %v975_v59  ;;  %v179_v51 = vmul.f32 %v178_v41, %v7489_v13 }
 0x11c   :  { %v969_v5 = vrot.slane %v957_v60, 2  ;;  %v192_v1 = vrot.slane %v179_v51, 1 }
 0x11e   :  { %689 = vrot.lane.b32.xlu0 %v682_v6, %s7387_s29  ;;  %645 = vrot.lane.b32.xlu1 %v637_v7, %s7386_s0  ;;  %v962_v6 = vmul.f32 %v956_v37, %v7543_v52  ;;  %v931_v7 = vsel %vm304_vm4, %v929_v61, %v930_v63  ;;  %v971_v17 = vsel %vm304_vm4, %v969_v5, %v970_v8 }
 0x11f   :  { %v117_v61 = vmul.f32 %v116_v42, %v7489_v13  ;;  %v184_v5 = vmul.f32 %v178_v41, %v7543_v52 }
 0x120   :  { %v977_v15 = vrot.slane %v962_v6, 2 }
 0x122   :  { %685 = vrot.lane.b32.xlu0 %v677_v11, %s7387_s29  ;;  %831 = vrot.lane.b32.xlu1 %v824_v12, %s7386_s0  ;;  %v919_v11 = vmul.f32 %v916_v27, %v7552_v62  ;;  %v978_v25 = vsel %vm304_vm4, %v975_v59, %v977_v15  ;;  %v972_v27 = vrot.slane %v959_v21, 2  ;;  %v200_v21 = vrot.slane %v184_v5, 1 }
 0x124   :  { %v7668_v23 = vpop.permute.xlu0 %139  ;;  %v932_v20 = vrot.slane %v919_v11, 2  ;;  %v973_v30 = vsel %vm304_vm4, %v970_v8, %v972_v27 }
 0x126   :  { %871 = vrot.lane.b32.xlu0 %v864_v24, %s7387_s29  ;;  %827 = vrot.lane.b32.xlu1 %v819_v28, %s7386_s0  ;;  %v933_v26 = vsel %vm304_vm4, %v930_v63, %v932_v20  ;;  %v291_v63 = vstv %s6333_s20  ;;  %s8128_s20 = sld [smem:[#allocation9 + $0x10]] }
 0x127   :  { %v295_v8 = vmul.f32 %v291_v63, %v7485_v10  ;;  %v296_v9 = vmul.f32 %v291_v63, %v7493_v16  ;;  %v297_v5 = vmul.f32 %v291_v63, %v7543_v52 }
 0x128   :  { %v7677_v33 = vpop.permute.xlu0 %165  ;;  %v7679_v34 = vpop.permute.xlu1 %135 }
 0x129   :  { %v147_v0 = vadd.f32 %v7679_v34, %v117_v61  ;;  %v310_v27 = vrot.slane %v295_v8, 2 }
 0x12a   :  { %867 = vrot.lane.b32.xlu0 %v859_v38, %s7387_s29  ;;  %833 = vrot.lane.b32.xlu1 %v826_v39, %s7386_s0 }
 0x12c   :  { %v7687_v43 = vpop.permute.xlu0 %161  ;;  %v7689_v44 = vpop.permute.xlu1 %141 }
 0x12d   :  { %v173_v11 = vadd.f32 %v7687_v43, %v147_v0  ;;  %v293_v43 = vmul.f32 %v291_v63, %v7499_v19 }
 0x12e   :  { %873 = vrot.lane.b32.xlu0 %v866_v49, %s7387_s29  ;;  %829 = vrot.lane.b32.xlu1 %v821_v50, %s7386_s0  ;;  %v119_v49 = vmul.f32 %v116_v42, %v7485_v10 }
 0x130   :  { %v7700_v55 = vpop.permute.xlu0 %167  ;;  %v7702_v56 = vpop.permute.xlu1 %137  ;;  %v149_v50 = vadd.f32 %v7668_v23, %v119_v49  ;;  %v118_v49 = vmul.f32 %v116_v42, %v7499_v19 }
 0x132   :  { %869 = vrot.lane.b32.xlu0 %v861_v54, %s7387_s29  ;;  %943 = vrot.lane.b32.xlu1 %v936_v57, %s7386_s0  ;;  %v197_v54 = vrot.slane %v182_v46, 1  ;;  %v198_v57 = vrot.slane %v183_v47, 1  ;;  %v175_v60 = vadd.f32 %v7677_v33, %v149_v50  ;;  %v120_v33 = vmul.f32 %v116_v42, %v7493_v16 }
 0x133   :  { %v292_v46 = vmul.f32 %v291_v63, %v7489_v13 }
 0x134   :  { %v7710_v2 = vpop.permute.xlu0 %163  ;;  %v7712_v3 = vpop.permute.xlu1 %437  ;;  %v199_v23 = vsel %vm191_vm3, %v197_v54, %v198_v57  ;;  %v150_v34 = vadd.f32 %v7689_v44, %v120_v33  ;;  %v148_v44 = vadd.f32 %v7702_v56, %v118_v49  ;;  %v201_v51 = vsel %vm191_vm3, %v198_v57, %v200_v21 }
 0x135   :  { %v208_v15 = vadd.f32 %v199_v23, %v175_v60  ;;  %v305_v0 = vrot.slane %v292_v46, 2 }
 0x136   :  { %983 = vrot.lane.b32.xlu0 %v976_v4, %s7387_s29  ;;  %939 = vrot.lane.b32.xlu1 %v931_v7, %s7386_s0  ;;  %v193_v4 = vrot.slane %v180_v53, 1  ;;  %v176_v47 = vadd.f32 %v7700_v55, %v150_v34  ;;  %v174_v55 = vadd.f32 %v7710_v2, %v148_v44 }
 0x138   :  { %v7720_v12 = vpop.permute.xlu0 %463  ;;  %v7722_v14 = vpop.permute.xlu1 %433  ;;  %v194_v20 = vsel %vm191_vm3, %v192_v1, %v193_v4  ;;  %v306_v1 = vrot.slane %v293_v43, 2 }
 0x139   :  { %v206_v50 = vadd.f32 %v194_v20, %v173_v11 }
 0x13a   :  { %979 = vrot.lane.b32.xlu0 %v971_v17, %s7387_s29  ;;  %945 = vrot.lane.b32.xlu1 %v938_v18, %s7386_s0  ;;  %v181_v17 = vmul.f32 %v178_v41, %v7552_v62  ;;  %v307_v11 = vsel %vm304_vm4, %v305_v0, %v306_v1  ;;  %v476_v0 = vstv %s6339_s24  ;;  %s8267_s24 = sld [smem:[#allocation9 + $0x13]] }
 0x13c   :  { %v7729_v22 = vpop.permute.xlu0 %459  ;;  %v7731_v24 = vpop.permute.xlu1 %439  ;;  %v195_v53 = vrot.slane %v181_v17, 1  ;;  %v294_v17 = vmul.f32 %v291_v63, %v7552_v62 }
 0x13e   :  { %985 = vrot.lane.b32.xlu0 %v978_v25, %s7387_s29  ;;  %941 = vrot.lane.b32.xlu1 %v933_v26, %s7386_s0  ;;  %v196_v57 = vsel %vm191_vm3, %v193_v4, %v195_v53  ;;  %v308_v43 = vrot.slane %v294_v17, 2  ;;  %v7819_v17 = vmul.f32 %v476_v0, %v7499_v19 }
 0x140   :  { %v7737_v28 = vpop.permute.xlu0 %465  ;;  %v7739_v29 = vpop.permute.xlu1 %435 }
 0x142   :  { %981 = vrot.lane.b32.xlu1 %v973_v30, %s7387_s29  ;;  %v311_v30 = vrot.slane %v296_v9, 2 }
 0x144   :  { %v7743_v31 = vpop.permute.xlu0 %461  ;;  %v7745_v32 = vpop.permute.xlu1 %733  ;;  %v312_v60 = vsel %vm304_vm4, %v310_v27, %v311_v30 }
 0x148   :  { %v7747_v35 = vpop.permute.xlu0 %759  ;;  %v7749_v36 = vpop.permute.xlu1 %729 }
 0x14c   :  { %v7751_v37 = vpop.permute.xlu0 %755  ;;  %v7753_v38 = vpop.permute.xlu1 %735 }
 0x150   :  { %v7755_v39 = vpop.permute.xlu0 %761  ;;  %v7757_v40 = vpop.permute.xlu1 %731 }
 0x154   :  { %v7759_v45 = vpop.permute.xlu0 %757  ;;  %v239_v48 = vpop.permute.xlu1 %238 }
 0x155   :  { %v248_v18 = vadd.f32 %v239_v48, %v208_v15  ;;  %v313_v15 = vrot.slane %v297_v5, 2  ;;  %v414_v5 = vstv %s6336_s25  ;;  %s8334_s25 = sld [smem:[#allocation9 + $0x14]] }
 0x157   :  { %v314_v4 = vsel %vm304_vm4, %v311_v30, %v313_v15  ;;  %v477_v15 = vmul.f32 %v476_v0, %v7489_v13 }
 0x158   :  { %v279_v58 = vpop.permute.xlu0 %278  ;;  %v235_v59 = vpop.permute.xlu1 %234 }
 0x159   :  { %v288_v41 = vadd.f32 %v279_v58, %v248_v18  ;;  %v246_v48 = vadd.f32 %v235_v59, %v206_v50  ;;  %v209_v58 = vadd.f32 %v201_v51, %v176_v47  ;;  %v404_v59 = vstv %s403_s21  ;;  %s8148_s21 = sld [smem:[#allocation9 + $0x22]] }
 0x15a   :  { %v207_v18 = vadd.f32 %v196_v57, %v174_v55  ;;  %v1016_v47 = vstv %s6356_s22  ;;  %s8162_s22 = sld [smem:[#allocation9 + $0x11]] }
 0x15b   :  { %v321_v23 = vadd.f32 %v312_v60, %v288_v41  ;;  %v7796_v60 = vstv %s6357_s23  ;;  %s8180_s23 = sld [smem:[#allocation7 + $0x2]] }
 0x15c   :  { %v275_v6 = vpop.permute.xlu0 %274  ;;  %v241_v7 = vpop.permute.xlu1 %240 }
 0x15d   :  { %v286_v42 = vadd.f32 %v275_v6, %v246_v48  ;;  %v249_v8 = vadd.f32 %v241_v7, %v209_v58 }
 0x15f   :  { %v319_v2 = vadd.f32 %v307_v11, %v286_v42 }
 0x160   :  { %v281_v25 = vpop.permute.xlu0 %280  ;;  %v237_v26 = vpop.permute.xlu1 %236 }
 0x161   :  { %v289_v34 = vadd.f32 %v281_v25, %v249_v8  ;;  %v247_v6 = vadd.f32 %v237_v26, %v207_v18  ;;  %v309_v26 = vsel %vm304_vm4, %v306_v1, %v308_v43  ;;  %v480_v8 = vmul.f32 %v476_v0, %v7485_v10 }
 0x162   :  { %v415_v43 = vmul.f32 %v414_v5, %v7489_v13 }
 0x163   :  { %v322_v50 = vadd.f32 %v314_v4, %v289_v34  ;;  %v7827_v4 = vstv %s7798_s26  ;;  %s6395_s26 = sld [smem:[#allocation9 + $0x28]] }
 0x164   :  { %v277_v54 = vpop.permute.xlu0 %276  ;;  %v352_v61 = vpop.permute.xlu1 %351  ;;  %11642 = vst [vmem:[#allocation18_spill] sm:$0xff] %v7827_v4 }
 0x165   :  { %v361_v56 = vadd.f32 %v352_v61, %v321_v23  ;;  %v287_v49 = vadd.f32 %v277_v54, %v247_v6  ;;  %v494_v6 = vrot.slane %v480_v8, 1 }
 0x167   :  { %v320_v54 = vadd.f32 %v309_v26, %v287_v49 }
 0x168   :  { %v392_v9 = vpop.permute.xlu0 %391  ;;  %v348_v33 = vpop.permute.xlu1 %347 }
 0x169   :  { %v401_v20 = vadd.f32 %v392_v9, %v361_v56  ;;  %v359_v21 = vadd.f32 %v348_v33, %v319_v2  ;;  %v7810_v56 = vmul.f32 %v476_v0, %v7493_v16  ;;  %v417_v9 = vmul.f32 %v414_v5, %v7485_v10 }
 0x16b   :  { %v407_v7 = vadd.f32 %v404_v59, %v401_v20  ;;  %v447_v34 = vadd.f32 %v7712_v3, %v417_v9  ;;  %v7836_v3 = vstv %s7803_s27  ;;  %s6396_s27 = sld [smem:[#allocation9 + $0x29]] }
 0x16c   :  { %v388_v27 = vpop.permute.xlu0 %387  ;;  %v354_v46 = vpop.permute.xlu1 %353  ;;  %v592_v26 = vmul.f32 %v7836_v3, %v7485_v10 }
 0x16d   :  { %v7792_v41 = vmax.f32 %v407_v7, 0.0  ;;  %v399_v63 = vadd.f32 %v388_v27, %v359_v21  ;;  %v362_v44 = vadd.f32 %v354_v46, %v322_v50  ;;  %v495_v7 = vrot.slane %v7810_v56, 1 }
 0x16e   :  { %v473_v46 = vadd.f32 %v7720_v12, %v447_v34  ;;  %v445_v50 = vadd.f32 %v7722_v14, %v415_v43  ;;  %v606_v9 = vrot.slane %v592_v26, 2  ;;  %v7878_v34 = vstv %s7839_s28  ;;  %s6377_s28 = sld [smem:[#allocation9 + $0x16]] }
 0x16f   :  { %v405_v25 = vadd.f32 %v404_v59, %v399_v63  ;;  %v1019_v48 = vmul.f32 %v1016_v47, %v7792_v41  ;;  %v1045_v1 = vmul.f32 %v7796_v60, %v7792_v41  ;;  %v490_v63 = vrot.slane %v7819_v17, 1  ;;  %11644 = vst [vmem:[#allocation20_spill] sm:$0xff] %v7878_v34 }
 0x170   :  { %v394_v51 = vpop.permute.xlu0 %393  ;;  %v350_v53 = vpop.permute.xlu1 %349  ;;  %v2000_v12 = vmul.f32 %v7827_v4, %v7792_v41  ;;  %v471_v14 = vadd.f32 %v7729_v22, %v445_v50  ;;  %v594_v50 = vmul.f32 %v7836_v3, %v7543_v52  ;;  %v591_v56 = vmul.f32 %v7836_v3, %v7552_v62 }
 0x171   :  { %v7800_v30 = vmax.f32 %v405_v25, 0.0  ;;  %v402_v61 = vadd.f32 %v394_v51, %v362_v44  ;;  %1029 = vrot.lane.b32.xlu0 %v1019_v48, %s7386_s0  ;;  %v360_v42 = vadd.f32 %v350_v53, %v320_v54  ;;  %v496_v44 = vsel %vm191_vm3, %v494_v6, %v495_v7 }
 0x172   :  { %v7852_v53 = vmul.f32 %v7836_v3, %v7493_v16 }
 0x173   :  { %11641 = vst [vmem:[#allocation17_spill] sm:$0xff] %v7800_v30  ;;  %v408_v55 = vadd.f32 %v404_v59, %v402_v61  ;;  %v1017_v58 = vmul.f32 %v1016_v47, %v7800_v30  ;;  %v1043_v2 = vmul.f32 %v7796_v60, %v7800_v30  ;;  %v505_v61 = vadd.f32 %v496_v44, %v473_v46 }
 0x174   :  { %v390_v23 = vpop.permute.xlu0 %389  ;;  %v536_v57 = vpop.permute.xlu1 %535  ;;  %v2026_v44 = vmul.f32 %v7878_v34, %v7792_v41 }
 0x175   :  { %v7813_v11 = vmax.f32 %v408_v55, 0.0  ;;  %v400_v33 = vadd.f32 %v390_v23, %v360_v42  ;;  %1055 = vrot.lane.b32.xlu0 %v1045_v1, %s7387_s29  ;;  %1025 = vrot.lane.b32.xlu1 %v1017_v58, %s7386_s0  ;;  %v482_v55 = vmul.f32 %v476_v0, %v7543_v52  ;;  %v479_v42 = vmul.f32 %v476_v0, %v7552_v62 }
 0x176   :  { %v545_v10 = vadd.f32 %v536_v57, %v505_v61  ;;  %v1998_v1 = vmul.f32 %v7827_v4, %v7800_v30  ;;  %v589_v58 = vmul.f32 %v7836_v3, %v7489_v13  ;;  %v590_v0 = vmul.f32 %v7836_v3, %v7499_v19 }
 0x177   :  { %v406_v18 = vadd.f32 %v404_v59, %v400_v33  ;;  %v1020_v20 = vmul.f32 %v1016_v47, %v7813_v11  ;;  %v489_v59 = vrot.slane %v477_v15, 1  ;;  %v607_v33 = vrot.slane %v7852_v53, 2 }
 0x178   :  { %v576_v21 = vpop.permute.xlu0 %575  ;;  %v532_v27 = vpop.permute.xlu1 %531  ;;  %v416_v57 = vmul.f32 %v414_v5, %v7499_v19  ;;  %v1046_v19 = vmul.f32 %v7796_v60, %v7813_v11  ;;  %v601_v43 = vrot.slane %v589_v58, 2  ;;  %v604_v58 = vrot.slane %v591_v56, 2 }
 0x179   :  { %v7831_v49 = vmax.f32 %v406_v18, 0.0  ;;  %1031 = vrot.lane.b32.xlu0 %v1020_v20, %s7386_s0  ;;  %1051 = vrot.lane.b32.xlu1 %v1043_v2, %s7387_s29  ;;  %v491_v54 = vsel %vm191_vm3, %v489_v59, %v490_v63  ;;  %v585_v15 = vadd.f32 %v576_v21, %v545_v10  ;;  %v2024_v2 = vmul.f32 %v7878_v34, %v7800_v30 }
 0x17a   :  { %v503_v17 = vadd.f32 %v491_v54, %v471_v14  ;;  %v446_v18 = vadd.f32 %v7739_v29, %v416_v57  ;;  %v608_v21 = vsel %vm304_vm4, %v606_v9, %v607_v33  ;;  %v609_v54 = vrot.slane %v594_v50, 2 }
 0x17b   :  { %11643 = vst [vmem:[#allocation19_spill] sm:$0xff] %v7831_v49  ;;  %v1018_v25 = vmul.f32 %v1016_v47, %v7831_v49  ;;  %v418_v47 = vmul.f32 %v414_v5, %v7493_v16  ;;  %v1044_v22 = vmul.f32 %v7796_v60, %v7831_v49  ;;  %v492_v5 = vrot.slane %v479_v42, 1 }
 0x17c   :  { %v572_v48 = vpop.permute.xlu0 %571  ;;  %v538_v51 = vpop.permute.xlu1 %537  ;;  %v543_v20 = vadd.f32 %v532_v27, %v503_v17  ;;  %v472_v59 = vadd.f32 %v7743_v31, %v446_v18  ;;  %v617_v27 = vadd.f32 %v608_v21, %v585_v15  ;;  %v610_v3 = vsel %vm304_vm4, %v607_v33, %v609_v54 }
 0x17d   :  { %2010 = vrot.lane.b32.xlu0 %v2000_v12, %s7386_s0  ;;  %1027 = vrot.lane.b32.xlu1 %v1018_v25, %s7386_s0  ;;  %v448_v23 = vadd.f32 %v7731_v24, %v418_v47  ;;  %v497_v24 = vrot.slane %v482_v55, 1  ;;  %v493_v31 = vsel %vm191_vm3, %v490_v63, %v492_v5 }
 0x17e   :  { %v583_v29 = vadd.f32 %v572_v48, %v543_v20  ;;  %v700_v48 = vstv %s7869_s30  ;;  %v504_v61 = vadd.f32 %v493_v31, %v472_v59  ;;  %v1092_v31 = vstv %s6359_s10  ;;  %s6378_s30 = sld [smem:[#allocation9 + $0x17]]  ;;  %s6401_s10 = sld [smem:[#allocation9 + $0x2e]] }
 0x17f   :  { %v474_v13 = vadd.f32 %v7737_v28, %v448_v23  ;;  %v602_v28 = vrot.slane %v590_v0, 2  ;;  %v498_v60 = vsel %vm191_vm3, %v495_v7, %v497_v24  ;;  %v1254_v23 = vstv %s7886_s8  ;;  %s6398_s8 = sld [smem:[#allocation9 + $0x2b]] }
 0x180   :  { %v578_v16 = vpop.permute.xlu0 %577  ;;  %v534_v8 = vpop.permute.xlu1 %533 }
 0x181   :  { %2006 = vrot.lane.b32.xlu0 %v1998_v1, %s7386_s0  ;;  %1053 = vrot.lane.b32.xlu1 %v1044_v22, %s7387_s29  ;;  %v506_v12 = vadd.f32 %v498_v60, %v474_v13  ;;  %v603_v53 = vsel %vm304_vm4, %v601_v43, %v602_v28  ;;  %v544_v42 = vadd.f32 %v534_v8, %v504_v61  ;;  %v1280_v13 = vstv %s6366_s9  ;;  %s6399_s9 = sld [smem:[#allocation9 + $0x2c]] }
 0x182   :  { %v615_v47 = vadd.f32 %v603_v53, %v583_v29  ;;  %v7940_v53 = vmul.f32 %v1092_v31, %v7831_v49 }
 0x183   :  { %v546_v7 = vadd.f32 %v538_v51, %v506_v12 }
 0x184   :  { %v574_v6 = vpop.permute.xlu0 %573  ;;  %v648_v46 = vpop.permute.xlu1 %647 }
 0x185   :  { %2032 = vrot.lane.b32.xlu0 %v2024_v2, %s7387_s29  ;;  %1057 = vrot.lane.b32.xlu1 %v1046_v19, %s7387_s29  ;;  %v657_v25 = vadd.f32 %v648_v46, %v617_v27  ;;  %v586_v55 = vadd.f32 %v578_v16, %v546_v7  ;;  %v584_v9 = vadd.f32 %v574_v6, %v544_v42  ;;  %v1102_v7 = vrot.slane %v7940_v53, 1 }
 0x186   :  { %v605_v16 = vsel %vm304_vm4, %v602_v28, %v604_v58 }
 0x187   :  { %v618_v57 = vadd.f32 %v610_v3, %v586_v55  ;;  %v616_v20 = vadd.f32 %v605_v16, %v584_v9  ;;  %v7977_v9 = vstv %s6368_s14  ;;  %s6407_s14 = sld [smem:[#allocation9 + $0x34]] }
 0x188   :  { %v688_v26 = vpop.permute.xlu0 %687  ;;  %v644_v14 = vpop.permute.xlu1 %643 }
 0x189   :  { %v697_v52 = vadd.f32 %v688_v26, %v657_v25  ;;  %2036 = vrot.lane.b32.xlu1 %v2026_v44, %s7387_s29  ;;  %v655_v10 = vadd.f32 %v644_v14, %v615_v47  ;;  %v7929_v25 = vstv %s6392_s2  ;;  %v7931_v44 = vstv %s6393_s1  ;;  %s6380_s2 = sld [smem:[#allocation9 + $0x19]]  ;;  %s6381_s1 = sld [smem:[#allocation9 + $0x1a]] }
 0x18a   :  { %11646 = vst [vmem:[#allocation22_spill] sm:$0xff] %v7929_v25  ;;  %11647 = vst [vmem:[#allocation23_spill] sm:$0xff] %v7931_v44  ;;  %v1124_v14 = vstv %s6360_s11  ;;  %v7955_v47 = vstv %s6362_s12  ;;  %s6402_s11 = sld [smem:[#allocation9 + $0x2f]]  ;;  %s6404_s12 = sld [smem:[#allocation9 + $0x31]] }
 0x18b   :  { %v703_v63 = vadd.f32 %v700_v48, %v697_v52  ;;  %v7948_v61 = vmul.f32 %v1124_v14, %v7831_v49  ;;  %v1096_v52 = vmul.f32 %v1092_v31, %v7813_v11  ;;  %v1128_v42 = vmul.f32 %v1124_v14, %v7813_v11 }
 0x18c   :  { %v684_v1 = vpop.permute.xlu0 %683  ;;  %v650_v22 = vpop.permute.xlu1 %649  ;;  %v1183_v53 = vmul.f32 %v7955_v47, %v7792_v41 }
 0x18d   :  { %v7905_v0 = vmax.f32 %v703_v63, 0.0  ;;  %v695_v62 = vadd.f32 %v684_v1, %v655_v10  ;;  %v658_v18 = vadd.f32 %v650_v22, %v618_v57  ;;  %v1134_v54 = vrot.slane %v7948_v61, 1 }
 0x18e   :  { %v1105_v55 = vrot.slane %v1096_v52, 1  ;;  %v7961_v63 = vmul.f32 %v7955_v47, %v7831_v49  ;;  %v1212_v10 = vstv %s6363_s13  ;;  %v1137_v1 = vrot.slane %v1128_v42, 1  ;;  %s6405_s13 = sld [smem:[#allocation9 + $0x32]] }
 0x18f   :  { %v701_v51 = vadd.f32 %v700_v48, %v695_v62  ;;  %v1257_v15 = vmul.f32 %v1254_v23, %v7905_v0  ;;  %v1283_v33 = vmul.f32 %v1280_v13, %v7905_v0  ;;  %v2264_v26 = vmul.f32 %v7931_v44, %v7905_v0 }
 0x190   :  { %v690_v17 = vpop.permute.xlu0 %689  ;;  %v646_v8 = vpop.permute.xlu1 %645  ;;  %v1190_v22 = vrot.slane %v7961_v63, 2  ;;  %v1214_v58 = vmul.f32 %v1212_v10, %v7831_v49  ;;  %v1216_v57 = vmul.f32 %v1212_v10, %v7813_v11  ;;  %v1192_v61 = vrot.slane %v1183_v53, 2 }
 0x191   :  { %v7910_v24 = vmax.f32 %v701_v51, 0.0  ;;  %1267 = vrot.lane.b32.xlu1 %v1257_v15, %s7386_s0  ;;  %v698_v2 = vadd.f32 %v690_v17, %v658_v18  ;;  %v656_v19 = vadd.f32 %v646_v8, %v616_v20  ;;  %v7991_v17 = vstv %s6369_s15  ;;  %s6408_s15 = sld [smem:[#allocation9 + $0x35]] }
 0x192   :  { %v1222_v3 = vrot.slane %v1214_v58, 2  ;;  %v1225_v16 = vrot.slane %v1216_v57, 2  ;;  %v8042_v58 = vstv %s6349_s3  ;;  %v2073_v53 = vstv %s8032_s18  ;;  %s8749_s3 = sld [smem:[#allocation9 + $0x37]]  ;;  %s6412_s18 = sld [smem:[#allocation9 + $0x38]] }
 0x193   :  { %v1255_v5 = vmul.f32 %v1254_v23, %v7910_v24  ;;  %v704_v46 = vadd.f32 %v700_v48, %v698_v2  ;;  %v1281_v28 = vmul.f32 %v1280_v13, %v7910_v24  ;;  %v2236_v56 = vmul.f32 %v7929_v25, %v7910_v24 }
 0x194   :  { %v686_v6 = vpop.permute.xlu0 %685  ;;  %v7979_v62 = vpop.permute.xlu1 %831  ;;  %v1095_v2 = vmul.f32 %v1092_v31, %v7792_v41  ;;  %v2074_v63 = vmul.f32 %v2073_v53, %v7800_v30 }
 0x195   :  { %v696_v21 = vadd.f32 %v686_v6, %v656_v19  ;;  %1263 = vrot.lane.b32.xlu0 %v1255_v5, %s7386_s0  ;;  %1293 = vrot.lane.b32.xlu1 %v1283_v33, %s7387_s29  ;;  %v7921_v29 = vmax.f32 %v704_v46, 0.0  ;;  %v1127_v19 = vmul.f32 %v1124_v14, %v7792_v41  ;;  %v1093_v46 = vmul.f32 %v1092_v31, %v7800_v30 }
 0x196   :  { %v1104_v6 = vrot.slane %v1095_v2, 1  ;;  %v1213_v31 = vmul.f32 %v1212_v10, %v7800_v30 }
 0x197   :  { %v702_v43 = vadd.f32 %v700_v48, %v696_v21  ;;  %v1284_v50 = vmul.f32 %v1280_v13, %v7921_v29  ;;  %v1258_v12 = vmul.f32 %v1254_v23, %v7921_v29  ;;  %v2238_v48 = vmul.f32 %v7929_v25, %v7905_v0 }
 0x198   :  { %v8000_v18 = vmul.f32 %v7977_v9, %v7921_v29  ;;  %v8002_v20 = vpop.permute.xlu1 %827  ;;  %v1136_v21 = vrot.slane %v1127_v19, 1  ;;  %v1221_v57 = vrot.slane %v1213_v31, 2 }
 0x199   :  { %v7918_v59 = vmax.f32 %v702_v43, 0.0  ;;  %1289 = vrot.lane.b32.xlu1 %v1281_v28, %s7387_s29  ;;  %v1215_v43 = vmul.f32 %v1212_v10, %v7792_v41 }
 0x19a   :  { %v1343_v33 = vrot.slane %v8000_v18, 1  ;;  %v1223_v19 = vsel %vm304_vm4, %v1221_v57, %v1222_v3 }
 0x19b   :  { %11645 = vst [vmem:[#allocation21_spill] sm:$0xff] %v7918_v59  ;;  %v1282_v27 = vmul.f32 %v1280_v13, %v7918_v59  ;;  %v1256_v60 = vmul.f32 %v1254_v23, %v7918_v59  ;;  %v7971_v23 = vmul.f32 %v7955_v47, %v7813_v11  ;;  %v7985_v15 = vmul.f32 %v7977_v9, %v7918_v59 }
 0x19c   :  { %v7996_v13 = vmul.f32 %v7991_v17, %v7918_v59  ;;  %v8020_v28 = vpop.permute.xlu1 %833 }
 0x19d   :  { %1291 = vrot.lane.b32.xlu0 %v1282_v27, %s7387_s29  ;;  %1265 = vrot.lane.b32.xlu1 %v1256_v60, %s7386_s0  ;;  %v1193_v51 = vrot.slane %v7971_v23, 2  ;;  %v11504_v8 = vrot.slane %v7985_v15, 1  ;;  %v1106_v27 = vsel %vm191_vm3, %v1104_v6, %v1105_v55  ;;  %v1138_v60 = vsel %vm191_vm3, %v1136_v21, %v1137_v1  ;;  %v7296_v21 = vld [vmem:[#allocation2 + $0x18] sm:$0xff] }
 0x19e   :  { %v11505_v5 = vrot.slane %v7996_v13, 1 }
 0x1a1   :  { %1295 = vrot.lane.b32.xlu0 %v1284_v50, %s7387_s29  ;;  %1269 = vrot.lane.b32.xlu1 %v1258_v12, %s7386_s0  ;;  %v8024_v50 = vpop.permute.xlu0 %871  ;;  %v1101_v12 = vrot.slane %v1093_v46, 1 }
 0x1a3   :  { %v1103_v52 = vsel %vm191_vm3, %v1101_v12, %v1102_v7  ;;  %v8063_v12 = vstv %s6352_s4  ;;  %s8753_s4 = sld [smem:[#allocation9 + $0x6]] }
 0x1a5   :  { %2248 = vrot.lane.b32.xlu0 %v2238_v48, %s7386_s0  ;;  %2274 = vrot.lane.b32.xlu1 %v2264_v26, %s7387_s29  ;;  %v1224_v48 = vrot.slane %v1215_v43, 2  ;;  %v1125_v26 = vmul.f32 %v1124_v14, %v7800_v30  ;;  %v8044_v14 = vpop.permute.xlu1 %829  ;;  %v776_v43 = vmul.f32 %v7296_v21, %v8042_v58 }
 0x1a7   :  { %v1133_v10 = vrot.slane %v1125_v26, 1  ;;  %v8071_v26 = vld [vmem:[#allocation2] sm:$0xff] }
 0x1a8   :  { %v8105_v23 = vmul.f32 %v8071_v26, %v8042_v58 }
 0x1a9   :  { %2244 = vrot.lane.b32.xlu0 %v2236_v56, %s7386_s0  ;;  %1109 = vrot.lane.b32.xlu1 %v1102_v7, %s7386_s0  ;;  %v8030_v56 = vstv %s6387_s16  ;;  %v1135_v2 = vsel %vm191_vm3, %v1133_v10, %v1134_v54  ;;  %v8083_v57 = vpop.permute.xlu1 %943  ;;  %s1005_s16 = sld [smem:[#allocation9]] }
 0x1aa   :  { %v8040_v42 = vmul.f32 %v8030_v56, %v7813_v11  ;;  %v2108_v7 = vmul.f32 %v8030_v56, %v7792_v41 }
 0x1ac   :  { %11648 = vst [vmem:[#allocation24_spill] sm:$0xff] %v8040_v42  ;;  %v11506_v6 = vrot.slane %v8040_v42, 1  ;;  %v888_v42 = vmul.f32 %v7296_v21, %v8063_v12 }
 0x1ad   :  { %1141 = vrot.lane.b32.xlu0 %v1134_v54, %s7387_s29  ;;  %1113 = vrot.lane.b32.xlu1 %v1105_v55, %s7386_s0  ;;  %v1226_v55 = vsel %vm304_vm4, %v1224_v48, %v1225_v16  ;;  %v2117_v54 = vrot.slane %v2108_v7, 1  ;;  %v1333_v48 = vmul.f32 %v7977_v9, %v7905_v0  ;;  %v8143_v4 = vpop.permute.xlu1 %939 }
 0x1af   :  { %v2119_v7 = vsel %vm191_vm3, %v2117_v54, %v11506_v6  ;;  %v1342_v54 = vrot.slane %v1333_v48, 1  ;;  %v2076_v6 = vmul.f32 %v2073_v53, %v7792_v41 }
 0x1b1   :  { %1145 = vrot.lane.b32.xlu0 %v1137_v1, %s7387_s29  ;;  %1197 = vrot.lane.b32.xlu1 %v1190_v22, %s7386_s0  ;;  %v710_v1 = vstv %s6346_s17  ;;  %s6358_s17 = sld [smem:[#allocation9 + $0x3]] }
 0x1b2   :  { %v713_v46 = vmul.f32 %v7296_v21, %v710_v1  ;;  %v8074_v31 = vmul.f32 %v8071_v26, %v710_v1  ;;  %v1363_v21 = vmul.f32 %v7991_v17, %v7910_v24 }
 0x1b5   :  { %1229 = vrot.lane.b32.xlu0 %v1222_v3, %s7387_s29  ;;  %1201 = vrot.lane.b32.xlu1 %v1193_v51, %s7386_s0  ;;  %v1181_v3 = vmul.f32 %v7955_v47, %v7800_v30  ;;  %v1194_v47 = vsel %vm304_vm4, %v1192_v61, %v1193_v51 }
 0x1b7   :  { %v1189_v61 = vrot.slane %v1181_v3, 2  ;;  %v8126_v3 = vmul.f32 %v2073_v53, %v7831_v49 }
 0x1b9   :  { %1233 = vrot.lane.b32.xlu0 %v1225_v16, %s7387_s29  ;;  %1347 = vrot.lane.b32.xlu1 %v11504_v8, %s7386_s0  ;;  %v8052_v16 = vpop.permute.xlu0 %867  ;;  %v790_v8 = vrot.slane %v776_v43, 1  ;;  %v1191_v48 = vsel %vm304_vm4, %v1189_v61, %v1190_v22 }
 0x1bd   :  { %1379 = vrot.lane.b32.xlu0 %v11505_v5, %s7387_s29  ;;  %1351 = vrot.lane.b32.xlu1 %v1343_v33, %s7386_s0  ;;  %v8107_v51 = vpop.permute.xlu0 %873  ;;  %v8119_v5 = vld [vmem:[#allocation2 + $0x28] sm:$0x3] }
 0x1c1   :  { %1111 = vrot.lane.b32.xlu0 %v1106_v27, %s7386_s0  ;;  %1143 = vrot.lane.b32.xlu1 %v1138_v60, %s7387_s29  ;;  %v7297_v27 = vld [vmem:[#allocation2 + $0x20] sm:$0xff]  ;;  %v8156_v25 = vpop.permute.xlu0 %869 }
 0x1c2   :  { %v8061_v60 = vmul.f32 %v7297_v27, %v8042_v58  ;;  %v8141_v34 = vmul.f32 %v7297_v27, %v8063_v12 }
 0x1c4   :  { %v11650_v22 = vrot.slane %v8061_v60, 1 }
 0x1c5   :  { %1107 = vrot.lane.b32.xlu0 %v1103_v52, %s7386_s0  ;;  %1231 = vrot.lane.b32.xlu1 %v1226_v55, %s7387_s29  ;;  %v8076_v52 = vmul.f32 %v7297_v27, %v710_v1  ;;  %v8078_v55 = vld [vmem:[#allocation2 + $0x8] sm:$0xff] }
 0x1c6   :  { %v8081_v10 = vmul.f32 %v8078_v55, %v710_v1  ;;  %v8099_v1 = vmul.f32 %v7991_v17, %v7921_v29  ;;  %v8117_v43 = vmul.f32 %v8078_v55, %v8042_v58  ;;  %v792_v18 = vsel %vm191_vm3, %v790_v8, %v11650_v22 }
 0x1c7   :  { %v11517_v22 = vrot.slane %v8141_v34, 2 }
 0x1c9   :  { %1139 = vrot.lane.b32.xlu0 %v1135_v2, %s7387_s29  ;;  %1227 = vrot.lane.b32.xlu1 %v1223_v19, %s7387_s29  ;;  %v8095_v2 = vmul.f32 %v2073_v53, %v7813_v11  ;;  %v743_v19 = vadd.f32 %v7745_v32, %v713_v46  ;;  %v1365_v32 = vmul.f32 %v7991_v17, %v7905_v0 }
 0x1ca   :  { %v8172_v17 = vmul.f32 %v8030_v56, %v7831_v49 }
 0x1cb   :  { %11649 = vst [vmem:[#allocation25_spill] sm:$0xff] %v8095_v2  ;;  %v769_v46 = vadd.f32 %v7747_v35, %v743_v19  ;;  %v1344_v35 = vsel %vm191_vm3, %v1342_v54, %v1343_v33  ;;  %v11515_v19 = vrot.slane %v8099_v1, 1  ;;  %v2085_v33 = vrot.slane %v2076_v6, 1 }
 0x1cc   :  { %v1374_v61 = vrot.slane %v1365_v32, 1  ;;  %11651 = vst [vmem:[#allocation26_spill] sm:$0xff] %v8172_v17 }
 0x1cd   :  { %1199 = vrot.lane.b32.xlu0 %v1194_v47, %s7386_s0  ;;  %2124 = vrot.lane.b32.xlu1 %v2119_v7, %s7387_s29  ;;  %v8123_v47 = vmul.f32 %v8119_v5, %v8042_v58  ;;  %v11514_v7 = vrot.slane %v8095_v2, 1  ;;  %v801_v27 = vadd.f32 %v792_v18, %v769_v46  ;;  %v902_v46 = vrot.slane %v888_v42, 2 }
 0x1ce   :  { %v1376_v6 = vsel %vm191_vm3, %v1374_v61, %v11515_v19  ;;  %v2082_v18 = vrot.slane %v2074_v63, 1  ;;  %v11520_v19 = vrot.slane %v8172_v17, 1 }
 0x1cf   :  { %v2087_v8 = vsel %vm191_vm3, %v2085_v33, %v11514_v7  ;;  %v841_v32 = vadd.f32 %v7979_v62, %v801_v27  ;;  %v8184_v33 = vld [vmem:[#allocation2 + $0x10] sm:$0x3]  ;;  %v1371_v7 = vrot.slane %v1363_v21, 1  ;;  %v2106_v62 = vmul.f32 %v8030_v56, %v7800_v30 }
 0x1d0   :  { %v8188_v61 = vmul.f32 %v8184_v33, %v8042_v58  ;;  %v8202_v58 = vstv %s8128_s20  ;;  %v11653_v21 = vrot.slane %v7996_v13, 1  ;;  %v8222_v13 = vmul.f32 %v8078_v55, %v8063_v12  ;;  %s6367_s20 = sld [smem:[#allocation9 + $0xc]] }
 0x1d1   :  { %1195 = vrot.lane.b32.xlu0 %v1191_v48, %s7386_s0  ;;  %1349 = vrot.lane.b32.xlu1 %v1344_v35, %s7386_s0  ;;  %v11516_v48 = vrot.slane %v8126_v3, 1  ;;  %v8160_v35 = vstv %s8086_s19  ;;  %v881_v27 = vadd.f32 %v8024_v50, %v841_v32  ;;  %v8211_v50 = vmul.f32 %v8202_v58, %v7921_v29  ;;  %v984_v32 = vpop.permute.xlu0 %983  ;;  %s6364_s19 = sld [smem:[#allocation9 + $0x9]] }
 0x1d2   :  { %v8176_v53 = vmul.f32 %v8160_v35, %v7813_v11  ;;  %v2196_v42 = vmul.f32 %v8160_v35, %v7792_v41  ;;  %v1373_v56 = vsel %vm191_vm3, %v1371_v7, %v11653_v21  ;;  %v2161_v7 = vstv %s8148_s21  ;;  %s6382_s21 = sld [smem:[#allocation9 + $0x1b]] }
 0x1d3   :  { %v2084_v63 = vsel %vm191_vm3, %v2082_v18, %v11516_v48  ;;  %v8218_v18 = vmul.f32 %v8071_v26, %v8063_v12  ;;  %v2114_v21 = vrot.slane %v2106_v62, 1  ;;  %v741_v26 = vadd.f32 %v7749_v36, %v8074_v31 }
 0x1d4   :  { %11652 = vst [vmem:[#allocation27_spill] sm:$0xff] %v8176_v53  ;;  %v2205_v48 = vrot.slane %v2196_v42, 2  ;;  %v8234_v55 = vmul.f32 %v2161_v7, %v7813_v11  ;;  %v11655_v62 = vrot.slane %v8176_v53, 2  ;;  %v744_v31 = vadd.f32 %v7753_v38, %v8076_v52 }
 0x1d5   :  { %2092 = vrot.lane.b32.xlu0 %v2087_v8, %s7386_s0  ;;  %1381 = vrot.lane.b32.xlu1 %v1376_v6, %s7387_s29  ;;  %v793_v8 = vrot.slane %v8123_v47, 1  ;;  %v8196_v6 = vpop.permute.xlu1 %945  ;;  %v904_v47 = vsel %vm304_vm4, %v902_v46, %v11517_v22  ;;  %v1331_v46 = vmul.f32 %v7977_v9, %v7910_v24  ;;  %v1421_v22 = vmul.f32 %v8202_v58, %v7905_v0  ;;  %v8261_v38 = vpop.permute.xlu0 %979 }
 0x1d6   :  { %v913_v54 = vadd.f32 %v904_v47, %v881_v27  ;;  %11654 = vst [vmem:[#allocation28_spill] sm:$0xff] %v8234_v55  ;;  %v2207_v42 = vsel %vm304_vm4, %v2205_v48, %v11655_v62  ;;  %v11521_v9 = vrot.slane %v8211_v50, 2  ;;  %v767_v36 = vadd.f32 %v7751_v37, %v741_v26 }
 0x1d7   :  { %v8252_v47 = vstv %s8180_s23  ;;  %v1339_v48 = vrot.slane %v1331_v46, 1  ;;  %v2164_v62 = vmul.f32 %v2161_v7, %v7792_v41  ;;  %v770_v37 = vadd.f32 %v7755_v39, %v744_v31  ;;  %s6370_s23 = sld [smem:[#allocation9 + $0xf]] }
 0x1d8   :  { %v953_v27 = vadd.f32 %v8083_v57, %v913_v54  ;;  %v8265_v57 = vmul.f32 %v2161_v7, %v7831_v49  ;;  %v11657_v54 = vrot.slane %v7985_v15, 1  ;;  %v890_v15 = vmul.f32 %v8119_v5, %v8063_v12 }
 0x1d9   :  { %2088 = vrot.lane.b32.xlu0 %v2084_v63, %s7386_s0  ;;  %1377 = vrot.lane.b32.xlu1 %v1373_v56, %s7387_s29  ;;  %v1450_v63 = vstv %s8162_s22  ;;  %v2116_v56 = vsel %vm191_vm3, %v2114_v21, %v11520_v19  ;;  %v8254_v17 = vpop.permute.xlu1 %941  ;;  %v1430_v21 = vrot.slane %v1421_v22, 2  ;;  %s6385_s22 = sld [smem:[#allocation9 + $0x1e]] }
 0x1da   :  { %v8245_v2 = vmul.f32 %v1450_v63, %v7921_v29  ;;  %v1453_v19 = vmul.f32 %v1450_v63, %v7905_v0  ;;  %v993_v26 = vadd.f32 %v984_v32, %v953_v27  ;;  %11656 = vst [vmem:[#allocation29_spill] sm:$0xff] %v8265_v57  ;;  %v1341_v22 = vsel %vm191_vm3, %v1339_v48, %v11657_v54 }
 0x1db   :  { %v1432_v46 = vsel %vm304_vm4, %v1430_v21, %v11521_v9  ;;  %v8277_v32 = vmul.f32 %v1450_v63, %v7918_v59  ;;  %v2162_v27 = vmul.f32 %v2161_v7, %v7800_v30  ;;  %v11660_v48 = vrot.slane %v8061_v60, 1 }
 0x1dc   :  { %v2173_v54 = vrot.slane %v2164_v62, 2  ;;  %v1462_v9 = vrot.slane %v1453_v19, 2  ;;  %v1451_v39 = vmul.f32 %v1450_v63, %v7910_v24  ;;  %v11525_v5 = vrot.slane %v8265_v57, 2 }
 0x1dd   :  { %2120 = vrot.lane.b32.xlu0 %v2116_v56, %s7387_s29  ;;  %2212 = vrot.lane.b32.xlu1 %v2207_v42, %s7387_s29  ;;  %v11658_v56 = vrot.slane %v8117_v43, 1  ;;  %v11659_v42 = vrot.slane %v8105_v23, 1  ;;  %v794_v21 = vsel %vm191_vm3, %v11660_v48, %v793_v8  ;;  %v11662_v60 = vrot.slane %v8245_v2, 2 }
 0x1de   :  { %v802_v52 = vadd.f32 %v794_v21, %v770_v37  ;;  %v1460_v19 = vrot.slane %v8277_v32, 2  ;;  %v8306_v63 = vmul.f32 %v8160_v35, %v7831_v49  ;;  %v897_v62 = vrot.slane %v8218_v18, 2 }
 0x1df   :  { %v787_v31 = vsel %vm191_vm3, %v11659_v42, %v11658_v56  ;;  %v999_v56 = vadd.f32 %v8252_v47, %v993_v26  ;;  %v8294_v42 = vpop.permute.xlu1 %981  ;;  %v1464_v8 = vsel %vm304_vm4, %v1462_v9, %v11662_v60  ;;  %v898_v37 = vrot.slane %v8222_v13, 2  ;;  %v986_v26 = vpop.permute.xlu0 %985 }
 0x1e0   :  { %v799_v23 = vadd.f32 %v787_v31, %v767_v36  ;;  %11663 = vst [vmem:[#allocation30_spill] sm:$0xff] %v8306_v63  ;;  %v842_v9 = vadd.f32 %v8020_v28, %v802_v52  ;;  %v905_v31 = vrot.slane %v890_v15, 2  ;;  %v1459_v48 = vrot.slane %v1451_v39, 2 }
 0x1e1   :  { %1345 = vrot.lane.b32.xlu0 %v1341_v22, %s7386_s0  ;;  %1437 = vrot.lane.b32.xlu1 %v1432_v46, %s7386_s0  ;;  %v11661_v22 = vrot.slane %v8234_v55, 2  ;;  %v2170_v46 = vrot.slane %v2162_v27, 2  ;;  %v2194_v21 = vmul.f32 %v8160_v35, %v7800_v30  ;;  %v11526_v35 = vrot.slane %v8306_v63, 2 }
 0x1e2   :  { %v839_v36 = vadd.f32 %v8002_v20, %v799_v23  ;;  %v8317_v20 = vmax.f32 %v999_v56, 0.0  ;;  %v882_v27 = vadd.f32 %v8107_v51, %v842_v9  ;;  %v1461_v28 = vsel %vm304_vm4, %v1459_v48, %v1460_v19 }
 0x1e3   :  { %v2175_v7 = vsel %vm304_vm4, %v2173_v54, %v11661_v22  ;;  %v2172_v23 = vsel %vm304_vm4, %v2170_v46, %v11525_v5  ;;  %v8325_v22 = vstv %s8267_s24  ;;  %v742_v52 = vadd.f32 %v7757_v40, %v8081_v10  ;;  %v8338_v39 = vpop.permute.xlu0 %1029  ;;  %s6388_s24 = sld [smem:[#allocation9 + $0x21]] }
 0x1e4   :  { %v879_v54 = vadd.f32 %v8052_v16, %v839_v36  ;;  %11664 = vst [vmem:[#allocation31_spill] sm:$0xff] %v8317_v20  ;;  %v1420_v16 = vmul.f32 %v8202_v58, %v7918_v59  ;;  %v788_v51 = vrot.slane %v8188_v61, 1  ;;  %v899_v15 = vsel %vm304_vm4, %v897_v62, %v898_v37 }
 0x1e5   :  { %2180 = vrot.lane.b32.xlu0 %v2175_v7, %s7386_s0  ;;  %1469 = vrot.lane.b32.xlu1 %v1464_v8, %s7387_s29  ;;  %v2202_v56 = vrot.slane %v2194_v21, 2  ;;  %v1419_v7 = vmul.f32 %v8202_v58, %v7910_v24  ;;  %v768_v60 = vadd.f32 %v7759_v45, %v742_v52  ;;  %v11665_v40 = vrot.slane %v8141_v34, 2 }
 0x1e6   :  { %v911_v8 = vadd.f32 %v899_v15, %v879_v54  ;;  %v1495_v61 = vmul.f32 %v8325_v22, %v8317_v20  ;;  %v1428_v9 = vrot.slane %v1420_v16, 2  ;;  %v11666_v45 = vrot.slane %v8117_v43, 1 }
 0x1e7   :  { %v8319_v18 = vpop.permute.xlu1 %1025  ;;  %v906_v10 = vsel %vm304_vm4, %v11665_v40, %v905_v31  ;;  %v2204_v62 = vsel %vm304_vm4, %v2202_v56, %v11526_v35  ;;  %v887_v48 = vmul.f32 %v8184_v33, %v8063_v12  ;;  %v1427_v21 = vrot.slane %v1419_v7, 2 }
 0x1e8   :  { %v914_v46 = vadd.f32 %v906_v10, %v882_v27  ;;  %v951_v58 = vadd.f32 %v8143_v4, %v911_v8  ;;  %v789_v34 = vsel %vm191_vm3, %v11666_v45, %v788_v51  ;;  %v8369_v27 = vpop.permute.xlu0 %1055  ;;  %v8375_v16 = vstv %s8334_s25  ;;  %s8977_s25 = sld [smem:[#allocation9 + $0x12]] }
 0x1e9   :  { %2176 = vrot.lane.b32.xlu0 %v2172_v23, %s7386_s0  ;;  %1465 = vrot.lane.b32.xlu1 %v1461_v28, %s7387_s29  ;;  %v800_v54 = vadd.f32 %v789_v34, %v768_v60  ;;  %v1429_v43 = vsel %vm304_vm4, %v1427_v21, %v1428_v9  ;;  %v900_v12 = vrot.slane %v887_v48, 2  ;;  %v2311_v56 = vstv %s6395_s26  ;;  %s8992_s26 = sld [smem:[#allocation9 + $0x15]] }
 0x1ea   :  { %v954_v31 = vadd.f32 %v8196_v6, %v914_v46  ;;  %v991_v23 = vadd.f32 %v8261_v38, %v951_v58  ;;  %v2262_v8 = vmul.f32 %v7931_v44, %v7910_v24  ;;  %v2343_v40 = vstv %s6396_s27  ;;  %s9005_s27 = sld [smem:[#allocation9 + $0x24]] }
 0x1eb   :  { %v8352_v36 = vpop.permute.xlu1 %1051  ;;  %v840_v6 = vadd.f32 %v8044_v14, %v800_v54  ;;  %v11667_v14 = vrot.slane %v8099_v1, 1  ;;  %v8406_v1 = vmul.f32 %v2343_v40, %v7921_v29 }
 0x1ec   :  { %v994_v28 = vadd.f32 %v986_v26, %v954_v31  ;;  %v997_v38 = vadd.f32 %v8252_v47, %v991_v23  ;;  %v1521_v26 = vmul.f32 %v8375_v16, %v8317_v20  ;;  %v8387_v15 = vpop.permute.xlu0 %1031  ;;  %v1568_v31 = vstv %s6377_s28  ;;  %s10200_s28 = sld [smem:[#allocation9 + $0x3f]] }
 0x1ed   :  { %2208 = vrot.lane.b32.xlu0 %v2204_v62, %s7387_s29  ;;  %1505 = vrot.lane.b32.xlu1 %v1495_v61, %s7386_s0  ;;  %v880_v33 = vadd.f32 %v8156_v25, %v840_v6  ;;  %v901_v25 = vsel %vm304_vm4, %v898_v37, %v900_v12  ;;  %v8403_v61 = vmul.f32 %v2311_v56, %v7921_v29  ;;  %v11672_v37 = vrot.slane %v8211_v50, 2 }
 0x1ee   :  { %v1000_v51 = vadd.f32 %v8252_v47, %v994_v28  ;;  %v8396_v7 = vmax.f32 %v997_v38, 0.0  ;;  %11671 = vst [vmem:[#allocation35_spill] sm:$0xff] %v8406_v1  ;;  %v2314_v62 = vmul.f32 %v2311_v56, %v7905_v0  ;;  %v11524_v50 = vrot.slane %v8406_v1, 1 }
 0x1ef   :  { %v8371_v4 = vpop.permute.xlu1 %1027  ;;  %v912_v60 = vadd.f32 %v901_v25, %v880_v33  ;;  %11670 = vst [vmem:[#allocation34_spill] sm:$0xff] %v8403_v61  ;;  %v11523_v48 = vrot.slane %v8403_v61, 1  ;;  %v1571_v23 = vmul.f32 %v1568_v31, %v8317_v20  ;;  %v8443_v38 = vmul.f32 %v2311_v56, %v7918_v59 }
 0x1f0   :  { %11668 = vst [vmem:[#allocation32_spill] sm:$0xff] %v8396_v7  ;;  %v8400_v10 = vmax.f32 %v1000_v51, 0.0  ;;  %v8418_v45 = vpop.permute.xlu0 %2010  ;;  %v1493_v34 = vmul.f32 %v8325_v22, %v8396_v7  ;;  %v2312_v51 = vmul.f32 %v2311_v56, %v7910_v24 }
 0x1f1   :  { %1433 = vrot.lane.b32.xlu0 %v1429_v43, %s7386_s0  ;;  %1435 = vrot.lane.b32.xlu1 %v1428_v9, %s7386_s0  ;;  %v952_v13 = vadd.f32 %v8254_v17, %v912_v60  ;;  %v2346_v9 = vmul.f32 %v2343_v40, %v7905_v0  ;;  %v1519_v17 = vmul.f32 %v8375_v16, %v8396_v7  ;;  %v1600_v60 = vstv %s6378_s30  ;;  %s7402_s30 = smov 64  }
 0x1f2   :  { %11669 = vst [vmem:[#allocation33_spill] sm:$0xff] %v8400_v10  ;;  %v8427_v21 = vmul.f32 %v1568_v31, %v8400_v10  ;;  %11673 = vst [vmem:[#allocation36_spill] sm:$0xff] %v8443_v38  ;;  %v2320_v56 = vrot.slane %v2312_v51, 1 }
 0x1f3   :  { %v8382_v52 = vpop.permute.xlu1 %1053  ;;  %v992_v58 = vadd.f32 %v8294_v42, %v952_v13  ;;  %v2323_v42 = vrot.slane %v2314_v62, 1  ;;  %v2355_v54 = vrot.slane %v2346_v9, 1  ;;  %v11522_v13 = vrot.slane %v8443_v38, 1 }
 0x1f4   :  { %v11529_v33 = vrot.slane %v8427_v21, 1  ;;  %v1603_v62 = vmul.f32 %v1600_v60, %v8317_v20 }
 0x1f5   :  { %1383 = vrot.lane.b32.xlu0 %v11667_v14, %s7387_s29  ;;  %1531 = vrot.lane.b32.xlu1 %v1521_v26, %s7387_s29  ;;  %v998_v28 = vadd.f32 %v8252_v47, %v992_v58  ;;  %v2325_v6 = vsel %vm191_vm3, %v2323_v42, %v11523_v48  ;;  %v2357_v12 = vsel %vm191_vm3, %v2355_v54, %v11524_v50  ;;  %v8445_v26 = vpop.permute.xlu0 %2006  ;;  %v1580_v47 = vrot.slane %v1571_v23, 1 }
 0x1f6   :  { %v1612_v42 = vrot.slane %v1603_v62, 1  ;;  %v2344_v54 = vmul.f32 %v2343_v40, %v7910_v24  ;;  %v1601_v62 = vmul.f32 %v1600_v60, %v8396_v7 }
 0x1f7   :  { %v8409_v46 = vpop.permute.xlu1 %1057  ;;  %v8450_v14 = vmax.f32 %v998_v28, 0.0 }
 0x1f9   :  { %2270 = vrot.lane.b32.xlu0 %v2262_v8, %s7387_s29  ;;  %1439 = vrot.lane.b32.xlu1 %v11672_v37, %s7386_s0  ;;  %11674 = vst [vmem:[#allocation37_spill] sm:$0xff] %v8450_v14  ;;  %v1582_v8 = vsel %vm191_vm3, %v1580_v47, %v11529_v33  ;;  %v8459_v37 = vmul.f32 %v1600_v60, %v8400_v10  ;;  %v8466_v9 = vpop.permute.xlu0 %2032 }
 0x1fa   :  { %11675 = vst [vmem:[#allocation38_spill] sm:$0xff] %v8466_v9  ;;  %v8491_v47 = vmul.f32 %v1568_v31, %v8450_v14  ;;  %v8494_v51 = vmul.f32 %v1600_v60, %v8450_v14 }
 0x1fb   :  { %v8433_v43 = vpop.permute.xlu1 %2036  ;;  %v11528_v32 = vrot.slane %v8459_v37, 1 }
 0x1fc   :  { %v11532_v60 = vrot.slane %v8494_v51, 1 }
 0x1fd   :  { %1501 = vrot.lane.b32.xlu0 %v1493_v34, %s7386_s0  ;;  %1527 = vrot.lane.b32.xlu1 %v1519_v17, %s7387_s29  ;;  %v1494_v34 = vmul.f32 %v8325_v22, %v8450_v14  ;;  %v2322_v17 = vsel %vm191_vm3, %v2320_v56, %v11522_v13  ;;  %v1569_v56 = vmul.f32 %v1568_v31, %v8396_v7  ;;  %v1578_v31 = vrot.slane %v8491_v47, 1 }
 0x1fe   :  { %v1496_v13 = vmul.f32 %v8325_v22, %v8400_v10 }
 0x1ff   :  { %v1577_v22 = vrot.slane %v1569_v56, 1 }
 0x201   :  { %2330 = vrot.lane.b32.xlu0 %v2325_v6, %s7386_s0  ;;  %2362 = vrot.lane.b32.xlu1 %v2357_v12, %s7387_s29  ;;  %v1614_v6 = vsel %vm191_vm3, %v1612_v42, %v11528_v32  ;;  %v1579_v32 = vsel %vm191_vm3, %v1577_v22, %v1578_v31 }
 0x203   :  { %v8452_v25 = vpop.permute.xlu1 %1267 }
 0x205   :  { %1467 = vrot.lane.b32.xlu0 %v1460_v19, %s7387_s29  ;;  %1587 = vrot.lane.b32.xlu1 %v1582_v8, %s7386_s0  ;;  %v8477_v19 = vmul.f32 %v2343_v40, %v7918_v59  ;;  %v11677_v40 = vrot.slane %v8245_v2, 2  ;;  %v2352_v8 = vrot.slane %v2344_v54, 1  ;;  %v2431_v2 = vstv %s6399_s9  ;;  %s7404_s9 = smov 92  }
 0x206   :  { %v2434_v5 = vmul.f32 %v2431_v2, %v7905_v0  ;;  %v8581_v1 = vmul.f32 %v2431_v2, %v7918_v59 }
 0x207   :  { %v8468_v58 = vpop.permute.xlu1 %1293  ;;  %11676 = vst [vmem:[#allocation39_spill] sm:$0xff] %v8477_v19  ;;  %v8482_v23 = vpop.permute.xlu0 %1263  ;;  %v11527_v12 = vrot.slane %v8477_v19, 1 }
 0x208   :  { %v2443_v33 = vrot.slane %v2434_v5, 2  ;;  %11689 = vst [vmem:[#allocation50_spill] sm:$0xff] %v8581_v1 }
 0x209   :  { %2326 = vrot.lane.b32.xlu0 %v2322_v17, %s7386_s0  ;;  %1503 = vrot.lane.b32.xlu1 %v1494_v34, %s7386_s0  ;;  %v2399_v34 = vstv %s6398_s8  ;;  %v2354_v54 = vsel %vm191_vm3, %v2352_v8, %v11527_v12  ;;  %v1656_v12 = vstv %s6380_s2  ;;  %s9044_s2 = sld [smem:[#allocation9 + $0x27]]  ;;  %s9222_s8 = sld [smem:[#allocation9 + $0x2d]] }
 0x20a   :  { %v8509_v48 = vmul.f32 %v2399_v34, %v7921_v29  ;;  %v2402_v50 = vmul.f32 %v2399_v34, %v7905_v0  ;;  %v1659_v47 = vmul.f32 %v1656_v12, %v8317_v20 }
 0x20b   :  { %v8484_v28 = vpop.permute.xlu1 %1289 }
 0x20c   :  { %11680 = vst [vmem:[#allocation42_spill] sm:$0xff] %v8509_v48  ;;  %v11686_v19 = vrot.slane %v8509_v48, 2  ;;  %v1668_v5 = vrot.slane %v1659_v47, 2 }
 0x20d   :  { %1471 = vrot.lane.b32.xlu0 %v11677_v40, %s7387_s29  ;;  %1619 = vrot.lane.b32.xlu1 %v1614_v6, %s7387_s29  ;;  %v8517_v6 = vmul.f32 %v2431_v2, %v7921_v29  ;;  %v1609_v40 = vrot.slane %v1601_v62, 1  ;;  %v8534_v62 = vmul.f32 %v1656_v12, %v8400_v10 }
 0x20f   :  { %v8502_v17 = vpop.permute.xlu0 %1291  ;;  %v8504_v42 = vpop.permute.xlu1 %1265  ;;  %11681 = vst [vmem:[#allocation43_spill] sm:$0xff] %v8517_v6  ;;  %v11535_v56 = vrot.slane %v8517_v6, 2 }
 0x210   :  { %11678 = vst [vmem:[#allocation40_spill] sm:$0xff] %v8502_v17  ;;  %11679 = vst [vmem:[#allocation41_spill] sm:$0xff] %v8504_v42 }
 0x211   :  { %2358 = vrot.lane.b32.xlu0 %v2354_v54, %s7387_s29  ;;  %1507 = vrot.lane.b32.xlu1 %v1496_v13, %s7386_s0  ;;  %v1611_v13 = vsel %vm191_vm3, %v1609_v40, %v11532_v60  ;;  %v2411_v54 = vrot.slane %v2402_v50, 2  ;;  %v2445_v60 = vsel %vm304_vm4, %v2443_v33, %v11535_v56  ;;  %v2400_v50 = vmul.f32 %v2399_v34, %v7910_v24 }
 0x212   :  { %v1688_v33 = vstv %s6381_s1  ;;  %s9051_s1 = sld [smem:[#allocation9 + $0x18]] }
 0x213   :  { %v8523_v35 = vpop.permute.xlu0 %1295  ;;  %v8525_v8 = vpop.permute.xlu1 %1269  ;;  %v2413_v40 = vsel %vm304_vm4, %v2411_v54, %v11686_v19  ;;  %v1520_v19 = vmul.f32 %v8375_v16, %v8450_v14 }
 0x214   :  { %11682 = vst [vmem:[#allocation44_spill] sm:$0xff] %v8523_v35  ;;  %11683 = vst [vmem:[#allocation45_spill] sm:$0xff] %v8525_v8  ;;  %v2637_v35 = vstv %s6407_s14  ;;  %s9097_s14 = sld [smem:[#allocation9 + $0x2a]] }
 0x215   :  { %1583 = vrot.lane.b32.xlu0 %v1579_v32, %s7386_s0  ;;  %1615 = vrot.lane.b32.xlu1 %v1611_v13, %s7387_s29  ;;  %v11537_v32 = vrot.slane %v8534_v62, 2  ;;  %v8551_v13 = vmul.f32 %v2399_v34, %v7918_v59  ;;  %v2408_v34 = vrot.slane %v2400_v50, 2 }
 0x217   :  { %v8539_v38 = vpop.permute.xlu0 %2248  ;;  %v8541_v22 = vpop.permute.xlu1 %2274  ;;  %11687 = vst [vmem:[#allocation48_spill] sm:$0xff] %v8551_v13  ;;  %v1670_v54 = vsel %vm304_vm4, %v1668_v5, %v11537_v32  ;;  %v11542_v56 = vrot.slane %v8551_v13, 2  ;;  %v1522_v13 = vmul.f32 %v8375_v16, %v8400_v10  ;;  %v1657_v16 = vmul.f32 %v1656_v12, %v8396_v7 }
 0x218   :  { %11684 = vst [vmem:[#allocation46_spill] sm:$0xff] %v8539_v38  ;;  %11685 = vst [vmem:[#allocation47_spill] sm:$0xff] %v8541_v22  ;;  %v2581_v38 = vstv %s6405_s13  ;;  %s7398_s13 = smov 108  }
 0x219   :  { %2418 = vrot.lane.b32.xlu0 %v2413_v40, %s7386_s0  ;;  %2450 = vrot.lane.b32.xlu1 %v2445_v60, %s7387_s29  ;;  %v8567_v40 = vmul.f32 %v1688_v33, %v8400_v10  ;;  %v1691_v60 = vmul.f32 %v1688_v33, %v8317_v20  ;;  %v2410_v5 = vsel %vm304_vm4, %v2408_v34, %v11542_v56  ;;  %v11549_v56 = vrot.slane %v8581_v1, 2 }
 0x21b   :  { %v8556_v61 = vpop.permute.xlu0 %2244  ;;  %v8558_v48 = vpop.permute.xlu1 %1109  ;;  %v11544_v32 = vrot.slane %v8567_v40, 2  ;;  %v1700_v50 = vrot.slane %v1691_v60, 2  ;;  %v1689_v60 = vmul.f32 %v1688_v33, %v8396_v7 }
 0x21c   :  { %11688 = vst [vmem:[#allocation49_spill] sm:$0xff] %v8556_v61  ;;  %v11698_v61 = vrot.slane %v8494_v51, 1 }
 0x21d   :  { %1529 = vrot.lane.b32.xlu0 %v1520_v19, %s7387_s29  ;;  %1675 = vrot.lane.b32.xlu1 %v1670_v54, %s7386_s0  ;;  %v2432_v19 = vmul.f32 %v2431_v2, %v7910_v24  ;;  %v1702_v34 = vsel %vm304_vm4, %v1700_v50, %v11544_v32 }
 0x21f   :  { %v8572_v47 = vpop.permute.xlu0 %1141  ;;  %v8574_v6 = vpop.permute.xlu1 %1113  ;;  %v2440_v2 = vrot.slane %v2432_v19, 2 }
 0x221   :  { %2414 = vrot.lane.b32.xlu0 %v2410_v5, %s7386_s0  ;;  %1585 = vrot.lane.b32.xlu1 %v1578_v31, %s7386_s0  ;;  %v8597_v5 = vmul.f32 %v1656_v12, %v8450_v14  ;;  %v1690_v31 = vmul.f32 %v1688_v33, %v8450_v14  ;;  %v2442_v32 = vsel %vm304_vm4, %v2440_v2, %v11549_v56  ;;  %v1665_v12 = vrot.slane %v1657_v16, 2 }
 0x222   :  { %v1697_v33 = vrot.slane %v1689_v60, 2  ;;  %v8622_v2 = vstv %s6401_s10  ;;  %v2549_v60 = vstv %s6404_s12  ;;  %s7392_s12 = smov 36   ;;  %s6417_s10 = sld [smem:[#allocation9 + $0x3d]] }
 0x223   :  { %v8586_v54 = vpop.permute.xlu0 %1145  ;;  %v8588_v44 = vpop.permute.xlu1 %1197  ;;  %v1666_v63 = vrot.slane %v8597_v5, 2  ;;  %v1698_v55 = vrot.slane %v1690_v31, 2  ;;  %11693 = vst [vmem:[#allocation53_spill] sm:$0xff] %v8622_v2  ;;  %v8624_v5 = vstv %s6402_s11  ;;  %v2476_v31 = vmul.f32 %v8622_v2, %v8317_v20  ;;  %s6420_s11 = sld [smem:[#allocation9 + $0x40]] }
 0x224   :  { %11694 = vst [vmem:[#allocation54_spill] sm:$0xff] %v8624_v5  ;;  %v2502_v16 = vmul.f32 %v8624_v5, %v8317_v20  ;;  %v8690_v17 = vmul.f32 %v2549_v60, %v8450_v14 }
 0x225   :  { %1533 = vrot.lane.b32.xlu0 %v1522_v13, %s7387_s29  ;;  %1707 = vrot.lane.b32.xlu1 %v1702_v34, %s7387_s29  ;;  %v11690_v13 = vrot.slane %v8427_v21, 1  ;;  %v1667_v53 = vsel %vm304_vm4, %v1665_v12, %v1666_v63  ;;  %v1699_v1 = vsel %vm304_vm4, %v1697_v33, %v1698_v55  ;;  %v2500_v33 = vmul.f32 %v8624_v5, %v8396_v7 }
 0x226   :  { %11703 = vst [vmem:[#allocation61_spill] sm:$0xff] %v8690_v17 }
 0x227   :  { %v8604_v57 = vpop.permute.xlu0 %1229  ;;  %v8606_v50 = vpop.permute.xlu1 %1201 }
 0x229   :  { %2446 = vrot.lane.b32.xlu0 %v2442_v32, %s7387_s29  ;;  %1589 = vrot.lane.b32.xlu1 %v11690_v13, %s7386_s0  ;;  %v8637_v13 = vmul.f32 %v2549_v60, %v8400_v10 }
 0x22b   :  { %v8616_v19 = vpop.permute.xlu0 %1233  ;;  %v8618_v34 = vpop.permute.xlu1 %1347  ;;  %11697 = vst [vmem:[#allocation57_spill] sm:$0xff] %v8637_v13  ;;  %v11553_v56 = vrot.slane %v8637_v13, 1  ;;  %v8674_v13 = vmul.f32 %v2581_v38, %v8450_v14 }
 0x22c   :  { %11691 = vst [vmem:[#allocation51_spill] sm:$0xff] %v8616_v19  ;;  %11692 = vst [vmem:[#allocation52_spill] sm:$0xff] %v8618_v34 }
 0x22d   :  { %1671 = vrot.lane.b32.xlu0 %v1667_v53, %s7386_s0  ;;  %1703 = vrot.lane.b32.xlu1 %v1699_v1, %s7387_s29  ;;  %v2552_v53 = vmul.f32 %v2549_v60, %v8317_v20  ;;  %11700 = vst [vmem:[#allocation59_spill] sm:$0xff] %v8674_v13  ;;  %v11559_v8 = vrot.slane %v8674_v13, 1 }
 0x22f   :  { %v8628_v21 = vpop.permute.xlu0 %1379  ;;  %v8630_v32 = vpop.permute.xlu1 %1351 }
 0x230   :  { %11695 = vst [vmem:[#allocation55_spill] sm:$0xff] %v8628_v21  ;;  %11696 = vst [vmem:[#allocation56_spill] sm:$0xff] %v8630_v32  ;;  %v2474_v32 = vmul.f32 %v8622_v2, %v8396_v7  ;;  %v8663_v21 = vmul.f32 %v2581_v38, %v8400_v10 }
 0x231   :  { %2486 = vrot.lane.b32.xlu0 %v2476_v31, %s7386_s0  ;;  %2512 = vrot.lane.b32.xlu1 %v2502_v16, %s7387_s29  ;;  %v2561_v31 = vrot.slane %v2552_v53, 1 }
 0x232   :  { %11699 = vst [vmem:[#allocation58_spill] sm:$0xff] %v8663_v21 }
 0x233   :  { %v8642_v1 = vpop.permute.xlu0 %1111  ;;  %v8644_v12 = vpop.permute.xlu1 %1143  ;;  %v2563_v5 = vsel %vm191_vm3, %v2561_v31, %v11553_v56  ;;  %v11701_v31 = vrot.slane %v8459_v37, 1  ;;  %v8693_v37 = vmul.f32 %v2637_v35, %v8450_v14 }
 0x235   :  { %1617 = vrot.lane.b32.xlu0 %v11698_v61, %s7387_s29  ;;  %2508 = vrot.lane.b32.xlu1 %v2500_v33, %s7387_s29  ;;  %v2584_v61 = vmul.f32 %v2581_v38, %v8317_v20  ;;  %v11556_v33 = vrot.slane %v8663_v21, 1  ;;  %11704 = vst [vmem:[#allocation62_spill] sm:$0xff] %v8693_v37 }
 0x237   :  { %v8653_v22 = vpop.permute.xlu0 %1107  ;;  %v8655_v16 = vpop.permute.xlu1 %1231 }
 0x239   :  { %2482 = vrot.lane.b32.xlu0 %v2474_v32, %s7386_s0  ;;  %2568 = vrot.lane.b32.xlu1 %v2563_v5, %s7386_s0  ;;  %v2593_v32 = vrot.slane %v2584_v61, 1  ;;  %v2582_v5 = vmul.f32 %v2581_v38, %v8396_v7  ;;  %v2550_v38 = vmul.f32 %v2549_v60, %v8396_v7  ;;  %v2638_v61 = vmul.f32 %v2637_v35, %v8396_v7 }
 0x23a   :  { %v11706_v60 = vrot.slane %v8534_v62, 2 }
 0x23b   :  { %v8668_v51 = vpop.permute.xlu0 %1139  ;;  %v8670_v53 = vpop.permute.xlu1 %1227  ;;  %v2595_v34 = vsel %vm191_vm3, %v2593_v32, %v11556_v33  ;;  %v2669_v33 = vstv %s6408_s15  ;;  %v2646_v19 = vrot.slane %v2638_v61, 2  ;;  %s9610_s15 = sld [smem:[#allocation9 + $0x3a]] }
 0x23c   :  { %v2670_v42 = vmul.f32 %v2669_v33, %v8396_v7 }
 0x23d   :  { %1621 = vrot.lane.b32.xlu0 %v11701_v31, %s7387_s29  ;;  %1705 = vrot.lane.b32.xlu1 %v1698_v55, %s7387_s29  ;;  %v2590_v55 = vrot.slane %v2582_v5, 1  ;;  %v8709_v5 = vmul.f32 %v2669_v33, %v8450_v14 }
 0x23e   :  { %v2678_v61 = vrot.slane %v2670_v42, 2  ;;  %v11710_v42 = vrot.slane %v8567_v40, 2 }
 0x23f   :  { %v8681_v56 = vpop.permute.xlu0 %1199  ;;  %v8683_v2 = vpop.permute.xlu1 %2124  ;;  %v2592_v21 = vsel %vm191_vm3, %v2590_v55, %v11559_v8  ;;  %11705 = vst [vmem:[#allocation63_spill] sm:$0xff] %v8709_v5  ;;  %v11565_v62 = vrot.slane %v8709_v5, 2 }
 0x240   :  { %11702 = vst [vmem:[#allocation60_spill] sm:$0xff] %v8683_v2  ;;  %v2558_v2 = vrot.slane %v2550_v38, 1  ;;  %v8732_v38 = vstv %s1005_s16  ;;  %s6409_s16 = sld [smem:[#allocation10 + $0x1]] }
 0x241   :  { %1673 = vrot.lane.b32.xlu0 %v1666_v63, %s7386_s0  ;;  %2600 = vrot.lane.b32.xlu1 %v2595_v34, %s7387_s29  ;;  %v11563_v63 = vrot.slane %v8690_v17, 1  ;;  %v11564_v34 = vrot.slane %v8693_v37, 2  ;;  %v1068_v17 = vstv %s6358_s17  ;;  %s7401_s17 = smov 52  }
 0x242   :  { %v8763_v5 = vmul.f32 %v1068_v17, %v7831_v49 }
 0x243   :  { %v8699_v31 = vpop.permute.xlu0 %1195  ;;  %v8701_v32 = vpop.permute.xlu1 %1349  ;;  %v2560_v8 = vsel %vm191_vm3, %v2558_v2, %v11563_v63  ;;  %v2648_v14 = vsel %vm304_vm4, %v2646_v19, %v11564_v34  ;;  %v8740_v19 = vmul.f32 %v1068_v17, %v7813_v11  ;;  %v2680_v34 = vsel %vm304_vm4, %v2678_v61, %v11565_v62 }
 0x244   :  { %v1071_v61 = vmul.f32 %v1068_v17, %v7792_v41 }
 0x245   :  { %1677 = vrot.lane.b32.xlu0 %v11706_v60, %s7386_s0  ;;  %2596 = vrot.lane.b32.xlu1 %v2592_v21, %s7387_s29  ;;  %v8728_v21 = vmul.f32 %v2637_v35, %v8400_v10  ;;  %v2640_v60 = vmul.f32 %v2637_v35, %v8317_v20  ;;  %v1009_v35 = vmul.f32 %v8732_v38, %v7792_v41 }
 0x247   :  { %v8716_v13 = vpop.permute.xlu0 %2092  ;;  %v8718_v55 = vpop.permute.xlu1 %1381  ;;  %11707 = vst [vmem:[#allocation64_spill] sm:$0xff] %v8728_v21  ;;  %v2649_v62 = vrot.slane %v2640_v60, 2  ;;  %v1039_v37 = vadd.f32 %v8338_v39, %v1009_v35  ;;  %v11714_v60 = vrot.slane %v8728_v21, 2  ;;  %v11576_v21 = vrot.slane %v8763_v5, 1 }
 0x249   :  { %2564 = vrot.lane.b32.xlu0 %v2560_v8, %s7386_s0  ;;  %2652 = vrot.lane.b32.xlu1 %v2648_v14, %s7386_s0  ;;  %v8747_v14 = vmul.f32 %v2669_v33, %v8400_v10  ;;  %v2672_v8 = vmul.f32 %v2669_v33, %v8317_v20  ;;  %v2651_v33 = vsel %vm304_vm4, %v2649_v62, %v11714_v60  ;;  %v1080_v20 = vrot.slane %v1071_v61, 1  ;;  %v11715_v60 = vld [vmem:[#allocation20_spill] sm:$0xff] }
 0x24a   :  { %v1065_v35 = vadd.f32 %v8369_v27, %v1039_v37  ;;  %v2025_v27 = vmul.f32 %v11715_v60, %v7831_v49  ;;  %v1156_v61 = vstv %s8753_s4  ;;  %s9278_s4 = sld [smem:[#allocation9 + $0x30]] }
 0x24b   :  { %v8735_v2 = vpop.permute.xlu0 %2088  ;;  %v8737_v63 = vpop.permute.xlu1 %1377  ;;  %11709 = vst [vmem:[#allocation66_spill] sm:$0xff] %v8747_v14  ;;  %v11575_v39 = vrot.slane %v8747_v14, 2 }
 0x24c   :  { %11708 = vst [vmem:[#allocation65_spill] sm:$0xff] %v8735_v2  ;;  %v11713_v2 = vld [vmem:[#allocation18_spill] sm:$0xff] }
 0x24d   :  { %1709 = vrot.lane.b32.xlu0 %v11710_v42, %s7387_s29  ;;  %2684 = vrot.lane.b32.xlu1 %v2680_v34, %s7387_s29  ;;  %v1999_v40 = vmul.f32 %v11713_v2, %v7831_v49  ;;  %v1007_v34 = vmul.f32 %v8732_v38, %v7800_v30  ;;  %v2681_v42 = vrot.slane %v2672_v8, 2  ;;  %v8798_v8 = vstv %s8749_s3  ;;  %s6429_s3 = sld [smem:[#allocation9 + $0x49]] }
 0x24e   :  { %11717 = vst [vmem:[#allocation18_spill] sm:$0xff] %v8798_v8 }
 0x24f   :  { %v8765_v10 = vpop.permute.xlu0 %2120  ;;  %v8767_v7 = vpop.permute.xlu1 %2212 }
 0x250   :  { %11711 = vst [vmem:[#allocation67_spill] sm:$0xff] %v8765_v10  ;;  %11712 = vst [vmem:[#allocation68_spill] sm:$0xff] %v8767_v7  ;;  %v1069_v7 = vmul.f32 %v1068_v17, %v7800_v30  ;;  %v1037_v10 = vadd.f32 %v8319_v18, %v1007_v34  ;;  %v11716_v17 = vrot.slane %v8740_v19, 1  ;;  %v2683_v18 = vsel %vm304_vm4, %v2681_v42, %v11575_v39 }
 0x251   :  { %2656 = vrot.lane.b32.xlu0 %v2651_v33, %s7386_s0  ;;  %2008 = vrot.lane.b32.xlu1 %v1999_v40, %s7386_s0  ;;  %v1157_v39 = vmul.f32 %v1156_v61, %v7800_v30 }
 0x252   :  { %v1063_v37 = vadd.f32 %v8352_v36, %v1037_v10  ;;  %v1082_v33 = vsel %vm191_vm3, %v1080_v20, %v11716_v17  ;;  %v1077_v34 = vrot.slane %v1069_v7, 1  ;;  %v8804_v36 = vmul.f32 %v1156_v61, %v7831_v49 }
 0x253   :  { %v8784_v9 = vpop.permute.xlu0 %1345  ;;  %v8786_v62 = vpop.permute.xlu1 %1437  ;;  %v1089_v40 = vadd.f32 %v1082_v33, %v1065_v35  ;;  %v8807_v10 = vmul.f32 %v1156_v61, %v7813_v11  ;;  %v2001_v7 = vmul.f32 %v11713_v2, %v7813_v11 }
 0x254   :  { %v1079_v42 = vsel %vm191_vm3, %v1077_v34, %v11576_v21  ;;  %v11579_v34 = vrot.slane %v8804_v36, 2 }
 0x255   :  { %2688 = vrot.lane.b32.xlu0 %v2683_v18, %s7387_s29  ;;  %2034 = vrot.lane.b32.xlu1 %v2025_v27, %s7387_s29  ;;  %v1121_v20 = vadd.f32 %v8642_v1, %v1089_v40  ;;  %v2977_v27 = vmul.f32 %v8798_v8, %v7792_v41  ;;  %v1087_v33 = vadd.f32 %v1079_v42, %v1063_v37  ;;  %v11578_v1 = vrot.slane %v8807_v10, 2 }
 0x256   :  { %v1159_v18 = vmul.f32 %v1156_v61, %v7792_v41  ;;  %v2027_v37 = vmul.f32 %v11715_v60, %v7813_v11 }
 0x257   :  { %v8813_v17 = vpop.permute.xlu0 %2180  ;;  %v8815_v35 = vpop.permute.xlu1 %1469  ;;  %v1119_v40 = vadd.f32 %v8653_v22, %v1087_v33  ;;  %v1153_v2 = vadd.f32 %v8644_v12, %v1121_v20  ;;  %v11719_v22 = vrot.slane %v8126_v3, 1 }
 0x258   :  { %v1168_v42 = vrot.slane %v1159_v18, 2 }
 0x259   :  { %2012 = vrot.lane.b32.xlu0 %v2001_v7, %s7386_s0  ;;  %2987 = vrot.lane.b32.xlu1 %v2977_v27, %s7386_s0  ;;  %v1151_v61 = vadd.f32 %v8668_v51, %v1119_v40  ;;  %v8836_v7 = vstv %s6412_s18  ;;  %v1165_v27 = vrot.slane %v1157_v39, 2  ;;  %v11720_v40 = vld [vmem:[#allocation25_spill] sm:$0xff]  ;;  %s6432_s18 = sld [smem:[#allocation9 + $0x4c]] }
 0x25a   :  { %11718 = vst [vmem:[#allocation20_spill] sm:$0xff] %v8836_v7  ;;  %v1170_v12 = vsel %vm304_vm4, %v1168_v42, %v11578_v1  ;;  %v3003_v39 = vmul.f32 %v8836_v7, %v7792_v41 }
 0x25b   :  { %v8829_v21 = vpop.permute.xlu0 %2176  ;;  %v8831_v14 = vpop.permute.xlu1 %1465  ;;  %v1177_v20 = vadd.f32 %v1170_v12, %v1153_v2  ;;  %v1167_v60 = vsel %vm304_vm4, %v1165_v27, %v11579_v34 }
 0x25c   :  { %v1175_v18 = vadd.f32 %v1167_v60, %v1151_v61  ;;  %v1008_v61 = vmul.f32 %v8732_v38, %v7831_v49 }
 0x25d   :  { %2038 = vrot.lane.b32.xlu0 %v2027_v37, %s7387_s29  ;;  %2090 = vrot.lane.b32.xlu1 %v11719_v22, %s7386_s0  ;;  %v1209_v3 = vadd.f32 %v8681_v56, %v1177_v20  ;;  %v11721_v37 = vrot.slane %v11720_v40, 1  ;;  %v2975_v22 = vmul.f32 %v8798_v8, %v7800_v30  ;;  %v8868_v56 = vstv %s6364_s19  ;;  %s6410_s19 = sld [smem:[#allocation9 + $0x36]] }
 0x25e   :  { %v1207_v2 = vadd.f32 %v8699_v31, %v1175_v18  ;;  %v1038_v20 = vadd.f32 %v8371_v4, %v1008_v61  ;;  %v1247_v60 = vmul.f32 %v8868_v56, %v7905_v0  ;;  %v2978_v61 = vmul.f32 %v8798_v8, %v7813_v11 }
 0x25f   :  { %v8848_v51 = vpop.permute.xlu0 %2208  ;;  %v8850_v33 = vpop.permute.xlu1 %1505  ;;  %v1241_v12 = vadd.f32 %v8655_v16, %v1209_v3  ;;  %v11722_v16 = vld [vmem:[#allocation24_spill] sm:$0xff] }
 0x260   :  { %v1239_v31 = vadd.f32 %v8670_v53, %v1207_v2  ;;  %v1064_v40 = vadd.f32 %v8382_v52, %v1038_v20  ;;  %v11723_v3 = vrot.slane %v11722_v16, 1  ;;  %v1306_v53 = vstv %s6367_s20  ;;  %s6430_s20 = sld [smem:[#allocation9 + $0x4a]] }
 0x261   :  { %2094 = vrot.lane.b32.xlu0 %v11721_v37, %s7386_s0  ;;  %3013 = vrot.lane.b32.xlu1 %v3003_v39, %s7387_s29  ;;  %v1245_v37 = vmul.f32 %v8868_v56, %v7910_v24  ;;  %v1251_v1 = vadd.f32 %v1247_v60, %v1241_v12  ;;  %v11724_v52 = vrot.slane %v8763_v5, 1  ;;  %v8895_v12 = vmul.f32 %v1306_v53, %v7921_v29 }
 0x262   :  { %v1010_v60 = vmul.f32 %v8732_v38, %v7813_v11 }
 0x263   :  { %v8860_v42 = vpop.permute.xlu0 %1433  ;;  %v8862_v27 = vpop.permute.xlu1 %1435  ;;  %v1249_v4 = vadd.f32 %v1245_v37, %v1239_v31  ;;  %v1088_v20 = vadd.f32 %v11724_v52, %v1064_v40  ;;  %v8900_v31 = vmul.f32 %v1306_v53, %v7918_v59  ;;  %v1277_v37 = vadd.f32 %v8452_v25, %v1251_v1 }
 0x264   :  { %v1040_v40 = vadd.f32 %v8387_v15, %v1010_v60  ;;  %v1307_v52 = vmul.f32 %v1306_v53, %v7910_v24  ;;  %v11583_v25 = vrot.slane %v8895_v12, 1 }
 0x265   :  { %2983 = vrot.lane.b32.xlu0 %v2975_v22, %s7386_s0  ;;  %v1120_v16 = vadd.f32 %v8558_v48, %v1088_v20  ;;  %v1275_v5 = vadd.f32 %v8482_v23, %v1249_v4  ;;  %v11584_v48 = vrot.slane %v8900_v31, 1  ;;  %v8918_v23 = vstv %s6382_s21  ;;  %s9154_s21 = sld [smem:[#allocation10]] }
 0x266   :  { %v1066_v1 = vadd.f32 %v8409_v46, %v1040_v40  ;;  %11725 = vst [vmem:[#allocation25_spill] sm:$0xff] %v8918_v23  ;;  %v1315_v20 = vrot.slane %v1307_v52, 1  ;;  %v1394_v52 = vstv %s6370_s23  ;;  %s7395_s23 = smov 112  }
 0x267   :  { %v8876_v39 = vpop.permute.xlu0 %1383  ;;  %v8878_v18 = vpop.permute.xlu1 %1531  ;;  %v1152_v8 = vadd.f32 %v8572_v47, %v1120_v16  ;;  %v1301_v15 = vadd.f32 %v8484_v28, %v1275_v5  ;;  %v11727_v47 = vrot.slane %v8804_v36, 2  ;;  %v1990_v28 = vmul.f32 %v8918_v23, %v7792_v41 }
 0x268   :  { %v1317_v40 = vsel %vm191_vm3, %v1315_v20, %v11584_v48  ;;  %v1988_v48 = vmul.f32 %v8918_v23, %v7800_v30 }
 0x269   :  { %2126 = vrot.lane.b32.xlu0 %v11723_v3, %s7387_s29  ;;  %v1309_v3 = vmul.f32 %v1306_v53, %v7905_v0  ;;  %v2049_v53 = vstv %s6385_s22  ;;  %v1176_v16 = vadd.f32 %v11727_v47, %v1152_v8  ;;  %v1325_v36 = vadd.f32 %v1317_v40, %v1301_v15  ;;  %s7394_s22 = smov 56  }
 0x26a   :  { %v2052_v8 = vmul.f32 %v2049_v53, %v7792_v41  ;;  %v8954_v15 = vmul.f32 %v1394_v52, %v7921_v29 }
 0x26b   :  { %v8886_v2 = vpop.permute.xlu0 %2270  ;;  %v8888_v22 = vpop.permute.xlu1 %1439  ;;  %v1318_v4 = vrot.slane %v1309_v3, 1  ;;  %v1357_v20 = vadd.f32 %v8784_v9, %v1325_v36  ;;  %v2137_v9 = vstv %s6388_s24  ;;  %s7396_s24 = smov 12  }
 0x26c   :  { %v8985_v40 = vmul.f32 %v2137_v9, %v7813_v11 }
 0x26d   :  { %2989 = vrot.lane.b32.xlu0 %v2978_v61, %s7386_s0  ;;  %v1303_v61 = vadd.f32 %v8468_v58, %v1277_v37  ;;  %v1320_v46 = vsel %vm191_vm3, %v1318_v4, %v11583_v25  ;;  %v8931_v58 = vmul.f32 %v2049_v53, %v7813_v11  ;;  %v11729_v37 = vrot.slane %v8740_v19, 1 }
 0x26e   :  { %v2020_v4 = vadd.f32 %v8418_v45, %v1990_v28  ;;  %v8944_v25 = vmul.f32 %v1394_v52, %v7918_v59  ;;  %v1395_v28 = vmul.f32 %v1394_v52, %v7910_v24  ;;  %11732 = vst [vmem:[#allocation71_spill] sm:$0xff] %v8985_v40 }
 0x26f   :  { %v8909_v34 = vpop.permute.xlu0 %1501  ;;  %v8911_v38 = vpop.permute.xlu1 %1527  ;;  %11728 = vst [vmem:[#allocation69_spill] sm:$0xff] %v8931_v58  ;;  %v1090_v3 = vadd.f32 %v11729_v37, %v1066_v1  ;;  %v1327_v5 = vadd.f32 %v1320_v46, %v1303_v61  ;;  %v1208_v1 = vadd.f32 %v8588_v44, %v1176_v16  ;;  %v11585_v61 = vrot.slane %v8931_v58, 1 }
 0x270   :  { %v2046_v45 = vadd.f32 %v8433_v43, %v2020_v4  ;;  %v1397_v44 = vmul.f32 %v1394_v52, %v7905_v0  ;;  %v1246_v16 = vmul.f32 %v8868_v56, %v7918_v59 }
 0x271   :  { %v1122_v47 = vadd.f32 %v8574_v6, %v1090_v3  ;;  %v1359_v46 = vadd.f32 %v8701_v32, %v1327_v5  ;;  %v1240_v37 = vadd.f32 %v8604_v57, %v1208_v1  ;;  %v2061_v3 = vrot.slane %v2052_v8, 1 }
 0x272   :  { %v8973_v32 = vmul.f32 %v2049_v53, %v7831_v49  ;;  %v1389_v57 = vadd.f32 %v8737_v63, %v1357_v20  ;;  %v11731_v8 = vrot.slane %v8807_v10, 2  ;;  %v1403_v1 = vrot.slane %v1395_v28, 2 }
 0x273   :  { %v8921_v60 = vpop.permute.xlu0 %2330  ;;  %v8923_v7 = vpop.permute.xlu1 %2362  ;;  %v1154_v6 = vadd.f32 %v8586_v54, %v1122_v47  ;;  %v2063_v54 = vsel %vm191_vm3, %v2061_v3, %v11585_v61  ;;  %v1391_v47 = vadd.f32 %v8718_v55, %v1359_v46  ;;  %v1250_v3 = vadd.f32 %v1246_v16, %v1240_v37 }
 0x274   :  { %11726 = vst [vmem:[#allocation24_spill] sm:$0xff] %v8923_v7  ;;  %11730 = vst [vmem:[#allocation70_spill] sm:$0xff] %v8973_v32  ;;  %v2070_v4 = vadd.f32 %v2063_v54, %v2046_v45  ;;  %v1406_v61 = vrot.slane %v1397_v44, 2  ;;  %v2050_v20 = vmul.f32 %v2049_v53, %v7800_v30  ;;  %v11733_v5 = vrot.slane %v8944_v25, 2  ;;  %v11735_v54 = vld [vmem:[#allocation38_spill] sm:$0xff] }
 0x275   :  { %v1178_v52 = vadd.f32 %v11731_v8, %v1154_v6  ;;  %v2018_v6 = vadd.f32 %v8445_v26, %v1988_v48  ;;  %v11734_v46 = vrot.slane %v8954_v15, 2  ;;  %v11587_v44 = vrot.slane %v8973_v32, 1  ;;  %v11736_v8 = vld [vmem:[#allocation41_spill] sm:$0xff] }
 0x276   :  { %v2102_v63 = vadd.f32 %v8716_v13, %v2070_v4  ;;  %v1405_v10 = vsel %vm304_vm4, %v1403_v1, %v11733_v5  ;;  %v2140_v13 = vmul.f32 %v2137_v9, %v7792_v41  ;;  %v1276_v4 = vadd.f32 %v11736_v8, %v1250_v3  ;;  %v6850_v3 = vld [vmem:[%s11501_s5] ss:$40 sps:$4 sm:$0xff]   ;;  %v11748_v32 = vld [vmem:[#allocation45_spill] sm:$0xff] }
 0x277   :  { %v8946_v7 = vpop.permute.xlu0 %1467  ;;  %v8948_v19 = vpop.permute.xlu1 %1587  ;;  %v1408_v28 = vsel %vm304_vm4, %v1406_v61, %v11734_v46  ;;  %v1413_v37 = vadd.f32 %v1405_v10, %v1389_v57  ;;  %v1210_v53 = vadd.f32 %v8606_v50, %v1178_v52  ;;  %v2044_v5 = vadd.f32 %v11735_v54, %v2018_v6  ;;  %v6848_v61 = vld [vmem:[%s11501_s5 + $0x4] ss:$40 sps:$4 sm:$0xff]   ;;  %v11737_v57 = vld [vmem:[#allocation51_spill] sm:$0xff] }
 0x278   :  { %v1415_v16 = vadd.f32 %v1408_v28, %v1391_v47  ;;  %v11586_v26 = vrot.slane %v8985_v40, 2  ;;  %v11738_v52 = vld [vmem:[#allocation60_spill] sm:$0xff]  ;;  %v2058_v47 = vrot.slane %v2050_v20, 1  ;;  %v2149_v28 = vrot.slane %v2140_v13, 2  ;;  %5871 = vmatprep.subr.bf16.mxu0 %v6848_v61 }
 0x279   :  { %v1445_v48 = vadd.f32 %v8860_v42, %v1413_v37  ;;  %v1242_v50 = vadd.f32 %v11737_v57, %v1210_v53  ;;  %v2134_v1 = vadd.f32 %v11738_v52, %v2102_v63  ;;  %v1248_v42 = vmul.f32 %v8868_v56, %v7921_v29  ;;  %5872 = vmatpush1.bf16.xpose.msra.mxu0 %v6850_v3  ;;  %v11741_v52 = vld [vmem:[#allocation31_spill] sm:$0xff]  ;;  %v11743_v3 = vld [vmem:[#allocation32_spill] sm:$0xff] }
 0x27a   :  { %v1447_v10 = vadd.f32 %v8786_v62, %v1415_v16  ;;  %v9027_v37 = vstv %s8977_s25  ;;  %v2060_v62 = vsel %vm191_vm3, %v2058_v47, %v11587_v44  ;;  %v2138_v20 = vmul.f32 %v2137_v9, %v7800_v30  ;;  %v11740_v16 = vld [vmem:[#allocation40_spill] sm:$0xff]  ;;  %s7397_s25 = smov 84  }
 0x27b   :  { %v8965_v36 = vpop.permute.xlu0 %2326  ;;  %v8967_v43 = vpop.permute.xlu1 %1503  ;;  %v9035_v53 = vmul.f32 %v2137_v9, %v7831_v49  ;;  %v1302_v56 = vadd.f32 %v11740_v16, %v1276_v4  ;;  %v2068_v13 = vadd.f32 %v2060_v62, %v2044_v5  ;;  %v2151_v54 = vsel %vm304_vm4, %v2149_v28, %v11586_v26  ;;  %v11742_v5 = vld [vmem:[#allocation65_spill] sm:$0xff]  ;;  %v11747_v26 = vld [vmem:[#allocation67_spill] sm:$0xff]  ;;  %v11761_v49 = vld [vmem:[#allocation56_spill] sm:$0xff] }
 0x27c   :  { %v1479_v63 = vadd.f32 %v8815_v35, %v1447_v10  ;;  %v1477_v8 = vadd.f32 %v8831_v14, %v1445_v48  ;;  %v1252_v61 = vadd.f32 %v1248_v42, %v1242_v50  ;;  %v2158_v57 = vadd.f32 %v2151_v54, %v2134_v1  ;;  %v11744_v14 = vld [vmem:[#allocation33_spill] sm:$0xff] }
 0x27d   :  { %11739 = vst [vmem:[#allocation38_spill] sm:$0xff] %v9035_v53  ;;  %v1485_v35 = vmul.f32 %v9027_v37, %v11741_v52  ;;  %v1544_v9 = vstv %s8992_s26  ;;  %v2100_v4 = vadd.f32 %v11742_v5, %v2068_v13  ;;  %v1483_v28 = vmul.f32 %v9027_v37, %v11743_v3  ;;  %v6851_v5 = vld [vmem:[%s11501_s5 + $0x54] ss:$40 sps:$4 sm:$0xff]   ;;  %s9313_s26 = sld [smem:[#allocation9 + $0x33]] }
 0x27e   :  { %v9057_v48 = vmul.f32 %v1544_v9, %v11744_v14  ;;  %v9060_v50 = vstv %s9005_s27  ;;  %v2190_v1 = vadd.f32 %v8813_v17, %v2158_v57  ;;  %v11746_v16 = vrot.slane %v8900_v31, 1  ;;  %v11749_v57 = vld [vmem:[#allocation37_spill] sm:$0xff]  ;;  %5873 = vmatprep.subr.bf16.mxu0 %v6851_v5  ;;  %s7389_s27 = smov 28  }
 0x27f   :  { %v8994_v55 = vpop.permute.xlu0 %1471  ;;  %v8996_v45 = vpop.permute.xlu1 %1619  ;;  %11745 = vst [vmem:[#allocation41_spill] sm:$0xff] %v9060_v50  ;;  %v1489_v62 = vadd.f32 %v1485_v35, %v1479_v63  ;;  %v2132_v44 = vadd.f32 %v11747_v26, %v2100_v4  ;;  %v1487_v40 = vadd.f32 %v1483_v28, %v1477_v8  ;;  %v1547_v13 = vmul.f32 %v1544_v9, %v11741_v52  ;;  %v6853_v26 = vld [vmem:[%s11501_s5 + $0x50] ss:$40 sps:$4 sm:$0xff]   ;;  %v11752_v28 = vld [vmem:[#allocation52_spill] sm:$0xff] }
 0x280   :  { %v1326_v54 = vadd.f32 %v11746_v16, %v1302_v56  ;;  %v1278_v58 = vadd.f32 %v11748_v32, %v1252_v61  ;;  %v2146_v23 = vrot.slane %v2138_v20, 2  ;;  %v9074_v42 = vmul.f32 %v1544_v9, %v11749_v57  ;;  %v11750_v32 = vld [vmem:[#allocation68_spill] sm:$0xff] }
 0x281   :  { %v1515_v17 = vadd.f32 %v8850_v33, %v1489_v62  ;;  %v1513_v56 = vadd.f32 %v8909_v34, %v1487_v40  ;;  %v2222_v33 = vadd.f32 %v11750_v32, %v2190_v1  ;;  %v11751_v20 = vrot.slane %v9035_v53, 2  ;;  %5874 = vmatpush1.bf16.xpose.msra.mxu0 %v6853_v26  ;;  %v11753_v8 = vld [vmem:[#allocation44_spill] sm:$0xff] }
 0x282   :  { %v1545_v4 = vmul.f32 %v1544_v9, %v11743_v3  ;;  %v1358_v62 = vadd.f32 %v11752_v28, %v1326_v54  ;;  %v2228_v34 = vmul.f32 %v9060_v50, %v7905_v0  ;;  %v1556_v16 = vrot.slane %v1547_v13, 1 }
 0x283   :  { %v9017_v46 = vpop.permute.xlu0 %2358  ;;  %v9019_v6 = vpop.permute.xlu1 %1507  ;;  %v2148_v61 = vsel %vm304_vm4, %v2146_v23, %v11751_v20  ;;  %v1541_v35 = vadd.f32 %v8878_v18, %v1515_v17  ;;  %v1304_v5 = vadd.f32 %v11753_v8, %v1278_v58  ;;  %v2287_v30 = vstv %s9044_s2  ;;  %s7390_s2 = smov 124  }
 0x284   :  { %v2156_v40 = vadd.f32 %v2148_v61, %v2132_v44  ;;  %v1632_v18 = vstv %s9051_s1  ;;  %v1539_v54 = vadd.f32 %v8911_v38, %v1513_v56  ;;  %v11754_v26 = vrot.slane %v9057_v48, 1  ;;  %v11755_v61 = vld [vmem:[#allocation55_spill] sm:$0xff]  ;;  %v6854_v56 = vld [vmem:[%s11501_s5 + $0xa4] ss:$40 sps:$4 sm:$0xff]   ;;  %s7391_s1 = smov 96  }
 0x285   :  { %v9108_v13 = vmul.f32 %v1632_v18, %v11744_v14  ;;  %v2232_v58 = vadd.f32 %v2228_v34, %v2222_v33  ;;  %v2226_v8 = vmul.f32 %v9060_v50, %v7910_v24  ;;  %v1553_v20 = vrot.slane %v1545_v4, 1  ;;  %v6856_v33 = vld [vmem:[%s11501_s5 + $0x504] ss:$40 sps:$4 sm:$0xff]   ;;  %5875 = vmatprep.subr.bf16.mxu0 %v6854_v56 }
 0x286   :  { %v2188_v9 = vadd.f32 %v8829_v21, %v2156_v40  ;;  %v1558_v44 = vsel %vm191_vm3, %v1556_v16, %v11754_v26  ;;  %v1390_v28 = vadd.f32 %v11755_v61, %v1358_v62  ;;  %v2290_v21 = vmul.f32 %v2287_v30, %v7905_v0  ;;  %v6858_v26 = vld [vmem:[%s11501_s5 + $0xa0] ss:$40 sps:$4 sm:$0xff]   ;;  %6076 = vmatprep.subr.bf16.mxu1 %v6856_v33 }
 0x287   :  { %v9047_v47 = vpop.permute.xlu0 %1583  ;;  %v9049_v10 = vpop.permute.xlu1 %1615  ;;  %v1565_v32 = vadd.f32 %v1558_v44, %v1541_v35  ;;  %v1635_v38 = vmul.f32 %v1632_v18, %v11741_v52  ;;  %v11756_v34 = vrot.slane %v8895_v12, 1  ;;  %v9125_v4 = vmul.f32 %v2287_v30, %v7921_v29  ;;  %v6859_v12 = vld [vmem:[%s11501_s5 + $0x500] ss:$40 sps:$4 sm:$0xff]  }
 0x288   :  { %v2220_v1 = vadd.f32 %v8848_v51, %v2188_v9  ;;  %v11758_v62 = vrot.slane %v9074_v42, 1  ;;  %6077 = vmatpush1.bf16.xpose.msra.mxu1 %v6859_v12  ;;  %v11760_v50 = vrot.slane %v8944_v25, 2  ;;  %v2299_v33 = vrot.slane %v2290_v21, 1 }
 0x289   :  { %v1328_v35 = vadd.f32 %v11756_v34, %v1304_v5  ;;  %11757 = vst [vmem:[#allocation51_spill] sm:$0xff] %v9125_v4  ;;  %v1597_v51 = vadd.f32 %v8948_v19, %v1565_v32  ;;  %v9142_v5 = vmul.f32 %v2287_v30, %v7910_v24  ;;  %v9146_v32 = vmul.f32 %v1632_v18, %v11749_v57 }
 0x28a   :  { %v1555_v40 = vsel %vm191_vm3, %v1553_v20, %v11758_v62  ;;  %v11759_v20 = vld [vmem:[#allocation46_spill] sm:$0xff]  ;;  %v1633_v62 = vmul.f32 %v1632_v18, %v11743_v3  ;;  %5876 = vmatpush1.bf16.xpose.msra.mxu0 %v6858_v26  ;;  %v2230_v53 = vadd.f32 %v2226_v8, %v2220_v1  ;;  %v1644_v44 = vrot.slane %v1635_v38, 2 }
 0x28b   :  { %v9076_v63 = vpop.permute.xlu0 %2418  ;;  %v9078_v31 = vpop.permute.xlu1 %2450  ;;  %v1563_v19 = vadd.f32 %v1555_v40, %v1539_v54  ;;  %v2258_v61 = vadd.f32 %v11759_v20, %v2232_v58  ;;  %v1629_v34 = vadd.f32 %v8996_v45, %v1597_v51  ;;  %v1414_v54 = vadd.f32 %v11760_v50, %v1390_v28  ;;  %v11764_v28 = vld [vmem:[#allocation47_spill] sm:$0xff] }
 0x28c   :  { %v1360_v56 = vadd.f32 %v11761_v49, %v1328_v35  ;;  %v9158_v58 = vmul.f32 %v2287_v30, %v7918_v59  ;;  %v2375_v45 = vstv %s9097_s14  ;;  %v11607_v25 = vrot.slane %v9125_v4, 1  ;;  %v11765_v35 = vld [vmem:[#allocation49_spill] sm:$0xff]  ;;  %s7399_s14 = smov 24  }
 0x28d   :  { %v1595_v40 = vadd.f32 %v9047_v47, %v1563_v19  ;;  %v1446_v1 = vadd.f32 %v8862_v27, %v1414_v54  ;;  %v11763_v50 = vrot.slane %v9108_v13, 2  ;;  %v1642_v8 = vrot.slane %v9146_v32, 2  ;;  %v6860_v19 = vld [vmem:[%s11501_s5 + $0xf4] ss:$40 sps:$4 sm:$0xff]   ;;  %v6880_v32 = vld [vmem:[%s11501_s5 + $0x1e0] ss:$40 sps:$4 sm:$0xff]  }
 0x28e   :  { %11762 = vst [vmem:[#allocation60_spill] sm:$0xff] %v9158_v58  ;;  %v1392_v49 = vadd.f32 %v8876_v39, %v1360_v56  ;;  %v2284_v21 = vadd.f32 %v11764_v28, %v2258_v61  ;;  %v1641_v38 = vrot.slane %v1633_v62, 2  ;;  %v2256_v26 = vadd.f32 %v11765_v35, %v2230_v53  ;;  %v6865_v62 = vld [vmem:[%s11501_s5 + $0x550] ss:$40 sps:$4 sm:$0xff]   ;;  %5877 = vmatprep.subr.bf16.mxu0 %v6860_v19 }
 0x28f   :  { %v9099_v23 = vpop.permute.xlu0 %1529  ;;  %v1676_v17 = vpop.permute.xlu1 %1675  ;;  %v1646_v47 = vsel %vm304_vm4, %v1644_v44, %v11763_v50  ;;  %v1478_v12 = vadd.f32 %v8946_v7, %v1446_v1  ;;  %v1627_v27 = vadd.f32 %v9049_v10, %v1595_v40  ;;  %v6862_v44 = vld [vmem:[%s11501_s5 + $0x554] ss:$40 sps:$4 sm:$0xff]   ;;  %v2296_v39 = vrot.slane %v9142_v5, 1  ;;  %v6864_v10 = vld [vmem:[%s11501_s5 + $0xf0] ss:$40 sps:$4 sm:$0xff]  }
 0x290   :  { %v1653_v30 = vadd.f32 %v1646_v47, %v1629_v34  ;;  %v11606_v20 = vrot.slane %v9158_v58, 1  ;;  %v1484_v61 = vmul.f32 %v9027_v37, %v11749_v57  ;;  %v2282_v5 = vadd.f32 %v8886_v2, %v2256_v26  ;;  %6078 = vmatprep.subr.bf16.mxu1 %v6862_v44 }
 0x291   :  { %v2301_v54 = vsel %vm191_vm3, %v2299_v33, %v11607_v25  ;;  %v1643_v40 = vsel %vm304_vm4, %v1641_v38, %v1642_v8  ;;  %v11766_v56 = vrot.slane %v8954_v15, 2  ;;  %v7388_v47 = vmov 1983009808   ;;  %6079 = vmatpush1.bf16.xpose.msra.mxu1 %v6865_v62 }
 0x292   :  { %v1685_v53 = vadd.f32 %v1676_v17, %v1653_v30  ;;  %v1734_v17 = vlaneseq  ;;  %v2308_v50 = vadd.f32 %v2301_v54, %v2284_v21  ;;  %v1732_v28 = vunpack.c.l.s4 %v7388_v47  ;;  %5878 = vmatpush1.bf16.xpose.msra.mxu0 %v6864_v10 }
 0x293   :  { %v9131_v16 = vpop.permute.xlu0 %2414  ;;  %v9133_v9 = vpop.permute.xlu1 %1585  ;;  %v1416_v1 = vadd.f32 %v11766_v56, %v1392_v49  ;;  %v1488_v2 = vadd.f32 %v1484_v61, %v1478_v12  ;;  %v9204_v35 = vmul.f32 %v2375_v45, %v7921_v29  ;;  %v9207_v33 = vstv %s9154_s21  ;;  %s6413_s21 = sld [smem:[#allocation9 + $0x39]] }
 0x294   :  { %v1651_v26 = vadd.f32 %v1643_v40, %v1627_v27  ;;  %v2340_v38 = vadd.f32 %v8921_v60, %v2308_v50  ;;  %v2298_v15 = vsel %vm191_vm3, %v2296_v39, %v11606_v20  ;;  %v2378_v49 = vmul.f32 %v2375_v45, %v7905_v0 }
 0x295   :  { %11767 = vst [vmem:[#allocation40_spill] sm:$0xff] %v9204_v35  ;;  %v9215_v21 = vmul.f32 %v2375_v45, %v7918_v59  ;;  %v2306_v12 = vadd.f32 %v2298_v15, %v2282_v5  ;;  %v2376_v44 = vmul.f32 %v2375_v45, %v7910_v24  ;;  %v1733_v27 = vunpack.c.0.s8 %v1732_v28  ;;  %v4025_v45 = vld [vmem:[%s11501_s5 + $0x140] sm:$0xff] }
 0x296   :  { %v9219_v10 = vshrl.u32 %v1734_v17, 7  ;;  %v1514_v62 = vadd.f32 %v8967_v43, %v1488_v2  ;;  %v11605_v54 = vrot.slane %v9204_v35, 2  ;;  %v6866_v5 = vld [vmem:[%s11501_s5 + $0x144] ss:$40 sps:$4 sm:$0xff]   ;;  %v2387_v43 = vrot.slane %v2378_v49, 2 }
 0x297   :  { %v9161_v51 = vpop.permute.xlu0 %1533  ;;  %v1708_v18 = vpop.permute.xlu1 %1707  ;;  %11768 = vst [vmem:[#allocation31_spill] sm:$0xff] %v9215_v21  ;;  %v2338_v39 = vadd.f32 %v8965_v36, %v2306_v12  ;;  %v11770_v17 = vld [vmem:[#allocation24_spill] sm:$0xff]  ;;  %5879 = vmatprep.subr.bf16.mxu0 %v6866_v5  ;;  %v2384_v49 = vrot.slane %v2376_v44, 2 }
 0x298   :  { %v1717_v30 = vadd.f32 %v1708_v18, %v1685_v53  ;;  %v1448_v53 = vadd.f32 %v8888_v22, %v1416_v1  ;;  %11769 = vst [vmem:[#allocation65_spill] sm:$0xff] %v9219_v10  ;;  %v4030_v22 = vld [vmem:[%s11501_s5 + $0x168] sm:$0xff]  ;;  %v2372_v56 = vadd.f32 %v11770_v17, %v2340_v38  ;;  %v11604_v1 = vrot.slane %v9215_v21, 2  ;;  %v4165_v28 = vld [vmem:[%s11501_s5 + $0x5a0] sm:$0xff] }
 0x299   :  { %v6868_v2 = vld [vmem:[%s11501_s5 + $0x5a4] ss:$40 sps:$4 sm:$0xff]   ;;  %v6479_v15 = vcombine.low %v4025_v45, %v4030_v22  ;;  %v6937_v21 = vld [vmem:[%s11501_s5 + $0x508] ss:$40 sps:$4 sm:$0xff]  }
 0x29a   :  { %v1723_v60 = vadd.f32 %v9207_v33, %v1717_v30  ;;  %v1480_v36 = vadd.f32 %v8994_v55, %v1448_v53  ;;  %v4170_v30 = vld [vmem:[%s11501_s5 + $0x5c8] sm:$0xff]  ;;  %v2370_v55 = vadd.f32 %v9017_v46, %v2338_v39  ;;  %6080 = vmatprep.subr.bf16.mxu1 %v6868_v2  ;;  %v2389_v46 = vsel %vm304_vm4, %v2387_v43, %v11605_v54  ;;  %v6872_v43 = vld [vmem:[%s11501_s5 + $0x5f4] ss:$40 sps:$4 sm:$0xff]   ;;  %v6875_v2 = vld [vmem:[%s11501_s5 + $0x5f0] ss:$40 sps:$4 sm:$0xff]  }
 0x29b   :  { %v9184_v34 = vpop.permute.xlu0 %2446  ;;  %v9186_v7 = vpop.permute.xlu1 %1589  ;;  %v6619_v12 = vcombine.low %v4165_v28, %v4170_v30  ;;  %5880 = vmatpush1.bf16.xpose.msra.mxu0 %v6479_v15  ;;  %v2396_v53 = vadd.f32 %v2389_v46, %v2372_v56  ;;  %v2386_v44 = vsel %vm304_vm4, %v2384_v49, %v11604_v1 }
 0x29d   :  { %6081 = vmatpush1.bf16.xpose.msra.mxu1 %v6619_v12  ;;  %v2428_v22 = vadd.f32 %v9076_v63, %v2396_v53 }
 0x29e   :  { %6082 = vmatprep.subr.bf16.mxu1 %v6872_v43  ;;  %v6876_v43 = vld [vmem:[%s11501_s5 + $0x1e4] ss:$40 sps:$4 sm:$0xff]  }
 0x29f   :  { %v1672_v18 = vpop.permute.xlu0 %1671  ;;  %v1704_v19 = vpop.permute.xlu1 %1703  ;;  %v2460_v15 = vadd.f32 %v9078_v31, %v2428_v22 }
 0x2a0   :  { %v1683_v61 = vadd.f32 %v1672_v18, %v1651_v26  ;;  %v1540_v26 = vadd.f32 %v9099_v23, %v1514_v62  ;;  %v9256_v18 = vsub.s32 %v1733_v27, %v9219_v10  ;;  %v2394_v62 = vadd.f32 %v2386_v44, %v2370_v55 }
 0x2a2   :  { %v1715_v40 = vadd.f32 %v1704_v19, %v1683_v61  ;;  %11771 = vst [vmem:[#allocation32_spill] sm:$0xff] %v9256_v18  ;;  %v9258_v19 = vmax.f32 %v1723_v60, 0.0  ;;  %v1486_v61 = vmul.f32 %v9027_v37, %v11744_v14  ;;  %v11772_v37 = vrot.slane %v9074_v42, 1  ;;  %v6870_v42 = vld [vmem:[%s11501_s5 + $0x194] ss:$40 sps:$4 sm:$0xff]  }
 0x2a3   :  { %v9239_v50 = vpop.permute.xlu0 %2486  ;;  %v9241_v47 = vpop.permute.xlu1 %2512  ;;  %v2426_v17 = vadd.f32 %v9131_v16, %v2394_v62  ;;  %v6874_v16 = vld [vmem:[%s11501_s5 + $0x190] ss:$40 sps:$4 sm:$0xff]   ;;  %5881 = vmatprep.subr.bf16.mxu0 %v6870_v42 }
 0x2a4   :  { %v1721_v38 = vadd.f32 %v9207_v33, %v1715_v40  ;;  %v1490_v39 = vadd.f32 %v1486_v61, %v1480_v36  ;;  %v1564_v40 = vadd.f32 %v11772_v37, %v1540_v26  ;;  %v9283_v5 = vrot.slane %v9258_v19, %v9256_v18  ;;  %5882 = vmatpush1.bf16.xpose.msra.mxu0 %v6874_v16 }
 0x2a5   :  { %v9288_v36 = vstv %s9222_s8  ;;  %6083 = vmatpush1.bf16.xpose.msra.mxu1 %v6875_v2  ;;  %5883 = vmatprep.subr.bf16.mxu0 %v6876_v43  ;;  %s7403_s8 = smov 120  }
 0x2a6   :  { %v9265_v23 = vmax.f32 %v1721_v38, 0.0  ;;  %11773 = vst [vmem:[#allocation33_spill] sm:$0xff] %v9288_v36  ;;  %v2464_v63 = vmul.f32 %v9288_v36, %v11743_v3  ;;  %v1516_v55 = vadd.f32 %v9019_v6, %v1490_v39  ;;  %v1596_v26 = vadd.f32 %v9133_v9, %v1564_v40 }
 0x2a7   :  { %v1618_v27 = vpop.permute.xlu0 %1617  ;;  %v9270_v60 = vpop.permute.xlu1 %2508  ;;  %v2458_v38 = vadd.f32 %v9184_v34, %v2426_v17  ;;  %v1749_v49 = vrot.slane %v9283_v5, 7  ;;  %v2466_v34 = vmul.f32 %v9288_v36, %v11741_v52  ;;  %v11775_v40 = vrot.slane %v9057_v48, 1 }
 0x2a8   :  { %v9276_v45 = vrot.slane %v9265_v23, %v9256_v18  ;;  %v1542_v6 = vadd.f32 %v9161_v51, %v1516_v55  ;;  %v1628_v61 = vadd.f32 %v1618_v27, %v1596_v26  ;;  %v2525_v27 = vstv %s9278_s4  ;;  %s7393_s4 = smov 8  }
 0x2a9   :  { %v2468_v51 = vadd.f32 %v2464_v63, %v2458_v38  ;;  %v2470_v62 = vadd.f32 %v2466_v34, %v2460_v15  ;;  %v9329_v37 = vmul.f32 %v2525_v27, %v11749_v57  ;;  %v6878_v63 = vld [vmem:[%s11501_s5 + $0x644] ss:$40 sps:$4 sm:$0xff]   ;;  %v9343_v16 = vmul.f32 %v2525_v27, %v11744_v14 }
 0x2aa   :  { %v1761_v56 = vrot.slane %v9276_v45, 1  ;;  %v1751_v31 = vsel %vm1750_vm5, %v1749_v49, %v9276_v45  ;;  %v1566_v22 = vadd.f32 %v11775_v40, %v1542_v6  ;;  %v2528_v38 = vmul.f32 %v2525_v27, %v11741_v52  ;;  %6084 = vmatprep.subr.bf16.mxu1 %v6878_v63  ;;  %v6886_v63 = vld [vmem:[%s11501_s5 + $0x230] ss:$40 sps:$4 sm:$0xff]  }
 0x2ab   :  { %v2483_v28 = vpop.permute.xlu0 %2482  ;;  %v9298_v30 = vpop.permute.xlu1 %2568  ;;  %11774 = vst [vmem:[#allocation67_spill] sm:$0xff] %v9329_v37  ;;  %v1753_v42 = vsel %vm1752_vm6, %v1749_v49, %v1751_v31  ;;  %11776 = vst [vmem:[#allocation45_spill] sm:$0xff] %v9343_v16  ;;  %v2496_v55 = vadd.f32 %v9239_v50, %v2470_v62  ;;  %v11602_v15 = vrot.slane %v9329_v37, 1  ;;  %v11603_v34 = vrot.slane %v9343_v16, 1 }
 0x2ac   :  { %v1764_v12 = vsel %vm1750_vm5, %v9283_v5, %v1761_v56  ;;  %v2494_v17 = vadd.f32 %v2483_v28, %v2468_v51  ;;  %v1652_v56 = vadd.f32 %v1642_v8, %v1628_v61  ;;  %v2526_v28 = vmul.f32 %v2525_v27, %v11743_v3  ;;  %v6881_v8 = vld [vmem:[%s11501_s5 + $0x640] ss:$40 sps:$4 sm:$0xff]   ;;  %5884 = vmatpush1.bf16.xpose.msra.mxu0 %v6880_v32 }
 0x2ad   :  { %v1765_v9 = vsel %vm1752_vm6, %v9283_v5, %v1764_v12  ;;  %v2613_v12 = vstv %s9313_s26  ;;  %v1755_v6 = vsel %vm1754_vm7, %v1749_v49, %v1753_v42  ;;  %v1598_v61 = vadd.f32 %v9186_v7, %v1566_v22  ;;  %6085 = vmatpush1.bf16.xpose.msra.mxu1 %v6881_v8  ;;  %s10089_s26 = sld [smem:[#allocation9 + $0x3c]] }
 0x2ae   :  { %v1766_v44 = vsel %vm1754_vm7, %v9283_v5, %v1765_v9  ;;  %v2520_v9 = vadd.f32 %v9270_v60, %v2494_v17  ;;  %v9360_v31 = vmul.f32 %v2613_v12, %v11749_v57  ;;  %v1757_v50 = vsel %vm11622_vm8, %v1749_v49, %v1755_v6 }
 0x2af   :  { %v1622_v46 = vpop.permute.xlu0 %1621  ;;  %v1706_v53 = vpop.permute.xlu1 %1705  ;;  %v1767_v39 = vsel %vm11622_vm8, %v9283_v5, %v1766_v44  ;;  %1760 = vst.msk [vmem:[#allocation3] sm:$0x3] %vm11617_vm9, %v1757_v50  ;;  %v2522_v62 = vadd.f32 %v9241_v47, %v2496_v55  ;;  %v2537_v40 = vrot.slane %v2528_v38, 1  ;;  %v2614_v49 = vmul.f32 %v2613_v12, %v11743_v3 }
 0x2b0   :  { %1768 = vrot.lane.b32.xlu0 %v1767_v39, %s7389_s27  ;;  %11777 = vst [vmem:[#allocation37_spill] sm:$0xff] %v9360_v31  ;;  %v2534_v39 = vrot.slane %v2526_v28, 1  ;;  %v1630_v7 = vadd.f32 %v1622_v46, %v1598_v61  ;;  %v11600_v17 = vrot.slane %v9360_v31, 2  ;;  %v9382_v43 = vmul.f32 %v2613_v12, %v11744_v14 }
 0x2b1   :  { %v2539_v47 = vsel %vm191_vm3, %v2537_v40, %v11603_v34  ;;  %v11779_v32 = vrot.slane %v9108_v13, 2  ;;  %v2616_v6 = vmul.f32 %v2613_v12, %v11741_v52  ;;  %vm1983_vm9 = vcmask 60418  }
 0x2b2   :  { %v2536_v60 = vsel %vm191_vm3, %v2534_v39, %v11602_v15  ;;  %11778 = vst [vmem:[#allocation68_spill] sm:$0xff] %v9382_v43  ;;  %v2546_v28 = vadd.f32 %v2539_v47, %v2522_v62  ;;  %v11601_v62 = vrot.slane %v9382_v43, 2  ;;  %v3026_v43 = vstv %s6413_s21  ;;  %s7413_s21 = smov 32  }
 0x2b3   :  { %v1674_v48 = vpop.permute.xlu0 %1673  ;;  %v2601_v2 = vpop.permute.xlu1 %2600  ;;  %v2544_v22 = vadd.f32 %v2536_v60, %v2520_v9  ;;  %v1654_v8 = vadd.f32 %v11779_v32, %v1630_v7  ;;  %v3030_v36 = vmul.f32 %v3026_v43, %v7813_v11  ;;  %v3029_v58 = vmul.f32 %v3026_v43, %v7792_v41 }
 0x2b4   :  { %v1684_v26 = vadd.f32 %v1674_v48, %v1652_v56  ;;  %v6884_v56 = vld [vmem:[%s11501_s5 + $0x694] ss:$40 sps:$4 sm:$0xff]   ;;  %v6887_v48 = vld [vmem:[%s11501_s5 + $0x690] ss:$40 sps:$4 sm:$0xff]   ;;  %v2578_v61 = vadd.f32 %v9298_v30, %v2546_v28  ;;  %v1807_v28 = vcombine.high %v9258_v19, %v9258_v19 }
 0x2b5   :  { %6086 = vmatprep.subr.bf16.mxu1 %v6884_v56 }
 0x2b6   :  { %v1716_v44 = vadd.f32 %v1706_v53, %v1684_v26  ;;  %v6882_v53 = vld [vmem:[%s11501_s5 + $0x234] ss:$40 sps:$4 sm:$0xff]   ;;  %v2622_v26 = vrot.slane %v2614_v49, 2  ;;  %6087 = vmatpush1.bf16.xpose.msra.mxu1 %v6887_v48  ;;  %v2610_v7 = vadd.f32 %v2601_v2, %v2578_v61  ;;  %v2625_v49 = vrot.slane %v2616_v6, 2  ;;  %v6888_v2 = vld [vmem:[%s11501_s5 + $0x284] ss:$40 sps:$4 sm:$0xff]  }
 0x2b7   :  { %v1678_v51 = vpop.permute.xlu0 %1677  ;;  %v2597_v27 = vpop.permute.xlu1 %2596  ;;  %5885 = vmatprep.subr.bf16.mxu0 %v6882_v53  ;;  %v6893_v48 = vld [vmem:[%s11501_s5 + $0x6e0] ss:$40 sps:$4 sm:$0xff]   ;;  %v9434_v61 = vcombine.high %v9283_v5, %v9283_v5 }
 0x2b8   :  { %v1722_v46 = vadd.f32 %v9207_v33, %v1716_v44  ;;  %v1686_v9 = vadd.f32 %v1678_v51, %v1654_v8  ;;  %5886 = vmatpush1.bf16.xpose.msra.mxu0 %v6886_v63  ;;  %v2624_v39 = vsel %vm304_vm4, %v2622_v26, %v11600_v17  ;;  %v2627_v53 = vsel %vm304_vm4, %v2625_v49, %v11601_v62  ;;  %v6892_v63 = vld [vmem:[%s11501_s5 + $0x280] ss:$40 sps:$4 sm:$0xff]  }
 0x2b9   :  { %5887 = vmatprep.subr.bf16.mxu0 %v6888_v2  ;;  %v1799_v26 = vcombine.high %v9265_v23, %v9265_v23 }
 0x2ba   :  { %v9394_v44 = vmax.f32 %v1722_v46, 0.0 }
 0x2bb   :  { %v2565_v42 = vpop.permute.xlu0 %2564  ;;  %v2653_v38 = vpop.permute.xlu1 %2652 }
 0x2bc   :  { %v2576_v55 = vadd.f32 %v2565_v42, %v2544_v22  ;;  %v9403_v51 = vrot.slane %v9394_v44, %v9256_v18  ;;  %v2634_v42 = vadd.f32 %v2627_v53, %v2610_v7  ;;  %v9442_v7 = vrot.slane %v1807_v28, %v9256_v18 }
 0x2be   :  { %v2608_v50 = vadd.f32 %v2597_v27, %v2576_v55  ;;  %v9405_v27 = vstv %s6409_s16  ;;  %s7400_s16 = smov 80  }
 0x2bf   :  { %v1710_v13 = vpop.permute.xlu0 %1709  ;;  %11780 = vst [vmem:[#allocation52_spill] sm:$0xff] %v9405_v27  ;;  %v2685_v22 = vpop.permute.xlu1 %2684 }
 0x2c0   :  { %v2632_v40 = vadd.f32 %v2624_v39, %v2608_v50  ;;  %v1718_v60 = vadd.f32 %v1710_v13, %v1686_v9  ;;  %5888 = vmatpush1.bf16.xpose.msra.mxu0 %v6892_v63  ;;  %v1773_v50 = vcombine.high %v9276_v45, %v9276_v45  ;;  %v9454_v45 = vrot.slane %v1799_v26, %v9256_v18 }
 0x2c2   :  { %v2664_v12 = vadd.f32 %v2653_v38, %v2632_v40  ;;  %v1724_v30 = vadd.f32 %v9207_v33, %v1718_v60  ;;  %v6890_v33 = vld [vmem:[%s11501_s5 + $0x6e4] ss:$40 sps:$4 sm:$0xff]   ;;  %v1898_v38 = vrot.slane %v9403_v51, 1  ;;  %v6894_v60 = vld [vmem:[%s11501_s5 + $0x2d4] ss:$40 sps:$4 sm:$0xff]   ;;  %v1787_v28 = vrot.slane %v1773_v50, 1 }
 0x2c3   :  { %v2657_v56 = vpop.permute.xlu0 %2656  ;;  %6088 = vmatprep.subr.bf16.mxu1 %v6890_v33  ;;  %5889 = vmatprep.subr.bf16.mxu0 %v6894_v60 }
 0x2c4   :  { %v9416_v47 = vmax.f32 %v1724_v30, 0.0  ;;  %v2696_v46 = vadd.f32 %v2685_v22, %v2664_v12  ;;  %v2666_v55 = vadd.f32 %v2657_v56, %v2634_v42  ;;  %6089 = vmatpush1.bf16.xpose.msra.mxu1 %v6893_v48  ;;  %v1777_v30 = vrot.slane %v9434_v61, 7  ;;  %v6896_v22 = vld [vmem:[%s11501_s5 + $0x734] ss:$40 sps:$4 sm:$0xff]  }
 0x2c5   :  { %6090 = vmatprep.subr.bf16.mxu1 %v6896_v22  ;;  %v1817_v48 = vrot.slane %v9442_v7, 7 }
 0x2c6   :  { %v1885_v32 = vrot.slane %v9416_v47, %v9256_v18  ;;  %v2702_v8 = vadd.f32 %v9405_v27, %v2696_v46  ;;  %v1778_v33 = vsel %vm1750_vm5, %v1777_v30, %v1773_v50  ;;  %v1941_v46 = vcombine.high %v9394_v44, %v9394_v44 }
 0x2c7   :  { %v2689_v6 = vpop.permute.xlu0 %2688  ;;  %v1949_v26 = vcombine.high %v9416_v47, %v9416_v47  ;;  %v1779_v44 = vsel %vm1752_vm6, %v1777_v30, %v1778_v33 }
 0x2c8   :  { %v9436_v9 = vmax.f32 %v2702_v8, 0.0  ;;  %v2698_v19 = vadd.f32 %v2689_v6, %v2666_v55  ;;  %v1901_v39 = vsel %vm1750_vm5, %v1885_v32, %v1898_v38  ;;  %v1888_v13 = vrot.slane %v1885_v32, 7 }
 0x2c9   :  { %v1902_v40 = vsel %vm1752_vm6, %v1885_v32, %v1901_v39  ;;  %v1832_v8 = vrot.slane %v9454_v45, 1  ;;  %v1818_v6 = vsel %vm1750_vm5, %v1817_v48, %v9454_v45  ;;  %v9482_v50 = vcombine.high %v1885_v32, %v1885_v32 }
 0x2ca   :  { %v9446_v23 = vrot.slane %v9436_v9, %v9256_v18  ;;  %v2704_v5 = vadd.f32 %v9405_v27, %v2698_v19  ;;  %v1903_v49 = vsel %vm1754_vm7, %v1885_v32, %v1902_v40  ;;  %v1889_v12 = vsel %vm1750_vm5, %v1888_v13, %v9403_v51 }
 0x2cb   :  { %v1904_v56 = vsel %vm11622_vm8, %v1885_v32, %v1903_v49  ;;  %v1890_v2 = vsel %vm1752_vm6, %v1888_v13, %v1889_v12  ;;  %v1948_v40 = vrot.slane %v1941_v46, %v9256_v18  ;;  %v1819_v12 = vsel %vm1752_vm6, %v1817_v48, %v1818_v6 }
 0x2cc   :  { %v2708_v53 = vmax.f32 %v2704_v5, 0.0  ;;  %v2738_v42 = vrot.slane %v9446_v23, 1  ;;  %1905 = vrot.lane.b32.xlu0 %v1904_v56, %s7390_s2  ;;  %v1891_v55 = vsel %vm1754_vm7, %v1888_v13, %v1890_v2  ;;  %v1780_v22 = vsel %vm1754_vm7, %v1777_v30, %v1779_v44 }
 0x2cd   :  { %v1892_v19 = vsel %vm11622_vm8, %v1888_v13, %v1891_v55  ;;  %v9492_v13 = vrot.slane %v1949_v26, %v9256_v18  ;;  %v1835_v56 = vsel %vm1750_vm5, %v9442_v7, %v1832_v8  ;;  %v1790_v46 = vsel %vm1750_vm5, %v9434_v61, %v1787_v28  ;;  %v4075_v55 = vld [vmem:[%s11501_s5 + $0x2d0] sm:$0xff]  ;;  %v4220_v8 = vld [vmem:[%s11501_s5 + $0x758] sm:$0xff] }
 0x2ce   :  { %v2725_v63 = vrot.slane %v2708_v53, %v9256_v18  ;;  %v2784_v2 = vcombine.high %v2708_v53, %v2708_v53  ;;  %v1969_v26 = vrot.slane %v1948_v40, 1  ;;  %v4080_v53 = vld [vmem:[%s11501_s5 + $0x2f8] sm:$0xff]  ;;  %v4215_v28 = vld [vmem:[%s11501_s5 + $0x730] sm:$0xff]  ;;  %v1915_v44 = vcombine.high %v9403_v51, %v9403_v51 }
 0x2cf   :  { %v1781_v6 = vsel %vm11622_vm8, %v1777_v30, %v1780_v22  ;;  %v6898_v22 = vld [vmem:[%s11501_s5 + $0x324] ss:$40 sps:$4 sm:$0xff]  }
 0x2d0   :  { %v2741_v38 = vsel %vm1750_vm5, %v2725_v63, %v2738_v42  ;;  %v2728_v5 = vrot.slane %v2725_v63, 7  ;;  %1893 = vrot.lane.b32.xlu0 %v1892_v19, %s7391_s1  ;;  %v9502_v42 = vrot.slane %v9482_v50, 7  ;;  %v1820_v19 = vsel %vm1754_vm7, %v1817_v48, %v1819_v12 }
 0x2d1   :  { %v2742_v39 = vsel %vm1752_vm6, %v2725_v63, %v2741_v38  ;;  %v9533_v51 = vrot.slane %v2784_v2, %v9256_v18  ;;  %v6529_v12 = vcombine.low %v4075_v55, %v4080_v53 }
 0x2d2   :  { %v2743_v47 = vsel %vm1754_vm7, %v2725_v63, %v2742_v39  ;;  %v2729_v49 = vsel %vm1750_vm5, %v2728_v5, %v9446_v23  ;;  %v1836_v39 = vsel %vm1752_vm6, %v9442_v7, %v1835_v56  ;;  %v1920_v30 = vsel %vm1750_vm5, %v9502_v42, %v1915_v44  ;;  %v6900_v56 = vld [vmem:[%s11501_s5 + $0x784] ss:$40 sps:$4 sm:$0xff]  }
 0x2d3   :  { %v2744_v60 = vsel %vm11622_vm8, %v2725_v63, %v2743_v47  ;;  %v2730_v32 = vsel %vm1752_vm6, %v2728_v5, %v2729_v49  ;;  %v1972_v47 = vsel %vm1750_vm5, %v9492_v13, %v1969_v26  ;;  %v9530_v49 = vcombine.high %v2725_v63, %v2725_v63  ;;  %5890 = vmatpush1.bf16.xpose.msra.mxu0 %v6529_v12  ;;  %v6904_v12 = vld [vmem:[%s11501_s5 + $0x374] ss:$40 sps:$4 sm:$0xff]  }
 0x2d4   :  { %v2731_v33 = vsel %vm1754_vm7, %v2728_v5, %v2730_v32  ;;  %2745 = vrot.lane.b32.xlu0 %v2744_v60, %s7392_s12  ;;  %v9528_v60 = vrot.slane %v9492_v13, 7  ;;  %v6669_v32 = vcombine.low %v4215_v28, %v4220_v8  ;;  %v1821_v63 = vsel %vm11622_vm8, %v1817_v48, %v1820_v19  ;;  %5891 = vmatprep.subr.bf16.mxu0 %v6898_v22  ;;  %s6423_s12 = sld [smem:[#allocation9 + $0x43]] }
 0x2d5   :  { %v2732_v38 = vsel %vm11622_vm8, %v2728_v5, %v2731_v33  ;;  %v1791_v5 = vsel %vm1752_vm6, %v9434_v61, %v1790_v46  ;;  %v1837_v2 = vsel %vm1754_vm7, %v9442_v7, %v1836_v39  ;;  %v2776_v33 = vcombine.high %v9436_v9, %v9436_v9 }
 0x2d6   :  { %2733 = vrot.lane.b32.xlu1 %v2732_v38, %s7393_s4  ;;  %v1792_v46 = vsel %vm1754_vm7, %v9434_v61, %v1791_v5  ;;  %v1973_v55 = vsel %vm1752_vm6, %v9492_v13, %v1972_v47  ;;  %v1929_v26 = vrot.slane %v1915_v44, 1  ;;  %v1921_v48 = vsel %vm1752_vm6, %v9502_v42, %v1920_v30  ;;  %6091 = vmatpush1.bf16.xpose.msra.mxu1 %v6669_v32  ;;  %v6902_v5 = vld [vmem:[%s11501_s5 + $0x320] ss:$40 sps:$4 sm:$0xff]   ;;  %s7406_s4 = smov 68  }
 0x2d7   :  { %v1960_v38 = vsel %vm1750_vm5, %v9528_v60, %v1948_v40  ;;  %v2754_v53 = vrot.slane %v9530_v49, 7  ;;  %v1838_v9 = vsel %vm11622_vm8, %v9442_v7, %v1837_v2  ;;  %v2794_v8 = vrot.slane %v9533_v51, 7  ;;  %6092 = vmatprep.subr.bf16.mxu1 %v6900_v56  ;;  %v6903_v30 = vld [vmem:[%s11501_s5 + $0x780] ss:$40 sps:$4 sm:$0xff]   ;;  %v6906_v56 = vld [vmem:[%s11501_s5 + $0x7d4] ss:$40 sps:$4 sm:$0xff]  }
 0x2d8   :  { %1782 = vrot.lane.b32.xlu0 %v1781_v6, %s7394_s22  ;;  %v1932_v28 = vsel %vm1750_vm5, %v9482_v50, %v1929_v26  ;;  %v2750_v44 = vcombine.high %v9446_v23, %v9446_v23  ;;  %v1793_v40 = vsel %vm11622_vm8, %v9434_v61, %v1792_v46  ;;  %v1974_v6 = vsel %vm1754_vm7, %v9492_v13, %v1973_v55 }
 0x2d9   :  { %v9572_v19 = vrot.slane %v2776_v33, %v9256_v18  ;;  %v1922_v39 = vsel %vm1754_vm7, %v9502_v42, %v1921_v48  ;;  %v1961_v23 = vsel %vm1752_vm6, %v9528_v60, %v1960_v38  ;;  %v1933_v61 = vsel %vm1752_vm6, %v9482_v50, %v1932_v28 }
 0x2da   :  { %1822 = vrot.lane.b32.xlu1 %v1821_v63, %s7395_s23  ;;  %v2755_v47 = vsel %vm1750_vm5, %v2754_v53, %v2750_v44  ;;  %v1975_v32 = vsel %vm11622_vm8, %v9492_v13, %v1974_v6  ;;  %v1923_v63 = vsel %vm11622_vm8, %v9502_v42, %v1922_v39  ;;  %v1962_v2 = vsel %vm1754_vm7, %v9528_v60, %v1961_v23 }
 0x2db   :  { %v2795_v22 = vsel %vm1750_vm5, %v2794_v8, %v9572_v19  ;;  %v2764_v33 = vrot.slane %v2750_v44, 1  ;;  %v1934_v13 = vsel %vm1754_vm7, %v9482_v50, %v1933_v61  ;;  %v2756_v46 = vsel %vm1752_vm6, %v2754_v53, %v2755_v47  ;;  %5892 = vmatpush1.bf16.xpose.msra.mxu0 %v6902_v5  ;;  %v6912_v5 = vld [vmem:[%s11501_s5 + $0x824] ss:$40 sps:$4 sm:$0xff]  }
 0x2dc   :  { %1839 = vrot.lane.b32.xlu0 %v1838_v9, %s7396_s24  ;;  %v9607_v55 = vcombine.high %v9442_v7, %v9442_v7  ;;  %v2796_v26 = vsel %vm1752_vm6, %v2794_v8, %v2795_v22  ;;  %5893 = vmatprep.subr.bf16.mxu0 %v6904_v12  ;;  %v1844_v42 = vcombine.high %v9454_v45, %v9454_v45 }
 0x2dd   :  { %v1963_v48 = vsel %vm11622_vm8, %v9528_v60, %v1962_v2  ;;  %v2767_v38 = vsel %vm1750_vm5, %v9530_v49, %v2764_v33  ;;  %v1935_v7 = vsel %vm11622_vm8, %v9482_v50, %v1934_v13  ;;  %v2757_v9 = vsel %vm1754_vm7, %v2754_v53, %v2756_v46  ;;  %v6908_v60 = vld [vmem:[%s11501_s5 + $0x370] ss:$40 sps:$4 sm:$0xff]   ;;  %v6914_v33 = vld [vmem:[%s11501_s5 + $0x3c0] ss:$40 sps:$4 sm:$0xff]  }
 0x2de   :  { %1794 = vrot.lane.b32.xlu1 %v1793_v40, %s7397_s25  ;;  %6093 = vmatpush1.bf16.xpose.msra.mxu1 %v6903_v30  ;;  %v2797_v28 = vsel %vm1754_vm7, %v2794_v8, %v2796_v26  ;;  %v1848_v45 = vrot.slane %v9607_v55, 7  ;;  %v2768_v44 = vsel %vm1752_vm6, %v9530_v49, %v2767_v38  ;;  %v6909_v50 = vld [vmem:[%s11501_s5 + $0x7d0] ss:$40 sps:$4 sm:$0xff]   ;;  %v6910_v40 = vld [vmem:[%s11501_s5 + $0x3c4] ss:$40 sps:$4 sm:$0xff]   ;;  %v2758_v6 = vsel %vm11622_vm8, %v2754_v53, %v2757_v9 }
 0x2df   :  { %6094 = vmatprep.subr.bf16.mxu1 %v6906_v56  ;;  %v1858_v23 = vrot.slane %v1844_v42, 1  ;;  %v2798_v61 = vsel %vm11622_vm8, %v2794_v8, %v2797_v28  ;;  %v2769_v47 = vsel %vm1754_vm7, %v9530_v49, %v2768_v44  ;;  %v3050_v53 = vstv %s9610_s15  ;;  %v11781_v8 = vld [vmem:[#allocation26_spill] sm:$0xff]  ;;  %v11783_v13 = vld [vmem:[#allocation20_spill] sm:$0xff]  ;;  %s6424_s15 = sld [smem:[#allocation9 + $0x44]] }
 0x2e0   :  { %1976 = vrot.lane.b32.xlu0 %v1975_v32, %s7398_s13  ;;  %v1849_v39 = vsel %vm1750_vm5, %v1848_v45, %v1844_v42  ;;  %v9645_v12 = vmul.f32 %v3050_v53, %v7813_v11  ;;  %v11782_v22 = vrot.slane %v11781_v8, 1  ;;  %v2770_v56 = vsel %vm11622_vm8, %v9530_v49, %v2769_v47  ;;  %v11784_v42 = vld [vmem:[#allocation19_spill] sm:$0xff]  ;;  %s6421_s13 = sld [smem:[#allocation9 + $0x41]] }
 0x2e1   :  { %v1850_v30 = vsel %vm1752_vm6, %v1848_v45, %v1849_v39  ;;  %v1861_v32 = vsel %vm1750_vm5, %v9607_v55, %v1858_v23  ;;  %v3053_v2 = vmul.f32 %v3050_v53, %v7792_v41  ;;  %v3004_v46 = vmul.f32 %v11783_v13, %v7813_v11  ;;  %v6915_v49 = vld [vmem:[%s11501_s5 + $0x820] ss:$40 sps:$4 sm:$0xff]  }
 0x2e2   :  { %1924 = vrot.lane.b32.xlu1 %v1923_v63, %s7399_s14  ;;  %v1851_v63 = vsel %vm1754_vm7, %v1848_v45, %v1850_v30  ;;  %v1862_v26 = vsel %vm1752_vm6, %v9607_v55, %v1861_v32  ;;  %v2821_v38 = vcombine.high %v9572_v19, %v9572_v19  ;;  %v2809_v28 = vrot.slane %v9572_v19, 1  ;;  %s7405_s14 = smov 40   ;;  %v6918_v19 = vld [vmem:[%s11501_s5 + $0x874] ss:$40 sps:$4 sm:$0xff]  }
 0x2e3   :  { %5894 = vmatpush1.bf16.xpose.msra.mxu0 %v6908_v60  ;;  %v1852_v9 = vsel %vm11622_vm8, %v1848_v45, %v1851_v63  ;;  %v3062_v60 = vrot.slane %v3053_v2, 1  ;;  %v1863_v44 = vsel %vm1754_vm7, %v9607_v55, %v1862_v26  ;;  %v6916_v45 = vld [vmem:[%s11501_s5 + $0x414] ss:$40 sps:$4 sm:$0xff]   ;;  %v6924_v26 = vld [vmem:[%s11501_s5 + $0x8c4] ss:$40 sps:$4 sm:$0xff]  }
 0x2e4   :  { %1964 = vrot.lane.b32.xlu0 %v1963_v48, %s7400_s16  ;;  %5895 = vmatprep.subr.bf16.mxu0 %v6910_v40  ;;  %v9664_v48 = vmul.f32 %v3050_v53, %v11784_v42  ;;  %v2812_v23 = vsel %vm1750_vm5, %v9533_v51, %v2809_v28  ;;  %v1864_v47 = vsel %vm11622_vm8, %v9607_v55, %v1863_v44  ;;  %v6921_v55 = vld [vmem:[%s11501_s5 + $0x870] ss:$40 sps:$4 sm:$0xff]   ;;  %s6426_s16 = sld [smem:[#allocation9 + $0x46]] }
 0x2e5   :  { %v2813_v30 = vsel %vm1752_vm6, %v9533_v51, %v2812_v23  ;;  %v11789_v44 = vld [vmem:[#allocation18_spill] sm:$0xff]  ;;  %v6927_v23 = vld [vmem:[%s11501_s5 + $0x8c0] ss:$40 sps:$4 sm:$0xff]  }
 0x2e6   :  { %1936 = vrot.lane.b32.xlu1 %v1935_v7, %s7401_s17  ;;  %6095 = vmatpush1.bf16.xpose.msra.mxu1 %v6909_v50  ;;  %v3063_v7 = vrot.slane %v9645_v12, 1  ;;  %v11785_v50 = vld [vmem:[#allocation17_spill] sm:$0xff]  ;;  %v2814_v32 = vsel %vm1754_vm7, %v9533_v51, %v2813_v30  ;;  %v11792_v30 = vld [vmem:[#allocation28_spill] sm:$0xff]  ;;  %s6427_s17 = sld [smem:[#allocation9 + $0x47]] }
 0x2e7   :  { %6096 = vmatprep.subr.bf16.mxu1 %v6912_v5  ;;  %v3051_v40 = vmul.f32 %v3050_v53, %v11785_v50  ;;  %v2822_v5 = vcombine.high %v9533_v51, %v9533_v51  ;;  %v6920_v12 = vld [vmem:[%s11501_s5 + $0x410] ss:$40 sps:$4 sm:$0xff]   ;;  %v9711_v63 = vsel %vm11622_vm8, %v9533_v51, %v2814_v32 }
 0x2e8   :  { %2759 = vrot.lane.b32.xlu0 %v2758_v6, %s7402_s30  ;;  %v3060_v6 = vrot.slane %v9664_v48, 1  ;;  %v3064_v39 = vsel %vm191_vm3, %v3062_v60, %v3063_v7  ;;  %11786 = vst [vmem:[#allocation44_spill] sm:$0xff] %v9711_v63  ;;  %s10202_s30 = sld [smem:[#allocation9 + $0x50]] }
 0x2e9   :  { %v3059_v53 = vrot.slane %v3051_v40, 1  ;;  %v2825_v8 = vrot.slane %v2822_v5, 7  ;;  %v2976_v40 = vmul.f32 %v11789_v44, %v11784_v42  ;;  %v6939_v44 = vld [vmem:[%s11501_s5 + $0x50c] ss:$40 sps:$4 sm:$0xff]  }
 0x2ea   :  { %2799 = vrot.lane.b32.xlu1 %v2798_v61, %s7403_s8  ;;  %v2835_v61 = vrot.slane %v2821_v38, 1  ;;  %s7407_s8 = smov 20  }
 0x2eb   :  { %5896 = vmatpush1.bf16.xpose.msra.mxu0 %v6914_v33  ;;  %v3061_v33 = vsel %vm191_vm3, %v3059_v53, %v3060_v6  ;;  %v11793_v53 = vrot.slane %v11792_v30, 2 }
 0x2ec   :  { %2122 = vrot.lane.b32.xlu0 %v11782_v22, %s7387_s29  ;;  %5897 = vmatprep.subr.bf16.mxu0 %v6916_v45  ;;  %v2838_v22 = vsel %vm1750_vm5, %v2822_v5, %v2835_v61  ;;  %v9749_v61 = vpop.permute.xlu0 %2012 }
 0x2ed   :  { %v2839_v2 = vsel %vm1752_vm6, %v2822_v5, %v2838_v22  ;;  %v3002_v22 = vmul.f32 %v11783_v13, %v11784_v42 }
 0x2ee   :  { %2771 = vrot.lane.b32.xlu1 %v2770_v56, %s7404_s9  ;;  %6097 = vmatpush1.bf16.xpose.msra.mxu1 %v6915_v49  ;;  %v6922_v56 = vld [vmem:[%s11501_s5 + $0x464] ss:$40 sps:$4 sm:$0xff]   ;;  %v2826_v49 = vsel %vm1750_vm5, %v2825_v8, %v2821_v38  ;;  %s6415_s9 = sld [smem:[#allocation9 + $0x3b]] }
 0x2ef   :  { %6098 = vmatprep.subr.bf16.mxu1 %v6918_v19  ;;  %v2827_v51 = vsel %vm1752_vm6, %v2825_v8, %v2826_v49  ;;  %v6926_v19 = vld [vmem:[%s11501_s5 + $0x460] ss:$40 sps:$4 sm:$0xff]   ;;  %v6933_v49 = vld [vmem:[%s11501_s5 + $0x910] ss:$40 sps:$4 sm:$0xff]  }
 0x2f0   :  { %3015 = vrot.lane.b32.xlu0 %v3004_v46, %s7387_s29  ;;  %v3001_v46 = vmul.f32 %v11783_v13, %v11785_v50  ;;  %v2828_v60 = vsel %vm1754_vm7, %v2825_v8, %v2827_v51 }
 0x2f1   :  { %v9732_v38 = vsel %vm11622_vm8, %v2825_v8, %v2828_v60  ;;  %v3138_v8 = vstv %s6417_s10  ;;  %s6418_s10 = sld [smem:[#allocation9 + $0x3e]] }
 0x2f2   :  { %1853 = vrot.lane.b32.xlu1 %v1852_v9, %s7405_s14  ;;  %v2840_v9 = vsel %vm1754_vm7, %v2822_v5, %v2839_v2  ;;  %11788 = vst [vmem:[#allocation46_spill] sm:$0xff] %v9732_v38  ;;  %v9765_v2 = vpop.permute.xlu0 %2038  ;;  %v9780_v60 = vmul.f32 %v3138_v8, %v11784_v42 }
 0x2f3   :  { %v9727_v28 = vsel %vm11622_vm8, %v2822_v5, %v2840_v9  ;;  %5898 = vmatpush1.bf16.xpose.msra.mxu0 %v6920_v12  ;;  %v6928_v5 = vld [vmem:[%s11501_s5 + $0x4b4] ss:$40 sps:$4 sm:$0xff]   ;;  %vm2748_vm8 = vcmask 517408  }
 0x2f4   :  { %3069 = vrot.lane.b32.xlu0 %v3064_v39, %s7386_s0  ;;  %11787 = vst [vmem:[#allocation55_spill] sm:$0xff] %v9727_v28  ;;  %5899 = vmatprep.subr.bf16.mxu0 %v6922_v56  ;;  %v11790_v39 = vld [vmem:[#allocation27_spill] sm:$0xff]  ;;  %v3082_v12 = vstv %s6415_s9  ;;  %v11794_v56 = vld [vmem:[#allocation30_spill] sm:$0xff]  ;;  %s7415_s9 = smov 60  }
 0x2f5   :  { %v11791_v45 = vrot.slane %v11790_v39, 2  ;;  %v3086_v32 = vmul.f32 %v3082_v12, %v7813_v11  ;;  %v3085_v13 = vmul.f32 %v3082_v12, %v7792_v41  ;;  %v6936_v9 = vld [vmem:[%s11501_s5 + $0xc] ss:$40 sps:$4 sm:$0xff]  }
 0x2f6   :  { %1865 = vrot.lane.b32.xlu1 %v1864_v47, %s7406_s4  ;;  %6099 = vmatpush1.bf16.xpose.msra.mxu1 %v6921_v55  ;;  %v6930_v47 = vld [vmem:[%s11501_s5 + $0x914] ss:$40 sps:$4 sm:$0xff]   ;;  %v3142_v55 = vmul.f32 %v3138_v8, %v7813_v11  ;;  %v11796_v39 = vld [vmem:[#allocation29_spill] sm:$0xff]  ;;  %v9792_v30 = vpop.permute.xlu0 %2094 }
 0x2f7   :  { %6100 = vmatprep.subr.bf16.mxu1 %v6924_v26  ;;  %v3095_v26 = vrot.slane %v3086_v32, 1  ;;  %v3148_v32 = vrot.slane %v9780_v60, 2  ;;  %v3170_v60 = vstv %s6418_s10  ;;  %s6428_s10 = sld [smem:[#allocation9 + $0x48]] }
 0x2f8   :  { %3065 = vrot.lane.b32.xlu0 %v3061_v33, %s7386_s0  ;;  %v3141_v33 = vmul.f32 %v3138_v8, %v7792_v41  ;;  %v3151_v51 = vrot.slane %v3142_v55, 2 }
 0x2fa   :  { %3009 = vrot.lane.b32.xlu1 %v3001_v46, %s7387_s29  ;;  %v6932_v46 = vld [vmem:[%s11501_s5 + $0x4b0] ss:$40 sps:$4 sm:$0xff]  }
 0x2fb   :  { %5900 = vmatpush1.bf16.xpose.msra.mxu0 %v6926_v19  ;;  %v3150_v19 = vrot.slane %v3141_v33, 2  ;;  %v9802_v33 = vpop.permute.xlu0 %2983 }
 0x2fc   :  { %2214 = vrot.lane.b32.xlu0 %v11791_v45, %s7387_s29  ;;  %5901 = vmatprep.subr.bf16.mxu0 %v6928_v5  ;;  %v11797_v45 = vrot.slane %v11796_v39, 2  ;;  %v3094_v5 = vrot.slane %v3085_v13, 1  ;;  %v3173_v39 = vmul.f32 %v3170_v60, %v7792_v41 }
 0x2fe   :  { %2985 = vrot.lane.b32.xlu1 %v2976_v40, %s7386_s0  ;;  %6101 = vmatpush1.bf16.xpose.msra.mxu1 %v6927_v23  ;;  %v3084_v40 = vmul.f32 %v3082_v12, %v11784_v42  ;;  %v3139_v23 = vmul.f32 %v3138_v8, %v11785_v50 }
 0x2ff   :  { %6102 = vmatprep.subr.bf16.mxu1 %v6930_v47  ;;  %v3083_v47 = vmul.f32 %v3082_v12, %v11785_v50 }
 0x300   :  { %3071 = vrot.lane.b32.xlu0 %v3063_v7, %s7386_s0  ;;  %v11795_v7 = vrot.slane %v11794_v56, 2  ;;  %v3092_v55 = vrot.slane %v3084_v40, 1  ;;  %v3147_v8 = vrot.slane %v3139_v23, 2  ;;  %v3174_v40 = vmul.f32 %v3170_v60, %v7813_v11 }
 0x301   :  { %v3091_v56 = vrot.slane %v3083_v47, 1  ;;  %v3182_v47 = vrot.slane %v3173_v39, 2  ;;  %v11804_v39 = vld [vmem:[#allocation39_spill] sm:$0xff] }
 0x302   :  { %2182 = vrot.lane.b32.xlu1 %v11793_v53, %s7386_s0  ;;  %v3152_v53 = vsel %vm304_vm4, %v3150_v19, %v3151_v51  ;;  %v3149_v12 = vsel %vm304_vm4, %v3147_v8, %v3148_v32  ;;  %v3172_v19 = vmul.f32 %v3170_v60, %v11784_v42 }
 0x303   :  { %5902 = vmatpush1.bf16.xpose.msra.mxu0 %v6932_v46  ;;  %v11798_v46 = vld [vmem:[#allocation23_spill] sm:$0xff] }
 0x304   :  { %2210 = vrot.lane.b32.xlu0 %v11795_v7, %s7387_s29  ;;  %5912 = vmatprep.subr.bf16.mxu0 %v6936_v9  ;;  %v3093_v7 = vsel %vm191_vm3, %v3091_v56, %v3092_v55  ;;  %v2265_v13 = vmul.f32 %v11798_v46, %v7921_v29 }
 0x306   :  { %3011 = vrot.lane.b32.xlu1 %v3002_v22, %s7387_s29  ;;  %6103 = vmatpush1.bf16.xpose.msra.mxu1 %v6933_v49  ;;  %v3096_v22 = vsel %vm191_vm3, %v3094_v5, %v3095_v26  ;;  %v11799_v49 = vld [vmem:[#allocation22_spill] sm:$0xff] }
 0x307   :  { %6117 = vmatprep.subr.bf16.mxu1 %v6939_v44  ;;  %v2239_v9 = vmul.f32 %v11799_v49, %v7921_v29  ;;  %v2263_v44 = vmul.f32 %v11798_v46, %v7918_v59  ;;  %v11800_v46 = vld [vmem:[#allocation35_spill] sm:$0xff] }
 0x308   :  { %3103 = vrot.lane.b32.xlu0 %v3095_v26, %s7387_s29  ;;  %v9811_v26 = vpop.permute.xlu0 %2126 }
 0x30a   :  { %2178 = vrot.lane.b32.xlu1 %v11797_v45, %s7386_s0  ;;  %v3212_v45 = vstv %s6420_s11  ;;  %s7408_s11 = smov 48  }
 0x30b   :  { %v3215_v5 = vmul.f32 %v3212_v45, %v7905_v0  ;;  %v3213_v8 = vmul.f32 %v3212_v45, %v7910_v24 }
 0x30c   :  { %3157 = vrot.lane.b32.xlu0 %v3152_v53, %s7386_s0  ;;  %v9821_v48 = vpop.permute.xlu0 %2989  ;;  %v3171_v53 = vmul.f32 %v3170_v60, %v11785_v50  ;;  %v11802_v60 = vld [vmem:[#allocation34_spill] sm:$0xff] }
 0x30e   :  { %3101 = vrot.lane.b32.xlu1 %v3096_v22, %s7387_s29  ;;  %v3179_v56 = vrot.slane %v3171_v53, 2 }
 0x310   :  { %3153 = vrot.lane.b32.xlu0 %v3149_v12, %s7386_s0 }
 0x312   :  { %3097 = vrot.lane.b32.xlu1 %v3093_v7, %s7387_s29  ;;  %v9840_v7 = vpop.permute.xlu1 %2008 }
 0x314   :  { %2276 = vrot.lane.b32.xlu0 %v2265_v13, %s7387_s29  ;;  %v11801_v13 = vrot.slane %v11800_v46, 1 }
 0x316   :  { %3067 = vrot.lane.b32.xlu1 %v3060_v6, %s7386_s0  ;;  %v3183_v6 = vrot.slane %v3174_v40, 2  ;;  %v3288_v40 = vstv %s6423_s12  ;;  %s10335_s12 = sld [smem:[#allocation9 + $0x42]] }
 0x317   :  { %v9863_v53 = vmul.f32 %v3288_v40, %v7918_v59 }
 0x318   :  { %3159 = vrot.lane.b32.xlu0 %v3151_v51, %s7386_s0  ;;  %v2237_v51 = vmul.f32 %v11799_v49, %v7918_v59  ;;  %v3184_v22 = vsel %vm304_vm4, %v3182_v47, %v3183_v6  ;;  %v3216_v49 = vmul.f32 %v3212_v45, %v7921_v29 }
 0x31a   :  { %2250 = vrot.lane.b32.xlu1 %v2239_v9, %s7386_s0  ;;  %v9848_v9 = vpop.permute.xlu1 %2034 }
 0x31c   :  { %2272 = vrot.lane.b32.xlu0 %v2263_v44, %s7387_s29  ;;  %v11803_v44 = vrot.slane %v11802_v60, 1 }
 0x31e   :  { %3099 = vrot.lane.b32.xlu1 %v3092_v55, %s7387_s29  ;;  %v3180_v55 = vrot.slane %v3172_v19, 2  ;;  %v3291_v19 = vmul.f32 %v3288_v40, %v7905_v0 }
 0x320   :  { %3191 = vrot.lane.b32.xlu0 %v3183_v6, %s7387_s29  ;;  %v3181_v12 = vsel %vm304_vm4, %v3179_v56, %v3180_v55  ;;  %v3292_v6 = vmul.f32 %v3288_v40, %v7921_v29  ;;  %v3300_v56 = vrot.slane %v3291_v19, 1  ;;  %v3214_v19 = vmul.f32 %v3212_v45, %v7918_v59 }
 0x322   :  { %2246 = vrot.lane.b32.xlu1 %v2237_v51, %s7386_s0  ;;  %v1769_v23 = vpop.permute.xlu0 %1768  ;;  %v11805_v51 = vrot.slane %v11804_v39, 1  ;;  %v3301_v47 = vrot.slane %v3292_v6, 1 }
 0x323   :  { %1772 = vst.msk [vmem:[#allocation3] sm:$0x3] %vm11616_vm10, %v1769_v23  ;;  %vm1982_vm10 = vcmask 1042272  }
 0x324   :  { %3225 = vrot.lane.b32.xlu0 %v3215_v5, %s7386_s0  ;;  %v9860_v5 = vpop.permute.xlu1 %2987 }
 0x326   :  { %3189 = vrot.lane.b32.xlu1 %v3184_v22, %s7387_s29  ;;  %v11806_v22 = vld [vmem:[#allocation36_spill] sm:$0xff] }
 0x328   :  { %3221 = vrot.lane.b32.xlu0 %v3213_v8, %s7386_s0  ;;  %v11807_v8 = vrot.slane %v11806_v22, 1 }
 0x32a   :  { %3185 = vrot.lane.b32.xlu1 %v3181_v12, %s7387_s29  ;;  %v3302_v12 = vsel %vm191_vm3, %v3300_v56, %v3301_v47 }
 0x32c   :  { %2364 = vrot.lane.b32.xlu0 %v11801_v13, %s7387_s29  ;;  %v3298_v13 = vrot.slane %v9863_v53, 1 }
 0x32e   :  { %3155 = vrot.lane.b32.xlu1 %v3148_v32, %s7386_s0  ;;  %v3238_v32 = vstv %s6421_s13 }
 0x32f   :  { %v3242_v23 = vmul.f32 %v3238_v32, %v7921_v29  ;;  %v3241_v46 = vmul.f32 %v3238_v32, %v7905_v0 }
 0x330   :  { %3227 = vrot.lane.b32.xlu0 %v3216_v49, %s7386_s0  ;;  %v9874_v49 = vpop.permute.xlu1 %2090 }
 0x332   :  { %2332 = vrot.lane.b32.xlu1 %v11803_v44, %s7386_s0 }
 0x334   :  { %2360 = vrot.lane.b32.xlu0 %v11805_v51, %s7387_s29  ;;  %v9887_v51 = vpop.permute.xlu1 %3013 }
 0x336   :  { %3187 = vrot.lane.b32.xlu1 %v3180_v55, %s7387_s29  ;;  %v3289_v55 = vmul.f32 %v3288_v40, %v7910_v24  ;;  %v3239_v40 = vmul.f32 %v3238_v32, %v7910_v24 }
 0x338   :  { %3253 = vrot.lane.b32.xlu0 %v3242_v23, %s7387_s29  ;;  %v3297_v60 = vrot.slane %v3289_v55, 1  ;;  %v11808_v23 = vld [vmem:[#allocation43_spill] sm:$0xff]  ;;  %v11810_v55 = vld [vmem:[#allocation42_spill] sm:$0xff] }
 0x339   :  { %v11809_v22 = vrot.slane %v11808_v23, 2 }
 0x33a   :  { %2328 = vrot.lane.b32.xlu1 %v11807_v8, %s7386_s0  ;;  %v3299_v6 = vsel %vm191_vm3, %v3297_v60, %v3298_v13 }
 0x33c   :  { %3307 = vrot.lane.b32.xlu0 %v3302_v12, %s7386_s0  ;;  %v11811_v12 = vrot.slane %v11810_v55, 2 }
 0x33e   :  { %3251 = vrot.lane.b32.xlu1 %v3241_v46, %s7387_s29  ;;  %v9877_v44 = vpop.permute.xlu0 %1905  ;;  %v3320_v46 = vstv %s6424_s15  ;;  %s7410_s15 = smov 4  }
 0x33f   :  { %v3324_v45 = vmul.f32 %v3320_v46, %v7921_v29  ;;  %v3323_v62 = vmul.f32 %v3320_v46, %v7905_v0 }
 0x340   :  { %3303 = vrot.lane.b32.xlu0 %v3299_v6, %s7386_s0  ;;  %v3376_v6 = vstv %s6426_s16  ;;  %s10699_s16 = sld [smem:[#allocation10 + $0x2]] }
 0x341   :  { %v3380_v23 = vmul.f32 %v3376_v6, %v7921_v29  ;;  %v3379_v55 = vmul.f32 %v3376_v6, %v7905_v0  ;;  %v9917_v1 = vmul.f32 %v3376_v6, %v7918_v59  ;;  %v3377_v54 = vmul.f32 %v3376_v6, %v7910_v24 }
 0x342   :  { %3247 = vrot.lane.b32.xlu1 %v3239_v40, %s7387_s29  ;;  %v9885_v39 = vpop.permute.xlu0 %1893  ;;  %v3332_v25 = vrot.slane %v3323_v62, 1 }
 0x343   :  { %v3389_v34 = vrot.slane %v3380_v23, 2  ;;  %v3388_v23 = vrot.slane %v3379_v55, 2  ;;  %v3385_v6 = vrot.slane %v3377_v54, 2 }
 0x344   :  { %2452 = vrot.lane.b32.xlu0 %v11809_v22, %s7387_s29  ;;  %v11812_v22 = vld [vmem:[#allocation50_spill] sm:$0xff] }
 0x345   :  { %v11813_v17 = vrot.slane %v11812_v22, 2 }
 0x346   :  { %3223 = vrot.lane.b32.xlu1 %v3214_v19, %s7386_s0  ;;  %v9894_v8 = vpop.permute.xlu0 %2745  ;;  %v3240_v19 = vmul.f32 %v3238_v32, %v7918_v59  ;;  %v3333_v32 = vrot.slane %v3324_v45, 1  ;;  %v11817_v45 = vld [vmem:[#allocation48_spill] sm:$0xff] }
 0x347   :  { %v11818_v22 = vrot.slane %v11817_v45, 2 }
 0x348   :  { %v9896_v56 = vpop.permute.xlu1 %2733  ;;  %3309 = vrot.lane.b32.xlu0 %v3301_v47, %s7386_s0  ;;  %v3334_v45 = vsel %vm191_vm3, %v3332_v25, %v3333_v32 }
 0x34a   :  { %2420 = vrot.lane.b32.xlu1 %v11811_v12, %s7386_s0  ;;  %v1783_v60 = vpop.permute.xlu0 %1782 }
 0x34b   :  { %1786 = vst.msk [vmem:[#allocation3] sm:$0x3] %vm11612_vm11, %v1783_v60  ;;  %v11814_v60 = vmov 0  ;;  %vm9980_vm11 = vmor %vm1912_vm13, %vm1911_vm12  ;;  %vm1939_vm12 = vcmask 648608   ;;  %vm1979_vm13 = vcmask 883712  }
 0x34c   :  { %v1823_v40 = vpop.permute.xlu1 %1822  ;;  %2448 = vrot.lane.b32.xlu0 %v11813_v17, %s7387_s29  ;;  %v11815_v60 = vsel %vm9911_vm0, 4294967295, %v11814_v60 }
 0x34d   :  { %v1824_v47 = vrot.slane %v1823_v40, 6  ;;  %11816 = vst [vmem:[#allocation56_spill] sm:$0xff] %v11815_v60 }
 0x34e   :  { %3249 = vrot.lane.b32.xlu1 %v3240_v19, %s7387_s29  ;;  %v1840_v12 = vpop.permute.xlu0 %1839  ;;  %v3322_v19 = vmul.f32 %v3320_v46, %v7918_v59 }
 0x34f   :  { %v1826_v17 = vsel %vm11610_vm14, %v1824_v47, %v1823_v40  ;;  %v3321_v40 = vmul.f32 %v3320_v46, %v7910_v24  ;;  %v3390_v47 = vsel %vm304_vm4, %v3388_v23, %v3389_v34  ;;  %vm11621_vm14 = vcmask 1009408  }
 0x350   :  { %v1795_v15 = vpop.permute.xlu1 %1794  ;;  %3341 = vrot.lane.b32.xlu0 %v3333_v32, %s7387_s29  ;;  %v3330_v55 = vrot.slane %v3322_v19, 1  ;;  %v11819_v32 = vld [vmem:[#allocation54_spill] sm:$0xff] }
 0x351   :  { %1798 = vst.msk [vmem:[#allocation3] sm:$0x3] %vm11609_vm15, %v1795_v15  ;;  %v3329_v62 = vrot.slane %v3321_v40, 1  ;;  %v2503_v54 = vmul.f32 %v11819_v32, %v11744_v14  ;;  %v2501_v53 = vmul.f32 %v11819_v32, %v11749_v57  ;;  %vm11620_vm15 = vcmask 1014784  }
 0x352   :  { %1831 = vst.msk [vmem:[#allocation3] sm:$0xf] %vm9911_vm0, %v1826_v17  ;;  %2416 = vrot.lane.b32.xlu1 %v11818_v22, %s7386_s0  ;;  %v9929_v20 = vpop.permute.xlu0 %1976  ;;  %v11611_v17 = vrot.slane %v9917_v1, 2 }
 0x353   :  { %1843 = vst.msk [vmem:[#allocation3 + $0x2] sm:$0x3] %vm11608_vm1, %v1840_v12  ;;  %v3331_v23 = vsel %vm191_vm3, %v3329_v62, %v3330_v55  ;;  %v3408_v62 = vstv %s6427_s17  ;;  %vm11619_vm1 = vcmask 779808   ;;  %v1978_v60 = vrot.slane %v9929_v20, 6  ;;  %s6431_s17 = sld [smem:[#allocation9 + $0x4b]] }
 0x354   :  { %v9933_v15 = vpop.permute.xlu1 %1924  ;;  %3395 = vrot.lane.b32.xlu0 %v3390_v47, %s7386_s0  ;;  %v3387_v12 = vsel %vm304_vm4, %v3385_v6, %v11611_v17  ;;  %v3411_v17 = vmul.f32 %v3408_v62, %v7905_v0 }
 0x356   :  { %3339 = vrot.lane.b32.xlu1 %v3334_v45, %s7387_s29  ;;  %v9940_v22 = vpop.permute.xlu0 %1964  ;;  %v11820_v45 = vld [vmem:[#allocation53_spill] sm:$0xff]  ;;  %v3420_v28 = vrot.slane %v3411_v17, 2 }
 0x357   :  { %v2477_v6 = vmul.f32 %v11820_v45, %v11744_v14  ;;  %v2475_v10 = vmul.f32 %v11820_v45, %v11749_v57 }
 0x358   :  { %v1937_v46 = vpop.permute.xlu1 %1936  ;;  %3391 = vrot.lane.b32.xlu0 %v3387_v12, %s7386_s0 }
 0x35a   :  { %3335 = vrot.lane.b32.xlu1 %v3331_v23, %s7387_s29  ;;  %v9948_v25 = vpop.permute.xlu0 %2759 }
 0x35c   :  { %v9952_v19 = vpop.permute.xlu1 %2799  ;;  %2514 = vrot.lane.b32.xlu0 %v2503_v54, %s7387_s29  ;;  %v9975_v54 = vstv %s6429_s3 }
 0x35d   :  { %v3453_v45 = vmul.f32 %v9975_v54, %v11741_v52 }
 0x35e   :  { %3305 = vrot.lane.b32.xlu1 %v3298_v13, %s7386_s0  ;;  %v9958_v40 = vpop.permute.xlu0 %2122  ;;  %v3412_v13 = vmul.f32 %v3408_v62, %v7921_v29 }
 0x360   :  { %v9960_v47 = vpop.permute.xlu1 %2771  ;;  %3397 = vrot.lane.b32.xlu0 %v3389_v34, %s7386_s0  ;;  %v1907_v34 = vrot.slane %v9877_v44, 6  ;;  %v3421_v32 = vrot.slane %v3412_v13, 2 }
 0x362   :  { %2488 = vrot.lane.b32.xlu1 %v2477_v6, %s7386_s0  ;;  %v9966_v12 = vpop.permute.xlu0 %3015  ;;  %v1909_v13 = vsel %vm11620_vm15, %v1907_v34, %v9877_v44  ;;  %v3409_v44 = vmul.f32 %v3408_v62, %v7910_v24  ;;  %vm10006_vm15 = vmor %vm1983_vm9, %vm1982_vm10  ;;  %vm2805_vm9 = vcmask 1042368   ;;  %vm2806_vm10 = vcmask 158722  }
 0x364   :  { %v1854_v23 = vpop.permute.xlu1 %1853  ;;  %2510 = vrot.lane.b32.xlu0 %v2501_v53, %s7387_s29 }
 0x365   :  { %1857 = vst.msk [vmem:[#allocation3 + $0x2] sm:$0x3] %vm11615_vm2, %v1854_v23  ;;  %v11821_v23 = vmov 0  ;;  %vm1927_vm2 = vcmask 419008  }
 0x366   :  { %3337 = vrot.lane.b32.xlu1 %v3330_v55, %s7387_s29  ;;  %v9977_v6 = vpop.permute.xlu0 %3069  ;;  %v11822_v23 = vsel %vm9980_vm11, 4294967295, %v11821_v23  ;;  %v9989_v55 = vmul.f32 %v3408_v62, %v7918_v59  ;;  %v1980_v62 = vsel %vm1979_vm13, %v1978_v60, %v9929_v20  ;;  %v3417_v20 = vrot.slane %v3409_v44, 2  ;;  %v11829_v44 = vld [vmem:[#allocation57_spill] sm:$0xff] }
 0x367   :  { %11823 = vst [vmem:[#allocation47_spill] sm:$0xff] %v11822_v23  ;;  %vm2774_vm13 = vcmask 976608   ;;  %v11830_v34 = vrot.slane %v11829_v44, 1  ;;  %v10076_v44 = vstv %s6430_s20  ;;  %s10285_s20 = sld [smem:[#allocation9 + $0x4f]] }
 0x368   :  { %v1866_v53 = vpop.permute.xlu1 %1865  ;;  %3429 = vrot.lane.b32.xlu0 %v3421_v32, %s7387_s29  ;;  %v3418_v17 = vrot.slane %v9989_v55, 2 }
 0x369   :  { %1869 = vst.msk [vmem:[#allocation3 + $0x2] sm:$0x3] %vm11619_vm1, %v1866_v53  ;;  %vm1967_vm1 = vcmask 878208  }
 0x36a   :  { %1897 = vst.msk [vmem:[#allocation3 + $0x2] sm:$0x3] %vm11621_vm14, %v9885_v39  ;;  %2484 = vrot.lane.b32.xlu1 %v2475_v10, %s7386_s0  ;;  %v10001_v53 = vpop.permute.xlu0 %3065  ;;  %vm2736_vm14 = vcmask 287808   ;;  %v3422_v39 = vsel %vm304_vm4, %v3420_v28, %v3421_v32  ;;  %v3451_v28 = vmul.f32 %v9975_v54, %v11743_v3 }
 0x36b   :  { %1914 = vst.msk [vmem:[#allocation3 + $0x2] sm:$0xf] %vm9980_vm11, %v1909_v13 }
 0x36c   :  { %1928 = vst.msk [vmem:[#allocation3 + $0x4] sm:$0x3] %vm1927_vm2, %v9933_v15  ;;  %v10012_v10 = vpop.permute.xlu1 %3009  ;;  %3463 = vrot.lane.b32.xlu0 %v3453_v45, %s7386_s0  ;;  %v2801_v15 = vrot.slane %v9952_v19, 6  ;;  %vm2762_vm2 = vcmask 747008  }
 0x36d   :  { %1940 = vst.msk [vmem:[#allocation3 + $0x4] sm:$0x3] %vm1939_vm12, %v1937_v46  ;;  %vm2802_vm12 = vcmask 982016  }
 0x36e   :  { %1968 = vst.msk [vmem:[#allocation3 + $0x4] sm:$0x3] %vm1967_vm1, %v9940_v22  ;;  %3427 = vrot.lane.b32.xlu1 %v3422_v39, %s7387_s29  ;;  %v10024_v46 = vpop.permute.xlu0 %2214  ;;  %vm2807_vm1 = vmor %vm2806_vm10, %vm2805_vm9  ;;  %v3419_v22 = vsel %vm304_vm4, %v3417_v20, %v3418_v17  ;;  %v2803_v32 = vsel %vm2802_vm12, %v2801_v15, %v9952_v19  ;;  %vm2833_vm10 = vcmask 615808  }
 0x36f   :  { %1985 = vst.msk [vmem:[#allocation3 + $0x4] sm:$0xf] %vm10006_vm15, %v1980_v62 }
 0x370   :  { %2737 = vst.msk [vmem:[#allocation3 + $0x6] sm:$0x3] %vm2736_vm14, %v9896_v56  ;;  %v10030_v60 = vpop.permute.xlu1 %2985  ;;  %3459 = vrot.lane.b32.xlu0 %v3451_v28, %s7386_s0 }
 0x371   :  { %2749 = vst.msk [vmem:[#allocation3 + $0x6] sm:$0x3] %vm2748_vm8, %v9894_v8  ;;  %v11826_v8 = vld [vmem:[#allocation58_spill] sm:$0xff] }
 0x372   :  { %2763 = vst.msk [vmem:[#allocation3 + $0x6] sm:$0x3] %vm2762_vm2, %v9948_v25  ;;  %3423 = vrot.lane.b32.xlu1 %v3419_v22, %s7387_s29  ;;  %v10040_v55 = vpop.permute.xlu0 %3071  ;;  %v11827_v13 = vrot.slane %v11826_v8, 1  ;;  %v11828_v25 = vrot.slane %v9917_v1, 2  ;;  %v3526_v1 = vstv %s6432_s18  ;;  %s10169_s18 = sld [smem:[#allocation9 + $0x4d]] }
 0x373   :  { %2775 = vst.msk [vmem:[#allocation3 + $0x6] sm:$0x3] %vm2774_vm13, %v9960_v47  ;;  %v3454_v47 = vmul.f32 %v9975_v54, %v11744_v14  ;;  %v10066_v22 = vmul.f32 %v3526_v1, %v11744_v14  ;;  %v3529_v23 = vmul.f32 %v3526_v1, %v11741_v52 }
 0x374   :  { %2808 = vst.msk [vmem:[#allocation3 + $0x6] sm:$0xf] %vm2807_vm1, %v2803_v32  ;;  %v10042_v56 = vpop.permute.xlu1 %2182  ;;  %2602 = vrot.lane.b32.xlu0 %v11827_v13, %s7387_s29  ;;  %v11831_v32 = vld [vmem:[#allocation25_spill] sm:$0xff]  ;;  %v10070_v13 = vstv %s6410_s19  ;;  %s10626_s19 = sld [smem:[#allocation9 + $0x4e]] }
 0x375   :  { %v1991_v8 = vmul.f32 %v11831_v32, %v7813_v11  ;;  %v2968_v27 = vmul.f32 %v10070_v13, %v7813_v11 }
 0x376   :  { %3393 = vrot.lane.b32.xlu1 %v11828_v25, %s7386_s0  ;;  %v10050_v19 = vpop.permute.xlu0 %2210  ;;  %v11832_v25 = vld [vmem:[#allocation59_spill] sm:$0xff] }
 0x377   :  { %v2021_v31 = vadd.f32 %v9749_v61, %v1991_v8  ;;  %v11835_v61 = vld [vmem:[#allocation61_spill] sm:$0xff] }
 0x378   :  { %v10054_v45 = vpop.permute.xlu1 %3011  ;;  %3465 = vrot.lane.b32.xlu0 %v3454_v47, %s7386_s0  ;;  %v11833_v47 = vrot.slane %v11832_v25, 1  ;;  %v3480_v25 = vmul.f32 %v10076_v44, %v11744_v14  ;;  %v11836_v38 = vrot.slane %v11835_v61, 1 }
 0x379   :  { %v2047_v16 = vadd.f32 %v9765_v2, %v2021_v31  ;;  %v3527_v31 = vmul.f32 %v3526_v1, %v11743_v3  ;;  %v2967_v2 = vmul.f32 %v10070_v13, %v7792_v41 }
 0x37a   :  { %2570 = vrot.lane.b32.xlu1 %v11830_v34, %s7386_s0  ;;  %v10060_v39 = vpop.permute.xlu0 %3103 }
 0x37b   :  { %v3917_v62 = vld [vmem:[#allocation3] sm:$0xff]  ;;  %v2997_v4 = vadd.f32 %v9860_v5, %v2967_v2 }
 0x37c   :  { %v10062_v15 = vpop.permute.xlu1 %2178  ;;  %v3923_v28 = vcombine.high %v3917_v62, %v3917_v62  ;;  %v3930_v20 = vrot.slane %v3917_v62, %v9256_v18  ;;  %2598 = vrot.lane.b32.xlu0 %v11833_v47, %s7387_s29 }
 0x37d   :  { %v3023_v5 = vadd.f32 %v9887_v51, %v2997_v4  ;;  %v6941_v4 = vld [vmem:[%s11501_s5 + $0x58] ss:$40 sps:$4 sm:$0xff]  }
 0x37e   :  { %3425 = vrot.lane.b32.xlu1 %v3418_v17, %s7387_s29  ;;  %v3938_v34 = vcombine.high %v3930_v20, %v3930_v20  ;;  %v10080_v62 = vrot.slane %v3923_v28, %v9256_v18  ;;  %v10085_v37 = vpop.permute.xlu0 %3157  ;;  %v6934_v28 = vld [vmem:[%s11501_s5 + $0x8] ss:$40 sps:$4 sm:$0xff]   ;;  %v10100_v18 = vmul.f32 %v3526_v1, %v11749_v57  ;;  %v3975_v35 = vpack.c.bf16 %v3930_v20, %v3930_v20 }
 0x37f   :  { %v11837_v1 = vrot.slane %v10066_v22, 1 }
 0x380   :  { %11834 = vst [vmem:[#allocation49_spill] sm:$0xff] %v10080_v62  ;;  %v10091_v17 = vpop.permute.xlu1 %3101  ;;  %v3976_v47 = vpack.c.bf16 %v3938_v34, %v3938_v34  ;;  %v3939_v8 = vcombine.high %v10080_v62, %v10080_v62  ;;  %3491 = vrot.lane.b32.xlu0 %v3480_v25, %s7387_s29  ;;  %v2998_v34 = vadd.f32 %v9821_v48, %v2968_v27  ;;  %v3538_v62 = vrot.slane %v3529_v23, 1  ;;  %v6943_v27 = vld [vmem:[%s11501_s5 + $0x5c] ss:$40 sps:$4 sm:$0xff]  }
 0x381   :  { %v2965_v25 = vmul.f32 %v10070_v13, %v11785_v50  ;;  %v10125_v48 = vmul.f32 %v3026_v43, %v11784_v42 }
 0x382   :  { %2566 = vrot.lane.b32.xlu1 %v11836_v38, %s7386_s0  ;;  %5903 = vmatprep.mubr.bf16.mxu0 %v3976_v47  ;;  %v3978_v63 = vpack.c.bf16 %v3939_v8, %v3939_v8  ;;  %v10118_v20 = vpop.permute.xlu0 %3153  ;;  %v3024_v38 = vadd.f32 %v9966_v12, %v2998_v34  ;;  %v3540_v61 = vsel %vm191_vm3, %v3538_v62, %v11837_v1  ;;  %v6946_v8 = vld [vmem:[%s11501_s5 + $0x55c] ss:$40 sps:$4 sm:$0xff]   ;;  %v11838_v12 = vld [vmem:[#allocation69_spill] sm:$0xff]  ;;  %v3535_v1 = vrot.slane %v3527_v31, 1 }
 0x383   :  { %6108 = vmatprep.mubr.bf16.mxu1 %v3976_v47  ;;  %5904 = vmatmul.mubr.bf16.vlgmr.msra.gmra.mrb[0].mxu0 %v3975_v35  ;;  %v11839_v34 = vrot.slane %v11838_v12, 1  ;;  %v3027_v62 = vmul.f32 %v3026_v43, %v11785_v50  ;;  %v1989_v47 = vmul.f32 %v11831_v32, %v11784_v42  ;;  %v3114_v43 = vstv %s10089_s26 }
 0x384   :  { %5913 = vmatpush1.bf16.xpose.msra.mxu0 %v6934_v28  ;;  %6109 = vmatmul.mubr.bf16.vlgmr.msra.gmra.mrb[0].mxu1 %v3975_v35  ;;  %v10127_v23 = vpop.permute.xlu1 %3097  ;;  %v3479_v35 = vmul.f32 %v10076_v44, %v11741_v52  ;;  %v3039_v28 = vrot.slane %v3030_v36, 1  ;;  %v3036_v36 = vrot.slane %v10125_v48, 1  ;;  %v3477_v31 = vmul.f32 %v10076_v44, %v11743_v3 }
 0x385   :  { %v2071_v59 = vadd.f32 %v11839_v34, %v2047_v16  ;;  %6118 = vmatpush1.bf16.xpose.msra.mxu1 %v6937_v21  ;;  %3545 = vrot.lane.b32.xlu0 %v3540_v61, %s7386_s0  ;;  %v2995_v16 = vadd.f32 %v9802_v33, %v2965_v25  ;;  %v3038_v21 = vrot.slane %v3029_v58, 1  ;;  %v2019_v58 = vadd.f32 %v9840_v7, %v1989_v47  ;;  %v6944_v25 = vld [vmem:[%s11501_s5 + $0x558] ss:$40 sps:$4 sm:$0xff]  }
 0x386   :  { %5944 = vmatprep.mubr.bf16.mxu0 %v3978_v63  ;;  %6149 = vmatprep.mubr.bf16.mxu1 %v3978_v63  ;;  %v10148_v2 = vpop.permute.xlu0 %2276  ;;  %v3048_v61 = vadd.f32 %v3039_v28, %v3024_v38  ;;  %v11840_v63 = vrot.slane %v10100_v18, 1  ;;  %v3035_v38 = vrot.slane %v3027_v62, 1  ;;  %v10189_v62 = vmul.f32 %v3114_v43, %v11784_v42 }
 0x387   :  { %3489 = vrot.lane.b32.xlu1 %v3479_v35, %s7387_s29  ;;  %5914 = vmatprep.subr.bf16.mxu0 %v6943_v27  ;;  %v2103_v33 = vadd.f32 %v9792_v30, %v2071_v59  ;;  %v3021_v51 = vadd.f32 %v10012_v10, %v2995_v16  ;;  %v3040_v27 = vsel %vm191_vm3, %v3038_v21, %v3039_v28  ;;  %v6949_v30 = vld [vmem:[%s11501_s5 + $0xac] ss:$40 sps:$4 sm:$0xff]  }
 0x388   :  { %v10152_v12 = vpop.permute.xlu1 %3067  ;;  %v3537_v32 = vsel %vm191_vm3, %v3535_v1, %v11840_v63  ;;  %6119 = vmatprep.subr.bf16.mxu1 %v6946_v8  ;;  %v3080_v7 = vadd.f32 %v10040_v55, %v3048_v61  ;;  %v3118_v59 = vmul.f32 %v3114_v43, %v7813_v11  ;;  %v6952_v10 = vld [vmem:[%s11501_s5 + $0x5ac] ss:$40 sps:$4 sm:$0xff]   ;;  %v2045_v47 = vadd.f32 %v9848_v9, %v2019_v58 }
 0x389   :  { %3541 = vrot.lane.b32.xlu0 %v3537_v32, %s7386_s0  ;;  %v2135_v8 = vadd.f32 %v9811_v26, %v2103_v33  ;;  %v3047_v34 = vadd.f32 %v3040_v27, %v3023_v5  ;;  %v3037_v11 = vsel %vm191_vm3, %v3035_v38, %v3036_v36  ;;  %v3117_v28 = vmul.f32 %v3114_v43, %v7792_v41  ;;  %v11841_v5 = vld [vmem:[#allocation66_spill] sm:$0xff]  ;;  %v11845_v32 = vld [vmem:[#allocation71_spill] sm:$0xff] }
 0x38a   :  { %v3160_v35 = vpop.permute.xlu0 %3159  ;;  %v3112_v55 = vadd.f32 %v10060_v39, %v3080_v7  ;;  %v3045_v9 = vadd.f32 %v3037_v11, %v3021_v51  ;;  %v11842_v16 = vrot.slane %v11841_v5, 2  ;;  %v3452_v21 = vmul.f32 %v9975_v54, %v11749_v57  ;;  %v11843_v61 = vld [vmem:[#allocation70_spill] sm:$0xff]  ;;  %v11848_v11 = vld [vmem:[#allocation64_spill] sm:$0xff] }
 0x38b   :  { %3485 = vrot.lane.b32.xlu1 %v3477_v31, %s7387_s29  ;;  %v3079_v26 = vadd.f32 %v9977_v6, %v3047_v34  ;;  %v3127_v39 = vrot.slane %v3118_v59, 2  ;;  %v3115_v41 = vmul.f32 %v3114_v43, %v11785_v50  ;;  %v11844_v6 = vrot.slane %v11843_v61, 1  ;;  %v6947_v31 = vld [vmem:[%s11501_s5 + $0xa8] ss:$40 sps:$4 sm:$0xff]  }
 0x38c   :  { %5915 = vmatpush1.bf16.xpose.msra.mxu0 %v6941_v4  ;;  %v10191_v1 = vpop.permute.xlu1 %2250  ;;  %v11846_v4 = vrot.slane %v11845_v32, 2  ;;  %v3126_v50 = vrot.slane %v3117_v28, 2  ;;  %v3124_v38 = vrot.slane %v10189_v62, 2  ;;  %v11847_v7 = vrot.slane %v10066_v22, 1  ;;  %v6950_v59 = vld [vmem:[%s11501_s5 + $0x5a8] ss:$40 sps:$4 sm:$0xff]  }
 0x38d   :  { %6120 = vmatpush1.bf16.xpose.msra.mxu1 %v6944_v25  ;;  %2690 = vrot.lane.b32.xlu0 %v11842_v16, %s7387_s29  ;;  %v2069_v63 = vadd.f32 %v11844_v6, %v2045_v47  ;;  %v3111_v33 = vadd.f32 %v10091_v17, %v3079_v26  ;;  %v3136_v43 = vadd.f32 %v3127_v39, %v3112_v55  ;;  %v11849_v55 = vrot.slane %v11848_v11, 2 }
 0x38e   :  { %5916 = vmatprep.subr.bf16.mxu0 %v6949_v30  ;;  %6121 = vmatprep.subr.bf16.mxu1 %v6952_v10  ;;  %v2159_v58 = vadd.f32 %v11846_v4, %v2135_v8  ;;  %v10210_v54 = vpop.permute.xlu0 %2272  ;;  %v3077_v17 = vadd.f32 %v10001_v53, %v3045_v9  ;;  %v3128_v30 = vsel %vm304_vm4, %v3126_v50, %v3127_v39  ;;  %v3123_v10 = vrot.slane %v3115_v41, 2  ;;  %v6958_v53 = vld [vmem:[%s11501_s5 + $0x5fc] ss:$40 sps:$4 sm:$0xff]   ;;  %v11850_v9 = vld [vmem:[#allocation41_spill] sm:$0xff] }
 0x38f   :  { %3461 = vrot.lane.b32.xlu1 %v3452_v21, %s7386_s0  ;;  %v2101_v25 = vadd.f32 %v9874_v49, %v2069_v63  ;;  %v3168_v47 = vadd.f32 %v3160_v35, %v3136_v43  ;;  %v3558_v8 = vstv %s10169_s18  ;;  %v6955_v49 = vld [vmem:[%s11501_s5 + $0xfc] ss:$40 sps:$4 sm:$0xff]   ;;  %v3135_v22 = vadd.f32 %v3128_v30, %v3111_v33  ;;  %v11853_v63 = vld [vmem:[#allocation38_spill] sm:$0xff] }
 0x390   :  { %v10212_v51 = vpop.permute.xlu1 %3099  ;;  %v2191_v27 = vadd.f32 %v10042_v56, %v2159_v58  ;;  %v3109_v34 = vadd.f32 %v10127_v23, %v3077_v17  ;;  %v3562_v28 = vmul.f32 %v3558_v8, %v11744_v14  ;;  %v2966_v26 = vmul.f32 %v10070_v13, %v11784_v42  ;;  %v11851_v39 = vld [vmem:[#allocation63_spill] sm:$0xff] }
 0x391   :  { %3547 = vrot.lane.b32.xlu0 %v11847_v7, %s7386_s0  ;;  %v2133_v56 = vadd.f32 %v9958_v40, %v2101_v25  ;;  %v2229_v5 = vmul.f32 %v11850_v9, %v7921_v29  ;;  %v3125_v21 = vsel %vm304_vm4, %v3123_v10, %v3124_v38  ;;  %v11852_v41 = vrot.slane %v11851_v39, 2 }
 0x392   :  { %v3192_v35 = vpop.permute.xlu0 %3191  ;;  %v2223_v23 = vadd.f32 %v10024_v46, %v2191_v27  ;;  %v3478_v42 = vmul.f32 %v10076_v44, %v11749_v57  ;;  %v2996_v13 = vadd.f32 %v10030_v60, %v2966_v26  ;;  %v10260_v61 = vstv %s10200_s28 }
 0x393   :  { %2658 = vrot.lane.b32.xlu1 %v11849_v55, %s7386_s0  ;;  %v10245_v16 = vadd.f32 %v3192_v35, %v3168_v47  ;;  %v10263_v46 = vmul.f32 %v3558_v8, %v11749_v57  ;;  %v3646_v6 = vstv %s10202_s30  ;;  %v11854_v32 = vrot.slane %v11853_v63, 2  ;;  %v6961_v47 = vld [vmem:[%s11501_s5 + $0x14c] ss:$40 sps:$4 sm:$0xff]   ;;  %s6425_s30 = sld [smem:[#allocation9 + $0x45]] }
 0x394   :  { %5917 = vmatpush1.bf16.xpose.msra.mxu0 %v6947_v31  ;;  %v10247_v40 = vpop.permute.xlu1 %2246  ;;  %v3133_v58 = vadd.f32 %v3125_v21, %v3109_v34  ;;  %v3167_v50 = vadd.f32 %v10085_v37, %v3135_v22  ;;  %v3571_v44 = vrot.slane %v3562_v28, 1  ;;  %v3022_v60 = vadd.f32 %v10054_v45, %v2996_v13  ;;  %v6953_v31 = vld [vmem:[%s11501_s5 + $0xf8] ss:$40 sps:$4 sm:$0xff]   ;;  %v11857_v13 = vld [vmem:[#allocation21_spill] sm:$0xff] }
 0x395   :  { %6122 = vmatpush1.bf16.xpose.msra.mxu1 %v6950_v59  ;;  %2686 = vrot.lane.b32.xlu0 %v11852_v41, %s7387_s29  ;;  %v2157_v4 = vadd.f32 %v11854_v32, %v2133_v56  ;;  %v3561_v25 = vmul.f32 %v3558_v8, %v11741_v52  ;;  %v10276_v27 = vmul.f32 %v3646_v6, %v11744_v14  ;;  %v6956_v45 = vld [vmem:[%s11501_s5 + $0x5f8] ss:$40 sps:$4 sm:$0xff]   ;;  %v3568_v10 = vrot.slane %v10263_v46, 1 }
 0x396   :  { %5918 = vmatprep.subr.bf16.mxu0 %v6955_v49  ;;  %6123 = vmatprep.subr.bf16.mxu1 %v6958_v53  ;;  %v3226_v33 = vpop.permute.xlu0 %3225  ;;  %v2233_v7 = vadd.f32 %v2229_v5, %v2223_v23  ;;  %v3205_v59 = vmul.f32 %v10260_v61, %v7905_v0  ;;  %v3203_v30 = vmul.f32 %v10260_v61, %v7910_v24  ;;  %v6964_v49 = vld [vmem:[%s11501_s5 + $0x64c] ss:$40 sps:$4 sm:$0xff]   ;;  %v11860_v62 = vrot.slane %v10100_v18, 1 }
 0x397   :  { %3487 = vrot.lane.b32.xlu1 %v3478_v42, %s7387_s29  ;;  %v2189_v17 = vadd.f32 %v10062_v15, %v2157_v4  ;;  %v3649_v15 = vmul.f32 %v3646_v6, %v11741_v52  ;;  %v11855_v22 = vld [vmem:[#allocation62_spill] sm:$0xff]  ;;  %v3165_v55 = vadd.f32 %v10118_v20, %v3133_v58  ;;  %v3559_v35 = vmul.f32 %v3558_v8, %v11743_v3 }
 0x398   :  { %v3190_v43 = vpop.permute.xlu1 %3189  ;;  %v2259_v53 = vadd.f32 %v10191_v1, %v2233_v7  ;;  %v11856_v34 = vrot.slane %v11855_v22, 2  ;;  %v3046_v28 = vadd.f32 %v3036_v36, %v3022_v60  ;;  %v3570_v5 = vrot.slane %v3561_v25, 1  ;;  %v6970_v7 = vld [vmem:[%s11501_s5 + $0x69c] ss:$40 sps:$4 sm:$0xff]  }
 0x399   :  { %v3199_v37 = vadd.f32 %v3190_v43, %v3167_v50  ;;  %3579 = vrot.lane.b32.xlu0 %v3571_v44, %s7387_s29  ;;  %v3659_v23 = vrot.slane %v10276_v27, 2  ;;  %v10307_v1 = vmul.f32 %v3646_v6, %v11749_v57  ;;  %v2221_v21 = vadd.f32 %v10050_v19, %v2189_v17  ;;  %v6962_v50 = vld [vmem:[%s11501_s5 + $0x648] ss:$40 sps:$4 sm:$0xff]   ;;  %v6976_v27 = vld [vmem:[%s11501_s5 + $0x6ec] ss:$40 sps:$4 sm:$0xff]  }
 0x39a   :  { %v3222_v11 = vpop.permute.xlu0 %3221  ;;  %v3572_v8 = vsel %vm191_vm3, %v3570_v5, %v3571_v44  ;;  %v3658_v48 = vrot.slane %v3649_v15, 2  ;;  %v3647_v36 = vmul.f32 %v3646_v6, %v11743_v3  ;;  %v3078_v41 = vadd.f32 %v10152_v12, %v3046_v28 }
 0x39b   :  { %v3209_v56 = vadd.f32 %v3205_v59, %v3199_v37  ;;  %2654 = vrot.lane.b32.xlu1 %v11856_v34, %s7386_s0  ;;  %v2285_v42 = vadd.f32 %v10148_v2, %v2259_v53  ;;  %v2227_v19 = vmul.f32 %v11850_v9, %v11857_v13  ;;  %v3567_v58 = vrot.slane %v3559_v35, 1  ;;  %v6959_v2 = vld [vmem:[%s11501_s5 + $0x148] ss:$40 sps:$4 sm:$0xff]  }
 0x39c   :  { %5919 = vmatpush1.bf16.xpose.msra.mxu0 %v6953_v31  ;;  %v3186_v26 = vpop.permute.xlu1 %3185  ;;  %v3660_v4 = vsel %vm304_vm4, %v3658_v48, %v3659_v23  ;;  %v3206_v6 = vmul.f32 %v10260_v61, %v7921_v29  ;;  %v3656_v12 = vrot.slane %v10307_v1, 2  ;;  %v3110_v9 = vadd.f32 %v10212_v51, %v3078_v41  ;;  %v6967_v51 = vld [vmem:[%s11501_s5 + $0x19c] ss:$40 sps:$4 sm:$0xff]   ;;  %v6983_v1 = vld [vmem:[%s11501_s5 + $0x288] ss:$40 sps:$4 sm:$0xff]  }
 0x39d   :  { %6124 = vmatpush1.bf16.xpose.msra.mxu1 %v6956_v45  ;;  %v3197_v39 = vadd.f32 %v3186_v26, %v3165_v55  ;;  %3575 = vrot.lane.b32.xlu0 %v3568_v10, %s7387_s29  ;;  %v10311_v20 = vadd.f32 %v3226_v33, %v3209_v56  ;;  %v2231_v33 = vadd.f32 %v2227_v19, %v2221_v21  ;;  %v3614_v44 = vstv %s10285_s20  ;;  %v11858_v45 = vld [vmem:[#allocation51_spill] sm:$0xff]  ;;  %v11861_v41 = vld [vmem:[#allocation60_spill] sm:$0xff]  ;;  %s7412_s20 = smov 116  }
 0x39e   :  { %5920 = vmatprep.subr.bf16.mxu0 %v6961_v47  ;;  %6125 = vmatprep.subr.bf16.mxu1 %v6964_v49  ;;  %v2365_v63 = vpop.permute.xlu0 %2364  ;;  %v3569_v43 = vsel %vm191_vm3, %v3567_v58, %v3568_v10  ;;  %v3210_v31 = vadd.f32 %v3206_v6, %v10245_v16  ;;  %v3655_v25 = vrot.slane %v3647_v36, 2  ;;  %v10342_v17 = vmul.f32 %v3614_v44, %v11744_v14  ;;  %v6965_v26 = vld [vmem:[%s11501_s5 + $0x198] ss:$40 sps:$4 sm:$0xff]   ;;  %v6973_v36 = vld [vmem:[%s11501_s5 + $0x1ec] ss:$40 sps:$4 sm:$0xff]   ;;  %v11863_v6 = vld [vmem:[#allocation44_spill] sm:$0xff] }
 0x39f   :  { %v3207_v46 = vadd.f32 %v3203_v30, %v3197_v39  ;;  %3577 = vrot.lane.b32.xlu1 %v3572_v8, %s7387_s29  ;;  %v2257_v59 = vadd.f32 %v10247_v40, %v2231_v33  ;;  %v11859_v30 = vrot.slane %v11858_v45, 1  ;;  %v3617_v49 = vmul.f32 %v3614_v44, %v11741_v52 }
 0x3a0   :  { %v3156_v32 = vpop.permute.xlu1 %3155  ;;  %v3657_v47 = vsel %vm304_vm4, %v3655_v25, %v3656_v12  ;;  %v3134_v53 = vadd.f32 %v3124_v38, %v3110_v9  ;;  %v3627_v56 = vrot.slane %v10342_v17, 2  ;;  %v10363_v22 = vmul.f32 %v3614_v44, %v11749_v57  ;;  %v6971_v25 = vld [vmem:[%s11501_s5 + $0x1e8] ss:$40 sps:$4 sm:$0xff]  }
 0x3a1   :  { %3665 = vrot.lane.b32.xlu0 %v3660_v4, %s7387_s29  ;;  %v10337_v60 = vadd.f32 %v3222_v11, %v3207_v46  ;;  %v2309_v16 = vadd.f32 %v11859_v30, %v2285_v42  ;;  %v2283_v34 = vadd.f32 %v10210_v54, %v2257_v59  ;;  %v3626_v28 = vrot.slane %v3617_v49, 2  ;;  %v6968_v54 = vld [vmem:[%s11501_s5 + $0x698] ss:$40 sps:$4 sm:$0xff]   ;;  %v6974_v59 = vld [vmem:[%s11501_s5 + $0x6e8] ss:$40 sps:$4 sm:$0xff]  }
 0x3a2   :  { %v3228_v37 = vpop.permute.xlu0 %3227  ;;  %v3166_v11 = vadd.f32 %v3156_v32, %v3134_v53  ;;  %v3615_v5 = vmul.f32 %v3614_v44, %v11743_v3  ;;  %v3264_v18 = vstv %s10335_s12  ;;  %v3624_v8 = vrot.slane %v10363_v22, 2 }
 0x3a3   :  { %3573 = vrot.lane.b32.xlu1 %v3569_v43, %s7387_s29  ;;  %v3236_v10 = vadd.f32 %v3228_v37, %v3210_v31  ;;  %v3628_v39 = vsel %vm304_vm4, %v3626_v28, %v3627_v56  ;;  %v3268_v48 = vmul.f32 %v3264_v18, %v7921_v29  ;;  %v11862_v42 = vrot.slane %v11861_v41, 1  ;;  %v6979_v37 = vld [vmem:[%s11501_s5 + $0x23c] ss:$40 sps:$4 sm:$0xff]  }
 0x3a4   :  { %5921 = vmatpush1.bf16.xpose.msra.mxu0 %v6959_v2  ;;  %v2333_v15 = vpop.permute.xlu1 %2332  ;;  %v3623_v32 = vrot.slane %v3615_v5, 2  ;;  %v3267_v4 = vmul.f32 %v3264_v18, %v7905_v0  ;;  %v10398_v33 = vmul.f32 %v3264_v18, %v11857_v13  ;;  %v3265_v17 = vmul.f32 %v3264_v18, %v7910_v24  ;;  %v6988_v5 = vld [vmem:[%s11501_s5 + $0x78c] ss:$40 sps:$4 sm:$0xff]  }
 0x3a5   :  { %6126 = vmatpush1.bf16.xpose.msra.mxu1 %v6962_v50  ;;  %v2341_v40 = vadd.f32 %v2333_v15, %v2309_v16  ;;  %3661 = vrot.lane.b32.xlu0 %v3657_v47, %s7387_s29  ;;  %v2307_v19 = vadd.f32 %v11862_v42, %v2283_v34  ;;  %v3277_v9 = vrot.slane %v3268_v48, 1  ;;  %v6982_v16 = vld [vmem:[%s11501_s5 + $0x73c] ss:$40 sps:$4 sm:$0xff]   ;;  %v3204_v53 = vmul.f32 %v10260_v61, %v11857_v13  ;;  %v6980_v61 = vld [vmem:[%s11501_s5 + $0x738] ss:$40 sps:$4 sm:$0xff]  }
 0x3a6   :  { %5922 = vmatprep.subr.bf16.mxu0 %v6967_v51  ;;  %6127 = vmatprep.subr.bf16.mxu1 %v6970_v7  ;;  %v2361_v38 = vpop.permute.xlu0 %2360  ;;  %v3625_v2 = vsel %vm304_vm4, %v3623_v32, %v3624_v8  ;;  %v3276_v43 = vrot.slane %v3267_v4, 1  ;;  %v11864_v7 = vld [vmem:[#allocation46_spill] sm:$0xff]  ;;  %v3274_v30 = vrot.slane %v10398_v33, 1  ;;  %v3273_v15 = vrot.slane %v3265_v17, 1  ;;  %v7006_v33 = vld [vmem:[%s11501_s5 + $0x87c] ss:$40 sps:$4 sm:$0xff]  }
 0x3a7   :  { %v10366_v55 = vadd.f32 %v2365_v63, %v2341_v40  ;;  %3543 = vrot.lane.b32.xlu1 %v11860_v62, %s7386_s0  ;;  %v3352_v42 = vstv %s6425_s30 }
 0x3a8   :  { %v3188_v35 = vpop.permute.xlu1 %3187  ;;  %v3278_v45 = vsel %vm191_vm3, %v3276_v43, %v3277_v9  ;;  %v3275_v22 = vsel %vm191_vm3, %v3273_v15, %v3274_v30 }
 0x3a9   :  { %v3198_v21 = vadd.f32 %v3188_v35, %v3166_v11  ;;  %3667 = vrot.lane.b32.xlu0 %v3659_v23, %s7387_s29  ;;  %v6985_v35 = vld [vmem:[%s11501_s5 + $0x28c] ss:$40 sps:$4 sm:$0xff]  }
 0x3aa   :  { %v3254_v23 = vpop.permute.xlu0 %3253 }
 0x3ab   :  { %3633 = vrot.lane.b32.xlu1 %v3628_v39, %s7386_s0  ;;  %v3262_v46 = vadd.f32 %v3254_v23, %v3236_v10  ;;  %v3208_v11 = vadd.f32 %v3204_v53, %v3198_v21 }
 0x3ac   :  { %5923 = vmatpush1.bf16.xpose.msra.mxu0 %v6965_v26  ;;  %v2329_v63 = vpop.permute.xlu1 %2328 }
 0x3ad   :  { %6128 = vmatpush1.bf16.xpose.msra.mxu1 %v6968_v54  ;;  %v2339_v58 = vadd.f32 %v2329_v63, %v2307_v19  ;;  %2816 = vrot.lane.b32.xlu0 %v11863_v6, %s7407_s8  ;;  %v3286_v26 = vadd.f32 %v3277_v9, %v3262_v46  ;;  %v11865_v54 = vld [vmem:[#allocation40_spill] sm:$0xff]  ;;  %v3356_v46 = vmul.f32 %v3352_v42, %v7921_v29  ;;  %s7414_s8 = smov 88  }
 0x3ae   :  { %5924 = vmatprep.subr.bf16.mxu0 %v6973_v36  ;;  %6129 = vmatprep.subr.bf16.mxu1 %v6976_v27  ;;  %v3308_v44 = vpop.permute.xlu0 %3307  ;;  %v11866_v18 = vrot.slane %v11865_v54, 2  ;;  %v6991_v19 = vld [vmem:[%s11501_s5 + $0x2dc] ss:$40 sps:$4 sm:$0xff]   ;;  %v3355_v6 = vmul.f32 %v3352_v42, %v7905_v0  ;;  %v10467_v9 = vmul.f32 %v3352_v42, %v11857_v13  ;;  %v6992_v0 = vld [vmem:[%s11501_s5 + $0x7d8] ss:$40 sps:$4 sm:$0xff]  }
 0x3af   :  { %v10400_v50 = vadd.f32 %v2361_v38, %v2339_v58  ;;  %3629 = vrot.lane.b32.xlu1 %v3625_v2, %s7386_s0  ;;  %v6994_v63 = vld [vmem:[%s11501_s5 + $0x7dc] ss:$40 sps:$4 sm:$0xff]   ;;  %v3365_v2 = vrot.slane %v3356_v46, 2  ;;  %v7012_v54 = vld [vmem:[%s11501_s5 + $0x8cc] ss:$40 sps:$4 sm:$0xff]  }
 0x3b0   :  { %v3252_v31 = vpop.permute.xlu1 %3251  ;;  %v2397_v39 = vadd.f32 %v11866_v18, %v10366_v55  ;;  %v6986_v55 = vld [vmem:[%s11501_s5 + $0x788] ss:$40 sps:$4 sm:$0xff]   ;;  %v3364_v29 = vrot.slane %v3355_v6, 2  ;;  %v7036_v6 = vld [vmem:[%s11501_s5 + $0x514] ss:$40 sps:$4 sm:$0xff]  }
 0x3b1   :  { %v3261_v51 = vadd.f32 %v3252_v31, %v10311_v20  ;;  %2830 = vrot.lane.b32.xlu0 %v11864_v7, %s7408_s11  ;;  %v6989_v31 = vld [vmem:[%s11501_s5 + $0x2d8] ss:$40 sps:$4 sm:$0xff]   ;;  %v3362_v7 = vrot.slane %v10467_v9, 2  ;;  %v11877_v9 = vld [vmem:[#allocation52_spill] sm:$0xff]  ;;  %s7418_s11 = smov 72  }
 0x3b2   :  { %v3304_v10 = vpop.permute.xlu0 %3303  ;;  %v3366_v13 = vsel %vm304_vm4, %v3364_v29, %v3365_v2  ;;  %v11867_v29 = vld [vmem:[#allocation31_spill] sm:$0xff] }
 0x3b3   :  { %v3285_v20 = vadd.f32 %v3278_v45, %v3261_v51  ;;  %3635 = vrot.lane.b32.xlu1 %v3627_v56, %s7386_s0  ;;  %v6997_v51 = vld [vmem:[%s11501_s5 + $0x32c] ss:$40 sps:$4 sm:$0xff]  }
 0x3b4   :  { %5925 = vmatpush1.bf16.xpose.msra.mxu0 %v6971_v25  ;;  %v3248_v47 = vpop.permute.xlu1 %3247  ;;  %v3353_v25 = vmul.f32 %v3352_v42, %v7910_v24 }
 0x3b5   :  { %6130 = vmatpush1.bf16.xpose.msra.mxu1 %v6974_v59  ;;  %v3259_v49 = vadd.f32 %v3248_v47, %v10337_v60  ;;  %5926 = vmatprep.subr.bf16.mxu0 %v6979_v37  ;;  %v3317_v40 = vadd.f32 %v3308_v44, %v3285_v20  ;;  %v6977_v60 = vld [vmem:[%s11501_s5 + $0x238] ss:$40 sps:$4 sm:$0xff]   ;;  %v7000_v59 = vld [vmem:[%s11501_s5 + $0x82c] ss:$40 sps:$4 sm:$0xff]  }
 0x3b6   :  { %6131 = vmatprep.subr.bf16.mxu1 %v6982_v16  ;;  %v2453_v56 = vpop.permute.xlu0 %2452  ;;  %v3361_v24 = vrot.slane %v3353_v25, 2  ;;  %v11869_v25 = vld [vmem:[#allocation33_spill] sm:$0xff] }
 0x3b7   :  { %v3283_v34 = vadd.f32 %v3275_v22, %v3259_v49  ;;  %3631 = vrot.lane.b32.xlu1 %v3624_v8, %s7386_s0  ;;  %v6995_v22 = vld [vmem:[%s11501_s5 + $0x328] ss:$40 sps:$4 sm:$0xff]   ;;  %s7417_s0 = smov 44  }
 0x3b8   :  { %v3224_v62 = vpop.permute.xlu1 %3223  ;;  %v3363_v15 = vsel %vm304_vm4, %v3361_v24, %v3362_v7 }
 0x3b9   :  { %v3234_v38 = vadd.f32 %v3224_v62, %v3208_v11  ;;  %v3315_v28 = vadd.f32 %v3304_v10, %v3283_v34  ;;  %v7003_v11 = vld [vmem:[%s11501_s5 + $0x37c] ss:$40 sps:$4 sm:$0xff]  }
 0x3ba   :  { %v3310_v21 = vpop.permute.xlu0 %3309 }
 0x3bb   :  { %3663 = vrot.lane.b32.xlu1 %v3656_v12, %s7387_s29  ;;  %v3318_v8 = vadd.f32 %v3310_v21, %v3286_v26  ;;  %v7001_v26 = vld [vmem:[%s11501_s5 + $0x378] ss:$40 sps:$4 sm:$0xff]   ;;  %v7009_v21 = vld [vmem:[%s11501_s5 + $0x3cc] ss:$40 sps:$4 sm:$0xff]  }
 0x3bc   :  { %5927 = vmatpush1.bf16.xpose.msra.mxu0 %v6977_v60  ;;  %v2421_v48 = vpop.permute.xlu1 %2420 }
 0x3bd   :  { %6132 = vmatpush1.bf16.xpose.msra.mxu1 %v6980_v61  ;;  %v2429_v36 = vadd.f32 %v2421_v48, %v2397_v39  ;;  %5928 = vmatprep.subr.bf16.mxu0 %v6985_v35 }
 0x3be   :  { %6133 = vmatprep.subr.bf16.mxu1 %v6988_v5  ;;  %v10448_v23 = vpop.permute.xlu0 %2448  ;;  %v7004_v5 = vld [vmem:[%s11501_s5 + $0x878] ss:$40 sps:$4 sm:$0xff]  }
 0x3bf   :  { %v10446_v27 = vadd.f32 %v2453_v56, %v2429_v36  ;;  %v6998_v56 = vld [vmem:[%s11501_s5 + $0x828] ss:$40 sps:$4 sm:$0xff]  }
 0x3c0   :  { %v3250_v41 = vpop.permute.xlu1 %3249  ;;  %v7007_v36 = vld [vmem:[%s11501_s5 + $0x3c8] ss:$40 sps:$4 sm:$0xff]  }
 0x3c1   :  { %v3260_v12 = vadd.f32 %v3250_v41, %v3234_v38  ;;  %v7010_v41 = vld [vmem:[%s11501_s5 + $0x8c8] ss:$40 sps:$4 sm:$0xff]  }
 0x3c2   :  { %v3342_v32 = vpop.permute.xlu0 %3341 }
 0x3c3   :  { %v3350_v4 = vadd.f32 %v3342_v32, %v3318_v8  ;;  %v3284_v53 = vadd.f32 %v3274_v30, %v3260_v12  ;;  %v7018_v12 = vld [vmem:[%s11501_s5 + $0x91c] ss:$40 sps:$4 sm:$0xff]   ;;  %v7016_v32 = vld [vmem:[%s11501_s5 + $0x918] ss:$40 sps:$4 sm:$0xff]  }
 0x3c4   :  { %5929 = vmatpush1.bf16.xpose.msra.mxu0 %v6983_v1  ;;  %v10463_v58 = vpop.permute.xlu1 %2416  ;;  %v7015_v1 = vld [vmem:[%s11501_s5 + $0x41c] ss:$40 sps:$4 sm:$0xff]  }
 0x3c5   :  { %6134 = vmatpush1.bf16.xpose.msra.mxu1 %v6986_v55  ;;  %5930 = vmatprep.subr.bf16.mxu0 %v6991_v19  ;;  %v3374_v60 = vadd.f32 %v3365_v2, %v3350_v4  ;;  %v7021_v4 = vld [vmem:[%s11501_s5 + $0x46c] ss:$40 sps:$4 sm:$0xff]  }
 0x3c6   :  { %6135 = vmatprep.subr.bf16.mxu1 %v6994_v63  ;;  %v3396_v44 = vpop.permute.xlu0 %3395  ;;  %v7013_v63 = vld [vmem:[%s11501_s5 + $0x418] ss:$40 sps:$4 sm:$0xff]  }
 0x3c8   :  { %v3340_v43 = vpop.permute.xlu1 %3339 }
 0x3c9   :  { %v3349_v17 = vadd.f32 %v3340_v43, %v3317_v40  ;;  %v11868_v43 = vrot.slane %v11867_v29, 2 }
 0x3ca   :  { %v3392_v45 = vpop.permute.xlu0 %3391 }
 0x3cb   :  { %v3373_v37 = vadd.f32 %v3366_v13, %v3349_v17  ;;  %v2467_v17 = vmul.f32 %v11869_v25, %v11744_v14 }
 0x3cc   :  { %5931 = vmatpush1.bf16.xpose.msra.mxu0 %v6989_v31  ;;  %v3336_v16 = vpop.permute.xlu1 %3335  ;;  %v2395_v31 = vadd.f32 %v11868_v43, %v10400_v50  ;;  %v7024_v50 = vld [vmem:[%s11501_s5 + $0x4bc] ss:$40 sps:$4 sm:$0xff]  }
 0x3cd   :  { %6136 = vmatpush1.bf16.xpose.msra.mxu1 %v6992_v0  ;;  %v3347_v20 = vadd.f32 %v3336_v16, %v3315_v28  ;;  %5932 = vmatprep.subr.bf16.mxu0 %v6997_v51  ;;  %v10484_v10 = vadd.f32 %v3396_v44, %v3373_v37  ;;  %v2471_v13 = vadd.f32 %v2467_v17, %v10446_v27  ;;  %v7019_v37 = vld [vmem:[%s11501_s5 + $0x468] ss:$40 sps:$4 sm:$0xff]   ;;  %v7042_v27 = vld [vmem:[%s11501_s5 + $0x564] ss:$40 sps:$4 sm:$0xff]  }
 0x3ce   :  { %6137 = vmatprep.subr.bf16.mxu1 %v7000_v59  ;;  %v10489_v49 = vpop.permute.xlu0 %2514  ;;  %v2427_v51 = vadd.f32 %v10463_v58, %v2395_v31  ;;  %v11870_v16 = vld [vmem:[#allocation49_spill] sm:$0xff] }
 0x3cf   :  { %v3371_v47 = vadd.f32 %v3363_v15, %v3347_v20  ;;  %v3977_v58 = vpack.c.bf16 %v11870_v16, %v11870_v16  ;;  %v7054_v43 = vld [vmem:[%s11501_s5 + $0x604] ss:$40 sps:$4 sm:$0xff]  }
 0x3d0   :  { %v3306_v40 = vpop.permute.xlu1 %3305  ;;  %v2459_v15 = vadd.f32 %v10448_v23, %v2427_v51  ;;  %v3502_v51 = vstv %s6431_s17 }
 0x3d1   :  { %v10496_v34 = vadd.f32 %v3306_v40, %v3284_v53  ;;  %v10504_v62 = vadd.f32 %v3392_v45, %v3371_v47  ;;  %v7034_v45 = vld [vmem:[%s11501_s5 + $0x510] ss:$40 sps:$4 sm:$0xff]   ;;  %v2465_v40 = vmul.f32 %v11869_v25, %v11749_v57 }
 0x3d2   :  { %v3398_v30 = vpop.permute.xlu0 %3397 }
 0x3d3   :  { %v10509_v38 = vadd.f32 %v3398_v30, %v3374_v60  ;;  %v7027_v60 = vld [vmem:[%s11501_s5 + $0x14] ss:$40 sps:$4 sm:$0xff]   ;;  %v11871_v30 = vld [vmem:[#allocation45_spill] sm:$0xff] }
 0x3d4   :  { %5933 = vmatpush1.bf16.xpose.msra.mxu0 %v6995_v22  ;;  %v2489_v61 = vpop.permute.xlu1 %2488 }
 0x3d5   :  { %6138 = vmatpush1.bf16.xpose.msra.mxu1 %v6998_v56  ;;  %5934 = vmatprep.subr.bf16.mxu0 %v7003_v11  ;;  %v2497_v24 = vadd.f32 %v2489_v61, %v2471_v13  ;;  %v2469_v56 = vadd.f32 %v2465_v40, %v2459_v15  ;;  %v7022_v11 = vld [vmem:[%s11501_s5 + $0x4b8] ss:$40 sps:$4 sm:$0xff]   ;;  %v11872_v61 = vrot.slane %v11871_v30, 1  ;;  %v11875_v13 = vld [vmem:[#allocation68_spill] sm:$0xff]  ;;  %v3505_v15 = vmul.f32 %v3502_v51, %v11741_v52 }
 0x3d6   :  { %6139 = vmatprep.subr.bf16.mxu1 %v7006_v33  ;;  %v10511_v35 = vpop.permute.xlu0 %2510  ;;  %v3503_v40 = vmul.f32 %v3502_v51, %v11743_v3  ;;  %v10677_v30 = vmul.f32 %v3502_v51, %v11749_v57 }
 0x3d7   :  { %v2523_v53 = vadd.f32 %v10489_v49, %v2497_v24  ;;  %v7040_v49 = vld [vmem:[%s11501_s5 + $0x560] ss:$40 sps:$4 sm:$0xff]  }
 0x3d8   :  { %v10513_v28 = vpop.permute.xlu1 %3337 }
 0x3da   :  { %v10527_v18 = vpop.permute.xlu0 %3429 }
 0x3db   :  { %v3438_v24 = vadd.f32 %v10527_v18, %v10509_v38  ;;  %v7028_v38 = vld [vmem:[%s11501_s5 + $0x60] ss:$40 sps:$4 sm:$0xff]  }
 0x3dc   :  { %5935 = vmatpush1.bf16.xpose.msra.mxu0 %v7001_v26  ;;  %v2485_v39 = vpop.permute.xlu1 %2484  ;;  %v2547_v26 = vadd.f32 %v11872_v61, %v2523_v53  ;;  %v7060_v61 = vld [vmem:[%s11501_s5 + $0x654] ss:$40 sps:$4 sm:$0xff]  }
 0x3dd   :  { %6140 = vmatpush1.bf16.xpose.msra.mxu1 %v7004_v5  ;;  %5936 = vmatprep.subr.bf16.mxu0 %v7009_v21  ;;  %v2495_v33 = vadd.f32 %v2485_v39, %v2469_v56  ;;  %v7048_v5 = vld [vmem:[%s11501_s5 + $0x5b4] ss:$40 sps:$4 sm:$0xff]  }
 0x3de   :  { %6141 = vmatprep.subr.bf16.mxu1 %v7012_v54  ;;  %v10529_v8 = vpop.permute.xlu0 %3463 }
 0x3e0   :  { %v10531_v48 = vpop.permute.xlu1 %3427 }
 0x3e2   :  { %v10545_v55 = vpop.permute.xlu0 %3459 }
 0x3e4   :  { %5937 = vmatpush1.bf16.xpose.msra.mxu0 %v7007_v36  ;;  %v10547_v42 = vpop.permute.xlu1 %3423 }
 0x3e5   :  { %6142 = vmatpush1.bf16.xpose.msra.mxu1 %v7010_v41  ;;  %5938 = vmatprep.subr.bf16.mxu0 %v7015_v1  ;;  %v2521_v41 = vadd.f32 %v10511_v35, %v2495_v33  ;;  %v7046_v35 = vld [vmem:[%s11501_s5 + $0x5b0] ss:$40 sps:$4 sm:$0xff]  }
 0x3e6   :  { %6143 = vmatprep.subr.bf16.mxu1 %v7018_v12  ;;  %v2603_v19 = vpop.permute.xlu0 %2602  ;;  %v7025_v12 = vld [vmem:[%s11501_s5 + $0x10] ss:$40 sps:$4 sm:$0xff]  }
 0x3e8   :  { %v10549_v46 = vpop.permute.xlu1 %3393 }
 0x3ea   :  { %v10563_v2 = vpop.permute.xlu0 %3465 }
 0x3ec   :  { %5939 = vmatpush1.bf16.xpose.msra.mxu0 %v7013_v63  ;;  %v2571_v44 = vpop.permute.xlu1 %2570  ;;  %v10622_v63 = vstv %s6428_s10  ;;  %s7409_s10 = smov 104  }
 0x3ed   :  { %6144 = vmatpush1.bf16.xpose.msra.mxu1 %v7016_v32  ;;  %5940 = vmatprep.subr.bf16.mxu0 %v7021_v4  ;;  %v2579_v54 = vadd.f32 %v2571_v44, %v2547_v26  ;;  %v7030_v4 = vld [vmem:[%s11501_s5 + $0x64] ss:$40 sps:$4 sm:$0xff]   ;;  %v3443_v25 = vmul.f32 %v10622_v63, %v11741_v52 }
 0x3ee   :  { %6158 = vmatprep.subr.bf16.mxu1 %v7036_v6  ;;  %v10570_v0 = vpop.permute.xlu0 %2598  ;;  %v11873_v6 = vld [vmem:[#allocation67_spill] sm:$0xff] }
 0x3ef   :  { %v2611_v1 = vadd.f32 %v2603_v19, %v2579_v54  ;;  %v3437_v19 = vadd.f32 %v10531_v48, %v10484_v10  ;;  %v11874_v44 = vrot.slane %v11873_v6, 1  ;;  %v3348_v10 = vadd.f32 %v10513_v28, %v10496_v34 }
 0x3f0   :  { %v10574_v59 = vpop.permute.xlu1 %3425  ;;  %v3435_v48 = vadd.f32 %v10547_v42, %v10504_v62  ;;  %v3506_v34 = vmul.f32 %v3502_v51, %v11744_v14  ;;  %v3444_v62 = vmul.f32 %v10622_v63, %v11744_v14 }
 0x3f1   :  { %v2545_v29 = vadd.f32 %v11874_v44, %v2521_v41  ;;  %v3447_v16 = vadd.f32 %v3443_v25, %v3437_v19  ;;  %v3372_v53 = vadd.f32 %v3362_v7, %v3348_v10 }
 0x3f2   :  { %v10590_v20 = vpop.permute.xlu0 %3491  ;;  %v3515_v54 = vrot.slane %v3506_v34, 1 }
 0x3f3   :  { %v3473_v33 = vadd.f32 %v10529_v8, %v3447_v16  ;;  %v3404_v26 = vadd.f32 %v10549_v46, %v3372_v53  ;;  %v7058_v16 = vld [vmem:[%s11501_s5 + $0x650] ss:$40 sps:$4 sm:$0xff]  }
 0x3f4   :  { %6150 = vmatmul.mubr.bf16.vlgmr.msra.gmra.mrb[0].mxu1 %v3977_v58  ;;  %5941 = vmatpush1.bf16.xpose.msra.mxu0 %v7019_v37  ;;  %v2567_v47 = vpop.permute.xlu1 %2566  ;;  %v11876_v37 = vrot.slane %v11875_v13, 2  ;;  %v3511_v13 = vrot.slane %v3503_v40, 1 }
 0x3f5   :  { %5942 = vmatprep.subr.bf16.mxu0 %v7024_v50  ;;  %6159 = vmatpush1.bf16.xpose.msra.mxu1 %v7034_v45  ;;  %v2577_v17 = vadd.f32 %v2567_v47, %v2545_v29  ;;  %v3436_v6 = vadd.f32 %v10574_v59, %v3404_v26 }
 0x3f6   :  { %6160 = vmatprep.subr.bf16.mxu1 %v7042_v27  ;;  %v2635_v50 = vadd.f32 %v11876_v37, %v2611_v1  ;;  %v3441_v27 = vmul.f32 %v10622_v63, %v11743_v3 }
 0x3f7   :  { %v10596_v22 = vpop.permute.xlu0 %3545  ;;  %v2609_v42 = vadd.f32 %v10570_v0, %v2577_v17  ;;  %v7052_v0 = vld [vmem:[%s11501_s5 + $0x600] ss:$40 sps:$4 sm:$0xff]   ;;  %v3442_v17 = vmul.f32 %v10622_v63, %v11749_v57  ;;  %v7039_v63 = vld [vmem:[%s11501_s5 + $0x104] ss:$40 sps:$4 sm:$0xff]  }
 0x3f8   :  { %v3445_v18 = vadd.f32 %v3441_v27, %v3435_v48  ;;  %v11880_v48 = vld [vmem:[#allocation32_spill] sm:$0xff] }
 0x3f9   :  { %v10601_v23 = vpop.permute.xlu1 %3489  ;;  %v3446_v10 = vadd.f32 %v3442_v17, %v3436_v6 }
 0x3fa   :  { %v3499_v8 = vadd.f32 %v10601_v23, %v3473_v33  ;;  %v3471_v46 = vadd.f32 %v10545_v55, %v3445_v18  ;;  %v3512_v23 = vrot.slane %v10677_v30, 1  ;;  %v10747_v30 = vstv %s10699_s16  ;;  %s7411_s16 = smov 76  }
 0x3fb   :  { %v10614_v21 = vpop.permute.xlu0 %3541 }
 0x3fc   :  { %5943 = vmatpush1.bf16.xpose.msra.mxu0 %v7022_v11  ;;  %v3590_v11 = vstv %s10626_s19  ;;  %s7416_s19 = smov 16  }
 0x3fd   :  { %v10616_v36 = vpop.permute.xlu1 %3485  ;;  %5953 = vmatprep.subr.bf16.mxu0 %v7027_v60  ;;  %6161 = vmatpush1.bf16.xpose.msra.mxu1 %v7040_v49  ;;  %v7033_v60 = vld [vmem:[%s11501_s5 + $0xb4] ss:$40 sps:$4 sm:$0xff]   ;;  %v3448_v49 = vadd.f32 %v3444_v62, %v3438_v24  ;;  %v10692_v19 = vmul.f32 %v3590_v11, %v11749_v57  ;;  %v3591_v25 = vmul.f32 %v3590_v11, %v11743_v3  ;;  %v7031_v3 = vld [vmem:[%s11501_s5 + $0xb0] ss:$40 sps:$4 sm:$0xff]  }
 0x3fe   :  { %6162 = vmatprep.subr.bf16.mxu1 %v7048_v5  ;;  %v3514_v5 = vrot.slane %v3505_v15, 1  ;;  %v3497_v55 = vadd.f32 %v10616_v36, %v3471_v46 }
 0x3ff   :  { %v2691_v39 = vpop.permute.xlu0 %2690  ;;  %v3474_v1 = vadd.f32 %v10563_v2, %v3448_v49  ;;  %v3599_v34 = vrot.slane %v3591_v25, 2 }
 0x400   :  { %v3516_v59 = vsel %vm191_vm3, %v3514_v5, %v3515_v54 }
 0x401   :  { %v10624_v32 = vpop.permute.xlu1 %3461  ;;  %v3500_v2 = vadd.f32 %v10590_v20, %v3474_v1  ;;  %v3523_v20 = vadd.f32 %v3516_v59, %v3499_v8 }
 0x403   :  { %v10641_v31 = vpop.permute.xlu0 %3547  ;;  %5945 = vmatmul.mubr.bf16.vlgmr.msra.gmra.mrb[0].mxu0 %v3977_v58  ;;  %v3524_v27 = vadd.f32 %v3515_v54, %v3500_v2  ;;  %v3555_v40 = vadd.f32 %v10596_v22, %v3523_v20 }
 0x404   :  { %5954 = vmatpush1.bf16.xpose.msra.mxu0 %v7025_v12  ;;  %v11878_v12 = vld [vmem:[#allocation37_spill] sm:$0xff] }
 0x405   :  { %v2659_v45 = vpop.permute.xlu1 %2658  ;;  %5955 = vmatprep.subr.bf16.mxu0 %v7030_v4  ;;  %6163 = vmatpush1.bf16.xpose.msra.mxu1 %v7046_v35  ;;  %v11879_v4 = vrot.slane %v11878_v12, 2  ;;  %v3556_v18 = vadd.f32 %v10641_v31, %v3524_v27 }
 0x406   :  { %v2667_v58 = vadd.f32 %v2659_v45, %v2635_v50  ;;  %6164 = vmatprep.subr.bf16.mxu1 %v7054_v43  ;;  %v3600_v50 = vrot.slane %v10692_v19, 2 }
 0x407   :  { %v2687_v28 = vpop.permute.xlu0 %2686  ;;  %v2633_v35 = vadd.f32 %v11879_v4, %v2609_v42  ;;  %v3472_v42 = vadd.f32 %v10624_v32, %v3446_v10 }
 0x408   :  { %v2699_v47 = vadd.f32 %v2691_v39, %v2667_v58  ;;  %v10685_v39 = vmul.f32 %v3590_v11, %v11744_v14  ;;  %v3593_v14 = vmul.f32 %v3590_v11, %v11741_v52  ;;  %v3513_v58 = vsel %vm191_vm3, %v3511_v13, %v3512_v23 }
 0x409   :  { %v10666_v56 = vpop.permute.xlu1 %3487  ;;  %v3521_v62 = vadd.f32 %v3513_v58, %v3497_v55  ;;  %v3601_v11 = vsel %vm304_vm4, %v3599_v34, %v3600_v50  ;;  %vm2819_vm3 = vcmask 386208  }
 0x40a   :  { %v2705_v7 = vadd.f32 %v11877_v9, %v2699_v47  ;;  %v3603_v51 = vrot.slane %v10685_v39, 2  ;;  %v3602_v57 = vrot.slane %v3593_v14, 2  ;;  %v3498_v32 = vadd.f32 %v10666_v56, %v3472_v42  ;;  %v7045_v14 = vld [vmem:[%s11501_s5 + $0x154] ss:$40 sps:$4 sm:$0xff]  }
 0x40b   :  { %v3580_v41 = vpop.permute.xlu0 %3579  ;;  %v3553_v56 = vadd.f32 %v10614_v21, %v3521_v62  ;;  %v7037_v21 = vld [vmem:[%s11501_s5 + $0x100] ss:$40 sps:$4 sm:$0xff]  }
 0x40c   :  { %5956 = vmatpush1.bf16.xpose.msra.mxu0 %v7028_v38  ;;  %v2709_v44 = vmax.f32 %v2705_v7, 0.0  ;;  %v3604_v38 = vsel %vm304_vm4, %v3602_v57, %v3603_v51  ;;  %v3522_v8 = vadd.f32 %v3512_v23, %v3498_v32  ;;  %vm11881_vm4 = vcmask 1047559  }
 0x40d   :  { %v2655_v29 = vpop.permute.xlu1 %2654  ;;  %5957 = vmatprep.subr.bf16.mxu0 %v7033_v60  ;;  %6165 = vmatpush1.bf16.xpose.msra.mxu1 %v7052_v0  ;;  %vm11882_vm8 = vmmov %vm11881_vm4 }
 0x40e   :  { %v2665_v43 = vadd.f32 %v2655_v29, %v2633_v35  ;;  %6166 = vmatprep.subr.bf16.mxu1 %v7060_v61  ;;  %v10714_v45 = vrot.slane %v2709_v44, %v11880_v48  ;;  %v2926_v36 = vcombine.high %v2709_v44, %v2709_v44  ;;  %vm11883_vm14 = vmmov %vm11881_vm4 }
 0x40f   :  { %v10706_v52 = vpop.permute.xlu0 %3575  ;;  %vm11884_vm15 = vmmov %vm11881_vm4 }
 0x410   :  { %v2697_v37 = vadd.f32 %v2687_v28, %v2665_v43  ;;  %v7066_v28 = vld [vmem:[%s11501_s5 + $0x6a4] ss:$40 sps:$4 sm:$0xff]   ;;  %v2933_v60 = vrot.slane %v2926_v36, %v11880_v48  ;;  %v10742_v49 = vcombine.high %v10714_v45, %v10714_v45  ;;  %v2865_v22 = vrot.slane %v10714_v45, 7  ;;  %vm11886_vm9 = vmmov %vm11881_vm4 }
 0x411   :  { %v3578_v24 = vpop.permute.xlu1 %3577  ;;  %vm11887_vm2 = vmmov %vm11881_vm4 }
 0x412   :  { %v2703_v15 = vadd.f32 %v11877_v9, %v2697_v37  ;;  %v10749_v9 = vadd.f32 %v3580_v41, %v3556_v18  ;;  %v3587_v7 = vadd.f32 %v3578_v24, %v3555_v40  ;;  %v2896_v35 = vrot.slane %v10742_v49, 7  ;;  %v7064_v37 = vld [vmem:[%s11501_s5 + $0x6a0] ss:$40 sps:$4 sm:$0xff]   ;;  %vm11888_vm12 = vmmov %vm11887_vm2 }
 0x413   :  { %v10728_v47 = vpop.permute.xlu0 %3665  ;;  %v2936_v41 = vrot.slane %v2933_v60, 7  ;;  %vm11889_vm13 = vmmov %vm11887_vm2 }
 0x414   :  { %v2707_v53 = vmax.f32 %v2703_v15, 0.0  ;;  %5958 = vmatpush1.bf16.xpose.msra.mxu0 %v7031_v3  ;;  %v3611_v55 = vadd.f32 %v3604_v38, %v3587_v7  ;;  %vm11890_vm1 = vmmov %vm11887_vm2 }
 0x415   :  { %v3574_v0 = vpop.permute.xlu1 %3573  ;;  %5959 = vmatprep.subr.bf16.mxu0 %v7039_v63  ;;  %6167 = vmatpush1.bf16.xpose.msra.mxu1 %v7058_v16  ;;  %v7072_v63 = vld [vmem:[%s11501_s5 + $0x6f4] ss:$40 sps:$4 sm:$0xff]  }
 0x416   :  { %v2855_v31 = vrot.slane %v2707_v53, %v11880_v48  ;;  %v2918_v33 = vcombine.high %v2707_v53, %v2707_v53  ;;  %6168 = vmatprep.subr.bf16.mxu1 %v7066_v28  ;;  %v3585_v44 = vadd.f32 %v3574_v0, %v3553_v56 }
 0x417   :  { %v10752_v61 = vpop.permute.xlu0 %3661 }
 0x418   :  { %v2880_v26 = vrot.slane %v2855_v31, 1  ;;  %v2892_v5 = vcombine.high %v2855_v31, %v2855_v31  ;;  %v2925_v54 = vrot.slane %v2918_v33, %v11880_v48  ;;  %v2866_v1 = vsel %vm1750_vm5, %v2865_v22, %v2855_v31 }
 0x419   :  { %v3544_v12 = vpop.permute.xlu1 %3543  ;;  %v2867_v4 = vsel %vm1752_vm6, %v2865_v22, %v2866_v1  ;;  %v3609_v28 = vadd.f32 %v3601_v11, %v3585_v44 }
 0x41a   :  { %v2906_v6 = vrot.slane %v2892_v5, 1  ;;  %v2946_v46 = vrot.slane %v2925_v54, 1  ;;  %v2868_v29 = vsel %vm1754_vm7, %v2865_v22, %v2867_v4  ;;  %v2883_v43 = vsel %vm1750_vm5, %v10714_v45, %v2880_v26 }
 0x41b   :  { %v10765_v2 = vpop.permute.xlu0 %3667  ;;  %v2869_v23 = vsel %vm11881_vm4, %v2865_v22, %v2868_v29  ;;  %v2897_v25 = vsel %vm1750_vm5, %v2896_v35, %v2892_v5  ;;  %v2937_v59 = vsel %vm1750_vm5, %v2936_v41, %v2925_v54  ;;  %v2884_v17 = vsel %vm1752_vm6, %v10714_v45, %v2883_v43  ;;  %v7051_v22 = vld [vmem:[%s11501_s5 + $0x1a4] ss:$40 sps:$4 sm:$0xff]   ;;  %vm11892_vm4 = vmmov %vm11890_vm1 }
 0x41c   :  { %2870 = vrot.lane.b32.xlu1 %v2869_v23, %s7409_s10  ;;  %v2949_v20 = vsel %vm1750_vm5, %v2933_v60, %v2946_v46  ;;  %v2898_v13 = vsel %vm1752_vm6, %v2896_v35, %v2897_v25  ;;  %v2885_v10 = vsel %vm1754_vm7, %v10714_v45, %v2884_v17  ;;  %v2938_v57 = vsel %vm1752_vm6, %v2936_v41, %v2937_v59 }
 0x41d   :  { %v3634_v3 = vpop.permute.xlu1 %3633  ;;  %v2950_v36 = vsel %vm1752_vm6, %v2933_v60, %v2949_v20  ;;  %v2899_v24 = vsel %vm1754_vm7, %v2896_v35, %v2898_v13  ;;  %5960 = vmatpush1.bf16.xpose.msra.mxu0 %v7037_v21  ;;  %v2886_v58 = vsel %vm11882_vm8, %v10714_v45, %v2885_v10  ;;  %v2939_v42 = vsel %vm1754_vm7, %v2936_v41, %v2938_v57  ;;  %v11885_v45 = vld [vmem:[#allocation55_spill] sm:$0xff]  ;;  %vm11893_vm8 = vmmov %vm11890_vm1 }
 0x41e   :  { %v3643_v16 = vadd.f32 %v3634_v3, %v3611_v55  ;;  %v2951_v27 = vsel %vm1754_vm7, %v2933_v60, %v2950_v36  ;;  %v2900_v15 = vsel %vm11883_vm14, %v2896_v35, %v2899_v24  ;;  %5961 = vmatprep.subr.bf16.mxu0 %v7045_v14  ;;  %2887 = vrot.lane.b32.xlu0 %v2886_v58, %s7410_s15  ;;  %v7057_v14 = vld [vmem:[%s11501_s5 + $0x1f4] ss:$40 sps:$4 sm:$0xff]   ;;  %v7076_v55 = vld [vmem:[%s11501_s5 + $0x740] ss:$40 sps:$4 sm:$0xff]   ;;  %vm11894_vm14 = vmmov %vm11890_vm1 }
 0x41f   :  { %v2817_v34 = vpop.permute.xlu0 %2816  ;;  %v2952_v62 = vsel %vm11884_vm15, %v2933_v60, %v2951_v27  ;;  %v2909_v38 = vsel %vm1750_vm5, %v10742_v49, %v2906_v6  ;;  %v2940_v53 = vsel %vm11886_vm9, %v2936_v41, %v2939_v42  ;;  %6169 = vmatpush1.bf16.xpose.msra.mxu1 %v7064_v37  ;;  %v3554_v11 = vadd.f32 %v3544_v12, %v3522_v8  ;;  %v7078_v8 = vld [vmem:[%s11501_s5 + $0x744] ss:$40 sps:$4 sm:$0xff]   ;;  %v7049_v6 = vld [vmem:[%s11501_s5 + $0x1a0] ss:$40 sps:$4 sm:$0xff]   ;;  %v7084_v3 = vld [vmem:[%s11501_s5 + $0x794] ss:$40 sps:$4 sm:$0xff]  }
 0x420   :  { %v3675_v18 = vadd.f32 %v10728_v47, %v3643_v16  ;;  %2820 = vst.msk [vmem:[#allocation3 + $0x8] sm:$0x3] %vm2819_vm3, %v2817_v34  ;;  %2842 = vrot.lane.b32.xlu1 %v11885_v45, %s7411_s16  ;;  %v2910_v40 = vsel %vm1752_vm6, %v10742_v49, %v2909_v38  ;;  %v7043_v47 = vld [vmem:[%s11501_s5 + $0x150] ss:$40 sps:$4 sm:$0xff]   ;;  %6170 = vmatprep.subr.bf16.mxu1 %v7072_v63  ;;  %vm11891_vm3 = vmmov %vm11890_vm1  ;;  %s7419_s16 = smov 100  }
 0x421   :  { %v3630_v60 = vpop.permute.xlu1 %3629  ;;  %v2911_v32 = vsel %vm1754_vm7, %v10742_v49, %v2910_v40  ;;  %v3612_v5 = vadd.f32 %v3603_v51, %v10749_v9  ;;  %v3586_v54 = vadd.f32 %v10706_v52, %v3554_v11  ;;  %v7055_v40 = vld [vmem:[%s11501_s5 + $0x1f0] ss:$40 sps:$4 sm:$0xff]   ;;  %vm11895_vm15 = vmmov %vm11890_vm1 }
 0x422   :  { %v3681_v0 = vadd.f32 %v10747_v30, %v3675_v18  ;;  %v3641_v31 = vadd.f32 %v3630_v60, %v3609_v28  ;;  %v2912_v33 = vsel %vm11887_vm2, %v10742_v49, %v2911_v32  ;;  %2953 = vrot.lane.b32.xlu0 %v2952_v62, %s7412_s20  ;;  %v7070_v49 = vld [vmem:[%s11501_s5 + $0x6f0] ss:$40 sps:$4 sm:$0xff]   ;;  %vm11896_vm9 = vmmov %vm11890_vm1 }
 0x423   :  { %v2831_v7 = vpop.permute.xlu0 %2830  ;;  %v3610_v41 = vadd.f32 %v3600_v50, %v3586_v54  ;;  %vm11898_vm2 = vmmov %vm11890_vm1 }
 0x424   :  { %v3685_v56 = vmax.f32 %v3681_v0, 0.0  ;;  %v3673_v26 = vadd.f32 %v10752_v61, %v3641_v31  ;;  %2834 = vst.msk [vmem:[#allocation3 + $0x8] sm:$0x3] %vm2833_vm10, %v2831_v7  ;;  %2901 = vrot.lane.b32.xlu1 %v2900_v15, %s7413_s21  ;;  %vm11897_vm10 = vmmov %vm11890_vm1 }
 0x425   :  { %v3636_v1 = vpop.permute.xlu1 %3635  ;;  %5962 = vmatpush1.bf16.xpose.msra.mxu0 %v7043_v47  ;;  %v7063_v47 = vld [vmem:[%s11501_s5 + $0x244] ss:$40 sps:$4 sm:$0xff]  }
 0x426   :  { %v10824_v61 = vrot.slane %v3685_v56, %v11880_v48  ;;  %v3761_v12 = vcombine.high %v3685_v56, %v3685_v56  ;;  %v3679_v4 = vadd.f32 %v10747_v30, %v3673_v26  ;;  %v3644_v39 = vadd.f32 %v3636_v1, %v3612_v5  ;;  %5963 = vmatprep.subr.bf16.mxu0 %v7051_v22 }
 0x427   :  { %2941 = vrot.lane.b32.xlu0 %v2940_v53, %s7414_s8  ;;  %6171 = vmatpush1.bf16.xpose.msra.mxu1 %v7070_v49  ;;  %v7082_v49 = vld [vmem:[%s11501_s5 + $0x790] ss:$40 sps:$4 sm:$0xff]  }
 0x428   :  { %v3768_v51 = vrot.slane %v3761_v12, %v11880_v48  ;;  %v3683_v9 = vmax.f32 %v3679_v4, 0.0  ;;  %v3676_v52 = vadd.f32 %v10765_v2, %v3644_v39  ;;  %2913 = vrot.lane.b32.xlu1 %v2912_v33, %s7415_s9  ;;  %v10833_v21 = vcombine.high %v10824_v61, %v10824_v61  ;;  %6172 = vmatprep.subr.bf16.mxu1 %v7078_v8  ;;  %v7090_v12 = vld [vmem:[%s11501_s5 + $0x7e4] ss:$40 sps:$4 sm:$0xff]  }
 0x429   :  { %v3632_v35 = vpop.permute.xlu1 %3631  ;;  %v3705_v50 = vrot.slane %v10824_v61, 7 }
 0x42a   :  { %v3695_v46 = vrot.slane %v3683_v9, %v11880_v48  ;;  %v3753_v44 = vcombine.high %v3683_v9, %v3683_v9  ;;  %v3682_v29 = vadd.f32 %v10747_v30, %v3676_v52  ;;  %v3642_v19 = vadd.f32 %v3632_v35, %v3610_v41 }
 0x42b   :  { %v10844_v2 = vcombine.high %v3768_v51, %v3768_v51  ;;  %v3731_v13 = vrot.slane %v10833_v21, 7  ;;  %v10858_v10 = vrot.slane %v3768_v51, 7 }
 0x42c   :  { %v3715_v23 = vrot.slane %v3695_v46, 1  ;;  %v3727_v43 = vcombine.high %v3695_v46, %v3695_v46  ;;  %v10847_v25 = vrot.slane %v3753_v44, %v11880_v48  ;;  %v3686_v59 = vmax.f32 %v3682_v29, 0.0 }
 0x42d   :  { %v3664_v17 = vpop.permute.xlu1 %3663  ;;  %v3706_v20 = vsel %vm1750_vm5, %v3705_v50, %v3695_v46  ;;  %v3793_v37 = vrot.slane %v10844_v2, 7  ;;  %5964 = vmatpush1.bf16.xpose.msra.mxu0 %v7049_v6 }
 0x42e   :  { %v3741_v36 = vrot.slane %v3727_v43, 1  ;;  %v3778_v24 = vrot.slane %v10847_v25, 1  ;;  %v3789_v57 = vcombine.high %v10847_v25, %v10847_v25  ;;  %v10864_v63 = vrot.slane %v3686_v59, %v11880_v48  ;;  %5965 = vmatprep.subr.bf16.mxu0 %v7057_v14 }
 0x42f   :  { %v3885_v16 = vcombine.high %v3686_v59, %v3686_v59  ;;  %v3674_v58 = vadd.f32 %v3664_v17, %v3642_v19  ;;  %v3707_v27 = vsel %vm1752_vm6, %v3705_v50, %v3706_v20  ;;  %v3718_v15 = vsel %vm1750_vm5, %v10824_v61, %v3715_v23  ;;  %6173 = vmatpush1.bf16.xpose.msra.mxu1 %v7076_v55  ;;  %v7061_v59 = vld [vmem:[%s11501_s5 + $0x240] ss:$40 sps:$4 sm:$0xff]  }
 0x430   :  { %v3831_v34 = vrot.slane %v10864_v63, 7  ;;  %v3708_v28 = vsel %vm1754_vm7, %v3705_v50, %v3707_v27  ;;  %v3781_v62 = vsel %vm1750_vm5, %v3768_v51, %v3778_v24  ;;  %v3719_v42 = vsel %vm1752_vm6, %v10824_v61, %v3718_v15  ;;  %6174 = vmatprep.subr.bf16.mxu1 %v7084_v3 }
 0x431   :  { %v10875_v38 = vrot.slane %v3885_v16, %v11880_v48  ;;  %v3680_v18 = vadd.f32 %v10747_v30, %v3674_v58  ;;  %v3709_v45 = vsel %vm11888_vm12, %v3705_v50, %v3708_v28  ;;  %v3782_v53 = vsel %vm1752_vm6, %v3768_v51, %v3781_v62  ;;  %vm11899_vm12 = vmmov %vm11890_vm1 }
 0x432   :  { %3710 = vrot.lane.b32.xlu1 %v3709_v45, %s7416_s19  ;;  %v3783_v11 = vsel %vm1754_vm7, %v3768_v51, %v3782_v53  ;;  %v3720_v60 = vsel %vm1754_vm7, %v10824_v61, %v3719_v42  ;;  %v3732_v32 = vsel %vm1750_vm5, %v3731_v13, %v3727_v43  ;;  %v3794_v30 = vsel %vm1750_vm5, %v3793_v37, %v3789_v57  ;;  %v7096_v42 = vld [vmem:[%s11501_s5 + $0x834] ss:$40 sps:$4 sm:$0xff]  }
 0x433   :  { %v3684_v0 = vmax.f32 %v3680_v18, 0.0  ;;  %v3784_v31 = vsel %vm11889_vm13, %v3768_v51, %v3783_v11  ;;  %v3721_v33 = vsel %vm11890_vm1, %v10824_v61, %v3720_v60  ;;  %v3733_v22 = vsel %vm1752_vm6, %v3731_v13, %v3732_v32  ;;  %vm11900_vm13 = vmmov %vm11890_vm1 }
 0x434   :  { %3785 = vrot.lane.b32.xlu0 %v3784_v31, %s7389_s27  ;;  %v3734_v7 = vsel %vm1754_vm7, %v3731_v13, %v3733_v22  ;;  %v3795_v56 = vsel %vm1752_vm6, %v3793_v37, %v3794_v30  ;;  %v3744_v26 = vsel %vm1750_vm5, %v10833_v21, %v3741_v36  ;;  %v3802_v5 = vrot.slane %v3789_v57, 1  ;;  %v7073_v22 = vld [vmem:[%s11501_s5 + $0x2e0] ss:$40 sps:$4 sm:$0xff]  }
 0x435   :  { %v3821_v54 = vrot.slane %v3684_v0, %v11880_v48  ;;  %v3877_v1 = vcombine.high %v3684_v0, %v3684_v0  ;;  %v3735_v8 = vsel %vm11891_vm3, %v3731_v13, %v3734_v7  ;;  %v3796_v61 = vsel %vm1754_vm7, %v3793_v37, %v3795_v56  ;;  %5966 = vmatpush1.bf16.xpose.msra.mxu0 %v7055_v40  ;;  %v7075_v0 = vld [vmem:[%s11501_s5 + $0x2e4] ss:$40 sps:$4 sm:$0xff]   ;;  %v7081_v7 = vld [vmem:[%s11501_s5 + $0x334] ss:$40 sps:$4 sm:$0xff]   ;;  %v7100_v56 = vld [vmem:[%s11501_s5 + $0x880] ss:$40 sps:$4 sm:$0xff]  }
 0x436   :  { %v3797_v4 = vsel %vm11892_vm4, %v3793_v37, %v3796_v61  ;;  %v3745_v39 = vsel %vm1752_vm6, %v10833_v21, %v3744_v26  ;;  %v3805_v51 = vsel %vm1750_vm5, %v10844_v2, %v3802_v5  ;;  %v3854_v9 = vcombine.high %v10864_v63, %v10864_v63  ;;  %5967 = vmatprep.subr.bf16.mxu0 %v7063_v47  ;;  %v7069_v37 = vld [vmem:[%s11501_s5 + $0x294] ss:$40 sps:$4 sm:$0xff]   ;;  %v7079_v5 = vld [vmem:[%s11501_s5 + $0x330] ss:$40 sps:$4 sm:$0xff]  }
 0x437   :  { %v3832_v52 = vsel %vm1750_vm5, %v3831_v34, %v3821_v54  ;;  %v3842_v35 = vrot.slane %v3821_v54, 1  ;;  %v3853_v41 = vcombine.high %v3821_v54, %v3821_v54  ;;  %v3884_v6 = vrot.slane %v3877_v1, %v11880_v48  ;;  %6175 = vmatpush1.bf16.xpose.msra.mxu1 %v7082_v49  ;;  %v7108_v26 = vld [vmem:[%s11501_s5 + $0x8d4] ss:$40 sps:$4 sm:$0xff]   ;;  %v7087_v49 = vld [vmem:[%s11501_s5 + $0x384] ss:$40 sps:$4 sm:$0xff]  }
 0x438   :  { %3722 = vrot.lane.b32.xlu0 %v3721_v33, %s7417_s0  ;;  %v3833_v46 = vsel %vm1752_vm6, %v3831_v34, %v3832_v52  ;;  %v3746_v44 = vsel %vm1754_vm7, %v10833_v21, %v3745_v39  ;;  %v3806_v29 = vsel %vm1752_vm6, %v10844_v2, %v3805_v51  ;;  %v3857_v14 = vrot.slane %v3854_v9, 7  ;;  %6176 = vmatprep.subr.bf16.mxu1 %v7090_v12  ;;  %v7094_v33 = vld [vmem:[%s11501_s5 + $0x830] ss:$40 sps:$4 sm:$0xff]   ;;  %v7114_v1 = vld [vmem:[%s11501_s5 + $0x924] ss:$40 sps:$4 sm:$0xff]  }
 0x439   :  { %v3866_v19 = vrot.slane %v3853_v41, 1  ;;  %v3904_v50 = vrot.slane %v3884_v6, 1  ;;  %v3834_v23 = vsel %vm1754_vm7, %v3831_v34, %v3833_v46  ;;  %v3747_v43 = vsel %vm11893_vm8, %v10833_v21, %v3746_v44  ;;  %v7106_v54 = vld [vmem:[%s11501_s5 + $0x8d0] ss:$40 sps:$4 sm:$0xff]   ;;  %v7093_v61 = vld [vmem:[%s11501_s5 + $0x3d4] ss:$40 sps:$4 sm:$0xff]  }
 0x43a   :  { %v3835_v55 = vsel %vm11894_vm14, %v3831_v34, %v3834_v23  ;;  %v3807_v17 = vsel %vm1754_vm7, %v10844_v2, %v3806_v29  ;;  %v3858_v20 = vsel %vm1750_vm5, %v3857_v14, %v3853_v41  ;;  %v3845_v13 = vsel %vm1750_vm5, %v10864_v63, %v3842_v35  ;;  %v7112_v12 = vld [vmem:[%s11501_s5 + $0x920] ss:$40 sps:$4 sm:$0xff]   ;;  %v7091_v39 = vld [vmem:[%s11501_s5 + $0x3d0] ss:$40 sps:$4 sm:$0xff]   ;;  %v7099_v51 = vld [vmem:[%s11501_s5 + $0x424] ss:$40 sps:$4 sm:$0xff]  }
 0x43b   :  { %3836 = vrot.lane.b32.xlu1 %v3835_v55, %s7395_s23  ;;  %v3808_v21 = vsel %vm11895_vm15, %v10844_v2, %v3807_v17  ;;  %v3859_v3 = vsel %vm1752_vm6, %v3857_v14, %v3858_v20  ;;  %v3846_v36 = vsel %vm1752_vm6, %v10864_v63, %v3845_v13  ;;  %v3869_v24 = vsel %vm1750_vm5, %v3854_v9, %v3866_v19  ;;  %v7088_v2 = vld [vmem:[%s11501_s5 + $0x7e0] ss:$40 sps:$4 sm:$0xff]   ;;  %v7105_v52 = vld [vmem:[%s11501_s5 + $0x474] ss:$40 sps:$4 sm:$0xff]   ;;  %v7103_v35 = vld [vmem:[%s11501_s5 + $0x470] ss:$40 sps:$4 sm:$0xff]  }
 0x43c   :  { %3736 = vrot.lane.b32.xlu0 %v3735_v8, %s7418_s11  ;;  %v3860_v57 = vsel %vm1754_vm7, %v3857_v14, %v3859_v3  ;;  %v3847_v16 = vsel %vm1754_vm7, %v10864_v63, %v3846_v36  ;;  %v3870_v58 = vsel %vm1752_vm6, %v3854_v9, %v3869_v24  ;;  %v3907_v27 = vsel %vm1750_vm5, %v10875_v38, %v3904_v50  ;;  %v7085_v8 = vld [vmem:[%s11501_s5 + $0x380] ss:$40 sps:$4 sm:$0xff]   ;;  %v7111_v41 = vld [vmem:[%s11501_s5 + $0x4c4] ss:$40 sps:$4 sm:$0xff]  }
 0x43d   :  { %v3861_v15 = vsel %vm11896_vm9, %v3857_v14, %v3860_v57  ;;  %v3848_v34 = vsel %vm11897_vm10, %v10864_v63, %v3847_v16  ;;  %v3871_v28 = vsel %vm1754_vm7, %v3854_v9, %v3870_v58  ;;  %v3908_v62 = vsel %vm1752_vm6, %v10875_v38, %v3907_v27  ;;  %5968 = vmatpush1.bf16.xpose.msra.mxu0 %v7061_v59  ;;  %v7117_v46 = vld [vmem:[%s11501_s5 + $0x1c] ss:$40 sps:$4 sm:$0xff]  }
 0x43e   :  { %v3872_v18 = vsel %vm11898_vm2, %v3854_v9, %v3871_v28  ;;  %v3909_v45 = vsel %vm1754_vm7, %v10875_v38, %v3908_v62  ;;  %v3895_v53 = vrot.slane %v10875_v38, 7  ;;  %5969 = vmatprep.subr.bf16.mxu0 %v7069_v37  ;;  %v3772_v63 = vsel %vm1750_vm5, %v10858_v10, %v10847_v25  ;;  %v7067_v25 = vld [vmem:[%s11501_s5 + $0x290] ss:$40 sps:$4 sm:$0xff]   ;;  %v7097_v9 = vld [vmem:[%s11501_s5 + $0x420] ss:$40 sps:$4 sm:$0xff]  }
 0x43f   :  { %3798 = vrot.lane.b32.xlu1 %v3797_v4, %s7394_s22  ;;  %v3910_v40 = vsel %vm11899_vm12, %v10875_v38, %v3909_v45  ;;  %v3773_v11 = vsel %vm1752_vm6, %v10858_v10, %v3772_v63  ;;  %6177 = vmatpush1.bf16.xpose.msra.mxu1 %v7088_v2  ;;  %v7120_v4 = vld [vmem:[%s11501_s5 + $0x51c] ss:$40 sps:$4 sm:$0xff]   ;;  %vm2873_vm3 = vcmask 850944   ;;  %vm2845_vm4 = vcmask 845408  }
 0x440   :  { %3748 = vrot.lane.b32.xlu0 %v3747_v43, %s7419_s16  ;;  %v3896_v60 = vsel %vm1750_vm5, %v3895_v53, %v3884_v6  ;;  %v3774_v32 = vsel %vm1754_vm7, %v10858_v10, %v3773_v11  ;;  %6178 = vmatprep.subr.bf16.mxu1 %v7096_v42  ;;  %vm11901_vm5 = vcmask 222208   ;;  %v7109_v6 = vld [vmem:[%s11501_s5 + $0x4c0] ss:$40 sps:$4 sm:$0xff]   ;;  %vm2890_vm14 = vcmask 255008  }
 0x441   :  { %v3897_v30 = vsel %vm1752_vm6, %v3895_v53, %v3896_v60  ;;  %v3775_v38 = vsel %vm11900_vm13, %v10858_v10, %v3774_v32  ;;  %v7102_v10 = vld [vmem:[%s11501_s5 + $0x884] ss:$40 sps:$4 sm:$0xff]   ;;  %vm2876_vm6 = vcmask 1042240   ;;  %vm2904_vm15 = vcmask 484608  }
 0x442   :  { %v3898_v47 = vsel %vm1754_vm7, %v3895_v53, %v3897_v30  ;;  %3777 = vst.msk [vmem:[#allocation3 + $0xe] sm:$0x3] %vm11901_vm5, %v3775_v38  ;;  %vm2877_vm7 = vcmask 27650   ;;  %vm2959_vm9 = vcmask 1042336   ;;  %vm2960_vm10 = vcmask 125954  }
 0x443   :  { %3809 = vrot.lane.b32.xlu1 %v3808_v21, %s7397_s25  ;;  %v3899_v31 = vsel %vm11890_vm1, %v3895_v53, %v3898_v47  ;;  %vm2878_vm8 = vmor %vm2877_vm7, %vm2876_vm6  ;;  %vm2916_vm2 = vcmask 714208   ;;  %vm2956_vm12 = vcmask 949248   ;;  %vm2944_vm13 = vcmask 943808   ;;  %v7118_v38 = vld [vmem:[%s11501_s5 + $0x518] ss:$40 sps:$4 sm:$0xff]  }
 0x444   :  { %3862 = vrot.lane.b32.xlu0 %v3861_v15, %s7405_s14  ;;  %vm2961_vm5 = vmor %vm2960_vm10, %vm2959_vm9  ;;  %vm3713_vm1 = vcmask 353408   ;;  %vm11902_vm6 = vcmask 451808   ;;  %vm3725_vm7 = vcmask 583008   ;;  %vm11907_vm9 = vcmask 320608   ;;  %v7190_v15 = vld [vmem:[%s11501_s5 + $0x3dc] ss:$40 sps:$4 sm:$0xff]  }
 0x445   :  { %5970 = vmatpush1.bf16.xpose.msra.mxu0 %v7067_v25  ;;  %vm11908_vm10 = vcmask 550208   ;;  %v7115_v25 = vld [vmem:[%s11501_s5 + $0x18] ss:$40 sps:$4 sm:$0xff]  }
 0x446   :  { %5971 = vmatprep.subr.bf16.mxu0 %v7075_v0 }
 0x447   :  { %3849 = vrot.lane.b32.xlu1 %v3848_v34, %s7396_s24  ;;  %6179 = vmatpush1.bf16.xpose.msra.mxu1 %v7094_v33  ;;  %v7124_v33 = vld [vmem:[%s11501_s5 + $0x6c] ss:$40 sps:$4 sm:$0xff]  }
 0x448   :  { %3873 = vrot.lane.b32.xlu0 %v3872_v18, %s7406_s4  ;;  %6180 = vmatprep.subr.bf16.mxu1 %v7102_v10  ;;  %v7127_v10 = vld [vmem:[%s11501_s5 + $0x56c] ss:$40 sps:$4 sm:$0xff]  }
 0x44b   :  { %3911 = vrot.lane.b32.xlu1 %v3910_v40, %s7390_s2 }
 0x44d   :  { %5972 = vmatpush1.bf16.xpose.msra.mxu0 %v7073_v22  ;;  %v7122_v22 = vld [vmem:[%s11501_s5 + $0x68] ss:$40 sps:$4 sm:$0xff]  }
 0x44e   :  { %5973 = vmatprep.subr.bf16.mxu0 %v7081_v7  ;;  %v7125_v7 = vld [vmem:[%s11501_s5 + $0x568] ss:$40 sps:$4 sm:$0xff]  }
 0x44f   :  { %3900 = vrot.lane.b32.xlu1 %v3899_v31, %s7391_s1  ;;  %6181 = vmatpush1.bf16.xpose.msra.mxu1 %v7100_v56  ;;  %v7130_v56 = vld [vmem:[%s11501_s5 + $0xbc] ss:$40 sps:$4 sm:$0xff]  }
 0x450   :  { %6182 = vmatprep.subr.bf16.mxu1 %v7108_v26  ;;  %v7133_v26 = vld [vmem:[%s11501_s5 + $0x5bc] ss:$40 sps:$4 sm:$0xff]  }
 0x455   :  { %5974 = vmatpush1.bf16.xpose.msra.mxu0 %v7079_v5  ;;  %v7128_v5 = vld [vmem:[%s11501_s5 + $0xb8] ss:$40 sps:$4 sm:$0xff]  }
 0x456   :  { %5975 = vmatprep.subr.bf16.mxu0 %v7087_v49  ;;  %v7131_v49 = vld [vmem:[%s11501_s5 + $0x5b8] ss:$40 sps:$4 sm:$0xff]  }
 0x457   :  { %6183 = vmatpush1.bf16.xpose.msra.mxu1 %v7106_v54  ;;  %v7136_v54 = vld [vmem:[%s11501_s5 + $0x10c] ss:$40 sps:$4 sm:$0xff]  }
 0x458   :  { %6184 = vmatprep.subr.bf16.mxu1 %v7114_v1  ;;  %v7139_v1 = vld [vmem:[%s11501_s5 + $0x60c] ss:$40 sps:$4 sm:$0xff]  }
 0x45d   :  { %5976 = vmatpush1.bf16.xpose.msra.mxu0 %v7085_v8  ;;  %v7134_v8 = vld [vmem:[%s11501_s5 + $0x108] ss:$40 sps:$4 sm:$0xff]  }
 0x45e   :  { %5977 = vmatprep.subr.bf16.mxu0 %v7093_v61  ;;  %v7137_v61 = vld [vmem:[%s11501_s5 + $0x608] ss:$40 sps:$4 sm:$0xff]  }
 0x45f   :  { %6185 = vmatpush1.bf16.xpose.msra.mxu1 %v7112_v12  ;;  %v7142_v12 = vld [vmem:[%s11501_s5 + $0x15c] ss:$40 sps:$4 sm:$0xff]  }
 0x460   :  { %6199 = vmatprep.subr.bf16.mxu1 %v7120_v4  ;;  %v7145_v4 = vld [vmem:[%s11501_s5 + $0x65c] ss:$40 sps:$4 sm:$0xff]  }
 0x465   :  { %5978 = vmatpush1.bf16.xpose.msra.mxu0 %v7091_v39  ;;  %v7140_v39 = vld [vmem:[%s11501_s5 + $0x158] ss:$40 sps:$4 sm:$0xff]  }
 0x466   :  { %5979 = vmatprep.subr.bf16.mxu0 %v7099_v51  ;;  %v7143_v51 = vld [vmem:[%s11501_s5 + $0x658] ss:$40 sps:$4 sm:$0xff]  }
 0x46d   :  { %5980 = vmatpush1.bf16.xpose.msra.mxu0 %v7097_v9  ;;  %v7148_v9 = vld [vmem:[%s11501_s5 + $0x1ac] ss:$40 sps:$4 sm:$0xff]  }
 0x46e   :  { %5981 = vmatprep.subr.bf16.mxu0 %v7105_v52  ;;  %v7151_v52 = vld [vmem:[%s11501_s5 + $0x6ac] ss:$40 sps:$4 sm:$0xff]  }
 0x475   :  { %5982 = vmatpush1.bf16.xpose.msra.mxu0 %v7103_v35  ;;  %v7146_v35 = vld [vmem:[%s11501_s5 + $0x1a8] ss:$40 sps:$4 sm:$0xff]  }
 0x476   :  { %5983 = vmatprep.subr.bf16.mxu0 %v7111_v41  ;;  %v7149_v41 = vld [vmem:[%s11501_s5 + $0x6a8] ss:$40 sps:$4 sm:$0xff]  }
 0x47d   :  { %5984 = vmatpush1.bf16.xpose.msra.mxu0 %v7109_v6  ;;  %v7154_v6 = vld [vmem:[%s11501_s5 + $0x1fc] ss:$40 sps:$4 sm:$0xff]  }
 0x47e   :  { %5994 = vmatprep.subr.bf16.mxu0 %v7117_v46  ;;  %v7157_v46 = vld [vmem:[%s11501_s5 + $0x6fc] ss:$40 sps:$4 sm:$0xff]  }
 0x48e   :  { %v2871_v44 = vpop.permute.xlu1 %2870 }
 0x48f   :  { %v2872_v29 = vrot.slane %v2871_v44, 6 }
 0x490   :  { %v2888_v14 = vpop.permute.xlu0 %2887 }
 0x491   :  { %v2874_v50 = vsel %vm2873_vm3, %v2872_v29, %v2871_v44  ;;  %vm3739_vm3 = vcmask 812608   ;;  %v7152_v44 = vld [vmem:[%s11501_s5 + $0x1f8] ss:$40 sps:$4 sm:$0xff]  }
 0x492   :  { %v2843_v19 = vpop.permute.xlu1 %2842  ;;  %v7155_v29 = vld [vmem:[%s11501_s5 + $0x6f8] ss:$40 sps:$4 sm:$0xff]  }
 0x493   :  { %2846 = vst.msk [vmem:[#allocation3 + $0x8] sm:$0x3] %vm2845_vm4, %v2843_v19  ;;  %vm3751_vm4 = vcmask 1042208   ;;  %v7163_v19 = vld [vmem:[%s11501_s5 + $0x74c] ss:$40 sps:$4 sm:$0xff]  }
 0x494   :  { %2879 = vst.msk [vmem:[#allocation3 + $0x8] sm:$0xf] %vm2878_vm8, %v2874_v50  ;;  %v2954_v23 = vpop.permute.xlu0 %2953  ;;  %vm11903_vm8 = vcmask 681408   ;;  %v7158_v50 = vld [vmem:[%s11501_s5 + $0x248] ss:$40 sps:$4 sm:$0xff]  }
 0x495   :  { %2891 = vst.msk [vmem:[#allocation3 + $0xa] sm:$0x3] %vm2890_vm14, %v2888_v14  ;;  %v2955_v59 = vrot.slane %v2954_v23, 6  ;;  %vm11904_vm14 = vcmask 916480   ;;  %v7160_v14 = vld [vmem:[%s11501_s5 + $0x24c] ss:$40 sps:$4 sm:$0xff]  }
 0x496   :  { %v2902_v43 = vpop.permute.xlu1 %2901 }
 0x497   :  { %2905 = vst.msk [vmem:[#allocation3 + $0xa] sm:$0x3] %vm2904_vm15, %v2902_v43  ;;  %v2957_v20 = vsel %vm2956_vm12, %v2955_v59, %v2954_v23  ;;  %vm11905_vm15 = vcmask 911008   ;;  %vm11911_vm12 = vcmask 1009408   ;;  %v7161_v23 = vld [vmem:[%s11501_s5 + $0x748] ss:$40 sps:$4 sm:$0xff]  }
 0x498   :  { %v7166_v43 = vld [vmem:[%s11501_s5 + $0x29c] ss:$40 sps:$4 sm:$0xff]  }
 0x499   :  { %v2942_v17 = vpop.permute.xlu0 %2941  ;;  %v7169_v59 = vld [vmem:[%s11501_s5 + $0x79c] ss:$40 sps:$4 sm:$0xff]  }
 0x49a   :  { %v2914_v55 = vpop.permute.xlu1 %2913 }
 0x49b   :  { %2917 = vst.msk [vmem:[#allocation3 + $0xa] sm:$0x3] %vm2916_vm2, %v2914_v55  ;;  %vm11909_vm2 = vcmask 779808   ;;  %v7164_v55 = vld [vmem:[%s11501_s5 + $0x298] ss:$40 sps:$4 sm:$0xff]  }
 0x49c   :  { %2945 = vst.msk [vmem:[#allocation3 + $0xa] sm:$0x3] %vm2944_vm13, %v2942_v17  ;;  %v7167_v17 = vld [vmem:[%s11501_s5 + $0x798] ss:$40 sps:$4 sm:$0xff]   ;;  %vm6303_vm13 = vcmask 1041408  }
 0x49d   :  { %2962 = vst.msk [vmem:[#allocation3 + $0xa] sm:$0xf] %vm2961_vm5, %v2957_v20  ;;  %v7172_v20 = vld [vmem:[%s11501_s5 + $0x2ec] ss:$40 sps:$4 sm:$0xff]   ;;  %vm6304_vm5 = vcmask 1043458  }
 0x4a4   :  { %v3711_v13 = vpop.permute.xlu1 %3710 }
 0x4a5   :  { %3714 = vst.msk [vmem:[#allocation3 + $0xc] sm:$0x3] %vm3713_vm1, %v3711_v13  ;;  %v7175_v13 = vld [vmem:[%s11501_s5 + $0x7ec] ss:$40 sps:$4 sm:$0xff]   ;;  %vm6305_vm1 = vmor %vm6304_vm5, %vm6303_vm13 }
 0x4a6   :  { %v3786_v37 = vpop.permute.xlu0 %3785 }
 0x4a7   :  { %3788 = vst.msk [vmem:[#allocation3 + $0xe] sm:$0x3] %vm11902_vm6, %v3786_v37  ;;  %v7170_v37 = vld [vmem:[%s11501_s5 + $0x2e8] ss:$40 sps:$4 sm:$0xff]   ;;  %vm6306_vm6 = vcmask 1045508  }
 0x4aa   :  { %v3723_v21 = vpop.permute.xlu0 %3722 }
 0x4ab   :  { %3726 = vst.msk [vmem:[#allocation3 + $0xc] sm:$0x3] %vm3725_vm7, %v3723_v21  ;;  %v7173_v21 = vld [vmem:[%s11501_s5 + $0x7e8] ss:$40 sps:$4 sm:$0xff]   ;;  %vm6307_vm7 = vmor %vm6306_vm6, %vm6305_vm1 }
 0x4ad   :  { %v3837_v3 = vpop.permute.xlu1 %3836 }
 0x4ae   :  { %v3737_v36 = vpop.permute.xlu0 %3736  ;;  %v3838_v57 = vrot.slane %v3837_v3, 6 }
 0x4af   :  { %3740 = vst.msk [vmem:[#allocation3 + $0xc] sm:$0x3] %vm3739_vm3, %v3737_v36  ;;  %v7181_v36 = vld [vmem:[%s11501_s5 + $0x83c] ss:$40 sps:$4 sm:$0xff]   ;;  %vm6308_vm3 = vcmask 785414  }
 0x4b0   :  { %v3839_v27 = vsel %vm11904_vm14, %v3838_v57, %v3837_v3  ;;  %v7178_v3 = vld [vmem:[%s11501_s5 + $0x33c] ss:$40 sps:$4 sm:$0xff]   ;;  %v7179_v57 = vld [vmem:[%s11501_s5 + $0x838] ss:$40 sps:$4 sm:$0xff]  }
 0x4b1   :  { %v3799_v24 = vpop.permute.xlu1 %3798 }
 0x4b2   :  { %3801 = vst.msk [vmem:[#allocation3 + $0xe] sm:$0x3] %vm11903_vm8, %v3799_v24  ;;  %v3749_v16 = vpop.permute.xlu0 %3748  ;;  %v7176_v24 = vld [vmem:[%s11501_s5 + $0x338] ss:$40 sps:$4 sm:$0xff]  }
 0x4b3   :  { %3752 = vst.msk [vmem:[#allocation3 + $0xc] sm:$0x3] %vm3751_vm4, %v3749_v16  ;;  %v7184_v16 = vld [vmem:[%s11501_s5 + $0x38c] ss:$40 sps:$4 sm:$0xff]   ;;  %vm6309_vm4 = vmor %vm6308_vm3, %vm6307_vm7 }
 0x4b5   :  { %v3810_v58 = vpop.permute.xlu1 %3809 }
 0x4b6   :  { %3812 = vst.msk [vmem:[#allocation3 + $0xe] sm:$0x3] %vm11905_vm15, %v3810_v58  ;;  %v3863_v2 = vpop.permute.xlu0 %3862  ;;  %v7187_v58 = vld [vmem:[%s11501_s5 + $0x88c] ss:$40 sps:$4 sm:$0xff]  }
 0x4b7   :  { %3841 = vst.msk [vmem:[#allocation3 + $0xe] sm:$0xf] %vm9911_vm0, %v3839_v27  ;;  %vm11910_vm0 = vcmask 1014784   ;;  %v7182_v27 = vld [vmem:[%s11501_s5 + $0x388] ss:$40 sps:$4 sm:$0xff]  }
 0x4b9   :  { %v3850_v34 = vpop.permute.xlu1 %3849 }
 0x4ba   :  { %3852 = vst.msk [vmem:[#allocation3 + $0x10] sm:$0x3] %vm11907_vm9, %v3850_v34  ;;  %v3874_v28 = vpop.permute.xlu0 %3873  ;;  %v7193_v34 = vld [vmem:[%s11501_s5 + $0x8dc] ss:$40 sps:$4 sm:$0xff]  }
 0x4bb   :  { %3865 = vst.msk [vmem:[#allocation3 + $0x10] sm:$0x3] %vm11908_vm10, %v3863_v2  ;;  %v7185_v2 = vld [vmem:[%s11501_s5 + $0x888] ss:$40 sps:$4 sm:$0xff]  }
 0x4bc   :  { %3876 = vst.msk [vmem:[#allocation3 + $0x10] sm:$0x3] %vm11909_vm2, %v3874_v28  ;;  %v7188_v28 = vld [vmem:[%s11501_s5 + $0x3d8] ss:$40 sps:$4 sm:$0xff]  }
 0x4bd   :  { %v3912_v62 = vpop.permute.xlu1 %3911 }
 0x4be   :  { %v3913_v42 = vrot.slane %v3912_v62, 6  ;;  %v3918_v18 = vld [vmem:[#allocation3 + $0x8] sm:$0xff] }
 0x4bf   :  { %v3947_v45 = vrot.slane %v3918_v18, %v11880_v48  ;;  %v3940_v53 = vcombine.high %v3918_v18, %v3918_v18  ;;  %v7199_v18 = vld [vmem:[%s11501_s5 + $0x92c] ss:$40 sps:$4 sm:$0xff]  }
 0x4c0   :  { %v3914_v60 = vsel %vm11910_vm0, %v3913_v42, %v3912_v62  ;;  %v7191_v62 = vld [vmem:[%s11501_s5 + $0x8d8] ss:$40 sps:$4 sm:$0xff]   ;;  %v7196_v42 = vld [vmem:[%s11501_s5 + $0x42c] ss:$40 sps:$4 sm:$0xff]  }
 0x4c1   :  { %v3901_v63 = vpop.permute.xlu1 %3900  ;;  %v3955_v40 = vcombine.high %v3947_v45, %v3947_v45  ;;  %v11073_v11 = vrot.slane %v3940_v53, %v11880_v48  ;;  %v3979_v0 = vpack.c.bf16 %v3947_v45, %v3947_v45  ;;  %v7194_v45 = vld [vmem:[%s11501_s5 + $0x428] ss:$40 sps:$4 sm:$0xff]  }
 0x4c2   :  { %3903 = vst.msk [vmem:[#allocation3 + $0x10] sm:$0x3] %vm11911_vm12, %v3901_v63  ;;  %v7197_v53 = vld [vmem:[%s11501_s5 + $0x928] ss:$40 sps:$4 sm:$0xff]   ;;  %v7202_v63 = vld [vmem:[%s11501_s5 + $0x47c] ss:$40 sps:$4 sm:$0xff]  }
 0x4c3   :  { %3916 = vst.msk [vmem:[#allocation3 + $0x10] sm:$0xf] %vm9980_vm11, %v3914_v60  ;;  %v3980_v30 = vpack.c.bf16 %v3955_v40, %v3955_v40  ;;  %v3956_v47 = vcombine.high %v11073_v11, %v11073_v11  ;;  %v7203_v40 = vld [vmem:[%s11501_s5 + $0x524] ss:$40 sps:$4 sm:$0xff]   ;;  %vm5777_vm11 = vcmask 195584  }
 0x4c5   :  { %5985 = vmatprep.mubr.bf16.mxu0 %v3980_v30  ;;  %6190 = vmatprep.mubr.bf16.mxu1 %v3980_v30  ;;  %v3982_v31 = vpack.c.bf16 %v3956_v47, %v3956_v47  ;;  %v7200_v30 = vld [vmem:[%s11501_s5 + $0x478] ss:$40 sps:$4 sm:$0xff]   ;;  %v7208_v47 = vld [vmem:[%s11501_s5 + $0x4cc] ss:$40 sps:$4 sm:$0xff]  }
 0x4c6   :  { %5986 = vmatmul.mubr.bf16.vlgmr.msra.gmra.mrb[0].mxu0 %v3979_v0  ;;  %6191 = vmatmul.mubr.bf16.vlgmr.msra.gmra.mrb[0].mxu1 %v3979_v0  ;;  %v7209_v0 = vld [vmem:[%s11501_s5 + $0x574] ss:$40 sps:$4 sm:$0xff]  }
 0x4c7   :  { %5995 = vmatpush1.bf16.xpose.msra.mxu0 %v7115_v25  ;;  %6200 = vmatpush1.bf16.xpose.msra.mxu1 %v7118_v38  ;;  %v7205_v25 = vld [vmem:[%s11501_s5 + $0x520] ss:$40 sps:$4 sm:$0xff]   ;;  %v3981_v38 = vpack.c.bf16 %v11073_v11, %v11073_v11 }
 0x4c8   :  { %6026 = vmatprep.mubr.bf16.mxu0 %v3982_v31  ;;  %6231 = vmatprep.mubr.bf16.mxu1 %v3982_v31  ;;  %v7206_v11 = vld [vmem:[%s11501_s5 + $0x4c8] ss:$40 sps:$4 sm:$0xff]  }
 0x4c9   :  { %5996 = vmatprep.subr.bf16.mxu0 %v7124_v33  ;;  %6201 = vmatprep.subr.bf16.mxu1 %v7127_v10  ;;  %v7211_v33 = vld [vmem:[%s11501_s5 + $0x570] ss:$40 sps:$4 sm:$0xff]   ;;  %v7212_v10 = vld [vmem:[%s11501_s5 + $0x24] ss:$40 sps:$4 sm:$0xff]  }
 0x4ca   :  { %v11249_v60 = vld.sshfl [vmem:[#allocation3 + $0x10] sm:$0x33 pattern:$0x76325410] }
 0x4cb   :  { %v3964_v32 = vcombine.high %v11249_v60, %v11249_v60 }
 0x4cd   :  { %v3984_v31 = vpack.c.bf16 %v3964_v32, %v3964_v32  ;;  %v7290_v32 = vld [vmem:[%s11501_s5 + $0x484] ss:$40 sps:$4 sm:$0xff]  }
 0x4cf   :  { %5997 = vmatpush1.bf16.xpose.msra.mxu0 %v7122_v22  ;;  %6202 = vmatpush1.bf16.xpose.msra.mxu1 %v7125_v7  ;;  %v7214_v22 = vld [vmem:[%s11501_s5 + $0x5c4] ss:$40 sps:$4 sm:$0xff]   ;;  %v7216_v7 = vld [vmem:[%s11501_s5 + $0x20] ss:$40 sps:$4 sm:$0xff]  }
 0x4d0   :  { %5998 = vmatprep.subr.bf16.mxu0 %v7130_v56  ;;  %6203 = vmatprep.subr.bf16.mxu1 %v7133_v26  ;;  %v7217_v56 = vld [vmem:[%s11501_s5 + $0x5c0] ss:$40 sps:$4 sm:$0xff]   ;;  %v7218_v26 = vld [vmem:[%s11501_s5 + $0x74] ss:$40 sps:$4 sm:$0xff]  }
 0x4d7   :  { %5999 = vmatpush1.bf16.xpose.msra.mxu0 %v7128_v5  ;;  %6204 = vmatpush1.bf16.xpose.msra.mxu1 %v7131_v49  ;;  %v7220_v5 = vld [vmem:[%s11501_s5 + $0x614] ss:$40 sps:$4 sm:$0xff]   ;;  %v7222_v49 = vld [vmem:[%s11501_s5 + $0x70] ss:$40 sps:$4 sm:$0xff]  }
 0x4d8   :  { %6000 = vmatprep.subr.bf16.mxu0 %v7136_v54  ;;  %6205 = vmatprep.subr.bf16.mxu1 %v7139_v1  ;;  %v7223_v54 = vld [vmem:[%s11501_s5 + $0x610] ss:$40 sps:$4 sm:$0xff]   ;;  %v7224_v1 = vld [vmem:[%s11501_s5 + $0xc4] ss:$40 sps:$4 sm:$0xff]  }
 0x4df   :  { %6001 = vmatpush1.bf16.xpose.msra.mxu0 %v7134_v8  ;;  %6206 = vmatpush1.bf16.xpose.msra.mxu1 %v7137_v61  ;;  %v7226_v8 = vld [vmem:[%s11501_s5 + $0x664] ss:$40 sps:$4 sm:$0xff]   ;;  %v7228_v61 = vld [vmem:[%s11501_s5 + $0xc0] ss:$40 sps:$4 sm:$0xff]  }
 0x4e0   :  { %6002 = vmatprep.subr.bf16.mxu0 %v7142_v12  ;;  %6207 = vmatprep.subr.bf16.mxu1 %v7145_v4  ;;  %v7229_v12 = vld [vmem:[%s11501_s5 + $0x660] ss:$40 sps:$4 sm:$0xff]   ;;  %v7230_v4 = vld [vmem:[%s11501_s5 + $0x114] ss:$40 sps:$4 sm:$0xff]  }
 0x4e7   :  { %6003 = vmatpush1.bf16.xpose.msra.mxu0 %v7140_v39  ;;  %6208 = vmatpush1.bf16.xpose.msra.mxu1 %v7143_v51  ;;  %v7232_v39 = vld [vmem:[%s11501_s5 + $0x6b4] ss:$40 sps:$4 sm:$0xff]   ;;  %v7234_v51 = vld [vmem:[%s11501_s5 + $0x110] ss:$40 sps:$4 sm:$0xff]  }
 0x4e8   :  { %6004 = vmatprep.subr.bf16.mxu0 %v7148_v9  ;;  %6209 = vmatprep.subr.bf16.mxu1 %v7151_v52  ;;  %v7235_v9 = vld [vmem:[%s11501_s5 + $0x6b0] ss:$40 sps:$4 sm:$0xff]   ;;  %v7236_v52 = vld [vmem:[%s11501_s5 + $0x164] ss:$40 sps:$4 sm:$0xff]  }
 0x4ef   :  { %6005 = vmatpush1.bf16.xpose.msra.mxu0 %v7146_v35  ;;  %6210 = vmatpush1.bf16.xpose.msra.mxu1 %v7149_v41  ;;  %v7238_v35 = vld [vmem:[%s11501_s5 + $0x704] ss:$40 sps:$4 sm:$0xff]   ;;  %v7240_v41 = vld [vmem:[%s11501_s5 + $0x160] ss:$40 sps:$4 sm:$0xff]  }
 0x4f0   :  { %6006 = vmatprep.subr.bf16.mxu0 %v7154_v6  ;;  %6211 = vmatprep.subr.bf16.mxu1 %v7157_v46  ;;  %v7241_v6 = vld [vmem:[%s11501_s5 + $0x700] ss:$40 sps:$4 sm:$0xff]   ;;  %v7242_v46 = vld [vmem:[%s11501_s5 + $0x1b4] ss:$40 sps:$4 sm:$0xff]  }
 0x4f7   :  { %6007 = vmatpush1.bf16.xpose.msra.mxu0 %v7152_v44  ;;  %6212 = vmatpush1.bf16.xpose.msra.mxu1 %v7155_v29  ;;  %v7244_v44 = vld [vmem:[%s11501_s5 + $0x754] ss:$40 sps:$4 sm:$0xff]   ;;  %v7246_v29 = vld [vmem:[%s11501_s5 + $0x1b0] ss:$40 sps:$4 sm:$0xff]  }
 0x4f8   :  { %6008 = vmatprep.subr.bf16.mxu0 %v7160_v14  ;;  %6213 = vmatprep.subr.bf16.mxu1 %v7163_v19  ;;  %v7247_v14 = vld [vmem:[%s11501_s5 + $0x750] ss:$40 sps:$4 sm:$0xff]   ;;  %v7248_v19 = vld [vmem:[%s11501_s5 + $0x204] ss:$40 sps:$4 sm:$0xff]  }
 0x4ff   :  { %6009 = vmatpush1.bf16.xpose.msra.mxu0 %v7158_v50  ;;  %6214 = vmatpush1.bf16.xpose.msra.mxu1 %v7161_v23  ;;  %v7250_v50 = vld [vmem:[%s11501_s5 + $0x7a4] ss:$40 sps:$4 sm:$0xff]   ;;  %v7252_v23 = vld [vmem:[%s11501_s5 + $0x200] ss:$40 sps:$4 sm:$0xff]  }
 0x500   :  { %6010 = vmatprep.subr.bf16.mxu0 %v7166_v43  ;;  %6215 = vmatprep.subr.bf16.mxu1 %v7169_v59  ;;  %v7253_v43 = vld [vmem:[%s11501_s5 + $0x7a0] ss:$40 sps:$4 sm:$0xff]   ;;  %v7254_v59 = vld [vmem:[%s11501_s5 + $0x254] ss:$40 sps:$4 sm:$0xff]  }
 0x507   :  { %6011 = vmatpush1.bf16.xpose.msra.mxu0 %v7164_v55  ;;  %6216 = vmatpush1.bf16.xpose.msra.mxu1 %v7167_v17  ;;  %v7256_v55 = vld [vmem:[%s11501_s5 + $0x7f4] ss:$40 sps:$4 sm:$0xff]   ;;  %v7258_v17 = vld [vmem:[%s11501_s5 + $0x250] ss:$40 sps:$4 sm:$0xff]  }
 0x508   :  { %6012 = vmatprep.subr.bf16.mxu0 %v7172_v20  ;;  %6217 = vmatprep.subr.bf16.mxu1 %v7175_v13  ;;  %v7259_v20 = vld [vmem:[%s11501_s5 + $0x7f0] ss:$40 sps:$4 sm:$0xff]   ;;  %v7260_v13 = vld [vmem:[%s11501_s5 + $0x2a4] ss:$40 sps:$4 sm:$0xff]  }
 0x50f   :  { %6013 = vmatpush1.bf16.xpose.msra.mxu0 %v7170_v37  ;;  %6218 = vmatpush1.bf16.xpose.msra.mxu1 %v7173_v21  ;;  %v7262_v37 = vld [vmem:[%s11501_s5 + $0x844] ss:$40 sps:$4 sm:$0xff]   ;;  %v7264_v21 = vld [vmem:[%s11501_s5 + $0x2a0] ss:$40 sps:$4 sm:$0xff]  }
 0x510   :  { %6014 = vmatprep.subr.bf16.mxu0 %v7178_v3  ;;  %6219 = vmatprep.subr.bf16.mxu1 %v7181_v36  ;;  %v7265_v3 = vld [vmem:[%s11501_s5 + $0x840] ss:$40 sps:$4 sm:$0xff]   ;;  %v7266_v36 = vld [vmem:[%s11501_s5 + $0x2f4] ss:$40 sps:$4 sm:$0xff]  }
 0x517   :  { %6015 = vmatpush1.bf16.xpose.msra.mxu0 %v7176_v24  ;;  %6220 = vmatpush1.bf16.xpose.msra.mxu1 %v7179_v57  ;;  %v7268_v24 = vld [vmem:[%s11501_s5 + $0x894] ss:$40 sps:$4 sm:$0xff]   ;;  %v7270_v57 = vld [vmem:[%s11501_s5 + $0x2f0] ss:$40 sps:$4 sm:$0xff]  }
 0x518   :  { %6016 = vmatprep.subr.bf16.mxu0 %v7184_v16  ;;  %6221 = vmatprep.subr.bf16.mxu1 %v7187_v58  ;;  %v7271_v16 = vld [vmem:[%s11501_s5 + $0x890] ss:$40 sps:$4 sm:$0xff]   ;;  %v7272_v58 = vld [vmem:[%s11501_s5 + $0x344] ss:$40 sps:$4 sm:$0xff]  }
 0x51f   :  { %6017 = vmatpush1.bf16.xpose.msra.mxu0 %v7182_v27  ;;  %6222 = vmatpush1.bf16.xpose.msra.mxu1 %v7185_v2  ;;  %v7274_v27 = vld [vmem:[%s11501_s5 + $0x8e4] ss:$40 sps:$4 sm:$0xff]   ;;  %v7276_v2 = vld [vmem:[%s11501_s5 + $0x340] ss:$40 sps:$4 sm:$0xff]  }
 0x520   :  { %6018 = vmatprep.subr.bf16.mxu0 %v7190_v15  ;;  %6223 = vmatprep.subr.bf16.mxu1 %v7193_v34  ;;  %v7277_v15 = vld [vmem:[%s11501_s5 + $0x8e0] ss:$40 sps:$4 sm:$0xff]   ;;  %v7278_v34 = vld [vmem:[%s11501_s5 + $0x394] ss:$40 sps:$4 sm:$0xff]  }
 0x527   :  { %6019 = vmatpush1.bf16.xpose.msra.mxu0 %v7188_v28  ;;  %6224 = vmatpush1.bf16.xpose.msra.mxu1 %v7191_v62  ;;  %v7280_v28 = vld [vmem:[%s11501_s5 + $0x934] ss:$40 sps:$4 sm:$0xff]   ;;  %v7282_v62 = vld [vmem:[%s11501_s5 + $0x390] ss:$40 sps:$4 sm:$0xff]  }
 0x528   :  { %6020 = vmatprep.subr.bf16.mxu0 %v7196_v42  ;;  %6225 = vmatprep.subr.bf16.mxu1 %v7199_v18  ;;  %v7283_v42 = vld [vmem:[%s11501_s5 + $0x930] ss:$40 sps:$4 sm:$0xff]   ;;  %v7284_v18 = vld [vmem:[%s11501_s5 + $0x3e4] ss:$40 sps:$4 sm:$0xff]  }
 0x52f   :  { %6021 = vmatpush1.bf16.xpose.msra.mxu0 %v7194_v45  ;;  %6226 = vmatpush1.bf16.xpose.msra.mxu1 %v7197_v53  ;;  %v7286_v45 = vld [vmem:[%s11501_s5 + $0x3e0] ss:$40 sps:$4 sm:$0xff]   ;;  %v7287_v53 = vld [vmem:[%s11501_s5 + $0x434] ss:$40 sps:$4 sm:$0xff]  }
 0x530   :  { %6022 = vmatprep.subr.bf16.mxu0 %v7202_v63  ;;  %6756 = vmatprep.subr.msk.bf16.mxu1 %vm5777_vm11, %v7203_v40  ;;  %v3983_v63 = vpack.c.bf16 %v11249_v60, %v11249_v60  ;;  %v7289_v40 = vld [vmem:[%s11501_s5 + $0x430] ss:$40 sps:$4 sm:$0xff]   ;;  %v7293_v60 = vld [vmem:[%s11501_s5 + $0x4d4] ss:$40 sps:$4 sm:$0xff]  }
 0x536   :  { %6232 = vmatmul.mubr.bf16.vlgmr.msra.gmra.mrb[0].mxu1 %v3981_v38 }
 0x537   :  { %6023 = vmatpush1.bf16.xpose.msra.mxu0 %v7200_v30  ;;  %6241 = vmatpush1.bf16.xpose.msra.mxu1 %v7205_v25  ;;  %v7292_v30 = vld [vmem:[%s11501_s5 + $0x480] ss:$40 sps:$4 sm:$0xff]   ;;  %v7295_v25 = vld [vmem:[%s11501_s5 + $0x4d0] ss:$40 sps:$4 sm:$0xff]   ;;  %s7420_s5 = smov [#allocation12]  }
 0x538   :  { %6770 = vmatprep.mubr.msk.bf16.mxu1 %vm5777_vm11, %v3984_v31  ;;  %6024 = vmatprep.subr.bf16.mxu0 %v7208_v47 }
 0x539   :  { %6757 = vmatprep.subr.msk.bf16.mxu1 %vm5777_vm11, %v7209_v0  ;;  %v4285_v0 = vld [vmem:[%s11502_s6] sm:$0xf]  ;;  %s6317_s6 = sshll.u32 %s7420_s5, 4  ;;  %s6318_s6 = int_to_ptr.vmem [resolvable:$true] %s6317_s6 }
 0x53a   :  { %s7350_s21 = scalar_lea.vmem %s6318_s6, 128  ;;  %p7355_p7 = scmp.lt.s32.totalorder %s6318_s6, %s6318_s6 }
 0x53b   :  { %p7351_p6 = scmp.ne.s32.totalorder %s6318_s6, %s7350_s21  ;;  %p7356_p8 = scmp.lt.s32.totalorder %s7350_s21, %s7350_s21 }
 0x53d   :  { %p7357_p9 = por %p7356_p8, %p7355_p7 }
 0x53f   :  { %6025 = vmatpush1.bf16.xpose.msra.mxu0 %v7206_v11  ;;  %6243 = vmatpush1.bf16.xpose.msra.mxu1 %v7211_v33  ;;  %p7358_p10 = pnand %p7357_p9, %p7351_p6 }
 0x540   :  { %6739 = vmatprep.subr.msk.bf16.mxu0 %vm5777_vm11, %v7212_v10  ;;  %6758 = vmatprep.subr.msk.bf16.mxu1 %vm5777_vm11, %v7214_v22 }
 0x546   :  { %6027 = vmatmul.mubr.bf16.vlgmr.msra.gmra.mrb[0].mxu0 %v3981_v38  ;;  %v11913_v38 = vld [vmem:[#allocation65_spill] sm:$0xff] }
 0x547   :  { %6036 = vmatpush1.bf16.xpose.msra.mxu0 %v7216_v7  ;;  %6755 = vmatprep.mubr.msk.bf16.mxu0 %vm5777_vm11, %v3984_v31  ;;  %v4297_v47 = vsub.s32 2, %v11913_v38  ;;  %v4301_v31 = vsub.s32 3, %v11913_v38 }
 0x548   :  { %6245 = vmatpush1.bf16.xpose.msra.mxu1 %v7217_v56  ;;  %6740 = vmatprep.subr.msk.bf16.mxu0 %vm5777_vm11, %v7218_v26 }
 0x549   :  { %6759 = vmatprep.subr.msk.bf16.mxu1 %vm5777_vm11, %v7220_v5  ;;  %v4298_v11 = vrot.slane %v4285_v0, %v4297_v47  ;;  %v4302_v33 = vrot.slane %v4285_v0, %v4301_v31 }
 0x54f   :  { %6038 = vmatpush1.bf16.xpose.msra.mxu0 %v7222_v49 }
 0x550   :  { %6247 = vmatpush1.bf16.xpose.msra.mxu1 %v7223_v54  ;;  %6741 = vmatprep.subr.msk.bf16.mxu0 %vm5777_vm11, %v7224_v1  ;;  %v4289_v54 = vsub.s32 0, %v11913_v38  ;;  %v4293_v1 = vsub.s32 1, %v11913_v38 }
 0x551   :  { %6760 = vmatprep.subr.msk.bf16.mxu1 %vm5777_vm11, %v7226_v8 }
 0x552   :  { %v4290_v8 = vrot.slane %v4285_v0, %v4289_v54 }
 0x557   :  { %6040 = vmatpush1.bf16.xpose.msra.mxu0 %v7228_v61  ;;  %v4294_v61 = vrot.slane %v4285_v0, %v4293_v1 }
 0x558   :  { %6249 = vmatpush1.bf16.xpose.msra.mxu1 %v7229_v12  ;;  %6742 = vmatprep.subr.msk.bf16.mxu0 %vm5777_vm11, %v7230_v4 }
 0x559   :  { %6761 = vmatprep.subr.msk.bf16.mxu1 %vm5777_vm11, %v7232_v39 }
 0x55f   :  { %6042 = vmatpush1.bf16.xpose.msra.mxu0 %v7234_v51 }
 0x560   :  { %6251 = vmatpush1.bf16.xpose.msra.mxu1 %v7235_v9  ;;  %6743 = vmatprep.subr.msk.bf16.mxu0 %vm5777_vm11, %v7236_v52 }
 0x561   :  { %6762 = vmatprep.subr.msk.bf16.mxu1 %vm5777_vm11, %v7238_v35 }
 0x567   :  { %6044 = vmatpush1.bf16.xpose.msra.mxu0 %v7240_v41 }
 0x568   :  { %6253 = vmatpush1.bf16.xpose.msra.mxu1 %v7241_v6  ;;  %6744 = vmatprep.subr.msk.bf16.mxu0 %vm5777_vm11, %v7242_v46 }
 0x569   :  { %6763 = vmatprep.subr.msk.bf16.mxu1 %vm5777_vm11, %v7244_v44 }
 0x56f   :  { %6046 = vmatpush1.bf16.xpose.msra.mxu0 %v7246_v29 }
 0x570   :  { %6255 = vmatpush1.bf16.xpose.msra.mxu1 %v7247_v14  ;;  %6745 = vmatprep.subr.msk.bf16.mxu0 %vm5777_vm11, %v7248_v19 }
 0x571   :  { %6764 = vmatprep.subr.msk.bf16.mxu1 %vm5777_vm11, %v7250_v50 }
 0x577   :  { %6048 = vmatpush1.bf16.xpose.msra.mxu0 %v7252_v23 }
 0x578   :  { %6257 = vmatpush1.bf16.xpose.msra.mxu1 %v7253_v43  ;;  %6746 = vmatprep.subr.msk.bf16.mxu0 %vm5777_vm11, %v7254_v59 }
 0x579   :  { %6765 = vmatprep.subr.msk.bf16.mxu1 %vm5777_vm11, %v7256_v55 }
 0x57f   :  { %6050 = vmatpush1.bf16.xpose.msra.mxu0 %v7258_v17 }
 0x580   :  { %6259 = vmatpush1.bf16.xpose.msra.mxu1 %v7259_v20  ;;  %6747 = vmatprep.subr.msk.bf16.mxu0 %vm5777_vm11, %v7260_v13 }
 0x581   :  { %6766 = vmatprep.subr.msk.bf16.mxu1 %vm5777_vm11, %v7262_v37 }
 0x587   :  { %6052 = vmatpush1.bf16.xpose.msra.mxu0 %v7264_v21 }
 0x588   :  { %6261 = vmatpush1.bf16.xpose.msra.mxu1 %v7265_v3  ;;  %6748 = vmatprep.subr.msk.bf16.mxu0 %vm5777_vm11, %v7266_v36 }
 0x589   :  { %6767 = vmatprep.subr.msk.bf16.mxu1 %vm5777_vm11, %v7268_v24 }
 0x58f   :  { %6054 = vmatpush1.bf16.xpose.msra.mxu0 %v7270_v57 }
 0x590   :  { %6263 = vmatpush1.bf16.xpose.msra.mxu1 %v7271_v16  ;;  %6749 = vmatprep.subr.msk.bf16.mxu0 %vm5777_vm11, %v7272_v58 }
 0x591   :  { %6768 = vmatprep.subr.msk.bf16.mxu1 %vm5777_vm11, %v7274_v27 }
 0x597   :  { %6056 = vmatpush1.bf16.xpose.msra.mxu0 %v7276_v2 }
 0x598   :  { %6265 = vmatpush1.bf16.xpose.msra.mxu1 %v7277_v15  ;;  %6750 = vmatprep.subr.msk.bf16.mxu0 %vm5777_vm11, %v7278_v34 }
 0x599   :  { %6769 = vmatprep.subr.msk.bf16.mxu1 %vm5777_vm11, %v7280_v28 }
 0x59f   :  { %6058 = vmatpush1.bf16.xpose.msra.mxu0 %v7282_v62 }
 0x5a0   :  { %6267 = vmatpush1.bf16.xpose.msra.mxu1 %v7283_v42  ;;  %6751 = vmatprep.subr.msk.bf16.mxu0 %vm5777_vm11, %v7284_v18 }
 0x5a7   :  { %6273 = vmatmul.mubr.bf16.vlgmr.msra.gmra.mrb[0].mxu1 %v3983_v63  ;;  %6060 = vmatpush1.bf16.xpose.msra.mxu0 %v7286_v45 }
 0x5a8   :  { %6752 = vmatprep.subr.msk.bf16.mxu0 %vm5777_vm11, %v7287_v53 }
 0x5af   :  { %6062 = vmatpush1.bf16.xpose.msra.mxu0 %v7289_v40 }
 0x5b0   :  { %6753 = vmatprep.subr.msk.bf16.mxu0 %vm5777_vm11, %v7290_v32 }
 0x5b7   :  { %6064 = vmatpush1.bf16.xpose.msra.mxu0 %v7292_v30 }
 0x5b8   :  { %6754 = vmatprep.subr.msk.bf16.mxu0 %vm5777_vm11, %v7293_v60 }
 0x5bf   :  { %6066 = vmatpush1.bf16.xpose.msra.mxu0 %v7295_v25 }
 0x5c6   :  { %6068 = vmatmul.mubr.bf16.vlgmr.msra.gmra.mrb[0].mxu0 %v3983_v63 }
 0x67a   :  { %v6274_v10 = vpop.f32.mrb[0].mxu1 }
 0x67b   :  { %v6773_v22 = vadd.f32 %v6274_v10, %v4298_v11  ;;  %v6276_v7 = vpop.f32.mrb[1].mxu1 }
 0x67c   :  { %v6774_v56 = vadd.f32 %v6276_v7, %v4302_v33  ;;  %v6278_v26 = vpop.f32.mrb[2].mxu1 }
 0x67d   :  { %v6279_v5 = vpop.f32.mrb[3].mxu1 }
 0x67e   :  { %v6286_v49 = vcombine.low %v6773_v22, %v6774_v56 }
 0x680   :  { %v6300_v6 = vrot.slane %v6286_v49, %v11880_v48 }
 0x699   :  { %v6069_v12 = vpop.f32.mrb[0].mxu0 }
 0x69a   :  { %v6771_v4 = vadd.f32 %v6069_v12, %v4290_v8  ;;  %v6071_v39 = vpop.f32.mrb[1].mxu0 }
 0x69b   :  { %v6772_v51 = vadd.f32 %v6071_v39, %v4294_v61  ;;  %v6073_v9 = vpop.f32.mrb[2].mxu0 }
 0x69c   :  { %v6074_v52 = vpop.f32.mrb[3].mxu0 }
 0x69d   :  { %v6285_v35 = vcombine.low %v6771_v4, %v6772_v51 }
 0x69f   :  { %v6293_v41 = vrot.slane %v6285_v35, %v11880_v48 }
 0x6a1   :  { %v6301_v46 = vcombine.low %v6293_v41, %v6300_v6 }
 0x6a3   :  { %6310 = vst.msk [vmem:[#allocation12] sm:$0xff] %vm6309_vm4, %v6301_v46 }
 0x6a4   :  { %7361 = shalt.err (!%p7358_p10)
}
 0x6a5   :  { %s7362_s28 = scalar_lea.hbm %s11503_s7, 128 }
 0x6a6   :  { %p7363_p11 = scmp.ne.s32.totalorder %s11503_s7, %s7362_s28  ;;  %p7366_p12 = scmp.lt.u32.totalorder %s7362_s28, %s11503_s7 }
 0x6a8   :  { %p7368_p13 = pnand %p7366_p12, %p7363_p11 }
 0x6aa   :  { %7371 = shalt.err (!%p7368_p13)
}
 0x6ab   :  { %6320 = dma.vmem_to_hbm [thread:$0]  %s6318_s6, 128, %s11503_s7, [#allocation5]  }
 0x6ac   :  { %7378 = dma.done.wait [#allocation5], 128  }
 0x6ad   :  { %7379 = vsyncadd [#allocation5], 4294967168 }
 0x6ae   :  { %6324 = vsyncpa [#allocation5], 1 }
 0x6af   :  { %6325 = vsyncpa [#allocation6], 1 }
 0x6b0   :  { %6326 = vsyncpa [#allocation8], 1 }
 0x6b1   :  { %6327 = vsyncpa [#allocation11], 1 }

</bundles_post_ra>
